<compile_context>
chip_gen: v6e
topology: v6e:2x2x1
jax: 0.10.0
libtpu: 0.0.40
codegen_flags: <defaults>
</compile_context>

<pallas_src>
import functools

import jax
import jax.numpy as jnp
from jax.experimental import pallas as pl
from jax.experimental.pallas import tpu as pltpu

BN_EPS = 1e-5


def _elu(v, alpha):
    # exp only ever sees non-positive values -> no inf in the dead branch
    return jnp.where(v > 0, v, alpha * (jnp.exp(jnp.minimum(v, 0.0)) - 1.0))


# ----------------------------------------------------------------------------
# Fused block kernel: (BN-folded) 1x1 conv -> ELU(1.0) -> depthwise 3x3 pad=1
#                     -> ELU(0.1)  [+ optional per-channel sum / sum_sq stats]
# One batch image per grid step, channels-first (C, H, W) layout in VMEM.
# ----------------------------------------------------------------------------
def _block_core(x_ref, wpw_ref, bpw_ref, wdw_ref, bdw_ref, o_ref, stats_ref,
                *, H, W, cin, cout):
    x = x_ref[0]                         # (cin, H, W); W on lanes
    wpw = wpw_ref[...]                   # (cin, cout, 1, 1)  BN folded into W/b

    # ---- 1x1 conv as `cin` unrolled VPU broadcast-FMAs (skip the MXU: at
    # these channel counts a matmul pass would be almost entirely idle) ----
    acc = jnp.broadcast_to(bpw_ref[...], (cout, H, W))
    for ci in range(cin):
        acc = acc + wpw[ci] * x[ci][None, :, :]
    y = _elu(acc, 1.0)                   # SeparableConv2d's internal ELU (alpha=1)

    # ---- depthwise 3x3, padding=1: zero halo built in-register (no host pad) ----
    zc = jnp.zeros((cout, H, 1), jnp.float32)
    zr = jnp.zeros((cout, 1, W + 2), jnp.float32)
    xp = jnp.concatenate([zr, jnp.concatenate([zc, y, zc], axis=2), zr], axis=1)

    wdw = wdw_ref[...]                   # (9, cout, 1, 1)
    acc2 = jnp.broadcast_to(bdw_ref[...], (cout, H, W))
    t = 0
    for dh in range(3):
        for dj in range(3):
            acc2 = acc2 + xp[:, dh:dh + H, dj:dj + W] * wdw[t]
            t += 1
    z = _elu(acc2, 0.1)                  # double_conv's ELU(alpha=0.1)
    o_ref[...] = z[None]

    # ---- optional per-channel [sum, sum_sq] so the next BatchNorm's batch
    # statistics need no extra HBM pass over z ----
    if stats_ref is not None:
        @pl.when(pl.program_id(0) == 0)
        def _():
            stats_ref[...] = jnp.zeros_like(stats_ref)

        zsum = jnp.sum(jnp.sum(z, axis=2, keepdims=True), axis=1, keepdims=True)
        zsq = jnp.sum(jnp.sum(z * z, axis=2, keepdims=True), axis=1, keepdims=True)
        stats_ref[...] += jnp.concatenate([zsum, zsq], axis=2)


def _block_kernel_stats(x_ref, wpw_ref, bpw_ref, wdw_ref, bdw_ref, o_ref,
                        stats_ref, *, H, W, cin, cout):
    _block_core(x_ref, wpw_ref, bpw_ref, wdw_ref, bdw_ref, o_ref, stats_ref,
                H=H, W=W, cin=cin, cout=cout)


def _block_kernel(x_ref, wpw_ref, bpw_ref, wdw_ref, bdw_ref, o_ref,
                  *, H, W, cin, cout):
    _block_core(x_ref, wpw_ref, bpw_ref, wdw_ref, bdw_ref, o_ref, None,
                H=H, W=W, cin=cin, cout=cout)


def fused_block(x, w_pw, b_pw, w_dw, b_dw, *, with_stats):
    """x: (N, cin, H, W) f32. w_pw: (cout, cin) BN-folded. w_dw: (cout, 3, 3)."""
    N, cin, H, W = x.shape
    cout = w_pw.shape[0]

    # kernel-friendly parameter layouts (one-time XLA reshapes, negligible)
    wpw_k = jnp.transpose(w_pw, (1, 0)).reshape(cin, cout, 1, 1)
    bpw_k = b_pw.reshape(cout, 1, 1)
    wdw_k = jnp.transpose(w_dw, (1, 2, 0)).reshape(9, cout, 1, 1)
    bdw_k = b_dw.reshape(cout, 1, 1)

    in_specs = [
        pl.BlockSpec((1, cin, H, W), lambda n: (n, 0, 0, 0)),
        pl.BlockSpec((cin, cout, 1, 1), lambda n: (0, 0, 0, 0)),
        pl.BlockSpec((cout, 1, 1), lambda n: (0, 0, 0)),
        pl.BlockSpec((9, cout, 1, 1), lambda n: (0, 0, 0, 0)),
        pl.BlockSpec((cout, 1, 1), lambda n: (0, 0, 0)),
    ]
    if with_stats:
        kernel = functools.partial(_block_kernel_stats, H=H, W=W, cin=cin, cout=cout)
        out_shape = (jax.ShapeDtypeStruct((N, cout, H, W), jnp.float32),
                     jax.ShapeDtypeStruct((cout, 1, 2), jnp.float32))
        out_specs = (pl.BlockSpec((1, cout, H, W), lambda n: (n, 0, 0, 0)),
                     pl.BlockSpec((cout, 1, 2), lambda n: (0, 0, 0)))
        dims = ("arbitrary",)  # stats output is a VMEM-resident accumulator over the batch axis
    else:
        kernel = functools.partial(_block_kernel, H=H, W=W, cin=cin, cout=cout)
        out_shape = jax.ShapeDtypeStruct((N, cout, H, W), jnp.float32)
        out_specs = pl.BlockSpec((1, cout, H, W), lambda n: (n, 0, 0, 0))
        dims = ("parallel",)

    # TODO(synk): for large H,W (e.g. 512x512 UNet inputs) add a spatial grid
    # axis with a 1-row halo so per-step blocks stay well under VMEM (v7x:
    # 64 MiB) and both TensorCores stay fed; whole-image blocks are fine here.
    return pl.pallas_call(
        kernel,
        out_shape=out_shape,
        grid=(N,),
        in_specs=in_specs,
        out_specs=out_specs,
        compiler_params=pltpu.CompilerParams(dimension_semantics=dims),
    )(x, wpw_k, bpw_k, wdw_k, bdw_k)


# ----------------------------------------------------------------------------
# inconv forward
# ----------------------------------------------------------------------------
def _fold_bn_into_pointwise(w, b, gamma, beta, mean, var):
    # BN(x) = scale*x + shift ; Conv1x1(BN(x)) = (W*scale) x + (W@shift + b)
    scale = gamma * jax.lax.rsqrt(var + BN_EPS)
    shift = beta - mean * scale
    return w * scale[None, :], w @ shift + b


def inconv_forward(x_nchw, p):
    x = x_nchw.astype(jnp.float32)
    N, cin, H, W = x.shape
    count = N * H * W

    # BN1 batch stats over the raw input, single pass (mean and E[x^2] together)
    m1 = jnp.mean(x, axis=(0, 2, 3))
    v1 = jnp.mean(x * x, axis=(0, 2, 3)) - m1 * m1
    w1, b1 = _fold_bn_into_pointwise(p["pw1_w"], p["pw1_b"], p["bn1_g"], p["bn1_b"], m1, v1)

    z, stats = fused_block(x, w1, b1, p["dw1_w"], p["dw1_b"], with_stats=True)

    # BN2 batch stats came back from the block-1 kernel (per-channel sum / sum_sq)
    m2 = stats[:, 0, 0] / count
    v2 = stats[:, 0, 1] / count - m2 * m2
    w2, b2 = _fold_bn_into_pointwise(p["pw2_w"], p["pw2_b"], p["bn2_g"], p["bn2_b"], m2, v2)

    return fused_block(z, w2, b2, p["dw2_w"], p["dw2_b"], with_stats=False)


# ----------------------------------------------------------------------------
# Pure-JAX reference (straight transcription of the PyTorch module) for checking
# ----------------------------------------------------------------------------
def reference_forward(x_nchw, p):
    x = x_nchw.astype(jnp.float32)

    def elu(v, a):
        return jnp.where(v > 0, v, a * (jnp.exp(jnp.minimum(v, 0.0)) - 1.0))

    def bn(v, g, b):
        m = v.mean((0, 2, 3), keepdims=True)
        var = ((v - m) ** 2).mean((0, 2, 3), keepdims=True)
        return (v - m) / jnp.sqrt(var + BN_EPS) * g.reshape(1, -1, 1, 1) + b.reshape(1, -1, 1, 1)

    def pw(v, w, b):
        return jnp.einsum("nchw,oc->nohw", v, w) + b.reshape(1, -1, 1, 1)

    def dw(v, k, b):
        N, C, H, W = v.shape
        vp = jnp.pad(v, ((0, 0), (0, 0), (1, 1), (1, 1)))
        acc = jnp.zeros_like(v)
        for dh in range(3):
            for dj in range(3):
                acc = acc + vp[:, :, dh:dh + H, dj:dj + W] * k[:, dh, dj].reshape(1, -1, 1, 1)
        return acc + b.reshape(1, -1, 1, 1)

    y = elu(pw(bn(x, p["bn1_g"], p["bn1_b"]), p["pw1_w"], p["pw1_b"]), 1.0)
    z = elu(dw(y, p["dw1_w"], p["dw1_b"]), 0.1)
    u = elu(pw(bn(z, p["bn2_g"], p["bn2_b"]), p["pw2_w"], p["pw2_b"]), 1.0)
    return elu(dw(u, p["dw2_w"], p["dw2_b"]), 0.1)


# ----------------------------------------------------------------------------
# Deterministic parameter init (shapes match the PyTorch module, channels-first)
# ----------------------------------------------------------------------------
def init_params(key, in_ch, out_ch):
    ks = jax.random.split(key, 12)
    return {
        # nn.BatchNorm2d(in_ch)
        "bn1_g": 1.0 + 0.1 * jax.random.normal(ks[0], (in_ch,), jnp.float32),
        "bn1_b": 0.1 * jax.random.normal(ks[1], (in_ch,), jnp.float32),
        # SeparableConv2d: Conv2d(in_ch, out_ch, 1) -> (out_ch, in_ch)
        "pw1_w": jax.random.normal(ks[2], (out_ch, in_ch), jnp.float32) / jnp.sqrt(in_ch),
        "pw1_b": 0.1 * jax.random.normal(ks[3], (out_ch,), jnp.float32),
        # depthwise Conv2d(out_ch, out_ch, 3, groups=out_ch) -> (out_ch, 3, 3)
        "dw1_w": jax.random.normal(ks[4], (out_ch, 3, 3), jnp.float32) / 3.0,
        "dw1_b": 0.1 * jax.random.normal(ks[5], (out_ch,), jnp.float32),
        # nn.BatchNorm2d(out_ch)
        "bn2_g": 1.0 + 0.1 * jax.random.normal(ks[6], (out_ch,), jnp.float32),
        "bn2_b": 0.1 * jax.random.normal(ks[7], (out_ch,), jnp.float32),
        # SeparableConv2d(out_ch, out_ch)
        "pw2_w": jax.random.normal(ks[8], (out_ch, out_ch), jnp.float32) / jnp.sqrt(out_ch),
        "pw2_b": 0.1 * jax.random.normal(ks[9], (out_ch,), jnp.float32),
        "dw2_w": jax.random.normal(ks[10], (out_ch, 3, 3), jnp.float32) / 3.0,
        "dw2_b": 0.1 * jax.random.normal(ks[11], (out_ch,), jnp.float32),
    }


if __name__ == "__main__":
    key = jax.random.PRNGKey(0)
    kx, kp = jax.random.split(key)
    in_ch, out_ch = 4, 8
    x = jax.random.normal(kx, (2, in_ch, 16, 16), jnp.float32)  # NCHW, PyTorch convention
    params = init_params(kp, in_ch, out_ch)

    out = jax.block_until_ready(jax.jit(inconv_forward)(x, params))
    ref = jax.block_until_ready(reference_forward(x, params))

    assert out.shape == (2, out_ch, 16, 16), out.shape
    max_err = float(jnp.max(jnp.abs(out - ref)))
    assert max_err < 5e-3, f"max abs err too large: {max_err}"
    print("KERNEL_OK")
</pallas_src>

<mosaic_0001>
module attributes {stable_mosaic.version = 11 : i64} {
  func.func @_block_kernel_stats(%arg0: i32, %arg1: memref<1x4x16x16xf32, #tpu.memory_space<vmem>>, %arg2: memref<4x8x1x1xf32, #tpu.memory_space<vmem>>, %arg3: memref<8x1x1xf32, #tpu.memory_space<vmem>>, %arg4: memref<9x8x1x1xf32, #tpu.memory_space<vmem>>, %arg5: memref<8x1x1xf32, #tpu.memory_space<vmem>>, %arg6: memref<1x8x16x16xf32, #tpu.memory_space<vmem>>, %arg7: memref<8x1x2xf32, #tpu.memory_space<vmem>>) attributes {dimension_semantics = [#tpu.dimension_semantics<arbitrary>], iteration_bounds = array<i64: 2>, scalar_prefetch = 0 : i64, scratch_operands = 0 : i64, tpu.core_type = #tpu.core_type<tc>, window_params = [{transform_indices = @transform_0, window_bounds = array<i64: 1, 4, 16, 16>}, {pipeline_mode = #tpu.pipeline_mode<synchronous>, transform_indices = @transform_1, window_bounds = array<i64: 4, 8, 1, 1>}, {pipeline_mode = #tpu.pipeline_mode<synchronous>, transform_indices = @transform_2, window_bounds = array<i64: 8, 1, 1>}, {pipeline_mode = #tpu.pipeline_mode<synchronous>, transform_indices = @transform_3, window_bounds = array<i64: 9, 8, 1, 1>}, {pipeline_mode = #tpu.pipeline_mode<synchronous>, transform_indices = @transform_4, window_bounds = array<i64: 8, 1, 1>}, {transform_indices = @transform_5, window_bounds = array<i64: 1, 8, 16, 16>}, {pipeline_mode = #tpu.pipeline_mode<synchronous>, transform_indices = @transform_6, window_bounds = array<i64: 8, 1, 2>}]} {
    %c0 = arith.constant 0 : index
    %c0_0 = arith.constant 0 : index
    %c0_1 = arith.constant 0 : index
    %c0_2 = arith.constant 0 : index
    %0 = vector.load %arg1[%c0, %c0_0, %c0_1, %c0_2] : memref<1x4x16x16xf32, #tpu.memory_space<vmem>>, vector<1x4x16x16xf32>
    %1 = vector.shape_cast %0 : vector<1x4x16x16xf32> to vector<4x16x16xf32>
    %c0_3 = arith.constant 0 : index
    %c0_4 = arith.constant 0 : index
    %c0_5 = arith.constant 0 : index
    %c0_6 = arith.constant 0 : index
    %2 = vector.load %arg2[%c0_3, %c0_4, %c0_5, %c0_6] : memref<4x8x1x1xf32, #tpu.memory_space<vmem>>, vector<4x8x1x1xf32>
    %c0_7 = arith.constant 0 : index
    %c0_8 = arith.constant 0 : index
    %c0_9 = arith.constant 0 : index
    %3 = vector.load %arg3[%c0_7, %c0_8, %c0_9] : memref<8x1x1xf32, #tpu.memory_space<vmem>>, vector<8x1x1xf32>
    %4 = vector.shape_cast %3 : vector<8x1x1xf32> to vector<8x1x1xf32>
    %5 = vector.broadcast %4 : vector<8x1x1xf32> to vector<8x16x16xf32>
    %6 = vector.extract_strided_slice %2 {offsets = [0, 0, 0, 0], sizes = [1, 8, 1, 1], strides = [1, 1, 1, 1]} : vector<4x8x1x1xf32> to vector<1x8x1x1xf32>
    %7 = vector.shape_cast %6 : vector<1x8x1x1xf32> to vector<8x1x1xf32>
    %8 = vector.extract_strided_slice %1 {offsets = [0, 0, 0], sizes = [1, 16, 16], strides = [1, 1, 1]} : vector<4x16x16xf32> to vector<1x16x16xf32>
    %9 = vector.shape_cast %8 : vector<1x16x16xf32> to vector<16x16xf32>
    %10 = vector.shape_cast %9 : vector<16x16xf32> to vector<1x16x16xf32>
    %11 = vector.broadcast %7 : vector<8x1x1xf32> to vector<8x16x16xf32>
    %12 = vector.broadcast %10 : vector<1x16x16xf32> to vector<8x16x16xf32>
    %13 = arith.mulf %11, %12 : vector<8x16x16xf32>
    %14 = arith.addf %5, %13 : vector<8x16x16xf32>
    %15 = vector.extract_strided_slice %2 {offsets = [1, 0, 0, 0], sizes = [1, 8, 1, 1], strides = [1, 1, 1, 1]} : vector<4x8x1x1xf32> to vector<1x8x1x1xf32>
    %16 = vector.shape_cast %15 : vector<1x8x1x1xf32> to vector<8x1x1xf32>
    %17 = vector.extract_strided_slice %1 {offsets = [1, 0, 0], sizes = [1, 16, 16], strides = [1, 1, 1]} : vector<4x16x16xf32> to vector<1x16x16xf32>
    %18 = vector.shape_cast %17 : vector<1x16x16xf32> to vector<16x16xf32>
    %19 = vector.shape_cast %18 : vector<16x16xf32> to vector<1x16x16xf32>
    %20 = vector.broadcast %16 : vector<8x1x1xf32> to vector<8x16x16xf32>
    %21 = vector.broadcast %19 : vector<1x16x16xf32> to vector<8x16x16xf32>
    %22 = arith.mulf %20, %21 : vector<8x16x16xf32>
    %23 = arith.addf %14, %22 : vector<8x16x16xf32>
    %24 = vector.extract_strided_slice %2 {offsets = [2, 0, 0, 0], sizes = [1, 8, 1, 1], strides = [1, 1, 1, 1]} : vector<4x8x1x1xf32> to vector<1x8x1x1xf32>
    %25 = vector.shape_cast %24 : vector<1x8x1x1xf32> to vector<8x1x1xf32>
    %26 = vector.extract_strided_slice %1 {offsets = [2, 0, 0], sizes = [1, 16, 16], strides = [1, 1, 1]} : vector<4x16x16xf32> to vector<1x16x16xf32>
    %27 = vector.shape_cast %26 : vector<1x16x16xf32> to vector<16x16xf32>
    %28 = vector.shape_cast %27 : vector<16x16xf32> to vector<1x16x16xf32>
    %29 = vector.broadcast %25 : vector<8x1x1xf32> to vector<8x16x16xf32>
    %30 = vector.broadcast %28 : vector<1x16x16xf32> to vector<8x16x16xf32>
    %31 = arith.mulf %29, %30 : vector<8x16x16xf32>
    %32 = arith.addf %23, %31 : vector<8x16x16xf32>
    %33 = vector.extract_strided_slice %2 {offsets = [3, 0, 0, 0], sizes = [1, 8, 1, 1], strides = [1, 1, 1, 1]} : vector<4x8x1x1xf32> to vector<1x8x1x1xf32>
    %34 = vector.shape_cast %33 : vector<1x8x1x1xf32> to vector<8x1x1xf32>
    %35 = vector.extract_strided_slice %1 {offsets = [3, 0, 0], sizes = [1, 16, 16], strides = [1, 1, 1]} : vector<4x16x16xf32> to vector<1x16x16xf32>
    %36 = vector.shape_cast %35 : vector<1x16x16xf32> to vector<16x16xf32>
    %37 = vector.shape_cast %36 : vector<16x16xf32> to vector<1x16x16xf32>
    %38 = vector.broadcast %34 : vector<8x1x1xf32> to vector<8x16x16xf32>
    %39 = vector.broadcast %37 : vector<1x16x16xf32> to vector<8x16x16xf32>
    %40 = arith.mulf %38, %39 : vector<8x16x16xf32>
    %41 = arith.addf %32, %40 : vector<8x16x16xf32>
    %cst = arith.constant 0.000000e+00 : f32
    %42 = vector.broadcast %cst : f32 to vector<8x16x16xf32>
    %43 = arith.cmpf ogt, %41, %42 : vector<8x16x16xf32>
    %cst_10 = arith.constant 0.000000e+00 : f32
    %44 = vector.broadcast %cst_10 : f32 to vector<8x16x16xf32>
    %45 = arith.minimumf %41, %44 : vector<8x16x16xf32>
    %46 = math.exp %45 : vector<8x16x16xf32>
    %cst_11 = arith.constant 1.000000e+00 : f32
    %47 = vector.broadcast %cst_11 : f32 to vector<8x16x16xf32>
    %48 = arith.subf %46, %47 : vector<8x16x16xf32>
    %cst_12 = arith.constant 1.000000e+00 : f32
    %49 = vector.broadcast %cst_12 : f32 to vector<8x16x16xf32>
    %50 = arith.mulf %49, %48 : vector<8x16x16xf32>
    %51 = arith.select %43, %41, %50 : vector<8x16x16xi1>, vector<8x16x16xf32>
    %cst_13 = arith.constant 0.000000e+00 : f32
    %52 = vector.broadcast %cst_13 : f32 to vector<8x16x1xf32>
    %cst_14 = arith.constant 0.000000e+00 : f32
    %53 = vector.broadcast %cst_14 : f32 to vector<8x1x18xf32>
    %54 = tpu.concatenate %52, %51, %52 in 2 : vector<8x16x1xf32>, vector<8x16x16xf32>, vector<8x16x1xf32> -> vector<8x16x18xf32>
    %55 = tpu.concatenate %53, %54, %53 in 1 : vector<8x1x18xf32>, vector<8x16x18xf32>, vector<8x1x18xf32> -> vector<8x18x18xf32>
    %c0_15 = arith.constant 0 : index
    %c0_16 = arith.constant 0 : index
    %c0_17 = arith.constant 0 : index
    %c0_18 = arith.constant 0 : index
    %56 = vector.load %arg4[%c0_15, %c0_16, %c0_17, %c0_18] : memref<9x8x1x1xf32, #tpu.memory_space<vmem>>, vector<9x8x1x1xf32>
    %c0_19 = arith.constant 0 : index
    %c0_20 = arith.constant 0 : index
    %c0_21 = arith.constant 0 : index
    %57 = vector.load %arg5[%c0_19, %c0_20, %c0_21] : memref<8x1x1xf32, #tpu.memory_space<vmem>>, vector<8x1x1xf32>
    %58 = vector.shape_cast %57 : vector<8x1x1xf32> to vector<8x1x1xf32>
    %59 = vector.broadcast %58 : vector<8x1x1xf32> to vector<8x16x16xf32>
    %60 = vector.extract_strided_slice %55 {offsets = [0, 0, 0], sizes = [8, 16, 16], strides = [1, 1, 1]} : vector<8x18x18xf32> to vector<8x16x16xf32>
    %61 = vector.extract_strided_slice %56 {offsets = [0, 0, 0, 0], sizes = [1, 8, 1, 1], strides = [1, 1, 1, 1]} : vector<9x8x1x1xf32> to vector<1x8x1x1xf32>
    %62 = vector.shape_cast %61 : vector<1x8x1x1xf32> to vector<8x1x1xf32>
    %63 = vector.broadcast %62 : vector<8x1x1xf32> to vector<8x16x16xf32>
    %64 = arith.mulf %60, %63 : vector<8x16x16xf32>
    %65 = arith.addf %59, %64 : vector<8x16x16xf32>
    %66 = vector.extract_strided_slice %55 {offsets = [0, 0, 1], sizes = [8, 16, 16], strides = [1, 1, 1]} : vector<8x18x18xf32> to vector<8x16x16xf32>
    %67 = vector.extract_strided_slice %56 {offsets = [1, 0, 0, 0], sizes = [1, 8, 1, 1], strides = [1, 1, 1, 1]} : vector<9x8x1x1xf32> to vector<1x8x1x1xf32>
    %68 = vector.shape_cast %67 : vector<1x8x1x1xf32> to vector<8x1x1xf32>
    %69 = vector.broadcast %68 : vector<8x1x1xf32> to vector<8x16x16xf32>
    %70 = arith.mulf %66, %69 : vector<8x16x16xf32>
    %71 = arith.addf %65, %70 : vector<8x16x16xf32>
    %72 = vector.extract_strided_slice %55 {offsets = [0, 0, 2], sizes = [8, 16, 16], strides = [1, 1, 1]} : vector<8x18x18xf32> to vector<8x16x16xf32>
    %73 = vector.extract_strided_slice %56 {offsets = [2, 0, 0, 0], sizes = [1, 8, 1, 1], strides = [1, 1, 1, 1]} : vector<9x8x1x1xf32> to vector<1x8x1x1xf32>
    %74 = vector.shape_cast %73 : vector<1x8x1x1xf32> to vector<8x1x1xf32>
    %75 = vector.broadcast %74 : vector<8x1x1xf32> to vector<8x16x16xf32>
    %76 = arith.mulf %72, %75 : vector<8x16x16xf32>
    %77 = arith.addf %71, %76 : vector<8x16x16xf32>
    %78 = vector.extract_strided_slice %55 {offsets = [0, 1, 0], sizes = [8, 16, 16], strides = [1, 1, 1]} : vector<8x18x18xf32> to vector<8x16x16xf32>
    %79 = vector.extract_strided_slice %56 {offsets = [3, 0, 0, 0], sizes = [1, 8, 1, 1], strides = [1, 1, 1, 1]} : vector<9x8x1x1xf32> to vector<1x8x1x1xf32>
    %80 = vector.shape_cast %79 : vector<1x8x1x1xf32> to vector<8x1x1xf32>
    %81 = vector.broadcast %80 : vector<8x1x1xf32> to vector<8x16x16xf32>
    %82 = arith.mulf %78, %81 : vector<8x16x16xf32>
    %83 = arith.addf %77, %82 : vector<8x16x16xf32>
    %84 = vector.extract_strided_slice %55 {offsets = [0, 1, 1], sizes = [8, 16, 16], strides = [1, 1, 1]} : vector<8x18x18xf32> to vector<8x16x16xf32>
    %85 = vector.extract_strided_slice %56 {offsets = [4, 0, 0, 0], sizes = [1, 8, 1, 1], strides = [1, 1, 1, 1]} : vector<9x8x1x1xf32> to vector<1x8x1x1xf32>
    %86 = vector.shape_cast %85 : vector<1x8x1x1xf32> to vector<8x1x1xf32>
    %87 = vector.broadcast %86 : vector<8x1x1xf32> to vector<8x16x16xf32>
    %88 = arith.mulf %84, %87 : vector<8x16x16xf32>
    %89 = arith.addf %83, %88 : vector<8x16x16xf32>
    %90 = vector.extract_strided_slice %55 {offsets = [0, 1, 2], sizes = [8, 16, 16], strides = [1, 1, 1]} : vector<8x18x18xf32> to vector<8x16x16xf32>
    %91 = vector.extract_strided_slice %56 {offsets = [5, 0, 0, 0], sizes = [1, 8, 1, 1], strides = [1, 1, 1, 1]} : vector<9x8x1x1xf32> to vector<1x8x1x1xf32>
    %92 = vector.shape_cast %91 : vector<1x8x1x1xf32> to vector<8x1x1xf32>
    %93 = vector.broadcast %92 : vector<8x1x1xf32> to vector<8x16x16xf32>
    %94 = arith.mulf %90, %93 : vector<8x16x16xf32>
    %95 = arith.addf %89, %94 : vector<8x16x16xf32>
    %96 = vector.extract_strided_slice %55 {offsets = [0, 2, 0], sizes = [8, 16, 16], strides = [1, 1, 1]} : vector<8x18x18xf32> to vector<8x16x16xf32>
    %97 = vector.extract_strided_slice %56 {offsets = [6, 0, 0, 0], sizes = [1, 8, 1, 1], strides = [1, 1, 1, 1]} : vector<9x8x1x1xf32> to vector<1x8x1x1xf32>
    %98 = vector.shape_cast %97 : vector<1x8x1x1xf32> to vector<8x1x1xf32>
    %99 = vector.broadcast %98 : vector<8x1x1xf32> to vector<8x16x16xf32>
    %100 = arith.mulf %96, %99 : vector<8x16x16xf32>
    %101 = arith.addf %95, %100 : vector<8x16x16xf32>
    %102 = vector.extract_strided_slice %55 {offsets = [0, 2, 1], sizes = [8, 16, 16], strides = [1, 1, 1]} : vector<8x18x18xf32> to vector<8x16x16xf32>
    %103 = vector.extract_strided_slice %56 {offsets = [7, 0, 0, 0], sizes = [1, 8, 1, 1], strides = [1, 1, 1, 1]} : vector<9x8x1x1xf32> to vector<1x8x1x1xf32>
    %104 = vector.shape_cast %103 : vector<1x8x1x1xf32> to vector<8x1x1xf32>
    %105 = vector.broadcast %104 : vector<8x1x1xf32> to vector<8x16x16xf32>
    %106 = arith.mulf %102, %105 : vector<8x16x16xf32>
    %107 = arith.addf %101, %106 : vector<8x16x16xf32>
    %108 = vector.extract_strided_slice %55 {offsets = [0, 2, 2], sizes = [8, 16, 16], strides = [1, 1, 1]} : vector<8x18x18xf32> to vector<8x16x16xf32>
    %109 = vector.extract_strided_slice %56 {offsets = [8, 0, 0, 0], sizes = [1, 8, 1, 1], strides = [1, 1, 1, 1]} : vector<9x8x1x1xf32> to vector<1x8x1x1xf32>
    %110 = vector.shape_cast %109 : vector<1x8x1x1xf32> to vector<8x1x1xf32>
    %111 = vector.broadcast %110 : vector<8x1x1xf32> to vector<8x16x16xf32>
    %112 = arith.mulf %108, %111 : vector<8x16x16xf32>
    %113 = arith.addf %107, %112 : vector<8x16x16xf32>
    %cst_22 = arith.constant 0.000000e+00 : f32
    %114 = vector.broadcast %cst_22 : f32 to vector<8x16x16xf32>
    %115 = arith.cmpf ogt, %113, %114 : vector<8x16x16xf32>
    %cst_23 = arith.constant 0.000000e+00 : f32
    %116 = vector.broadcast %cst_23 : f32 to vector<8x16x16xf32>
    %117 = arith.minimumf %113, %116 : vector<8x16x16xf32>
    %118 = math.exp %117 : vector<8x16x16xf32>
    %cst_24 = arith.constant 1.000000e+00 : f32
    %119 = vector.broadcast %cst_24 : f32 to vector<8x16x16xf32>
    %120 = arith.subf %118, %119 : vector<8x16x16xf32>
    %cst_25 = arith.constant 1.000000e-01 : f32
    %121 = vector.broadcast %cst_25 : f32 to vector<8x16x16xf32>
    %122 = arith.mulf %121, %120 : vector<8x16x16xf32>
    %123 = arith.select %115, %113, %122 : vector<8x16x16xi1>, vector<8x16x16xf32>
    %124 = vector.shape_cast %123 : vector<8x16x16xf32> to vector<1x8x16x16xf32>
    %c0_26 = arith.constant 0 : index
    %c0_27 = arith.constant 0 : index
    %c0_28 = arith.constant 0 : index
    %c0_29 = arith.constant 0 : index
    %125 = vector.load %arg6[%c0_26, %c0_27, %c0_28, %c0_29] : memref<1x8x16x16xf32, #tpu.memory_space<vmem>>, vector<1x8x16x16xf32>
    tpu.vector_store %arg6[%c0_26, %c0_27, %c0_28, %c0_29], %124 {strides = array<i32>} : memref<1x8x16x16xf32, #tpu.memory_space<vmem>>, vector<1x8x16x16xf32>,
    %c0_i32 = arith.constant 0 : i32
    %126 = arith.cmpi eq, %arg0, %c0_i32 : i32
    %127 = arith.extui %126 : i1 to i32
    %c0_i32_30 = arith.constant 0 : i32
    %128 = arith.cmpi ne, %127, %c0_i32_30 : i32
    scf.if %128 {
      %cst_41 = arith.constant 0.000000e+00 : f32
      %142 = vector.broadcast %cst_41 : f32 to vector<8x1x2xf32>
      %c0_42 = arith.constant 0 : index
      %c0_43 = arith.constant 0 : index
      %c0_44 = arith.constant 0 : index
      %143 = vector.load %arg7[%c0_42, %c0_43, %c0_44] : memref<8x1x2xf32, #tpu.memory_space<vmem>>, vector<8x1x2xf32>
      tpu.vector_store %arg7[%c0_42, %c0_43, %c0_44], %142 {strides = array<i32>} : memref<8x1x2xf32, #tpu.memory_space<vmem>>, vector<8x1x2xf32>,
    } else {
    }
    %cst_31 = arith.constant dense<0.000000e+00> : vector<8x16xf32>
    %129 = vector.multi_reduction <add>, %123, %cst_31 [2] : vector<8x16x16xf32> to vector<8x16xf32>
    %130 = vector.shape_cast %129 : vector<8x16xf32> to vector<8x16x1xf32>
    %cst_32 = arith.constant dense<0.000000e+00> : vector<8x1xf32>
    %131 = vector.multi_reduction <add>, %130, %cst_32 [1] : vector<8x16x1xf32> to vector<8x1xf32>
    %132 = vector.shape_cast %131 : vector<8x1xf32> to vector<8x1x1xf32>
    %133 = arith.mulf %123, %123 : vector<8x16x16xf32>
    %cst_33 = arith.constant dense<0.000000e+00> : vector<8x16xf32>
    %134 = vector.multi_reduction <add>, %133, %cst_33 [2] : vector<8x16x16xf32> to vector<8x16xf32>
    %135 = vector.shape_cast %134 : vector<8x16xf32> to vector<8x16x1xf32>
    %cst_34 = arith.constant dense<0.000000e+00> : vector<8x1xf32>
    %136 = vector.multi_reduction <add>, %135, %cst_34 [1] : vector<8x16x1xf32> to vector<8x1xf32>
    %137 = vector.shape_cast %136 : vector<8x1xf32> to vector<8x1x1xf32>
    %c0_35 = arith.constant 0 : index
    %c0_36 = arith.constant 0 : index
    %c0_37 = arith.constant 0 : index
    %138 = vector.load %arg7[%c0_35, %c0_36, %c0_37] : memref<8x1x2xf32, #tpu.memory_space<vmem>>, vector<8x1x2xf32>
    %139 = tpu.concatenate %132, %137 in 2 : vector<8x1x1xf32>, vector<8x1x1xf32> -> vector<8x1x2xf32>
    %140 = arith.addf %138, %139 : vector<8x1x2xf32>
    %c0_38 = arith.constant 0 : index
    %c0_39 = arith.constant 0 : index
    %c0_40 = arith.constant 0 : index
    %141 = vector.load %arg7[%c0_38, %c0_39, %c0_40] : memref<8x1x2xf32, #tpu.memory_space<vmem>>, vector<8x1x2xf32>
    tpu.vector_store %arg7[%c0_38, %c0_39, %c0_40], %140 {strides = array<i32>} : memref<8x1x2xf32, #tpu.memory_space<vmem>>, vector<8x1x2xf32>,
    return
  }
  func.func @transform_0(%arg0: i32) -> (i32, i32, i32, i32) {
    %c0_i32 = arith.constant 0 : i32
    %c0_i32_0 = arith.constant 0 : i32
    %c0_i32_1 = arith.constant 0 : i32
    %c0_i32_2 = arith.constant 0 : i32
    return %arg0, %c0_i32, %c0_i32_0, %c0_i32_1 : i32, i32, i32, i32
  }
  func.func @transform_1(%arg0: i32) -> (i32, i32, i32, i32) {
    %c0_i32 = arith.constant 0 : i32
    %c0_i32_0 = arith.constant 0 : i32
    %c0_i32_1 = arith.constant 0 : i32
    %c0_i32_2 = arith.constant 0 : i32
    %c0_i32_3 = arith.constant 0 : i32
    return %c0_i32, %c0_i32_0, %c0_i32_1, %c0_i32_2 : i32, i32, i32, i32
  }
  func.func @transform_2(%arg0: i32) -> (i32, i32, i32) {
    %c0_i32 = arith.constant 0 : i32
    %c0_i32_0 = arith.constant 0 : i32
    %c0_i32_1 = arith.constant 0 : i32
    %c0_i32_2 = arith.constant 0 : i32
    return %c0_i32, %c0_i32_0, %c0_i32_1 : i32, i32, i32
  }
  func.func @transform_3(%arg0: i32) -> (i32, i32, i32, i32) {
    %c0_i32 = arith.constant 0 : i32
    %c0_i32_0 = arith.constant 0 : i32
    %c0_i32_1 = arith.constant 0 : i32
    %c0_i32_2 = arith.constant 0 : i32
    %c0_i32_3 = arith.constant 0 : i32
    return %c0_i32, %c0_i32_0, %c0_i32_1, %c0_i32_2 : i32, i32, i32, i32
  }
  func.func @transform_4(%arg0: i32) -> (i32, i32, i32) {
    %c0_i32 = arith.constant 0 : i32
    %c0_i32_0 = arith.constant 0 : i32
    %c0_i32_1 = arith.constant 0 : i32
    %c0_i32_2 = arith.constant 0 : i32
    return %c0_i32, %c0_i32_0, %c0_i32_1 : i32, i32, i32
  }
  func.func @transform_5(%arg0: i32) -> (i32, i32, i32, i32) {
    %c0_i32 = arith.constant 0 : i32
    %c0_i32_0 = arith.constant 0 : i32
    %c0_i32_1 = arith.constant 0 : i32
    %c0_i32_2 = arith.constant 0 : i32
    return %arg0, %c0_i32, %c0_i32_0, %c0_i32_1 : i32, i32, i32, i32
  }
  func.func @transform_6(%arg0: i32) -> (i32, i32, i32) {
    %c0_i32 = arith.constant 0 : i32
    %c0_i32_0 = arith.constant 0 : i32
    %c0_i32_1 = arith.constant 0 : i32
    %c0_i32_2 = arith.constant 0 : i32
    return %c0_i32, %c0_i32_0, %c0_i32_1 : i32, i32, i32
  }
}

module attributes {stable_mosaic.version = 11 : i64} {
  func.func @_block_kernel(%arg0: i32, %arg1: memref<1x8x16x16xf32, #tpu.memory_space<vmem>>, %arg2: memref<8x8x1x1xf32, #tpu.memory_space<vmem>>, %arg3: memref<8x1x1xf32, #tpu.memory_space<vmem>>, %arg4: memref<9x8x1x1xf32, #tpu.memory_space<vmem>>, %arg5: memref<8x1x1xf32, #tpu.memory_space<vmem>>, %arg6: memref<1x8x16x16xf32, #tpu.memory_space<vmem>>) attributes {dimension_semantics = [#tpu.dimension_semantics<parallel>], iteration_bounds = array<i64: 2>, scalar_prefetch = 0 : i64, scratch_operands = 0 : i64, tpu.core_type = #tpu.core_type<tc>, window_params = [{transform_indices = @transform_0, window_bounds = array<i64: 1, 8, 16, 16>}, {pipeline_mode = #tpu.pipeline_mode<synchronous>, transform_indices = @transform_1, window_bounds = array<i64: 8, 8, 1, 1>}, {pipeline_mode = #tpu.pipeline_mode<synchronous>, transform_indices = @transform_2, window_bounds = array<i64: 8, 1, 1>}, {pipeline_mode = #tpu.pipeline_mode<synchronous>, transform_indices = @transform_3, window_bounds = array<i64: 9, 8, 1, 1>}, {pipeline_mode = #tpu.pipeline_mode<synchronous>, transform_indices = @transform_4, window_bounds = array<i64: 8, 1, 1>}, {transform_indices = @transform_5, window_bounds = array<i64: 1, 8, 16, 16>}]} {
    %c0 = arith.constant 0 : index
    %c0_0 = arith.constant 0 : index
    %c0_1 = arith.constant 0 : index
    %c0_2 = arith.constant 0 : index
    %0 = vector.load %arg1[%c0, %c0_0, %c0_1, %c0_2] : memref<1x8x16x16xf32, #tpu.memory_space<vmem>>, vector<1x8x16x16xf32>
    %1 = vector.shape_cast %0 : vector<1x8x16x16xf32> to vector<8x16x16xf32>
    %c0_3 = arith.constant 0 : index
    %c0_4 = arith.constant 0 : index
    %c0_5 = arith.constant 0 : index
    %c0_6 = arith.constant 0 : index
    %2 = vector.load %arg2[%c0_3, %c0_4, %c0_5, %c0_6] : memref<8x8x1x1xf32, #tpu.memory_space<vmem>>, vector<8x8x1x1xf32>
    %c0_7 = arith.constant 0 : index
    %c0_8 = arith.constant 0 : index
    %c0_9 = arith.constant 0 : index
    %3 = vector.load %arg3[%c0_7, %c0_8, %c0_9] : memref<8x1x1xf32, #tpu.memory_space<vmem>>, vector<8x1x1xf32>
    %4 = vector.shape_cast %3 : vector<8x1x1xf32> to vector<8x1x1xf32>
    %5 = vector.broadcast %4 : vector<8x1x1xf32> to vector<8x16x16xf32>
    %6 = vector.extract_strided_slice %2 {offsets = [0, 0, 0, 0], sizes = [1, 8, 1, 1], strides = [1, 1, 1, 1]} : vector<8x8x1x1xf32> to vector<1x8x1x1xf32>
    %7 = vector.shape_cast %6 : vector<1x8x1x1xf32> to vector<8x1x1xf32>
    %8 = vector.extract_strided_slice %1 {offsets = [0, 0, 0], sizes = [1, 16, 16], strides = [1, 1, 1]} : vector<8x16x16xf32> to vector<1x16x16xf32>
    %9 = vector.shape_cast %8 : vector<1x16x16xf32> to vector<16x16xf32>
    %10 = vector.shape_cast %9 : vector<16x16xf32> to vector<1x16x16xf32>
    %11 = vector.broadcast %7 : vector<8x1x1xf32> to vector<8x16x16xf32>
    %12 = vector.broadcast %10 : vector<1x16x16xf32> to vector<8x16x16xf32>
    %13 = arith.mulf %11, %12 : vector<8x16x16xf32>
    %14 = arith.addf %5, %13 : vector<8x16x16xf32>
    %15 = vector.extract_strided_slice %2 {offsets = [1, 0, 0, 0], sizes = [1, 8, 1, 1], strides = [1, 1, 1, 1]} : vector<8x8x1x1xf32> to vector<1x8x1x1xf32>
    %16 = vector.shape_cast %15 : vector<1x8x1x1xf32> to vector<8x1x1xf32>
    %17 = vector.extract_strided_slice %1 {offsets = [1, 0, 0], sizes = [1, 16, 16], strides = [1, 1, 1]} : vector<8x16x16xf32> to vector<1x16x16xf32>
    %18 = vector.shape_cast %17 : vector<1x16x16xf32> to vector<16x16xf32>
    %19 = vector.shape_cast %18 : vector<16x16xf32> to vector<1x16x16xf32>
    %20 = vector.broadcast %16 : vector<8x1x1xf32> to vector<8x16x16xf32>
    %21 = vector.broadcast %19 : vector<1x16x16xf32> to vector<8x16x16xf32>
    %22 = arith.mulf %20, %21 : vector<8x16x16xf32>
    %23 = arith.addf %14, %22 : vector<8x16x16xf32>
    %24 = vector.extract_strided_slice %2 {offsets = [2, 0, 0, 0], sizes = [1, 8, 1, 1], strides = [1, 1, 1, 1]} : vector<8x8x1x1xf32> to vector<1x8x1x1xf32>
    %25 = vector.shape_cast %24 : vector<1x8x1x1xf32> to vector<8x1x1xf32>
    %26 = vector.extract_strided_slice %1 {offsets = [2, 0, 0], sizes = [1, 16, 16], strides = [1, 1, 1]} : vector<8x16x16xf32> to vector<1x16x16xf32>
    %27 = vector.shape_cast %26 : vector<1x16x16xf32> to vector<16x16xf32>
    %28 = vector.shape_cast %27 : vector<16x16xf32> to vector<1x16x16xf32>
    %29 = vector.broadcast %25 : vector<8x1x1xf32> to vector<8x16x16xf32>
    %30 = vector.broadcast %28 : vector<1x16x16xf32> to vector<8x16x16xf32>
    %31 = arith.mulf %29, %30 : vector<8x16x16xf32>
    %32 = arith.addf %23, %31 : vector<8x16x16xf32>
    %33 = vector.extract_strided_slice %2 {offsets = [3, 0, 0, 0], sizes = [1, 8, 1, 1], strides = [1, 1, 1, 1]} : vector<8x8x1x1xf32> to vector<1x8x1x1xf32>
    %34 = vector.shape_cast %33 : vector<1x8x1x1xf32> to vector<8x1x1xf32>
    %35 = vector.extract_strided_slice %1 {offsets = [3, 0, 0], sizes = [1, 16, 16], strides = [1, 1, 1]} : vector<8x16x16xf32> to vector<1x16x16xf32>
    %36 = vector.shape_cast %35 : vector<1x16x16xf32> to vector<16x16xf32>
    %37 = vector.shape_cast %36 : vector<16x16xf32> to vector<1x16x16xf32>
    %38 = vector.broadcast %34 : vector<8x1x1xf32> to vector<8x16x16xf32>
    %39 = vector.broadcast %37 : vector<1x16x16xf32> to vector<8x16x16xf32>
    %40 = arith.mulf %38, %39 : vector<8x16x16xf32>
    %41 = arith.addf %32, %40 : vector<8x16x16xf32>
    %42 = vector.extract_strided_slice %2 {offsets = [4, 0, 0, 0], sizes = [1, 8, 1, 1], strides = [1, 1, 1, 1]} : vector<8x8x1x1xf32> to vector<1x8x1x1xf32>
    %43 = vector.shape_cast %42 : vector<1x8x1x1xf32> to vector<8x1x1xf32>
    %44 = vector.extract_strided_slice %1 {offsets = [4, 0, 0], sizes = [1, 16, 16], strides = [1, 1, 1]} : vector<8x16x16xf32> to vector<1x16x16xf32>
    %45 = vector.shape_cast %44 : vector<1x16x16xf32> to vector<16x16xf32>
    %46 = vector.shape_cast %45 : vector<16x16xf32> to vector<1x16x16xf32>
    %47 = vector.broadcast %43 : vector<8x1x1xf32> to vector<8x16x16xf32>
    %48 = vector.broadcast %46 : vector<1x16x16xf32> to vector<8x16x16xf32>
    %49 = arith.mulf %47, %48 : vector<8x16x16xf32>
    %50 = arith.addf %41, %49 : vector<8x16x16xf32>
    %51 = vector.extract_strided_slice %2 {offsets = [5, 0, 0, 0], sizes = [1, 8, 1, 1], strides = [1, 1, 1, 1]} : vector<8x8x1x1xf32> to vector<1x8x1x1xf32>
    %52 = vector.shape_cast %51 : vector<1x8x1x1xf32> to vector<8x1x1xf32>
    %53 = vector.extract_strided_slice %1 {offsets = [5, 0, 0], sizes = [1, 16, 16], strides = [1, 1, 1]} : vector<8x16x16xf32> to vector<1x16x16xf32>
    %54 = vector.shape_cast %53 : vector<1x16x16xf32> to vector<16x16xf32>
    %55 = vector.shape_cast %54 : vector<16x16xf32> to vector<1x16x16xf32>
    %56 = vector.broadcast %52 : vector<8x1x1xf32> to vector<8x16x16xf32>
    %57 = vector.broadcast %55 : vector<1x16x16xf32> to vector<8x16x16xf32>
    %58 = arith.mulf %56, %57 : vector<8x16x16xf32>
    %59 = arith.addf %50, %58 : vector<8x16x16xf32>
    %60 = vector.extract_strided_slice %2 {offsets = [6, 0, 0, 0], sizes = [1, 8, 1, 1], strides = [1, 1, 1, 1]} : vector<8x8x1x1xf32> to vector<1x8x1x1xf32>
    %61 = vector.shape_cast %60 : vector<1x8x1x1xf32> to vector<8x1x1xf32>
    %62 = vector.extract_strided_slice %1 {offsets = [6, 0, 0], sizes = [1, 16, 16], strides = [1, 1, 1]} : vector<8x16x16xf32> to vector<1x16x16xf32>
    %63 = vector.shape_cast %62 : vector<1x16x16xf32> to vector<16x16xf32>
    %64 = vector.shape_cast %63 : vector<16x16xf32> to vector<1x16x16xf32>
    %65 = vector.broadcast %61 : vector<8x1x1xf32> to vector<8x16x16xf32>
    %66 = vector.broadcast %64 : vector<1x16x16xf32> to vector<8x16x16xf32>
    %67 = arith.mulf %65, %66 : vector<8x16x16xf32>
    %68 = arith.addf %59, %67 : vector<8x16x16xf32>
    %69 = vector.extract_strided_slice %2 {offsets = [7, 0, 0, 0], sizes = [1, 8, 1, 1], strides = [1, 1, 1, 1]} : vector<8x8x1x1xf32> to vector<1x8x1x1xf32>
    %70 = vector.shape_cast %69 : vector<1x8x1x1xf32> to vector<8x1x1xf32>
    %71 = vector.extract_strided_slice %1 {offsets = [7, 0, 0], sizes = [1, 16, 16], strides = [1, 1, 1]} : vector<8x16x16xf32> to vector<1x16x16xf32>
    %72 = vector.shape_cast %71 : vector<1x16x16xf32> to vector<16x16xf32>
    %73 = vector.shape_cast %72 : vector<16x16xf32> to vector<1x16x16xf32>
    %74 = vector.broadcast %70 : vector<8x1x1xf32> to vector<8x16x16xf32>
    %75 = vector.broadcast %73 : vector<1x16x16xf32> to vector<8x16x16xf32>
    %76 = arith.mulf %74, %75 : vector<8x16x16xf32>
    %77 = arith.addf %68, %76 : vector<8x16x16xf32>
    %cst = arith.constant 0.000000e+00 : f32
    %78 = vector.broadcast %cst : f32 to vector<8x16x16xf32>
    %79 = arith.cmpf ogt, %77, %78 : vector<8x16x16xf32>
    %cst_10 = arith.constant 0.000000e+00 : f32
    %80 = vector.broadcast %cst_10 : f32 to vector<8x16x16xf32>
    %81 = arith.minimumf %77, %80 : vector<8x16x16xf32>
    %82 = math.exp %81 : vector<8x16x16xf32>
    %cst_11 = arith.constant 1.000000e+00 : f32
    %83 = vector.broadcast %cst_11 : f32 to vector<8x16x16xf32>
    %84 = arith.subf %82, %83 : vector<8x16x16xf32>
    %cst_12 = arith.constant 1.000000e+00 : f32
    %85 = vector.broadcast %cst_12 : f32 to vector<8x16x16xf32>
    %86 = arith.mulf %85, %84 : vector<8x16x16xf32>
    %87 = arith.select %79, %77, %86 : vector<8x16x16xi1>, vector<8x16x16xf32>
    %cst_13 = arith.constant 0.000000e+00 : f32
    %88 = vector.broadcast %cst_13 : f32 to vector<8x16x1xf32>
    %cst_14 = arith.constant 0.000000e+00 : f32
    %89 = vector.broadcast %cst_14 : f32 to vector<8x1x18xf32>
    %90 = tpu.concatenate %88, %87, %88 in 2 : vector<8x16x1xf32>, vector<8x16x16xf32>, vector<8x16x1xf32> -> vector<8x16x18xf32>
    %91 = tpu.concatenate %89, %90, %89 in 1 : vector<8x1x18xf32>, vector<8x16x18xf32>, vector<8x1x18xf32> -> vector<8x18x18xf32>
    %c0_15 = arith.constant 0 : index
    %c0_16 = arith.constant 0 : index
    %c0_17 = arith.constant 0 : index
    %c0_18 = arith.constant 0 : index
    %92 = vector.load %arg4[%c0_15, %c0_16, %c0_17, %c0_18] : memref<9x8x1x1xf32, #tpu.memory_space<vmem>>, vector<9x8x1x1xf32>
    %c0_19 = arith.constant 0 : index
    %c0_20 = arith.constant 0 : index
    %c0_21 = arith.constant 0 : index
    %93 = vector.load %arg5[%c0_19, %c0_20, %c0_21] : memref<8x1x1xf32, #tpu.memory_space<vmem>>, vector<8x1x1xf32>
    %94 = vector.shape_cast %93 : vector<8x1x1xf32> to vector<8x1x1xf32>
    %95 = vector.broadcast %94 : vector<8x1x1xf32> to vector<8x16x16xf32>
    %96 = vector.extract_strided_slice %91 {offsets = [0, 0, 0], sizes = [8, 16, 16], strides = [1, 1, 1]} : vector<8x18x18xf32> to vector<8x16x16xf32>
    %97 = vector.extract_strided_slice %92 {offsets = [0, 0, 0, 0], sizes = [1, 8, 1, 1], strides = [1, 1, 1, 1]} : vector<9x8x1x1xf32> to vector<1x8x1x1xf32>
    %98 = vector.shape_cast %97 : vector<1x8x1x1xf32> to vector<8x1x1xf32>
    %99 = vector.broadcast %98 : vector<8x1x1xf32> to vector<8x16x16xf32>
    %100 = arith.mulf %96, %99 : vector<8x16x16xf32>
    %101 = arith.addf %95, %100 : vector<8x16x16xf32>
    %102 = vector.extract_strided_slice %91 {offsets = [0, 0, 1], sizes = [8, 16, 16], strides = [1, 1, 1]} : vector<8x18x18xf32> to vector<8x16x16xf32>
    %103 = vector.extract_strided_slice %92 {offsets = [1, 0, 0, 0], sizes = [1, 8, 1, 1], strides = [1, 1, 1, 1]} : vector<9x8x1x1xf32> to vector<1x8x1x1xf32>
    %104 = vector.shape_cast %103 : vector<1x8x1x1xf32> to vector<8x1x1xf32>
    %105 = vector.broadcast %104 : vector<8x1x1xf32> to vector<8x16x16xf32>
    %106 = arith.mulf %102, %105 : vector<8x16x16xf32>
    %107 = arith.addf %101, %106 : vector<8x16x16xf32>
    %108 = vector.extract_strided_slice %91 {offsets = [0, 0, 2], sizes = [8, 16, 16], strides = [1, 1, 1]} : vector<8x18x18xf32> to vector<8x16x16xf32>
    %109 = vector.extract_strided_slice %92 {offsets = [2, 0, 0, 0], sizes = [1, 8, 1, 1], strides = [1, 1, 1, 1]} : vector<9x8x1x1xf32> to vector<1x8x1x1xf32>
    %110 = vector.shape_cast %109 : vector<1x8x1x1xf32> to vector<8x1x1xf32>
    %111 = vector.broadcast %110 : vector<8x1x1xf32> to vector<8x16x16xf32>
    %112 = arith.mulf %108, %111 : vector<8x16x16xf32>
    %113 = arith.addf %107, %112 : vector<8x16x16xf32>
    %114 = vector.extract_strided_slice %91 {offsets = [0, 1, 0], sizes = [8, 16, 16], strides = [1, 1, 1]} : vector<8x18x18xf32> to vector<8x16x16xf32>
    %115 = vector.extract_strided_slice %92 {offsets = [3, 0, 0, 0], sizes = [1, 8, 1, 1], strides = [1, 1, 1, 1]} : vector<9x8x1x1xf32> to vector<1x8x1x1xf32>
    %116 = vector.shape_cast %115 : vector<1x8x1x1xf32> to vector<8x1x1xf32>
    %117 = vector.broadcast %116 : vector<8x1x1xf32> to vector<8x16x16xf32>
    %118 = arith.mulf %114, %117 : vector<8x16x16xf32>
    %119 = arith.addf %113, %118 : vector<8x16x16xf32>
    %120 = vector.extract_strided_slice %91 {offsets = [0, 1, 1], sizes = [8, 16, 16], strides = [1, 1, 1]} : vector<8x18x18xf32> to vector<8x16x16xf32>
    %121 = vector.extract_strided_slice %92 {offsets = [4, 0, 0, 0], sizes = [1, 8, 1, 1], strides = [1, 1, 1, 1]} : vector<9x8x1x1xf32> to vector<1x8x1x1xf32>
    %122 = vector.shape_cast %121 : vector<1x8x1x1xf32> to vector<8x1x1xf32>
    %123 = vector.broadcast %122 : vector<8x1x1xf32> to vector<8x16x16xf32>
    %124 = arith.mulf %120, %123 : vector<8x16x16xf32>
    %125 = arith.addf %119, %124 : vector<8x16x16xf32>
    %126 = vector.extract_strided_slice %91 {offsets = [0, 1, 2], sizes = [8, 16, 16], strides = [1, 1, 1]} : vector<8x18x18xf32> to vector<8x16x16xf32>
    %127 = vector.extract_strided_slice %92 {offsets = [5, 0, 0, 0], sizes = [1, 8, 1, 1], strides = [1, 1, 1, 1]} : vector<9x8x1x1xf32> to vector<1x8x1x1xf32>
    %128 = vector.shape_cast %127 : vector<1x8x1x1xf32> to vector<8x1x1xf32>
    %129 = vector.broadcast %128 : vector<8x1x1xf32> to vector<8x16x16xf32>
    %130 = arith.mulf %126, %129 : vector<8x16x16xf32>
    %131 = arith.addf %125, %130 : vector<8x16x16xf32>
    %132 = vector.extract_strided_slice %91 {offsets = [0, 2, 0], sizes = [8, 16, 16], strides = [1, 1, 1]} : vector<8x18x18xf32> to vector<8x16x16xf32>
    %133 = vector.extract_strided_slice %92 {offsets = [6, 0, 0, 0], sizes = [1, 8, 1, 1], strides = [1, 1, 1, 1]} : vector<9x8x1x1xf32> to vector<1x8x1x1xf32>
    %134 = vector.shape_cast %133 : vector<1x8x1x1xf32> to vector<8x1x1xf32>
    %135 = vector.broadcast %134 : vector<8x1x1xf32> to vector<8x16x16xf32>
    %136 = arith.mulf %132, %135 : vector<8x16x16xf32>
    %137 = arith.addf %131, %136 : vector<8x16x16xf32>
    %138 = vector.extract_strided_slice %91 {offsets = [0, 2, 1], sizes = [8, 16, 16], strides = [1, 1, 1]} : vector<8x18x18xf32> to vector<8x16x16xf32>
    %139 = vector.extract_strided_slice %92 {offsets = [7, 0, 0, 0], sizes = [1, 8, 1, 1], strides = [1, 1, 1, 1]} : vector<9x8x1x1xf32> to vector<1x8x1x1xf32>
    %140 = vector.shape_cast %139 : vector<1x8x1x1xf32> to vector<8x1x1xf32>
    %141 = vector.broadcast %140 : vector<8x1x1xf32> to vector<8x16x16xf32>
    %142 = arith.mulf %138, %141 : vector<8x16x16xf32>
    %143 = arith.addf %137, %142 : vector<8x16x16xf32>
    %144 = vector.extract_strided_slice %91 {offsets = [0, 2, 2], sizes = [8, 16, 16], strides = [1, 1, 1]} : vector<8x18x18xf32> to vector<8x16x16xf32>
    %145 = vector.extract_strided_slice %92 {offsets = [8, 0, 0, 0], sizes = [1, 8, 1, 1], strides = [1, 1, 1, 1]} : vector<9x8x1x1xf32> to vector<1x8x1x1xf32>
    %146 = vector.shape_cast %145 : vector<1x8x1x1xf32> to vector<8x1x1xf32>
    %147 = vector.broadcast %146 : vector<8x1x1xf32> to vector<8x16x16xf32>
    %148 = arith.mulf %144, %147 : vector<8x16x16xf32>
    %149 = arith.addf %143, %148 : vector<8x16x16xf32>
    %cst_22 = arith.constant 0.000000e+00 : f32
    %150 = vector.broadcast %cst_22 : f32 to vector<8x16x16xf32>
    %151 = arith.cmpf ogt, %149, %150 : vector<8x16x16xf32>
    %cst_23 = arith.constant 0.000000e+00 : f32
    %152 = vector.broadcast %cst_23 : f32 to vector<8x16x16xf32>
    %153 = arith.minimumf %149, %152 : vector<8x16x16xf32>
    %154 = math.exp %153 : vector<8x16x16xf32>
    %cst_24 = arith.constant 1.000000e+00 : f32
    %155 = vector.broadcast %cst_24 : f32 to vector<8x16x16xf32>
    %156 = arith.subf %154, %155 : vector<8x16x16xf32>
    %cst_25 = arith.constant 1.000000e-01 : f32
    %157 = vector.broadcast %cst_25 : f32 to vector<8x16x16xf32>
    %158 = arith.mulf %157, %156 : vector<8x16x16xf32>
    %159 = arith.select %151, %149, %158 : vector<8x16x16xi1>, vector<8x16x16xf32>
    %160 = vector.shape_cast %159 : vector<8x16x16xf32> to vector<1x8x16x16xf32>
    %c0_26 = arith.constant 0 : index
    %c0_27 = arith.constant 0 : index
    %c0_28 = arith.constant 0 : index
    %c0_29 = arith.constant 0 : index
    %161 = vector.load %arg6[%c0_26, %c0_27, %c0_28, %c0_29] : memref<1x8x16x16xf32, #tpu.memory_space<vmem>>, vector<1x8x16x16xf32>
    tpu.vector_store %arg6[%c0_26, %c0_27, %c0_28, %c0_29], %160 {strides = array<i32>} : memref<1x8x16x16xf32, #tpu.memory_space<vmem>>, vector<1x8x16x16xf32>,
    return
  }
  func.func @transform_0(%arg0: i32) -> (i32, i32, i32, i32) {
    %c0_i32 = arith.constant 0 : i32
    %c0_i32_0 = arith.constant 0 : i32
    %c0_i32_1 = arith.constant 0 : i32
    %c0_i32_2 = arith.constant 0 : i32
    return %arg0, %c0_i32, %c0_i32_0, %c0_i32_1 : i32, i32, i32, i32
  }
  func.func @transform_1(%arg0: i32) -> (i32, i32, i32, i32) {
    %c0_i32 = arith.constant 0 : i32
    %c0_i32_0 = arith.constant 0 : i32
    %c0_i32_1 = arith.constant 0 : i32
    %c0_i32_2 = arith.constant 0 : i32
    %c0_i32_3 = arith.constant 0 : i32
    return %c0_i32, %c0_i32_0, %c0_i32_1, %c0_i32_2 : i32, i32, i32, i32
  }
  func.func @transform_2(%arg0: i32) -> (i32, i32, i32) {
    %c0_i32 = arith.constant 0 : i32
    %c0_i32_0 = arith.constant 0 : i32
    %c0_i32_1 = arith.constant 0 : i32
    %c0_i32_2 = arith.constant 0 : i32
    return %c0_i32, %c0_i32_0, %c0_i32_1 : i32, i32, i32
  }
  func.func @transform_3(%arg0: i32) -> (i32, i32, i32, i32) {
    %c0_i32 = arith.constant 0 : i32
    %c0_i32_0 = arith.constant 0 : i32
    %c0_i32_1 = arith.constant 0 : i32
    %c0_i32_2 = arith.constant 0 : i32
    %c0_i32_3 = arith.constant 0 : i32
    return %c0_i32, %c0_i32_0, %c0_i32_1, %c0_i32_2 : i32, i32, i32, i32
  }
  func.func @transform_4(%arg0: i32) -> (i32, i32, i32) {
    %c0_i32 = arith.constant 0 : i32
    %c0_i32_0 = arith.constant 0 : i32
    %c0_i32_1 = arith.constant 0 : i32
    %c0_i32_2 = arith.constant 0 : i32
    return %c0_i32, %c0_i32_0, %c0_i32_1 : i32, i32, i32
  }
  func.func @transform_5(%arg0: i32) -> (i32, i32, i32, i32) {
    %c0_i32 = arith.constant 0 : i32
    %c0_i32_0 = arith.constant 0 : i32
    %c0_i32_1 = arith.constant 0 : i32
    %c0_i32_2 = arith.constant 0 : i32
    return %arg0, %c0_i32, %c0_i32_0, %c0_i32_1 : i32, i32, i32, i32
  }
}

</mosaic_0001>

<bundles_post_ra>
// kernel: inconv_forward.3
= control target key start
LH: loop header
LB: loop body
LE: loop exit
PB: predicated region body
PF: predicated region fallthrough
CT: control target
= control target key end

     0   :  { %10 = vsyncpa [#allocation3], 0  ;;  %s6053_s0 = inlined_call_operand.vmem [shape: f32[2,8,16,16], index: 0, kind: input, shape index: {}]   ;;  %s6054_s1 = inlined_call_operand.vmem [shape: f32[8,8,1,1], index: 1, kind: input, shape index: {}]   ;;  %s6055_s2 = inlined_call_operand.vmem [shape: f32[8,1,1], index: 2, kind: input, shape index: {}]   ;;  %s6056_s3 = inlined_call_operand.vmem [shape: f32[9,8,1,1], index: 3, kind: input, shape index: {}]   ;;  %s6057_s4 = inlined_call_operand.vmem [shape: f32[8,1,1], index: 4, kind: input, shape index: {}]   ;;  %s6058_s5 = inlined_call_operand.hbm [shape: f32[2,8,16,16], index: 5, kind: output, shape index: {}]  }
   0x1   :  { %12 = vsyncpa [#allocation3 + $0x1], 0  ;;  %s3977_s18 = smov 0   ;;  %s3979_s19 = smov 0  }
   0x2   :  { %s3981_s20 = smov 0   ;;  %s3983_s21 = smov 0  }
   0x3 LB: > { %s3998_s22 = sadd.s32 4294967295, %s3938_s21   ;;  %s3569_s23 = sadd.s32 4294967294, %s3938_s21   ;;  %s3938_s21 = sphi %s3983_s21, %s6241_s21   ;;  %s3934_s20 = sphi %s3981_s20, %s6240_s20   ;;  %s3930_s19 = sphi %s3979_s19, %s6239_s19   ;;  %s3926_s18 = sphi %s3977_s18, %s6238_s18  }
   0x4   : > { %s4002_s24 = sadd.s32 1, %s3938_s21   ;;  %s135_s25 = sadd.s32 1, %s3934_s20 }
   0x5   : > { %s132_s26 = ssub.s32 %s3938_s21, %s4002_s24  ;;  %p145_p0 = scmp.ne.s32.totalorder %s3934_s20, %s3930_s19 }
   0x6   : > { %p133_p1 = scmp.eq.s32.totalorder %s132_s26, 0  ;;  %p146_p2 = scmp.eq.s32.totalorder %s3998_s22, 1 }
   0x7   : > { %p151_p3 = scmp.ne.s32.totalorder %s3930_s19, %s3926_s18  ;;  %p152_p4 = scmp.eq.s32.totalorder %s3569_s23, 1 }
   0x8   : > { %s4013_s27 = scalar_select %p133_p1, %s3934_s20, %s135_s25  }
   0x9   : > { %p4015_p5 = por %p146_p2, %p145_p0  ;;  %p4019_p6 = por %p152_p4, %p151_p3 }
   0xa   : > { %p3572_p7 = scmp.ge.s32.totalorder %s3938_s21, 1  ;;  %p190_p8 = scmp.lt.s32.totalorder %s3938_s21, 3 }
   0xc   : > { %p191_p9 = pnand %p3572_p7, %p190_p8 }
   0xe   : > { %194 = sbr.rel (%p191_p9) target bundleno = 1245 (0x4dd), region = 40 }
  0x13   : > { %v3578_v0 = vld [vmem:[%s6055_s2 + $0x2] ss:$0 sm:$0xff]  ;;  %v3576_v1 = vld [vmem:[%s6055_s2] ss:$0 sm:$0xff]  ;;  %v3940_v2 = vmov 0   ;;  %p218_p10 = scmp.lt.s32.totalorder %s3998_s22, 1 }
  0x14   : > { %3813 = vset.pattern.permute.xlu1 %v3940_v2  ;;  %3812 = vset.pattern.permute.xlu0 %v3940_v2  ;;  %v3579_v3 = vld [vmem:[%s6055_s2 + $0x3] ss:$0 sm:$0xff]  ;;  %v3577_v4 = vld [vmem:[%s6055_s2 + $0x1] ss:$0 sm:$0xff]  ;;  %v3581_v5 = vld [vmem:[%s6055_s2 + $0x5] ss:$0 sm:$0xff] }
  0x15   : > { %360 = vperm.xlu1 %3813, %v3578_v0   ;;  %352 = vperm.xlu0 %3812, %v3576_v1   ;;  %v3580_v6 = vld [vmem:[%s6055_s2 + $0x4] ss:$0 sm:$0xff]  ;;  %v3583_v7 = vld [vmem:[%s6055_s2 + $0x7] ss:$0 sm:$0xff]  ;;  %v3582_v8 = vld [vmem:[%s6055_s2 + $0x6] ss:$0 sm:$0xff] }
  0x16   : > { %v3585_v9 = vld [vmem:[%s6054_s1 + $0x1] ss:$0 sm:$0xff]  ;;  %v3584_v10 = vld [vmem:[%s6054_s1] ss:$0 sm:$0xff]  ;;  %v3587_v11 = vld [vmem:[%s6054_s1 + $0x3] ss:$0 sm:$0xff] }
  0x17   : > { %v3586_v12 = vld [vmem:[%s6054_s1 + $0x2] ss:$0 sm:$0xff]  ;;  %v3589_v13 = vld [vmem:[%s6054_s1 + $0x5] ss:$0 sm:$0xff]  ;;  %v3588_v14 = vld [vmem:[%s6054_s1 + $0x4] ss:$0 sm:$0xff] }
  0x18   : > { %v3591_v15 = vld [vmem:[%s6054_s1 + $0x7] ss:$0 sm:$0xff]  ;;  %v3590_v16 = vld [vmem:[%s6054_s1 + $0x6] ss:$0 sm:$0xff]  ;;  %v3593_v17 = vld [vmem:[%s6054_s1 + $0x9] ss:$0 sm:$0xff] }
  0x19   : > { %364 = vperm.xlu1 %3813, %v3579_v3   ;;  %356 = vperm.xlu0 %3812, %v3577_v4   ;;  %v3592_v18 = vld [vmem:[%s6054_s1 + $0x8] ss:$0 sm:$0xff]  ;;  %v3595_v19 = vld [vmem:[%s6054_s1 + $0xb] ss:$0 sm:$0xff]  ;;  %v3594_v20 = vld [vmem:[%s6054_s1 + $0xa] ss:$0 sm:$0xff] }
  0x1a   : > { %v3597_v21 = vld [vmem:[%s6054_s1 + $0xd] ss:$0 sm:$0xff]  ;;  %v3596_v22 = vld [vmem:[%s6054_s1 + $0xc] ss:$0 sm:$0xff]  ;;  %v3599_v23 = vld [vmem:[%s6054_s1 + $0xf] ss:$0 sm:$0xff] }
  0x1b   : > { %v3598_v24 = vld [vmem:[%s6054_s1 + $0xe] ss:$0 sm:$0xff]  ;;  %v3601_v25 = vld [vmem:[%s6054_s1 + $0x11] ss:$0 sm:$0xff]  ;;  %v3600_v26 = vld [vmem:[%s6054_s1 + $0x10] ss:$0 sm:$0xff] }
  0x1c   : > { %v3603_v27 = vld [vmem:[%s6054_s1 + $0x13] ss:$0 sm:$0xff]  ;;  %v3602_v28 = vld [vmem:[%s6054_s1 + $0x12] ss:$0 sm:$0xff]  ;;  %v3605_v29 = vld [vmem:[%s6054_s1 + $0x15] ss:$0 sm:$0xff] }
  0x1d   : > { %372 = vperm.xlu1 %3813, %v3581_v5   ;;  %368 = vperm.xlu0 %3812, %v3580_v6   ;;  %v3604_v30 = vld [vmem:[%s6054_s1 + $0x14] ss:$0 sm:$0xff]  ;;  %v3607_v31 = vld [vmem:[%s6054_s1 + $0x17] ss:$0 sm:$0xff]  ;;  %v3606_v32 = vld [vmem:[%s6054_s1 + $0x16] ss:$0 sm:$0xff] }
  0x1e   : > { %v3609_v33 = vld [vmem:[%s6054_s1 + $0x19] ss:$0 sm:$0xff]  ;;  %v3608_v34 = vld [vmem:[%s6054_s1 + $0x18] ss:$0 sm:$0xff]  ;;  %v3611_v35 = vld [vmem:[%s6054_s1 + $0x1b] ss:$0 sm:$0xff] }
  0x1f   : > { %v3610_v36 = vld [vmem:[%s6054_s1 + $0x1a] ss:$0 sm:$0xff]  ;;  %v3613_v37 = vld [vmem:[%s6054_s1 + $0x1d] ss:$0 sm:$0xff]  ;;  %v3612_v38 = vld [vmem:[%s6054_s1 + $0x1c] ss:$0 sm:$0xff] }
  0x20   : > { %v3615_v39 = vld [vmem:[%s6054_s1 + $0x1f] ss:$0 sm:$0xff]  ;;  %v3614_v40 = vld [vmem:[%s6054_s1 + $0x1e] ss:$0 sm:$0xff]  ;;  %v3617_v41 = vld [vmem:[%s6054_s1 + $0x21] ss:$0 sm:$0xff] }
  0x21   : > { %380 = vperm.xlu1 %3813, %v3583_v7   ;;  %376 = vperm.xlu0 %3812, %v3582_v8   ;;  %v3616_v42 = vld [vmem:[%s6054_s1 + $0x20] ss:$0 sm:$0xff]  ;;  %v3619_v43 = vld [vmem:[%s6054_s1 + $0x23] ss:$0 sm:$0xff]  ;;  %v3618_v44 = vld [vmem:[%s6054_s1 + $0x22] ss:$0 sm:$0xff] }
  0x22   : > { %v3621_v45 = vld [vmem:[%s6054_s1 + $0x25] ss:$0 sm:$0xff]  ;;  %v3620_v46 = vld [vmem:[%s6054_s1 + $0x24] ss:$0 sm:$0xff]  ;;  %v3623_v47 = vld [vmem:[%s6054_s1 + $0x27] ss:$0 sm:$0xff] }
  0x23   : > { %v3622_v48 = vld [vmem:[%s6054_s1 + $0x26] ss:$0 sm:$0xff]  ;;  %v3625_v49 = vld [vmem:[%s6054_s1 + $0x29] ss:$0 sm:$0xff]  ;;  %v3624_v50 = vld [vmem:[%s6054_s1 + $0x28] ss:$0 sm:$0xff] }
  0x24   : > { %v3627_v51 = vld [vmem:[%s6054_s1 + $0x2b] ss:$0 sm:$0xff]  ;;  %v3626_v52 = vld [vmem:[%s6054_s1 + $0x2a] ss:$0 sm:$0xff]  ;;  %v3629_v53 = vld [vmem:[%s6054_s1 + $0x2d] ss:$0 sm:$0xff] }
  0x25   : > { %428 = vperm.xlu1 %3813, %v3585_v9   ;;  %424 = vperm.xlu0 %3812, %v3584_v10   ;;  %v3628_v54 = vld [vmem:[%s6054_s1 + $0x2c] ss:$0 sm:$0xff]  ;;  %v3631_v55 = vld [vmem:[%s6054_s1 + $0x2f] ss:$0 sm:$0xff]  ;;  %v3630_v56 = vld [vmem:[%s6054_s1 + $0x2e] ss:$0 sm:$0xff] }
  0x26   : > { %v3633_v57 = vld [vmem:[%s6054_s1 + $0x31] ss:$0 sm:$0xff]  ;;  %v3632_v58 = vld [vmem:[%s6054_s1 + $0x30] ss:$0 sm:$0xff]  ;;  %v3635_v59 = vld [vmem:[%s6054_s1 + $0x33] ss:$0 sm:$0xff] }
  0x27   : > { %v3634_v60 = vld [vmem:[%s6054_s1 + $0x32] ss:$0 sm:$0xff]  ;;  %v3637_v61 = vld [vmem:[%s6054_s1 + $0x35] ss:$0 sm:$0xff]  ;;  %v3636_v62 = vld [vmem:[%s6054_s1 + $0x34] ss:$0 sm:$0xff] }
  0x28   : > { %v3639_v63 = vld [vmem:[%s6054_s1 + $0x37] ss:$0 sm:$0xff]  ;;  %v3638_v0 = vld [vmem:[%s6054_s1 + $0x36] ss:$0 sm:$0xff]  ;;  %v3641_v3 = vld [vmem:[%s6054_s1 + $0x39] ss:$0 sm:$0xff] }
  0x29   : > { %436 = vperm.xlu1 %3813, %v3587_v11   ;;  %432 = vperm.xlu0 %3812, %v3586_v12   ;;  %v3640_v4 = vld [vmem:[%s6054_s1 + $0x38] ss:$0 sm:$0xff]  ;;  %v3643_v7 = vld [vmem:[%s6054_s1 + $0x3b] ss:$0 sm:$0xff]  ;;  %v3642_v8 = vld [vmem:[%s6054_s1 + $0x3a] ss:$0 sm:$0xff] }
  0x2a   : > { %v3645_v11 = vld [vmem:[%s6054_s1 + $0x3d] ss:$0 sm:$0xff]  ;;  %v3644_v12 = vld [vmem:[%s6054_s1 + $0x3c] ss:$0 sm:$0xff]  ;;  %s219_s30 = scalar_select %p218_p10, %s3998_s22, 1 }
  0x2b   : > { %s3941_s10 = smov 1   ;;  %s3942_s11 = smov 127  }
  0x2c   : > { %s3765_s6 = sshll.u32 %s219_s30, 7  ;;  %s3943_s12 = smov 126  }
  0x2d   : > { %444 = vperm.xlu1 %3813, %v3589_v13   ;;  %440 = vperm.xlu0 %3812, %v3588_v14   ;;  %s4308_s9 = scalar_lea.vmem %s6053_s0, %s3765_s6  ;;  %s3944_s23 = smov [#allocation2]  }
  0x2e   : > { %s3882_s25 = sshll.u32 %s3944_s23, 4  ;;  %s3883_s25 = int_to_ptr.vmem [resolvable:$false] %s3882_s25 }
  0x2f   : > { %s3884_s26 = scalar_lea.vmem %s3883_s25, 4096 }
  0x31   : > { %452 = vperm.xlu1 %3813, %v3591_v15   ;;  %448 = vperm.xlu0 %3812, %v3590_v16   ;;  %v3647_v15 = vld [vmem:[%s6054_s1 + $0x3f] ss:$0 sm:$0xff]  ;;  %v3646_v16 = vld [vmem:[%s6054_s1 + $0x3e] ss:$0 sm:$0xff] }
  0x35   : > { %532 = vperm.xlu1 %3813, %v3593_v17   ;;  %528 = vperm.xlu0 %3812, %v3592_v18  }
  0x39   : > { %540 = vperm.xlu1 %3813, %v3595_v19   ;;  %536 = vperm.xlu0 %3812, %v3594_v20  }
  0x3d   : > { %548 = vperm.xlu1 %3813, %v3597_v21   ;;  %544 = vperm.xlu0 %3812, %v3596_v22  }
  0x41   : > { %556 = vperm.xlu1 %3813, %v3599_v23   ;;  %552 = vperm.xlu0 %3812, %v3598_v24  }
  0x45   : > { %636 = vperm.xlu1 %3813, %v3601_v25   ;;  %632 = vperm.xlu0 %3812, %v3600_v26  }
  0x49   : > { %644 = vperm.xlu1 %3813, %v3603_v27   ;;  %640 = vperm.xlu0 %3812, %v3602_v28  }
  0x4d   : > { %652 = vperm.xlu1 %3813, %v3605_v29   ;;  %648 = vperm.xlu0 %3812, %v3604_v30  }
  0x51   : > { %660 = vperm.xlu1 %3813, %v3607_v31   ;;  %656 = vperm.xlu0 %3812, %v3606_v32  }
  0x55   : > { %740 = vperm.xlu1 %3813, %v3609_v33   ;;  %736 = vperm.xlu0 %3812, %v3608_v34  }
  0x59   : > { %748 = vperm.xlu1 %3813, %v3611_v35   ;;  %744 = vperm.xlu0 %3812, %v3610_v36  }
  0x5d   : > { %756 = vperm.xlu1 %3813, %v3613_v37   ;;  %752 = vperm.xlu0 %3812, %v3612_v38  }
  0x61   : > { %764 = vperm.xlu1 %3813, %v3615_v39   ;;  %760 = vperm.xlu0 %3812, %v3614_v40  }
  0x65   : > { %844 = vperm.xlu1 %3813, %v3617_v41   ;;  %840 = vperm.xlu0 %3812, %v3616_v42  }
  0x69   : > { %852 = vperm.xlu1 %3813, %v3619_v43   ;;  %848 = vperm.xlu0 %3812, %v3618_v44  }
  0x6d   : > { %860 = vperm.xlu1 %3813, %v3621_v45   ;;  %856 = vperm.xlu0 %3812, %v3620_v46  }
  0x71   : > { %868 = vperm.xlu1 %3813, %v3623_v47   ;;  %864 = vperm.xlu0 %3812, %v3622_v48  }
  0x75   : > { %948 = vperm.xlu1 %3813, %v3625_v49   ;;  %944 = vperm.xlu0 %3812, %v3624_v50   ;;  %v223_v49 = vld [vmem:[%s4308_s9] sm:$0xff]  ;;  %v224_v50 = vld [vmem:[%s4308_s9 + $0x8] sm:$0xff] }
  0x79   : > { %956 = vperm.xlu1 %3813, %v3627_v51   ;;  %952 = vperm.xlu0 %3812, %v3626_v52  }
  0x7d   : > { %964 = vperm.xlu1 %3813, %v3629_v53   ;;  %960 = vperm.xlu0 %3812, %v3628_v54  }
  0x81   : > { %972 = vperm.xlu1 %3813, %v3631_v55   ;;  %968 = vperm.xlu0 %3812, %v3630_v56  }
  0x85   : > { %1052 = vperm.xlu1 %3813, %v3633_v57   ;;  %1048 = vperm.xlu0 %3812, %v3632_v58  }
  0x89   : > { %1060 = vperm.xlu1 %3813, %v3635_v59   ;;  %1056 = vperm.xlu0 %3812, %v3634_v60  }
  0x8d   : > { %1068 = vperm.xlu1 %3813, %v3637_v61   ;;  %1064 = vperm.xlu0 %3812, %v3636_v62  }
  0x90   : > { %v4217_v1 = vpop.permute.xlu1 %360  ;;  %v4219_v2 = vpop.permute.xlu0 %352 }
  0x91   : > { %1076 = vperm.xlu1 %3813, %v3639_v63   ;;  %1072 = vperm.xlu0 %3812, %v3638_v0  }
  0x94   : > { %v4227_v5 = vpop.permute.xlu1 %364  ;;  %v4229_v6 = vpop.permute.xlu0 %356 }
  0x95   : > { %1156 = vperm.xlu1 %3813, %v3641_v3   ;;  %1152 = vperm.xlu0 %3812, %v3640_v4  }
  0x98   : > { %v4237_v9 = vpop.permute.xlu1 %372  ;;  %v4239_v10 = vpop.permute.xlu0 %368 }
  0x99   : > { %1164 = vperm.xlu1 %3813, %v3643_v7   ;;  %1160 = vperm.xlu0 %3812, %v3642_v8  }
  0x9c   : > { %v4247_v13 = vpop.permute.xlu1 %380  ;;  %v4249_v14 = vpop.permute.xlu0 %376 }
  0x9d   : > { %1172 = vperm.xlu1 %3813, %v3645_v11   ;;  %1168 = vperm.xlu0 %3812, %v3644_v12  }
  0xa0   : > { %v429_v17 = vpop.permute.xlu1 %428  ;;  %v425_v18 = vpop.permute.xlu0 %424 }
  0xa1   : > { %1180 = vperm.xlu1 %3813, %v3647_v15   ;;  %1176 = vperm.xlu0 %3812, %v3646_v16   ;;  %v457_v51 = vmul.f32 %v429_v17, %v223_v49  ;;  %v458_v52 = vmul.f32 %v429_v17, %v224_v50  ;;  %v455_v55 = vmul.f32 %v425_v18, %v223_v49 }
  0xa2   : > { %v456_v56 = vmul.f32 %v425_v18, %v224_v50  ;;  %v225_v18 = vld [vmem:[%s4308_s9 + $0x10] sm:$0xff] }
  0xa3   : > { %v473_v0 = vadd.f32 %v457_v51, %v4229_v6  ;;  %v474_v3 = vadd.f32 %v458_v52, %v4229_v6  ;;  %v471_v12 = vadd.f32 %v455_v55, %v4219_v2 }
  0xa4   : > { %v437_v19 = vpop.permute.xlu1 %436  ;;  %v433_v20 = vpop.permute.xlu0 %432  ;;  %v472_v15 = vadd.f32 %v456_v56, %v4219_v2 }
  0xa5   : > { %v461_v57 = vmul.f32 %v437_v19, %v223_v49  ;;  %v462_v58 = vmul.f32 %v437_v19, %v224_v50  ;;  %v459_v59 = vmul.f32 %v433_v20, %v223_v49  ;;  %v460_v60 = vmul.f32 %v433_v20, %v224_v50  ;;  %v226_v19 = vld [vmem:[%s4308_s9 + $0x18] sm:$0xff] }
  0xa7   : > { %v477_v16 = vadd.f32 %v461_v57, %v4227_v5  ;;  %v478_v17 = vadd.f32 %v462_v58, %v4227_v5  ;;  %v475_v20 = vadd.f32 %v459_v59, %v4217_v1  ;;  %v476_v6 = vadd.f32 %v460_v60, %v4217_v1 }
  0xa8   : > { %v445_v21 = vpop.permute.xlu1 %444  ;;  %v441_v22 = vpop.permute.xlu0 %440 }
  0xa9   : > { %v465_v61 = vmul.f32 %v445_v21, %v223_v49  ;;  %v466_v62 = vmul.f32 %v445_v21, %v224_v50  ;;  %v463_v63 = vmul.f32 %v441_v22, %v223_v49  ;;  %v464_v4 = vmul.f32 %v441_v22, %v224_v50 }
  0xab   : > { %v481_v21 = vadd.f32 %v465_v61, %v4237_v9  ;;  %v482_v51 = vadd.f32 %v466_v62, %v4237_v9  ;;  %v479_v52 = vadd.f32 %v463_v63, %v4239_v10  ;;  %v480_v56 = vadd.f32 %v464_v4, %v4239_v10 }
  0xac   : > { %v453_v23 = vpop.permute.xlu1 %452  ;;  %v4257_v24 = vpop.permute.xlu0 %448 }
  0xad   : > { %v469_v7 = vmul.f32 %v453_v23, %v223_v49  ;;  %v470_v22 = vmul.f32 %v453_v23, %v224_v50  ;;  %v467_v55 = vmul.f32 %v4257_v24, %v223_v49  ;;  %v468_v2 = vmul.f32 %v4257_v24, %v224_v50 }
  0xaf   : > { %v485_v5 = vadd.f32 %v469_v7, %v4247_v13  ;;  %v486_v10 = vadd.f32 %v470_v22, %v4247_v13  ;;  %v483_v61 = vadd.f32 %v467_v55, %v4249_v14  ;;  %v484_v62 = vadd.f32 %v468_v2, %v4249_v14  ;;  %v228_v14 = vld [vmem:[%s4308_s9 + $0x28] sm:$0xff] }
  0xb0   : > { %v4259_v25 = vpop.permute.xlu1 %532  ;;  %v4261_v26 = vpop.permute.xlu0 %528 }
  0xb1   : > { %v561_v57 = vmul.f32 %v4259_v25, %v225_v18  ;;  %v562_v58 = vmul.f32 %v4259_v25, %v226_v19  ;;  %v559_v9 = vmul.f32 %v4261_v26, %v225_v18  ;;  %v560_v23 = vmul.f32 %v4261_v26, %v226_v19 }
  0xb3   : > { %v577_v4 = vadd.f32 %v561_v57, %v473_v0 }
  0xb4   : > { %v4263_v27 = vpop.permute.xlu1 %540  ;;  %v4265_v28 = vpop.permute.xlu0 %536 }
  0xb5   : > { %v565_v49 = vmul.f32 %v4263_v27, %v225_v18  ;;  %v566_v24 = vmul.f32 %v4263_v27, %v226_v19  ;;  %v563_v50 = vmul.f32 %v4265_v28, %v225_v18  ;;  %v564_v60 = vmul.f32 %v4265_v28, %v226_v19 }
  0xb6   : > { %v578_v27 = vadd.f32 %v562_v58, %v474_v3 }
  0xb7   : > { %v582_v55 = vadd.f32 %v566_v24, %v478_v17  ;;  %v579_v2 = vadd.f32 %v563_v50, %v475_v20 }
  0xb8   : > { %v4267_v29 = vpop.permute.xlu1 %548  ;;  %v4269_v30 = vpop.permute.xlu0 %544 }
  0xb9   : > { %v569_v25 = vmul.f32 %v4267_v29, %v225_v18  ;;  %v570_v26 = vmul.f32 %v4267_v29, %v226_v19  ;;  %v567_v63 = vmul.f32 %v4269_v30, %v225_v18  ;;  %v568_v13 = vmul.f32 %v4269_v30, %v226_v19 }
  0xba   : > { %v580_v29 = vadd.f32 %v564_v60, %v476_v6 }
  0xbb   : > { %v586_v3 = vadd.f32 %v570_v26, %v482_v51  ;;  %v583_v57 = vadd.f32 %v567_v63, %v479_v52 }
  0xbc   : > { %v4271_v31 = vpop.permute.xlu1 %556  ;;  %v4273_v32 = vpop.permute.xlu0 %552 }
  0xbd   : > { %v573_v7 = vmul.f32 %v4271_v31, %v225_v18  ;;  %v574_v0 = vmul.f32 %v4271_v31, %v226_v19  ;;  %v571_v30 = vmul.f32 %v4273_v32, %v225_v18  ;;  %v572_v58 = vmul.f32 %v4273_v32, %v226_v19 }
  0xbf   : > { %v587_v51 = vadd.f32 %v571_v30, %v483_v61  ;;  %v588_v52 = vadd.f32 %v572_v58, %v484_v62  ;;  %v230_v61 = vld [vmem:[%s4308_s9 + $0x38] sm:$0xff] }
  0xc0   : > { %v4275_v33 = vpop.permute.xlu1 %636  ;;  %v4277_v34 = vpop.permute.xlu0 %632 }
  0xc1   : > { %v664_v31 = vmul.f32 %v4277_v34, %v228_v14 }
  0xc4   : > { %v4279_v35 = vpop.permute.xlu1 %644  ;;  %v4281_v36 = vpop.permute.xlu0 %640 }
  0xc5   : > { %v670_v18 = vmul.f32 %v4279_v35, %v228_v14  ;;  %v668_v19 = vmul.f32 %v4281_v36, %v228_v14 }
  0xc7   : > { %v686_v60 = vadd.f32 %v670_v18, %v582_v55  ;;  %v231_v18 = vld [vmem:[%s4308_s9 + $0x40] sm:$0xff] }
  0xc8   : > { %v4283_v37 = vpop.permute.xlu1 %652  ;;  %v4285_v38 = vpop.permute.xlu0 %648 }
  0xcc   : > { %v4287_v39 = vpop.permute.xlu1 %660  ;;  %v4289_v40 = vpop.permute.xlu0 %656 }
  0xcd   : > { %v678_v63 = vmul.f32 %v4287_v39, %v228_v14 }
  0xd0   : > { %v4292_v41 = vpop.permute.xlu1 %740  ;;  %v4294_v42 = vpop.permute.xlu0 %736 }
  0xd4   : > { %v4297_v43 = vpop.permute.xlu1 %748  ;;  %v4299_v44 = vpop.permute.xlu0 %744 }
  0xd8   : > { %v4301_v45 = vpop.permute.xlu1 %756  ;;  %v4303_v46 = vpop.permute.xlu0 %752 }
  0xd9   : > { %v776_v58 = vmul.f32 %v4303_v46, %v230_v61 }
  0xdc   : > { %v4310_v47 = vpop.permute.xlu1 %764  ;;  %v4312_v48 = vpop.permute.xlu0 %760 }
  0xe0   : > { %v4316_v53 = vpop.permute.xlu1 %844  ;;  %v4318_v54 = vpop.permute.xlu0 %840 }
  0xe1   : > { %6086 = vst [vmem:[#allocation5_spill] sm:$0xff] %v4316_v53  ;;  %6087 = vst [vmem:[#allocation6_spill] sm:$0xff] %v4318_v54  ;;  %v585_v54 = vadd.f32 %v569_v25, %v481_v21  ;;  %v589_v53 = vadd.f32 %v573_v7, %v485_v5  ;;  %v590_v21 = vadd.f32 %v574_v0, %v486_v10  ;;  %v229_v25 = vld [vmem:[%s4308_s9 + $0x30] sm:$0xff] }
  0xe4   : > { %v4322_v8 = vpop.permute.xlu1 %852  ;;  %v4324_v11 = vpop.permute.xlu0 %848 }
  0xe5   : > { %6088 = vst [vmem:[#allocation7_spill] sm:$0xff] %v4322_v8  ;;  %6089 = vst [vmem:[#allocation8_spill] sm:$0xff] %v4324_v11  ;;  %v581_v11 = vadd.f32 %v565_v49, %v477_v16  ;;  %v227_v8 = vld [vmem:[%s4308_s9 + $0x20] sm:$0xff] }
  0xe6   : > { %v663_v20 = vmul.f32 %v4277_v34, %v227_v8  ;;  %v669_v6 = vmul.f32 %v4279_v35, %v227_v8  ;;  %v667_v32 = vmul.f32 %v4281_v36, %v227_v8  ;;  %v671_v5 = vmul.f32 %v4285_v38, %v227_v8 }
  0xe7   : > { %v677_v35 = vmul.f32 %v4287_v39, %v227_v8  ;;  %v768_v39 = vmul.f32 %v4294_v42, %v230_v61 }
  0xe8   : > { %v4343_v1 = vpop.permute.xlu1 %860  ;;  %v4345_v59 = vpop.permute.xlu0 %856  ;;  %v685_v50 = vadd.f32 %v669_v6, %v581_v11  ;;  %v683_v62 = vadd.f32 %v667_v32, %v579_v2  ;;  %v770_v11 = vmul.f32 %v4292_v41, %v230_v61  ;;  %v773_v2 = vmul.f32 %v4297_v43, %v229_v25 }
  0xe9   : > { %6090 = vst [vmem:[#allocation9_spill] sm:$0xff] %v4343_v1  ;;  %6091 = vst [vmem:[#allocation10_spill] sm:$0xff] %v4345_v59  ;;  %v575_v59 = vadd.f32 %v559_v9, %v471_v12  ;;  %v576_v1 = vadd.f32 %v560_v23, %v472_v15  ;;  %v665_v12 = vmul.f32 %v4275_v33, %v227_v8 }
  0xea   : > { %v666_v15 = vmul.f32 %v4275_v33, %v228_v14  ;;  %v673_v33 = vmul.f32 %v4283_v37, %v227_v8  ;;  %v672_v23 = vmul.f32 %v4285_v38, %v228_v14  ;;  %v675_v38 = vmul.f32 %v4289_v40, %v227_v8 }
  0xeb   : > { %v681_v34 = vadd.f32 %v665_v12, %v577_v4  ;;  %v679_v36 = vadd.f32 %v663_v20, %v575_v59  ;;  %v680_v10 = vadd.f32 %v664_v31, %v576_v1  ;;  %v693_v0 = vadd.f32 %v677_v35, %v589_v53 }
  0xec   : > { %v4361_v22 = vpop.permute.xlu1 %868  ;;  %v4363_v28 = vpop.permute.xlu0 %864  ;;  %v682_v9 = vadd.f32 %v666_v15, %v578_v27  ;;  %v689_v26 = vadd.f32 %v673_v33, %v585_v54  ;;  %v687_v27 = vadd.f32 %v671_v5, %v583_v57  ;;  %v769_v59 = vmul.f32 %v4292_v41, %v229_v25 }
  0xed   : > { %6092 = vst [vmem:[#allocation11_spill] sm:$0xff] %v4361_v22  ;;  %v584_v22 = vadd.f32 %v568_v13, %v480_v56  ;;  %v674_v56 = vmul.f32 %v4283_v37, %v228_v14  ;;  %v684_v37 = vadd.f32 %v668_v19, %v580_v29  ;;  %v676_v13 = vmul.f32 %v4289_v40, %v228_v14 }
  0xee   : > { %v767_v54 = vmul.f32 %v4294_v42, %v229_v25  ;;  %v774_v8 = vmul.f32 %v4297_v43, %v230_v61  ;;  %v694_v29 = vadd.f32 %v678_v63, %v590_v21  ;;  %v771_v40 = vmul.f32 %v4299_v44, %v229_v25  ;;  %v232_v21 = vld [vmem:[%s4308_s9 + $0x48] sm:$0xff]  ;;  %v6096_v63 = vld [vmem:[#allocation8_spill] sm:$0xff] }
  0xef   : > { %v690_v4 = vadd.f32 %v674_v56, %v586_v3  ;;  %v688_v7 = vadd.f32 %v672_v23, %v584_v22  ;;  %v772_v53 = vmul.f32 %v4299_v44, %v230_v61  ;;  %v777_v41 = vmul.f32 %v4301_v45, %v229_v25 }
  0xf0   : > { %v4372_v16 = vpop.permute.xlu1 %948  ;;  %v4374_v17 = vpop.permute.xlu0 %944  ;;  %v691_v22 = vadd.f32 %v675_v38, %v587_v51  ;;  %v692_v14 = vadd.f32 %v676_v13, %v588_v52  ;;  %v778_v3 = vmul.f32 %v4301_v45, %v230_v61  ;;  %v775_v57 = vmul.f32 %v4303_v46, %v229_v25 }
  0xf1   : > { %v785_v42 = vadd.f32 %v769_v59, %v681_v34  ;;  %v786_v30 = vadd.f32 %v770_v11, %v682_v9  ;;  %v781_v43 = vmul.f32 %v4310_v47, %v229_v25  ;;  %v783_v44 = vadd.f32 %v767_v54, %v679_v36  ;;  %v6093_v9 = vld [vmem:[#allocation5_spill] sm:$0xff] }
  0xf2   : > { %v784_v20 = vadd.f32 %v768_v39, %v680_v10  ;;  %v789_v31 = vadd.f32 %v773_v2, %v685_v50  ;;  %v790_v6 = vadd.f32 %v774_v8, %v686_v60  ;;  %v787_v32 = vadd.f32 %v771_v40, %v683_v62  ;;  %v6094_v50 = vld [vmem:[#allocation6_spill] sm:$0xff] }
  0xf3   : > { %v788_v45 = vadd.f32 %v772_v53, %v684_v37  ;;  %v793_v19 = vadd.f32 %v777_v41, %v689_v26  ;;  %v782_v33 = vmul.f32 %v4310_v47, %v230_v61  ;;  %v794_v51 = vadd.f32 %v778_v3, %v690_v4  ;;  %v6095_v47 = vld [vmem:[#allocation7_spill] sm:$0xff]  ;;  %v6097_v4 = vld [vmem:[#allocation9_spill] sm:$0xff] }
  0xf4   : > { %v4387_v49 = vpop.permute.xlu1 %956  ;;  %v4389_v24 = vpop.permute.xlu0 %952  ;;  %v791_v52 = vadd.f32 %v775_v57, %v687_v27  ;;  %v779_v46 = vmul.f32 %v4312_v48, %v229_v25  ;;  %v780_v56 = vmul.f32 %v4312_v48, %v230_v61  ;;  %v792_v5 = vadd.f32 %v776_v58, %v688_v7  ;;  %v6099_v2 = vld [vmem:[#allocation11_spill] sm:$0xff] }
  0xf5   : > { %v797_v34 = vadd.f32 %v781_v43, %v693_v0  ;;  %v873_v23 = vmul.f32 %v6093_v9, %v231_v18  ;;  %v874_v35 = vmul.f32 %v6093_v9, %v232_v21  ;;  %v871_v60 = vmul.f32 %v6094_v50, %v231_v18  ;;  %v6098_v0 = vld [vmem:[#allocation10_spill] sm:$0xff] }
  0xf6   : > { %v872_v62 = vmul.f32 %v6094_v50, %v232_v21  ;;  %v877_v37 = vmul.f32 %v6095_v47, %v231_v18  ;;  %v878_v26 = vmul.f32 %v6095_v47, %v232_v21  ;;  %v798_v25 = vadd.f32 %v782_v33, %v694_v29 }
  0xf7   : > { %v875_v48 = vmul.f32 %v6096_v63, %v231_v18  ;;  %v876_v61 = vmul.f32 %v6096_v63, %v232_v21  ;;  %v881_v27 = vmul.f32 %v6097_v4, %v231_v18  ;;  %v795_v38 = vadd.f32 %v779_v46, %v691_v22  ;;  %v233_v22 = vld [vmem:[%s4308_s9 + $0x50] sm:$0xff] }
  0xf8   : > { %v4398_v1 = vpop.permute.xlu1 %964  ;;  %v4400_v55 = vpop.permute.xlu0 %960  ;;  %v796_v13 = vadd.f32 %v780_v56, %v692_v14  ;;  %v882_v7 = vmul.f32 %v6097_v4, %v232_v21  ;;  %v879_v59 = vmul.f32 %v6098_v0, %v231_v18  ;;  %v889_v11 = vadd.f32 %v873_v23, %v785_v42  ;;  %v234_v14 = vld [vmem:[%s4308_s9 + $0x58] sm:$0xff] }
  0xf9   : > { %v890_v54 = vadd.f32 %v874_v35, %v786_v30  ;;  %v880_v39 = vmul.f32 %v6098_v0, %v232_v21  ;;  %v885_v8 = vmul.f32 %v6099_v2, %v231_v18  ;;  %v887_v53 = vadd.f32 %v871_v60, %v783_v44 }
  0xfa   : > { %v888_v41 = vadd.f32 %v872_v62, %v784_v20  ;;  %v893_v3 = vadd.f32 %v877_v37, %v789_v31  ;;  %v894_v57 = vadd.f32 %v878_v26, %v790_v6  ;;  %v891_v58 = vadd.f32 %v875_v48, %v787_v32 }
  0xfb   : > { %v892_v43 = vadd.f32 %v876_v61, %v788_v45  ;;  %v897_v33 = vadd.f32 %v881_v27, %v793_v19  ;;  %v886_v42 = vmul.f32 %v6099_v2, %v232_v21  ;;  %v898_v30 = vadd.f32 %v882_v7, %v794_v51  ;;  %v4484_v7 = vld [vmem:[%s4308_s9 + $0x78] sm:$0xff] }
  0xfc   : > { %v4413_v12 = vpop.permute.xlu1 %972  ;;  %v4415_v15 = vpop.permute.xlu0 %968  ;;  %v895_v46 = vadd.f32 %v879_v59, %v791_v52  ;;  %v883_v56 = vmul.f32 %v4363_v28, %v231_v18  ;;  %v884_v9 = vmul.f32 %v4363_v28, %v232_v21  ;;  %v896_v23 = vadd.f32 %v880_v39, %v792_v5  ;;  %v4459_v28 = vld [vmem:[%s4308_s9 + $0x60] sm:$0xff]  ;;  %v4462_v21 = vld [vmem:[%s4308_s9 + $0x68] sm:$0xff] }
  0xfd   : > { %v4446_v44 = vadd.f32 %v885_v8, %v797_v34  ;;  %v977_v20 = vmul.f32 %v4372_v16, %v233_v22  ;;  %v978_v31 = vmul.f32 %v4372_v16, %v234_v14  ;;  %v975_v45 = vmul.f32 %v4374_v17, %v233_v22 }
  0xfe   : > { %v976_v19 = vmul.f32 %v4374_v17, %v234_v14  ;;  %v981_v51 = vmul.f32 %v4387_v49, %v233_v22  ;;  %v982_v18 = vmul.f32 %v4387_v49, %v234_v14  ;;  %v902_v52 = vadd.f32 %v886_v42, %v798_v25 }
  0xff   : > { %v979_v5 = vmul.f32 %v4389_v24, %v233_v22  ;;  %v980_v16 = vmul.f32 %v4389_v24, %v234_v14  ;;  %v985_v34 = vmul.f32 %v4398_v1, %v233_v22  ;;  %v899_v35 = vadd.f32 %v883_v56, %v795_v38 }
 0x100   : > { %v4424_v36 = vpop.permute.xlu1 %1052  ;;  %v1049_v10 = vpop.permute.xlu0 %1048  ;;  %v4467_v50 = vadd.f32 %v884_v9, %v796_v13  ;;  %v986_v17 = vmul.f32 %v4398_v1, %v234_v14  ;;  %v983_v60 = vmul.f32 %v4400_v55, %v233_v22  ;;  %v993_v49 = vadd.f32 %v977_v20, %v889_v11  ;;  %v4481_v13 = vld [vmem:[%s4308_s9 + $0x70] sm:$0xff] }
 0x101   : > { %v994_v62 = vadd.f32 %v978_v31, %v890_v54  ;;  %v1079_v47 = vmul.f32 %v1049_v10, %v4459_v28  ;;  %v1080_v37 = vmul.f32 %v1049_v10, %v4462_v21  ;;  %v991_v25 = vadd.f32 %v975_v45, %v887_v53 }
 0x102   : > { %v992_v63 = vadd.f32 %v976_v19, %v888_v41  ;;  %v997_v48 = vadd.f32 %v981_v51, %v893_v3  ;;  %v998_v61 = vadd.f32 %v982_v18, %v894_v57  ;;  %v995_v4 = vadd.f32 %v979_v5, %v891_v58 }
 0x103   : > { %v996_v1 = vadd.f32 %v980_v16, %v892_v43  ;;  %v4477_v27 = vadd.f32 %v985_v34, %v897_v33  ;;  %v984_v38 = vmul.f32 %v4400_v55, %v234_v14  ;;  %v4486_v0 = vadd.f32 %v986_v17, %v898_v30 }
 0x104   : > { %v4437_v29 = vpop.permute.xlu1 %1060  ;;  %v4439_v40 = vpop.permute.xlu0 %1056  ;;  %v999_v10 = vadd.f32 %v983_v60, %v895_v46  ;;  %v990_v59 = vmul.f32 %v4413_v12, %v234_v14  ;;  %v1082_v11 = vmul.f32 %v4424_v36, %v4462_v21  ;;  %v987_v54 = vmul.f32 %v4415_v15, %v233_v22 }
 0x105   : > { %v1081_v39 = vmul.f32 %v4424_v36, %v4459_v28  ;;  %v1095_v2 = vadd.f32 %v1079_v47, %v991_v25  ;;  %v1096_v8 = vadd.f32 %v1080_v37, %v992_v63  ;;  %v1083_v41 = vmul.f32 %v4439_v40, %v4459_v28 }
 0x106   : > { %v1000_v43 = vadd.f32 %v984_v38, %v896_v23  ;;  %v4500_v33 = vmul.f32 %v4413_v12, %v233_v22  ;;  %v988_v42 = vmul.f32 %v4415_v15, %v234_v14  ;;  %v1084_v36 = vmul.f32 %v4439_v40, %v4462_v21 }
 0x107   : > { %v1098_v30 = vadd.f32 %v1082_v11, %v994_v62  ;;  %v4510_v20 = vadd.f32 %v990_v59, %v902_v52  ;;  %v4512_v31 = vadd.f32 %v987_v54, %v899_v35  ;;  %v1097_v23 = vadd.f32 %v1081_v39, %v993_v49 }
 0x108   : > { %v4450_v6 = vpop.permute.xlu1 %1068  ;;  %v4452_v32 = vpop.permute.xlu0 %1064  ;;  %v1085_v12 = vmul.f32 %v4437_v29, %v4459_v28  ;;  %v1086_v40 = vmul.f32 %v4437_v29, %v4462_v21  ;;  %v1099_v14 = vadd.f32 %v1083_v41, %v995_v4  ;;  %v1100_v51 = vadd.f32 %v1084_v36, %v996_v1 }
 0x109   : > { %v1088_v18 = vmul.f32 %v4452_v32, %v4462_v21  ;;  %v1087_v60 = vmul.f32 %v4452_v32, %v4459_v28  ;;  %v1089_v38 = vmul.f32 %v4450_v6, %v4459_v28 }
 0x10a   : > { %v1101_v17 = vadd.f32 %v1085_v12, %v997_v48  ;;  %v1102_v37 = vadd.f32 %v1086_v40, %v998_v61  ;;  %v1090_v48 = vmul.f32 %v4450_v6, %v4462_v21 }
 0x10b   : > { %v1104_v59 = vadd.f32 %v1088_v18, %v1000_v43 }
 0x10c   : > { %v4473_v26 = vpop.permute.xlu1 %1076  ;;  %v4475_v24 = vpop.permute.xlu0 %1072 }
 0x110   : > { %v1157_v55 = vpop.permute.xlu1 %1156  ;;  %v1153_v53 = vpop.permute.xlu0 %1152 }
 0x111   : > { %v1186_v3 = vmul.f32 %v1157_v55, %v4484_v7  ;;  %v1183_v57 = vmul.f32 %v1153_v53, %v4481_v13  ;;  %v1184_v58 = vmul.f32 %v1153_v53, %v4484_v7  ;;  %v1185_v46 = vmul.f32 %v1157_v55, %v4481_v13 }
 0x112   : > { %v1004_v53 = vadd.f32 %v988_v42, %v4467_v50  ;;  %v1105_v42 = vadd.f32 %v1089_v38, %v4477_v27 }
 0x113   : > { %v4506_v56 = vadd.f32 %v1183_v57, %v1095_v2  ;;  %v4508_v9 = vadd.f32 %v1184_v58, %v1096_v8  ;;  %v4518_v45 = vadd.f32 %v1186_v3, %v1098_v30  ;;  %v4525_v16 = vadd.f32 %v1185_v46, %v1097_v23 }
 0x114   : > { %v1165_v22 = vpop.permute.xlu1 %1164  ;;  %v1161_v15 = vpop.permute.xlu0 %1160  ;;  %v1103_v2 = vadd.f32 %v1087_v60, %v999_v10  ;;  %v1106_v57 = vadd.f32 %v1090_v48, %v4486_v0  ;;  %v1092_v58 = vmul.f32 %v4475_v24, %v4462_v21  ;;  %v1091_v23 = vmul.f32 %v4475_v24, %v4459_v28 }
 0x115   : > { %v1232_v19 = vmin.f32 %v4508_v9, 0.0  ;;  %v1187_v52 = vmul.f32 %v1161_v15, %v4481_v13  ;;  %v1188_v5 = vmul.f32 %v1161_v15, %v4484_v7  ;;  %v1231_v34 = vmin.f32 %v4506_v56, 0.0 }
 0x116   : > { %v1189_v35 = vmul.f32 %v1165_v22, %v4481_v13  ;;  %v1190_v29 = vmul.f32 %v1165_v22, %v4484_v7  ;;  %v1234_v25 = vmin.f32 %v4518_v45, 0.0  ;;  %v1233_v11 = vmin.f32 %v4525_v16, 0.0 }
 0x117   : > { %v4532_v49 = vadd.f32 %v1188_v5, %v1100_v51  ;;  %v1249_v47 = vmul.f32 1.442695, %v1232_v19  ;;  %v4535_v63 = vadd.f32 %v1187_v52, %v1099_v14  ;;  %v1247_v39 = vmul.f32 1.442695, %v1231_v34 }
 0x118   : > { %v1169_v62 = vpop.permute.xlu0 %1168  ;;  %v1173_v4 = vpop.permute.xlu1 %1172  ;;  %v4544_v54 = vadd.f32 %v1189_v35, %v1101_v17  ;;  %v4546_v61 = vadd.f32 %v1190_v29, %v1102_v37  ;;  %v1253_v3 = vmul.f32 1.442695, %v1234_v25  ;;  %v1251_v50 = vmul.f32 1.442695, %v1233_v11 }
 0x119   : > { %v1192_v1 = vmul.f32 %v1169_v62, %v4484_v7  ;;  %v1191_v32 = vmul.f32 %v1169_v62, %v4481_v13  ;;  %v1236_v8 = vmin.f32 %v4532_v49, 0.0  ;;  %v1194_v55 = vmul.f32 %v1173_v4, %v4484_v7 }
 0x11a   : > { %3814 = vpow2.f32 %v1249_v47  ;;  %v1235_v6 = vmin.f32 %v4535_v63, 0.0  ;;  %v1193_v43 = vmul.f32 %v1173_v4, %v4481_v13  ;;  %v1237_v30 = vmin.f32 %v4544_v54, 0.0 }
 0x11b   : > { %v4552_v41 = vadd.f32 %v1192_v1, %v1104_v59  ;;  %v4558_v10 = vadd.f32 %v1191_v32, %v1103_v2  ;;  %v1238_v46 = vmin.f32 %v4546_v61, 0.0  ;;  %3816 = vpow2.f32 %v1247_v39 }
 0x11c   : > { %v1177_v36 = vpop.permute.xlu0 %1176  ;;  %v4565_v0 = vadd.f32 %v1194_v55, %v1106_v57  ;;  %v1257_v12 = vmul.f32 1.442695, %v1236_v8  ;;  %3818 = vpow2.f32 %v1253_v3  ;;  %v1255_v40 = vmul.f32 1.442695, %v1235_v6  ;;  %v1181_v18 = vpop.permute.xlu1 %1180 }
 0x11d   : > { %v1240_v22 = vmin.f32 %v4552_v41, 0.0  ;;  %v1196_v15 = vmul.f32 %v1177_v36, %v4484_v7  ;;  %v1094_v14 = vmul.f32 %v4473_v26, %v4462_v21  ;;  %v1108_v19 = vadd.f32 %v1092_v58, %v1004_v53 }
 0x11e   : > { %v4571_v51 = vadd.f32 %v1193_v43, %v1105_v42  ;;  %v1239_v27 = vmin.f32 %v4558_v10, 0.0  ;;  %v1195_v24 = vmul.f32 %v1177_v36, %v4481_v13  ;;  %3820 = vpow2.f32 %v1251_v50 }
 0x11f   : > { %v1261_v52 = vmul.f32 1.442695, %v1238_v46  ;;  %v1259_v5 = vmul.f32 1.442695, %v1237_v30  ;;  %v1093_v34 = vmul.f32 %v4473_v26, %v4459_v28  ;;  %v1107_v35 = vadd.f32 %v1091_v23, %v4512_v31 }
 0x120   : > { %v1242_v29 = vmin.f32 %v4565_v0, 0.0  ;;  %3822 = vpow2.f32 %v1257_v12  ;;  %v1198_v21 = vmul.f32 %v1181_v18, %v4484_v7  ;;  %v4580_v17 = vadd.f32 %v1196_v15, %v1108_v19 }
 0x121   : > { %3824 = vpow2.f32 %v1255_v40  ;;  %v1265_v60 = vmul.f32 1.442695, %v1240_v22  ;;  %v1005_v62 = vadd.f32 %v4500_v33, %v4446_v44  ;;  %v1110_v47 = vadd.f32 %v1094_v14, %v4510_v20 }
 0x122   : > { %v1197_v37 = vmul.f32 %v1181_v18, %v4481_v13  ;;  %3826 = vpow2.f32 %v1261_v52  ;;  %v1241_v28 = vmin.f32 %v4571_v51, 0.0  ;;  %v4587_v26 = vadd.f32 %v1195_v24, %v1107_v35 }
 0x123   : > { %3828 = vpow2.f32 %v1259_v5  ;;  %v1263_v31 = vmul.f32 1.442695, %v1239_v27  ;;  %v1109_v25 = vadd.f32 %v1093_v34, %v1005_v62  ;;  %v4589_v4 = vadd.f32 %v1198_v21, %v1110_v47 }
 0x124   : > { %v1244_v1 = vmin.f32 %v4580_v17, 0.0  ;;  %3830 = vpow2.f32 %v1265_v60  ;;  %v1269_v38 = vmul.f32 1.442695, %v1242_v29  ;;  %v1243_v13 = vmin.f32 %v4587_v26, 0.0 }
 0x125   : > { %v4592_v44 = vadd.f32 %v1197_v37, %v1109_v25  ;;  %vm1216_vm0 = vcmp.gt.f32.partialorder %v4508_v9, 0.0  ;;  %3832 = vpow2.f32 %v1263_v31  ;;  %v1267_v20 = vmul.f32 1.442695, %v1241_v28  ;;  %v3665_v28 = vld [vmem:[%s6057_s4 + $0x1] ss:$0 sm:$0xff] }
 0x126   : > { %v1246_v32 = vmin.f32 %v4589_v4, 0.0  ;;  %3834 = vpow2.f32 %v1269_v38  ;;  %v1273_v39 = vmul.f32 1.442695, %v1244_v1  ;;  %vm1215_vm1 = vcmp.gt.f32.partialorder %v4506_v56, 0.0  ;;  %v3667_v31 = vld [vmem:[%s6057_s4 + $0x3] ss:$0 sm:$0xff] }
 0x127   : > { %v3815_v7 = vpop.eup %3814  ;;  %v1245_v8 = vmin.f32 %v4592_v44, 0.0  ;;  %3836 = vpow2.f32 %v1267_v20  ;;  %v1271_v6 = vmul.f32 1.442695, %v1243_v13  ;;  %vm1218_vm2 = vcmp.gt.f32.partialorder %v4518_v45, 0.0  ;;  %v3666_v25 = vld [vmem:[%s6057_s4 + $0x2] ss:$0 sm:$0xff] }
 0x128   : > { %v3649_v33 = vadd.f32 -1.0, %v3815_v7  ;;  %v3817_v48 = vpop.eup %3816  ;;  %3838 = vpow2.f32 %v1273_v39  ;;  %v1277_v43 = vmul.f32 1.442695, %v1246_v32  ;;  %vm1217_vm3 = vcmp.gt.f32.partialorder %v4525_v16, 0.0  ;;  %v3669_v7 = vld [vmem:[%s6057_s4 + $0x5] ss:$0 sm:$0xff] }
 0x129   : > { %v3648_v11 = vadd.f32 -1.0, %v3817_v48  ;;  %v3819_v2 = vpop.eup %3818  ;;  %3840 = vpow2.f32 %v1271_v6  ;;  %v1275_v42 = vmul.f32 1.442695, %v1245_v8  ;;  %vm1220_vm4 = vcmp.gt.f32.partialorder %v4532_v49, 0.0  ;;  %v3671_v1 = vld [vmem:[%s6057_s4 + $0x7] ss:$0 sm:$0xff] }
 0x12a   : > { %v1296_v59 = vsel %vm1216_vm0, %v4508_v9, %v3649_v33  ;;  %v3651_v53 = vadd.f32 -1.0, %v3819_v2  ;;  %3842 = vpow2.f32 %v1277_v43  ;;  %vm1219_vm5 = vcmp.gt.f32.partialorder %v4535_v63, 0.0  ;;  %v3670_v38 = vld [vmem:[%s6057_s4 + $0x6] ss:$0 sm:$0xff]  ;;  %v3672_v33 = vld [vmem:[%s6056_s3] ss:$0 sm:$0xff] }
 0x12b   : > { %1329 = vrot.lane.b32.xlu1 %v1296_v59, %s3941_s10  ;;  %v1295_v55 = vsel %vm1215_vm1, %v4506_v56, %v3648_v11  ;;  %v3821_v3 = vpop.eup %3820  ;;  %3844 = vpow2.f32 %v1275_v42  ;;  %vm1222_vm6 = vcmp.gt.f32.partialorder %v4546_v61, 0.0  ;;  %vm1221_vm7 = vcmp.gt.f32.partialorder %v4544_v54, 0.0  ;;  %v3675_v13 = vld [vmem:[%s6056_s3 + $0x3] ss:$0 sm:$0xff]  ;;  %v3674_v20 = vld [vmem:[%s6056_s3 + $0x2] ss:$0 sm:$0xff] }
 0x12c   : > { %1327 = vrot.lane.b32.xlu0 %v1295_v55, %s3941_s10  ;;  %v1298_v57 = vsel %vm1218_vm2, %v4518_v45, %v3651_v53  ;;  %v3650_v58 = vadd.f32 -1.0, %v3821_v3  ;;  %vm1224_vm8 = vcmp.gt.f32.partialorder %v4552_v41, 0.0  ;;  %vm1223_vm9 = vcmp.gt.f32.partialorder %v4558_v10, 0.0  ;;  %v3677_v48 = vld [vmem:[%s6056_s3 + $0x5] ss:$0 sm:$0xff] }
 0x12d   : > { %v3823_v9 = vpop.eup %3822  ;;  %vm1226_vm10 = vcmp.gt.f32.partialorder %v4565_v0, 0.0  ;;  %vm1225_vm11 = vcmp.gt.f32.partialorder %v4571_v51, 0.0  ;;  %vm1228_vm12 = vcmp.gt.f32.partialorder %v4580_v17, 0.0  ;;  %vm1227_vm13 = vcmp.gt.f32.partialorder %v4587_v26, 0.0  ;;  %v3676_v59 = vld [vmem:[%s6056_s3 + $0x4] ss:$0 sm:$0xff] }
 0x12e   : > { %v3825_v36 = vpop.eup %3824  ;;  %v3653_v56 = vadd.f32 -1.0, %v3823_v9  ;;  %v1297_v46 = vsel %vm1217_vm3, %v4525_v16, %v3650_v58  ;;  %vm1230_vm14 = vcmp.gt.f32.partialorder %v4589_v4, 0.0  ;;  %vm1229_vm15 = vcmp.gt.f32.partialorder %v4592_v44, 0.0  ;;  %v3679_v32 = vld [vmem:[%s6056_s3 + $0x7] ss:$0 sm:$0xff] }
 0x12f   : > { %1333 = vrot.lane.b32.xlu1 %v1298_v57, %s3941_s10  ;;  %v3827_v30 = vpop.eup %3826  ;;  %v3652_v50 = vadd.f32 -1.0, %v3825_v36  ;;  %v3678_v11 = vld [vmem:[%s6056_s3 + $0x6] ss:$0 sm:$0xff]  ;;  %v3681_v39 = vld [vmem:[%s6056_s3 + $0x9] ss:$0 sm:$0xff]  ;;  %vm1375_vm0 = vcmask 7168  }
 0x130   : > { %v3829_v23 = vpop.eup %3828  ;;  %1331 = vrot.lane.b32.xlu0 %v1297_v46, %s3941_s10  ;;  %v1300_v45 = vsel %vm1220_vm4, %v4532_v49, %v3653_v56  ;;  %v3655_v12 = vadd.f32 -1.0, %v3827_v30  ;;  %v3680_v2 = vld [vmem:[%s6056_s3 + $0x8] ss:$0 sm:$0xff]  ;;  %v3683_v8 = vld [vmem:[%s6056_s3 + $0xb] ss:$0 sm:$0xff]  ;;  %vm1392_vm1 = vcmask 138240  }
 0x131   : > { %v3831_v22 = vpop.eup %3830  ;;  %v1299_v15 = vsel %vm1219_vm5, %v4535_v63, %v3652_v50  ;;  %v3654_v16 = vadd.f32 -1.0, %v3829_v23  ;;  %v3682_v55 = vld [vmem:[%s6056_s3 + $0xa] ss:$0 sm:$0xff]  ;;  %v3685_v53 = vld [vmem:[%s6056_s3 + $0xd] ss:$0 sm:$0xff]  ;;  %vm1425_vm2 = vcmask 1040384  }
 0x132   : > { %v3833_v40 = vpop.eup %3832  ;;  %v1302_v14 = vsel %vm1222_vm6, %v4546_v61, %v3655_v12  ;;  %v3657_v19 = vadd.f32 -1.0, %v3831_v22  ;;  %v3684_v6 = vld [vmem:[%s6056_s3 + $0xc] ss:$0 sm:$0xff]  ;;  %v3687_v3 = vld [vmem:[%s6056_s3 + $0xf] ss:$0 sm:$0xff]  ;;  %vm2202_vm3 = vcmask 1046528  }
 0x133   : > { %1337 = vrot.lane.b32.xlu1 %v1300_v45, %s3941_s10  ;;  %v3835_v49 = vpop.eup %3834  ;;  %v1301_v27 = vsel %vm1221_vm7, %v4544_v54, %v3654_v16  ;;  %v3656_v18 = vadd.f32 -1.0, %v3833_v40  ;;  %v3686_v9 = vld [vmem:[%s6056_s3 + $0xe] ss:$0 sm:$0xff]  ;;  %v3689_v57 = vld [vmem:[%s6056_s3 + $0x11] ss:$0 sm:$0xff]  ;;  %vm2843_vm4 = vcmask 1045504  }
 0x134   : > { %1335 = vrot.lane.b32.xlu0 %v1299_v15, %s3941_s10  ;;  %v3837_v24 = vpop.eup %3836  ;;  %v1304_v63 = vsel %vm1224_vm8, %v4552_v41, %v3657_v19  ;;  %v3659_v52 = vadd.f32 -1.0, %v3835_v49  ;;  %v3688_v58 = vld [vmem:[%s6056_s3 + $0x10] ss:$0 sm:$0xff]  ;;  %v3691_v43 = vld [vmem:[%s6056_s3 + $0x13] ss:$0 sm:$0xff]  ;;  %vm3476_vm5 = vcmask 130048  }
 0x135   : > { %v3839_v5 = vpop.eup %3838  ;;  %v1303_v61 = vsel %vm1223_vm9, %v4558_v10, %v3656_v18  ;;  %v3658_v34 = vadd.f32 -1.0, %v3837_v24  ;;  %v3690_v36 = vld [vmem:[%s6056_s3 + $0x12] ss:$0 sm:$0xff]  ;;  %v3693_v56 = vld [vmem:[%s6056_s3 + $0x15] ss:$0 sm:$0xff] }
 0x136   : > { %v3841_v35 = vpop.eup %3840  ;;  %v1306_v54 = vsel %vm1226_vm10, %v4565_v0, %v3659_v52  ;;  %v3661_v29 = vadd.f32 -1.0, %v3839_v5  ;;  %v3692_v30 = vld [vmem:[%s6056_s3 + $0x14] ss:$0 sm:$0xff]  ;;  %v3695_v46 = vld [vmem:[%s6056_s3 + $0x17] ss:$0 sm:$0xff] }
 0x137   : > { %1341 = vrot.lane.b32.xlu1 %v1302_v14, %s3941_s10  ;;  %v3843_v21 = vpop.eup %3842  ;;  %v1305_v41 = vsel %vm1225_vm11, %v4571_v51, %v3658_v34  ;;  %v3660_v60 = vadd.f32 -1.0, %v3841_v35  ;;  %v3694_v50 = vld [vmem:[%s6056_s3 + $0x16] ss:$0 sm:$0xff] }
 0x138   : > { %1339 = vrot.lane.b32.xlu0 %v1301_v27, %s3941_s10  ;;  %v3845_v62 = vpop.eup %3844  ;;  %v1308_v10 = vsel %vm1228_vm12, %v4580_v17, %v3661_v29  ;;  %v3663_v47 = vadd.f32 -1.0, %v3843_v21 }
 0x139   : > { %v1307_v0 = vsel %vm1227_vm13, %v4587_v26, %v3660_v60  ;;  %v3662_v37 = vadd.f32 -1.0, %v3845_v62  ;;  %v3664_v26 = vld [vmem:[%s6057_s4] ss:$0 sm:$0xff] }
 0x13a   : > { %v1310_v51 = vsel %vm1230_vm14, %v4589_v4, %v3663_v47  ;;  %v3668_v4 = vld [vmem:[%s6057_s4 + $0x4] ss:$0 sm:$0xff] }
 0x13b   : > { %1345 = vrot.lane.b32.xlu1 %v1304_v63, %s3941_s10  ;;  %v1309_v17 = vsel %vm1229_vm15, %v4592_v44, %v3662_v37  ;;  %v3673_v44 = vld [vmem:[%s6056_s3 + $0x1] ss:$0 sm:$0xff] }
 0x13c   : > { %1343 = vrot.lane.b32.xlu0 %v1303_v61, %s3941_s10 }
 0x13f   : > { %1349 = vrot.lane.b32.xlu1 %v1306_v54, %s3941_s10 }
 0x140   : > { %1347 = vrot.lane.b32.xlu0 %v1305_v41, %s3941_s10 }
 0x143   : > { %1353 = vrot.lane.b32.xlu1 %v1308_v10, %s3941_s10 }
 0x144   : > { %1351 = vrot.lane.b32.xlu0 %v1307_v0, %s3941_s10 }
 0x147   : > { %1357 = vrot.lane.b32.xlu1 %v1310_v51, %s3941_s10 }
 0x148   : > { %1355 = vrot.lane.b32.xlu0 %v1309_v17, %s3941_s10  ;;  %s3766_s10 = sshll.u32 %s3998_s22, 11 }
 0x149   : > { %s6000_s16 = scalar_lea.hbm %s6058_s5, %s3766_s10 }
 0x14b   : > { %1615 = vperm.xlu1 %3813, %v3665_v28  }
 0x14c   : > { %1611 = vperm.xlu0 %3812, %v3664_v26  }
 0x14f   : > { %1623 = vperm.xlu1 %3813, %v3667_v31  }
 0x150   : > { %1619 = vperm.xlu0 %3812, %v3666_v25  }
 0x153   : > { %1631 = vperm.xlu1 %3813, %v3669_v7  }
 0x154   : > { %1627 = vperm.xlu0 %3812, %v3668_v4  }
 0x157   : > { %1639 = vperm.xlu1 %3813, %v3671_v1  }
 0x158   : > { %1635 = vperm.xlu0 %3812, %v3670_v38  }
 0x15b   : > { %1687 = vperm.xlu1 %3813, %v3673_v44  }
 0x15c   : > { %1683 = vperm.xlu0 %3812, %v3672_v33  }
 0x15f   : > { %1695 = vperm.xlu1 %3813, %v3675_v13  }
 0x160   : > { %1691 = vperm.xlu0 %3812, %v3674_v20  }
 0x163   : > { %1703 = vperm.xlu1 %3813, %v3677_v48  }
 0x164   : > { %1699 = vperm.xlu0 %3812, %v3676_v59  }
 0x167   : > { %1711 = vperm.xlu1 %3813, %v3679_v32  }
 0x168   : > { %1707 = vperm.xlu0 %3812, %v3678_v11  }
 0x16b   : > { %1791 = vperm.xlu1 %3813, %v3681_v39  }
 0x16c   : > { %1787 = vperm.xlu0 %3812, %v3680_v2  }
 0x16f   : > { %1799 = vperm.xlu1 %3813, %v3683_v8  }
 0x170   : > { %1795 = vperm.xlu0 %3812, %v3682_v55  }
 0x173   : > { %1807 = vperm.xlu1 %3813, %v3685_v53  }
 0x174   : > { %1803 = vperm.xlu0 %3812, %v3684_v6  }
 0x177   : > { %1815 = vperm.xlu1 %3813, %v3687_v3  }
 0x178   : > { %1811 = vperm.xlu0 %3812, %v3686_v9  }
 0x17b   : > { %1959 = vperm.xlu1 %3813, %v3689_v57  }
 0x17c   : > { %1955 = vperm.xlu0 %3812, %v3688_v58  }
 0x17f   : > { %1967 = vperm.xlu1 %3813, %v3691_v43  }
 0x180   : > { %1963 = vperm.xlu0 %3812, %v3690_v36  }
 0x183   : > { %1975 = vperm.xlu1 %3813, %v3693_v56  }
 0x184   : > { %1971 = vperm.xlu0 %3812, %v3692_v30  }
 0x187   : > { %1983 = vperm.xlu1 %3813, %v3695_v46  }
 0x188   : > { %1979 = vperm.xlu0 %3812, %v3694_v50  }
 0x19d   : > { %v1330_v42 = vpop.permute.xlu1 %1329 }
 0x19e   : > { %v1377_v23 = vsel %vm1375_vm0, 0.0, %v1330_v42  ;;  %v1328_v22 = vpop.permute.xlu0 %1327 }
 0x19f   : > { %v4743_v45 = vsel %vm1392_vm1, %v1377_v23, 0.0  ;;  %v1376_v56 = vsel %vm1375_vm0, 0.0, %v1328_v22 }
 0x1a0   : > { %v1427_v12 = vrot.slane %v4743_v45, 7  ;;  %v1393_v50 = vsel %vm1392_vm1, %v1376_v56, 0.0 }
 0x1a1   : > { %v1334_v16 = vpop.permute.xlu1 %1333  ;;  %v1426_v23 = vrot.slane %v1393_v50, 7 }
 0x1a2   : > { %v4749_v15 = vsel %vm1425_vm2, %v1427_v12, 0.0  ;;  %v1379_v40 = vsel %vm1375_vm0, 0.0, %v1334_v16  ;;  %v1332_v19 = vpop.permute.xlu0 %1331 }
 0x1a3   : > { %v4753_v14 = vsel %vm1392_vm1, %v1379_v40, 0.0  ;;  %v1378_v42 = vsel %vm1375_vm0, 0.0, %v1332_v19  ;;  %v4865_v22 = vsel %vm1425_vm2, %v1426_v23, %v1427_v12 }
 0x1a4   : > { %v1430_v49 = vrot.slane %v4753_v14, 7 }
 0x1a5   : > { %v1338_v27 = vpop.permute.xlu1 %1337 }
 0x1a6   : > { %v4759_v18 = vsel %vm1425_vm2, %v1430_v49, 0.0  ;;  %v1381_v24 = vsel %vm1375_vm0, 0.0, %v1338_v27  ;;  %v1336_v52 = vpop.permute.xlu0 %1335  ;;  %v1395_v27 = vsel %vm1392_vm1, %v1378_v42, 0.0 }
 0x1a7   : > { %v4763_v63 = vsel %vm1392_vm1, %v1381_v24, 0.0  ;;  %v1380_v24 = vsel %vm1375_vm0, 0.0, %v1336_v52 }
 0x1a8   : > { %v1433_v5 = vrot.slane %v4763_v63, 7  ;;  %v1397_v19 = vsel %vm1392_vm1, %v1380_v24, 0.0 }
 0x1a9   : > { %v1342_v61 = vpop.permute.xlu1 %1341  ;;  %v1432_v52 = vrot.slane %v1397_v19, 7 }
 0x1aa   : > { %v4769_v34 = vsel %vm1425_vm2, %v1433_v5, 0.0  ;;  %v1383_v35 = vsel %vm1375_vm0, 0.0, %v1342_v61  ;;  %v1340_v21 = vpop.permute.xlu0 %1339  ;;  %v4868_v61 = vsel %vm1425_vm2, 0.0, %v1426_v23 }
 0x1ab   : > { %6100 = vst [vmem:[#allocation5_spill] sm:$0xff] %v4769_v34  ;;  %v4773_v54 = vsel %vm1392_vm1, %v1383_v35, 0.0  ;;  %v1429_v35 = vrot.slane %v1395_v27, 7  ;;  %v4893_v14 = vsel %vm1425_vm2, %v1432_v52, %v1433_v5 }
 0x1ac   : > { %v1436_v29 = vrot.slane %v4773_v54, 7 }
 0x1ad   : > { %v1346_v41 = vpop.permute.xlu1 %1345  ;;  %v4879_v45 = vsel %vm1425_vm2, %v1429_v35, %v1430_v49  ;;  %v4882_v12 = vsel %vm1425_vm2, 0.0, %v1429_v35  ;;  %v4896_v49 = vsel %vm1425_vm2, 0.0, %v1432_v52 }
 0x1ae   : > { %v4779_v60 = vsel %vm1425_vm2, %v1436_v29, 0.0  ;;  %v1385_v62 = vsel %vm1375_vm0, 0.0, %v1346_v41  ;;  %v1344_v51 = vpop.permute.xlu0 %1343  ;;  %6102 = vst [vmem:[#allocation7_spill] sm:$0xff] %v4879_v45  ;;  %6103 = vst [vmem:[#allocation8_spill] sm:$0xff] %v4882_v12 }
 0x1af   : > { %6101 = vst [vmem:[#allocation6_spill] sm:$0xff] %v4779_v60  ;;  %v4783_v10 = vsel %vm1392_vm1, %v1385_v62, 0.0 }
 0x1b0   : > { %v1439_v47 = vrot.slane %v4783_v10, 7 }
 0x1b1   : > { %v1350_v0 = vpop.permute.xlu1 %1349 }
 0x1b2   : > { %v4789_v37 = vsel %vm1425_vm2, %v1439_v47, 0.0  ;;  %v1387_v17 = vsel %vm1375_vm0, 0.0, %v1350_v0  ;;  %v1348_v1 = vpop.permute.xlu0 %1347 }
 0x1b3   : > { %v4793_v28 = vsel %vm1392_vm1, %v1387_v17, 0.0  ;;  %v1382_v17 = vsel %vm1375_vm0, 0.0, %v1340_v21  ;;  %v1386_v27 = vsel %vm1375_vm0, 0.0, %v1348_v1 }
 0x1b4   : > { %v1442_v26 = vrot.slane %v4793_v28, 7 }
 0x1b5   : > { %v1354_v31 = vpop.permute.xlu1 %1353 }
 0x1b6   : > { %v4799_v25 = vsel %vm1425_vm2, %v1442_v26, 0.0  ;;  %v1389_v7 = vsel %vm1375_vm0, 0.0, %v1354_v31  ;;  %v4816_v59 = vpop.permute.xlu0 %1351 }
 0x1b7   : > { %v4803_v4 = vsel %vm1392_vm1, %v1389_v7, 0.0  ;;  %v1399_v7 = vsel %vm1392_vm1, %v1382_v17, 0.0 }
 0x1b8   : > { %v1445_v38 = vrot.slane %v4803_v4, 7  ;;  %v1435_v50 = vrot.slane %v1399_v7, 7 }
 0x1b9   : > { %v1358_v44 = vpop.permute.xlu1 %1357 }
 0x1ba   : > { %v4809_v33 = vsel %vm1425_vm2, %v1445_v38, 0.0  ;;  %v1391_v13 = vsel %vm1375_vm0, 0.0, %v1358_v44  ;;  %v4823_v11 = vpop.permute.xlu0 %1355  ;;  %v4907_v63 = vsel %vm1425_vm2, %v1435_v50, %v1436_v29  ;;  %v4910_v5 = vsel %vm1425_vm2, 0.0, %v1435_v50 }
 0x1bb   : > { %v4813_v20 = vsel %vm1392_vm1, %v1391_v13, 0.0  ;;  %v1384_v13 = vsel %vm1375_vm0, 0.0, %v1344_v51  ;;  %6104 = vst [vmem:[#allocation9_spill] sm:$0xff] %v4907_v63  ;;  %6105 = vst [vmem:[#allocation10_spill] sm:$0xff] %v4910_v5  ;;  %v1390_v7 = vsel %vm1375_vm0, 0.0, %v4823_v11 }
 0x1bc   : > { %v1448_v48 = vrot.slane %v4813_v20, 7  ;;  %v1401_v42 = vsel %vm1392_vm1, %v1384_v13, 0.0  ;;  %v1407_v13 = vsel %vm1392_vm1, %v1390_v7, 0.0 }
 0x1bd   : > { %v1438_v35 = vrot.slane %v1401_v42, 7  ;;  %v1447_v42 = vrot.slane %v1407_v13, 7 }
 0x1be   : > { %v4821_v32 = vsel %vm1425_vm2, %v1448_v48, 0.0 }
 0x1bf   : > { %v4922_v54 = vsel %vm1425_vm2, %v1438_v35, %v1439_v47  ;;  %v4925_v29 = vsel %vm1425_vm2, 0.0, %v1438_v35  ;;  %v4962_v4 = vsel %vm1425_vm2, %v1447_v42, %v1448_v48 }
 0x1c6   : > { %v4825_v39 = vpop.permute.xlu1 %1615 }
 0x1c7   : > { %v4827_v2 = vpop.permute.xlu0 %1611 }
 0x1ca   : > { %v4829_v8 = vpop.permute.xlu1 %1623 }
 0x1cb   : > { %v4831_v55 = vpop.permute.xlu0 %1619 }
 0x1ce   : > { %v4833_v53 = vpop.permute.xlu1 %1631 }
 0x1cf   : > { %v4835_v6 = vpop.permute.xlu0 %1627 }
 0x1d2   : > { %v4837_v3 = vpop.permute.xlu1 %1639 }
 0x1d3   : > { %v4839_v9 = vpop.permute.xlu0 %1635 }
 0x1d6   : > { %v4841_v57 = vpop.permute.xlu1 %1687 }
 0x1d7   : > { %v4843_v58 = vpop.permute.xlu0 %1683 }
 0x1da   : > { %v4845_v43 = vpop.permute.xlu1 %1695 }
 0x1db   : > { %v4847_v36 = vpop.permute.xlu0 %1691 }
 0x1de   : > { %v4850_v30 = vpop.permute.xlu1 %1703 }
 0x1df   : > { %v4852_v46 = vpop.permute.xlu0 %1699 }
 0x1e2   : > { %v4856_v16 = vpop.permute.xlu1 %1711 }
 0x1e3   : > { %v4858_v40 = vpop.permute.xlu0 %1707 }
 0x1e6   : > { %v1792_v31 = vpop.permute.xlu1 %1791 }
 0x1e7   : > { %v1788_v41 = vpop.permute.xlu0 %1787  ;;  %v1820_v44 = vmul.f32 %v1792_v31, %v4882_v12  ;;  %v1821_v21 = vmul.f32 %v1792_v31, %v4879_v45 }
 0x1e8   : > { %v1818_v62 = vmul.f32 %v1788_v41, %v4868_v61  ;;  %v1819_v0 = vmul.f32 %v1788_v41, %v4865_v22  ;;  %v1403_v41 = vsel %vm1392_vm1, %v1386_v27, 0.0 }
 0x1e9   : > { %v1441_v17 = vrot.slane %v1403_v41, 7 }
 0x1ea   : > { %1852 = vrot.lane.b32.xlu1 %v1819_v0, %s3942_s11  ;;  %1850 = vrot.lane.b32.xlu0 %v1818_v62, %s3942_s11  ;;  %v1800_v24 = vpop.permute.xlu1 %1799  ;;  %v1388_v62 = vsel %vm1375_vm0, 0.0, %v4816_v59 }
 0x1eb   : > { %v1796_v56 = vpop.permute.xlu0 %1795  ;;  %v1824_v19 = vmul.f32 %v1800_v24, %v4910_v5  ;;  %v1825_v1 = vmul.f32 %v1800_v24, %v4907_v63  ;;  %v1405_v31 = vsel %vm1392_vm1, %v1388_v62, 0.0  ;;  %v4937_v10 = vsel %vm1425_vm2, %v1441_v17, %v1442_v26 }
 0x1ec   : > { %v1822_v23 = vmul.f32 %v1796_v56, %v4896_v49  ;;  %v1823_v51 = vmul.f32 %v1796_v56, %v4893_v14  ;;  %v4940_v47 = vsel %vm1425_vm2, 0.0, %v1441_v17 }
 0x1ee   : > { %1856 = vrot.lane.b32.xlu1 %v1821_v21, %s3942_s11  ;;  %1854 = vrot.lane.b32.xlu0 %v1820_v44, %s3942_s11  ;;  %v1808_v44 = vpop.permute.xlu1 %1807  ;;  %v1444_v21 = vrot.slane %v1405_v31, 7 }
 0x1ef   : > { %v1804_v0 = vpop.permute.xlu0 %1803  ;;  %v1828_v56 = vmul.f32 %v1808_v44, %v4940_v47  ;;  %v1829_v11 = vmul.f32 %v1808_v44, %v4937_v10 }
 0x1f0   : > { %v1826_v52 = vmul.f32 %v1804_v0, %v4925_v29  ;;  %v1827_v59 = vmul.f32 %v1804_v0, %v4922_v54  ;;  %v4950_v28 = vsel %vm1425_vm2, %v1444_v21, %v1445_v38  ;;  %v4953_v26 = vsel %vm1425_vm2, 0.0, %v1444_v21 }
 0x1f1   : > { %v4965_v38 = vsel %vm1425_vm2, 0.0, %v1447_v42 }
 0x1f2   : > { %1860 = vrot.lane.b32.xlu1 %v1823_v51, %s3942_s11  ;;  %1858 = vrot.lane.b32.xlu0 %v1822_v23, %s3942_s11  ;;  %v1816_v27 = vpop.permute.xlu1 %1815 }
 0x1f3   : > { %v1812_v50 = vpop.permute.xlu0 %1811  ;;  %v1832_v24 = vmul.f32 %v1816_v27, %v4965_v38  ;;  %v1833_v35 = vmul.f32 %v1816_v27, %v4962_v4 }
 0x1f4   : > { %v1830_v23 = vmul.f32 %v1812_v50, %v4953_v26  ;;  %v1831_v51 = vmul.f32 %v1812_v50, %v4950_v28 }
 0x1f6   : > { %1864 = vrot.lane.b32.xlu1 %v1825_v1, %s3942_s11  ;;  %1862 = vrot.lane.b32.xlu0 %v1824_v19, %s3942_s11  ;;  %v1960_v20 = vpop.permute.xlu1 %1959 }
 0x1f7   : > { %v1956_v41 = vpop.permute.xlu0 %1955  ;;  %v1988_v48 = vmul.f32 %v1960_v20, %v4882_v12  ;;  %v1989_v62 = vmul.f32 %v1960_v20, %v4879_v45  ;;  %v3698_v20 = vld [vmem:[%s6056_s3 + $0x1a] ss:$0 sm:$0xff] }
 0x1f8   : > { %v1986_v19 = vmul.f32 %v1956_v41, %v4868_v61  ;;  %v1987_v1 = vmul.f32 %v1956_v41, %v4865_v22  ;;  %v3697_v41 = vld [vmem:[%s6056_s3 + $0x19] ss:$0 sm:$0xff] }
 0x1fa   : > { %1868 = vrot.lane.b32.xlu1 %v1827_v59, %s3942_s11  ;;  %1866 = vrot.lane.b32.xlu0 %v1826_v52, %s3942_s11  ;;  %v1968_v52 = vpop.permute.xlu1 %1967 }
 0x1fb   : > { %v1964_v0 = vpop.permute.xlu0 %1963  ;;  %v1992_v59 = vmul.f32 %v1968_v52, %v4910_v5  ;;  %v1993_v7 = vmul.f32 %v1968_v52, %v4907_v63  ;;  %v3704_v52 = vld [vmem:[%s6056_s3 + $0x20] ss:$0 sm:$0xff] }
 0x1fc   : > { %v1990_v17 = vmul.f32 %v1964_v0, %v4896_v49  ;;  %v1991_v31 = vmul.f32 %v1964_v0, %v4893_v14  ;;  %v3703_v0 = vld [vmem:[%s6056_s3 + $0x1f] ss:$0 sm:$0xff] }
 0x1fe   : > { %1872 = vrot.lane.b32.xlu1 %v1829_v11, %s3942_s11  ;;  %1870 = vrot.lane.b32.xlu0 %v1828_v56, %s3942_s11  ;;  %v1976_v56 = vpop.permute.xlu1 %1975 }
 0x1ff   : > { %v1972_v44 = vpop.permute.xlu0 %1971  ;;  %v1996_v11 = vmul.f32 %v1976_v56, %v4940_v47  ;;  %v1997_v50 = vmul.f32 %v1976_v56, %v4937_v10  ;;  %v3710_v56 = vld [vmem:[%s6056_s3 + $0x26] ss:$0 sm:$0xff] }
 0x200   : > { %v1994_v21 = vmul.f32 %v1972_v44, %v4925_v29  ;;  %v1995_v13 = vmul.f32 %v1972_v44, %v4922_v54  ;;  %v3709_v44 = vld [vmem:[%s6056_s3 + $0x25] ss:$0 sm:$0xff] }
 0x202   : > { %1876 = vrot.lane.b32.xlu1 %v1831_v51, %s3942_s11  ;;  %1874 = vrot.lane.b32.xlu0 %v1830_v23, %s3942_s11  ;;  %v1984_v27 = vpop.permute.xlu1 %1983 }
 0x203   : > { %v1980_v42 = vpop.permute.xlu0 %1979 }
 0x204   : > { %v1998_v23 = vmul.f32 %v1980_v42, %v4953_v26  ;;  %v1999_v51 = vmul.f32 %v1980_v42, %v4950_v28 }
 0x206   : > { %1880 = vrot.lane.b32.xlu1 %v1833_v35, %s3942_s11  ;;  %1878 = vrot.lane.b32.xlu0 %v1832_v24, %s3942_s11  ;;  %v2000_v24 = vmul.f32 %v1984_v27, %v4965_v38  ;;  %v2001_v35 = vmul.f32 %v1984_v27, %v4962_v4 }
 0x20a   : > { %2020 = vrot.lane.b32.xlu1 %v1987_v1, %s3943_s12  ;;  %2018 = vrot.lane.b32.xlu0 %v1986_v19, %s3943_s12  ;;  %v3696_v19 = vld [vmem:[%s6056_s3 + $0x18] ss:$0 sm:$0xff]  ;;  %v3699_v1 = vld [vmem:[%s6056_s3 + $0x1b] ss:$0 sm:$0xff] }
 0x20e   : > { %2024 = vrot.lane.b32.xlu1 %v1989_v62, %s3943_s12  ;;  %2022 = vrot.lane.b32.xlu0 %v1988_v48, %s3943_s12  ;;  %v3701_v48 = vld [vmem:[%s6056_s3 + $0x1d] ss:$0 sm:$0xff]  ;;  %v3700_v62 = vld [vmem:[%s6056_s3 + $0x1c] ss:$0 sm:$0xff] }
 0x212   : > { %2028 = vrot.lane.b32.xlu1 %v1991_v31, %s3943_s12  ;;  %2026 = vrot.lane.b32.xlu0 %v1990_v17, %s3943_s12  ;;  %v3702_v17 = vld [vmem:[%s6056_s3 + $0x1e] ss:$0 sm:$0xff]  ;;  %v3705_v31 = vld [vmem:[%s6056_s3 + $0x21] ss:$0 sm:$0xff] }
 0x216   : > { %2032 = vrot.lane.b32.xlu1 %v1993_v7, %s3943_s12  ;;  %2030 = vrot.lane.b32.xlu0 %v1992_v59, %s3943_s12  ;;  %v3707_v59 = vld [vmem:[%s6056_s3 + $0x23] ss:$0 sm:$0xff]  ;;  %v3706_v7 = vld [vmem:[%s6056_s3 + $0x22] ss:$0 sm:$0xff] }
 0x21a   : > { %2036 = vrot.lane.b32.xlu1 %v1995_v13, %s3943_s12  ;;  %2034 = vrot.lane.b32.xlu0 %v1994_v21, %s3943_s12  ;;  %v3708_v21 = vld [vmem:[%s6056_s3 + $0x24] ss:$0 sm:$0xff]  ;;  %v3711_v13 = vld [vmem:[%s6056_s3 + $0x27] ss:$0 sm:$0xff] }
 0x21e   : > { %2040 = vrot.lane.b32.xlu1 %v1997_v50, %s3943_s12  ;;  %2038 = vrot.lane.b32.xlu0 %v1996_v11, %s3943_s12 }
 0x222   : > { %2044 = vrot.lane.b32.xlu1 %v1999_v51, %s3943_s12  ;;  %2042 = vrot.lane.b32.xlu0 %v1998_v23, %s3943_s12 }
 0x226   : > { %2048 = vrot.lane.b32.xlu1 %v2001_v35, %s3943_s12  ;;  %2046 = vrot.lane.b32.xlu0 %v2000_v24, %s3943_s12 }
 0x22a   : > { %2127 = vperm.xlu1 %3813, %v3697_v41   ;;  %2123 = vperm.xlu0 %3812, %v3696_v19  }
 0x22e   : > { %2135 = vperm.xlu1 %3813, %v3699_v1   ;;  %2131 = vperm.xlu0 %3812, %v3698_v20  }
 0x232   : > { %2143 = vperm.xlu1 %3813, %v3701_v48   ;;  %2139 = vperm.xlu0 %3812, %v3700_v62  }
 0x236   : > { %2151 = vperm.xlu1 %3813, %v3703_v0   ;;  %2147 = vperm.xlu0 %3812, %v3702_v17  }
 0x23a   : > { %2320 = vperm.xlu1 %3813, %v3705_v31   ;;  %2316 = vperm.xlu0 %3812, %v3704_v52  }
 0x23e   : > { %2328 = vperm.xlu1 %3813, %v3707_v59   ;;  %2324 = vperm.xlu0 %3812, %v3706_v7  }
 0x242   : > { %2336 = vperm.xlu1 %3813, %v3709_v44   ;;  %2332 = vperm.xlu0 %3812, %v3708_v21  }
 0x246   : > { %2344 = vperm.xlu1 %3813, %v3711_v13   ;;  %2340 = vperm.xlu0 %3812, %v3710_v56  }
 0x25c   : > { %v5051_v11 = vpop.permute.xlu1 %1852  ;;  %v5053_v50 = vpop.permute.xlu0 %1850 }
 0x25d   : > { %6106 = vst [vmem:[#allocation11_spill] sm:$0xff] %v5053_v50 }
 0x260   : > { %v5055_v42 = vpop.permute.xlu1 %1856  ;;  %v5057_v23 = vpop.permute.xlu0 %1854 }
 0x261   : > { %6107 = vst [vmem:[#allocation12_spill] sm:$0xff] %v5055_v42  ;;  %6108 = vst [vmem:[#allocation13_spill] sm:$0xff] %v5057_v23 }
 0x264   : > { %v5059_v51 = vpop.permute.xlu1 %1860  ;;  %v5061_v27 = vpop.permute.xlu0 %1858 }
 0x265   : > { %6109 = vst [vmem:[#allocation14_spill] sm:$0xff] %v5059_v51  ;;  %6110 = vst [vmem:[#allocation15_spill] sm:$0xff] %v5061_v27 }
 0x268   : > { %v5063_v24 = vpop.permute.xlu1 %1864  ;;  %v5065_v35 = vpop.permute.xlu0 %1862 }
 0x269   : > { %6111 = vst [vmem:[#allocation16_spill] sm:$0xff] %v5063_v24  ;;  %6112 = vst [vmem:[#allocation17_spill] sm:$0xff] %v5065_v35 }
 0x26c   : > { %v5067_v41 = vpop.permute.xlu1 %1868  ;;  %v5069_v19 = vpop.permute.xlu0 %1866 }
 0x26d   : > { %6113 = vst [vmem:[#allocation18_spill] sm:$0xff] %v5067_v41  ;;  %6114 = vst [vmem:[#allocation19_spill] sm:$0xff] %v5069_v19 }
 0x270   : > { %v5071_v1 = vpop.permute.xlu1 %1872  ;;  %v5073_v20 = vpop.permute.xlu0 %1870 }
 0x271   : > { %6115 = vst [vmem:[#allocation20_spill] sm:$0xff] %v5071_v1  ;;  %6116 = vst [vmem:[#allocation21_spill] sm:$0xff] %v5073_v20 }
 0x274   : > { %v5075_v48 = vpop.permute.xlu1 %1876  ;;  %v5077_v62 = vpop.permute.xlu0 %1874 }
 0x275   : > { %6117 = vst [vmem:[#allocation22_spill] sm:$0xff] %v5075_v48  ;;  %6118 = vst [vmem:[#allocation23_spill] sm:$0xff] %v5077_v62 }
 0x278   : > { %v5079_v0 = vpop.permute.xlu1 %1880  ;;  %v5081_v17 = vpop.permute.xlu0 %1878 }
 0x279   : > { %6119 = vst [vmem:[#allocation24_spill] sm:$0xff] %v5079_v0  ;;  %6120 = vst [vmem:[#allocation25_spill] sm:$0xff] %v5081_v17 }
 0x27c   : > { %v5083_v31 = vpop.permute.xlu1 %2020  ;;  %v5085_v52 = vpop.permute.xlu0 %2018 }
 0x27d   : > { %6121 = vst [vmem:[#allocation26_spill] sm:$0xff] %v5083_v31  ;;  %6122 = vst [vmem:[#allocation27_spill] sm:$0xff] %v5085_v52 }
 0x280   : > { %v5087_v59 = vpop.permute.xlu1 %2024  ;;  %v5089_v7 = vpop.permute.xlu0 %2022 }
 0x281   : > { %6123 = vst [vmem:[#allocation28_spill] sm:$0xff] %v5087_v59  ;;  %6124 = vst [vmem:[#allocation29_spill] sm:$0xff] %v5089_v7 }
 0x284   : > { %v5091_v44 = vpop.permute.xlu1 %2028  ;;  %v5093_v21 = vpop.permute.xlu0 %2026 }
 0x285   : > { %6125 = vst [vmem:[#allocation30_spill] sm:$0xff] %v5091_v44  ;;  %6126 = vst [vmem:[#allocation31_spill] sm:$0xff] %v5093_v21 }
 0x288   : > { %v5095_v13 = vpop.permute.xlu1 %2032  ;;  %v5097_v56 = vpop.permute.xlu0 %2030 }
 0x289   : > { %6127 = vst [vmem:[#allocation32_spill] sm:$0xff] %v5095_v13  ;;  %6128 = vst [vmem:[#allocation33_spill] sm:$0xff] %v5097_v56 }
 0x28c   : > { %v5099_v62 = vpop.permute.xlu1 %2036  ;;  %v5101_v0 = vpop.permute.xlu0 %2034 }
 0x28d   : > { %6129 = vst [vmem:[#allocation34_spill] sm:$0xff] %v5099_v62  ;;  %6130 = vst [vmem:[#allocation35_spill] sm:$0xff] %v5101_v0 }
 0x290   : > { %v5103_v17 = vpop.permute.xlu1 %2040  ;;  %v5105_v48 = vpop.permute.xlu0 %2038 }
 0x291   : > { %6131 = vst [vmem:[#allocation36_spill] sm:$0xff] %v5103_v17  ;;  %6132 = vst [vmem:[#allocation37_spill] sm:$0xff] %v5105_v48 }
 0x294   : > { %v5107_v20 = vpop.permute.xlu1 %2044  ;;  %v5109_v59 = vpop.permute.xlu0 %2042 }
 0x295   : > { %6133 = vst [vmem:[#allocation38_spill] sm:$0xff] %v5107_v20  ;;  %6134 = vst [vmem:[#allocation39_spill] sm:$0xff] %v5109_v59 }
 0x298   : > { %v5111_v7 = vpop.permute.xlu1 %2048  ;;  %v5113_v44 = vpop.permute.xlu0 %2046 }
 0x299   : > { %6135 = vst [vmem:[#allocation40_spill] sm:$0xff] %v5111_v7  ;;  %6136 = vst [vmem:[#allocation41_spill] sm:$0xff] %v5113_v44 }
 0x2a5   : > { %v5115_v21 = vpop.permute.xlu1 %2127  ;;  %v5117_v13 = vpop.permute.xlu0 %2123 }
 0x2a9   : > { %v5119_v56 = vpop.permute.xlu1 %2135  ;;  %v5121_v62 = vpop.permute.xlu0 %2131 }
 0x2aa   : > { %6137 = vst [vmem:[#allocation42_spill] sm:$0xff] %v5119_v56  ;;  %6138 = vst [vmem:[#allocation43_spill] sm:$0xff] %v5121_v62 }
 0x2ad   : > { %v5123_v0 = vpop.permute.xlu1 %2143  ;;  %v5125_v17 = vpop.permute.xlu0 %2139 }
 0x2ae   : > { %6139 = vst [vmem:[#allocation44_spill] sm:$0xff] %v5123_v0  ;;  %6140 = vst [vmem:[#allocation45_spill] sm:$0xff] %v5125_v17 }
 0x2b1   : > { %v5127_v48 = vpop.permute.xlu1 %2151  ;;  %v5129_v20 = vpop.permute.xlu0 %2147 }
 0x2b2   : > { %6141 = vst [vmem:[#allocation46_spill] sm:$0xff] %v5127_v48  ;;  %6142 = vst [vmem:[#allocation47_spill] sm:$0xff] %v5129_v20 }
 0x2b5   : > { %v2321_v59 = vpop.permute.xlu1 %2320  ;;  %v2317_v7 = vpop.permute.xlu0 %2316 }
 0x2b6   : > { %v2350_v44 = vmul.f32 %v2321_v59, %v4882_v12  ;;  %v2351_v1 = vmul.f32 %v2321_v59, %v4879_v45  ;;  %v2352_v52 = vmul.f32 %v2321_v59, %v4759_v18  ;;  %v2347_v56 = vmul.f32 %v2317_v7, %v4868_v61 }
 0x2b7   : > { %v2348_v31 = vmul.f32 %v2317_v7, %v4865_v22  ;;  %v2349_v0 = vmul.f32 %v2317_v7, %v4749_v15 }
 0x2b8   : > { %v2395_v19 = vrot.slane %v2347_v56, 1  ;;  %v2400_v20 = vrot.slane %v2350_v44, 1  ;;  %v2401_v62 = vrot.slane %v2351_v1, 1  ;;  %v2403_v35 = vrot.slane %v2352_v52, 1 }
 0x2b9   : > { %v2396_v17 = vrot.slane %v2348_v31, 1  ;;  %v2398_v41 = vrot.slane %v2349_v0, 1  ;;  %v2325_v48 = vpop.permute.xlu0 %2324  ;;  %v2329_v27 = vpop.permute.xlu1 %2328 }
 0x2ba   : > { %v2353_v24 = vmul.f32 %v2325_v48, %v4896_v49  ;;  %v2354_v51 = vmul.f32 %v2325_v48, %v4893_v14  ;;  %v2355_v59 = vmul.f32 %v2325_v48, %v4769_v34  ;;  %v2356_v0 = vmul.f32 %v2329_v27, %v4910_v5 }
 0x2bb   : > { %v2399_v23 = vsel %vm2202_vm3, %v2396_v17, %v2398_v41  ;;  %v2397_v42 = vsel %vm2202_vm3, %v2395_v19, %v2396_v17  ;;  %v2357_v1 = vmul.f32 %v2329_v27, %v4907_v63  ;;  %v2358_v31 = vmul.f32 %v2329_v27, %v4779_v60 }
 0x2bc   : > { %2437 = vrot.lane.b32.xlu1 %v2399_v23, %s3942_s11  ;;  %2435 = vrot.lane.b32.xlu0 %v2397_v42, %s3942_s11  ;;  %v2405_v52 = vrot.slane %v2353_v24, 1  ;;  %v2406_v7 = vrot.slane %v2354_v51, 1  ;;  %v2408_v44 = vrot.slane %v2355_v59, 1  ;;  %v2404_v48 = vsel %vm2202_vm3, %v2401_v62, %v2403_v35 }
 0x2bd   : > { %v2333_v56 = vpop.permute.xlu0 %2332  ;;  %v2402_v41 = vsel %vm2202_vm3, %v2400_v20, %v2401_v62  ;;  %v2410_v23 = vrot.slane %v2356_v0, 1  ;;  %v2411_v42 = vrot.slane %v2357_v1, 1  ;;  %v2413_v19 = vrot.slane %v2358_v31, 1  ;;  %v2337_v50 = vpop.permute.xlu1 %2336 }
 0x2be   : > { %v2359_v17 = vmul.f32 %v2333_v56, %v4925_v29  ;;  %v2360_v27 = vmul.f32 %v2333_v56, %v4922_v54  ;;  %v2361_v51 = vmul.f32 %v2333_v56, %v4789_v37  ;;  %v2409_v24 = vsel %vm2202_vm3, %v2406_v7, %v2408_v44 }
 0x2bf   : > { %v2407_v35 = vsel %vm2202_vm3, %v2405_v52, %v2406_v7  ;;  %v2362_v20 = vmul.f32 %v2337_v50, %v4940_v47  ;;  %v2363_v62 = vmul.f32 %v2337_v50, %v4937_v10  ;;  %v2364_v59 = vmul.f32 %v2337_v50, %v4799_v25 }
 0x2c0   : > { %2441 = vrot.lane.b32.xlu1 %v2404_v48, %s3942_s11  ;;  %2439 = vrot.lane.b32.xlu0 %v2402_v41, %s3942_s11  ;;  %v2415_v0 = vrot.slane %v2359_v17, 1  ;;  %v2416_v1 = vrot.slane %v2360_v27, 1  ;;  %v2418_v31 = vrot.slane %v2361_v51, 1  ;;  %v2414_v56 = vsel %vm2202_vm3, %v2411_v42, %v2413_v19 }
 0x2c1   : > { %v2341_v48 = vpop.permute.xlu0 %2340  ;;  %v2412_v44 = vsel %vm2202_vm3, %v2410_v23, %v2411_v42  ;;  %v2420_v52 = vrot.slane %v2362_v20, 1  ;;  %v2421_v7 = vrot.slane %v2363_v62, 1  ;;  %v2423_v41 = vrot.slane %v2364_v59, 1 }
 0x2c2   : > { %v2366_v50 = vmul.f32 %v2341_v48, %v4950_v28  ;;  %v2367_v17 = vmul.f32 %v2341_v48, %v4809_v33  ;;  %v2419_v27 = vsel %vm2202_vm3, %v2416_v1, %v2418_v31  ;;  %v2417_v19 = vsel %vm2202_vm3, %v2415_v0, %v2416_v1 }
 0x2c4   : > { %2445 = vrot.lane.b32.xlu1 %v2409_v24, %s3942_s11  ;;  %2443 = vrot.lane.b32.xlu0 %v2407_v35, %s3942_s11  ;;  %v2365_v24 = vmul.f32 %v2341_v48, %v4953_v26  ;;  %v2345_v35 = vpop.permute.xlu1 %2344  ;;  %v2426_v62 = vrot.slane %v2366_v50, 1  ;;  %v2428_v59 = vrot.slane %v2367_v17, 1  ;;  %v2422_v48 = vsel %vm2202_vm3, %v2420_v52, %v2421_v7  ;;  %v3713_v52 = vld [vmem:[%s6056_s3 + $0x29] ss:$0 sm:$0xff]  ;;  %v3714_v50 = vld [vmem:[%s6056_s3 + $0x2a] ss:$0 sm:$0xff] }
 0x2c5   : > { %v2368_v23 = vmul.f32 %v2345_v35, %v4965_v38  ;;  %v2369_v42 = vmul.f32 %v2345_v35, %v4962_v4  ;;  %v2370_v51 = vmul.f32 %v2345_v35, %v4821_v32  ;;  %v3715_v35 = vld [vmem:[%s6056_s3 + $0x2b] ss:$0 sm:$0xff]  ;;  %v3717_v17 = vld [vmem:[%s6056_s3 + $0x2d] ss:$0 sm:$0xff] }
 0x2c6   : > { %v2425_v20 = vrot.slane %v2365_v24, 1 }
 0x2c7   : > { %v2430_v0 = vrot.slane %v2368_v23, 1  ;;  %v2431_v1 = vrot.slane %v2369_v42, 1  ;;  %v2433_v31 = vrot.slane %v2370_v51, 1  ;;  %v3719_v23 = vld [vmem:[%s6056_s3 + $0x2f] ss:$0 sm:$0xff] }
 0x2c8   : > { %2449 = vrot.lane.b32.xlu1 %v2414_v56, %s3942_s11  ;;  %2447 = vrot.lane.b32.xlu0 %v2412_v44, %s3942_s11  ;;  %v2424_v56 = vsel %vm2202_vm3, %v2421_v7, %v2423_v41  ;;  %v2429_v44 = vsel %vm2202_vm3, %v2426_v62, %v2428_v59  ;;  %v3712_v7 = vld [vmem:[%s6056_s3 + $0x28] ss:$0 sm:$0xff]  ;;  %v3718_v42 = vld [vmem:[%s6056_s3 + $0x2e] ss:$0 sm:$0xff] }
 0x2c9   : > { %v2434_v24 = vsel %vm2202_vm3, %v2431_v1, %v2433_v31  ;;  %v2432_v41 = vsel %vm2202_vm3, %v2430_v0, %v2431_v1 }
 0x2cc   : > { %2453 = vrot.lane.b32.xlu1 %v2419_v27, %s3942_s11  ;;  %2451 = vrot.lane.b32.xlu0 %v2417_v19, %s3942_s11  ;;  %v2427_v27 = vsel %vm2202_vm3, %v2425_v20, %v2426_v62  ;;  %v3716_v19 = vld [vmem:[%s6056_s3 + $0x2c] ss:$0 sm:$0xff] }
 0x2d0   : > { %2457 = vrot.lane.b32.xlu1 %v2424_v56, %s3942_s11  ;;  %2455 = vrot.lane.b32.xlu0 %v2422_v48, %s3942_s11 }
 0x2d4   : > { %2461 = vrot.lane.b32.xlu1 %v2429_v44, %s3942_s11  ;;  %2459 = vrot.lane.b32.xlu0 %v2427_v27, %s3942_s11 }
 0x2d8   : > { %2465 = vrot.lane.b32.xlu1 %v2434_v24, %s3942_s11  ;;  %2463 = vrot.lane.b32.xlu0 %v2432_v41, %s3942_s11 }
 0x2dc   : > { %2544 = vperm.xlu1 %3813, %v3713_v52   ;;  %2540 = vperm.xlu0 %3812, %v3712_v7  }
 0x2e0   : > { %2552 = vperm.xlu1 %3813, %v3715_v35   ;;  %2548 = vperm.xlu0 %3812, %v3714_v50  }
 0x2e4   : > { %2560 = vperm.xlu1 %3813, %v3717_v17   ;;  %2556 = vperm.xlu0 %3812, %v3716_v19  }
 0x2e8   : > { %2568 = vperm.xlu1 %3813, %v3719_v23   ;;  %2564 = vperm.xlu0 %3812, %v3718_v42  }
 0x32e   : > { %v5211_v51 = vpop.permute.xlu1 %2437  ;;  %v5213_v20 = vpop.permute.xlu0 %2435 }
 0x32f   : > { %6143 = vst [vmem:[#allocation48_spill] sm:$0xff] %v5211_v51  ;;  %6144 = vst [vmem:[#allocation49_spill] sm:$0xff] %v5213_v20 }
 0x332   : > { %v5215_v62 = vpop.permute.xlu1 %2441  ;;  %v5217_v59 = vpop.permute.xlu0 %2439 }
 0x333   : > { %6145 = vst [vmem:[#allocation50_spill] sm:$0xff] %v5215_v62  ;;  %6146 = vst [vmem:[#allocation51_spill] sm:$0xff] %v5217_v59 }
 0x336   : > { %v5219_v56 = vpop.permute.xlu1 %2445  ;;  %v5221_v48 = vpop.permute.xlu0 %2443 }
 0x337   : > { %6147 = vst [vmem:[#allocation52_spill] sm:$0xff] %v5219_v56  ;;  %6148 = vst [vmem:[#allocation53_spill] sm:$0xff] %v5221_v48 }
 0x33a   : > { %v5223_v0 = vpop.permute.xlu1 %2449  ;;  %v5225_v1 = vpop.permute.xlu0 %2447 }
 0x33b   : > { %6149 = vst [vmem:[#allocation54_spill] sm:$0xff] %v5223_v0  ;;  %6150 = vst [vmem:[#allocation55_spill] sm:$0xff] %v5225_v1 }
 0x33e   : > { %v5227_v31 = vpop.permute.xlu1 %2453  ;;  %v5229_v44 = vpop.permute.xlu0 %2451 }
 0x33f   : > { %6151 = vst [vmem:[#allocation56_spill] sm:$0xff] %v5227_v31  ;;  %6152 = vst [vmem:[#allocation57_spill] sm:$0xff] %v5229_v44 }
 0x342   : > { %v5231_v27 = vpop.permute.xlu1 %2457  ;;  %v5233_v24 = vpop.permute.xlu0 %2455 }
 0x343   : > { %6153 = vst [vmem:[#allocation58_spill] sm:$0xff] %v5231_v27  ;;  %6154 = vst [vmem:[#allocation59_spill] sm:$0xff] %v5233_v24 }
 0x346   : > { %v5235_v41 = vpop.permute.xlu1 %2461  ;;  %v5237_v52 = vpop.permute.xlu0 %2459 }
 0x347   : > { %6155 = vst [vmem:[#allocation60_spill] sm:$0xff] %v5235_v41  ;;  %6156 = vst [vmem:[#allocation61_spill] sm:$0xff] %v5237_v52 }
 0x34a   : > { %v5239_v7 = vpop.permute.xlu1 %2465  ;;  %v5241_v35 = vpop.permute.xlu0 %2463 }
 0x34b   : > { %6157 = vst [vmem:[#allocation62_spill] sm:$0xff] %v5239_v7  ;;  %6158 = vst [vmem:[#allocation63_spill] sm:$0xff] %v5241_v35 }
 0x357   : > { %v2545_v50 = vpop.permute.xlu1 %2544  ;;  %v2541_v17 = vpop.permute.xlu0 %2540 }
 0x358   : > { %v2574_v19 = vmul.f32 %v2545_v50, %v4882_v12  ;;  %v2575_v23 = vmul.f32 %v2545_v50, %v4879_v45  ;;  %v2576_v42 = vmul.f32 %v2545_v50, %v4759_v18  ;;  %v2571_v27 = vmul.f32 %v2541_v17, %v4868_v61 }
 0x359   : > { %v2572_v24 = vmul.f32 %v2541_v17, %v4865_v22  ;;  %v2573_v41 = vmul.f32 %v2541_v17, %v4749_v15 }
 0x35a   : > { %v2619_v44 = vrot.slane %v2571_v27, 1  ;;  %v2624_v1 = vrot.slane %v2574_v19, 1  ;;  %v2625_v35 = vrot.slane %v2575_v23, 1  ;;  %v2627_v0 = vrot.slane %v2576_v42, 1 }
 0x35b   : > { %v2620_v52 = vrot.slane %v2572_v24, 1  ;;  %v2622_v31 = vrot.slane %v2573_v41, 1  ;;  %v2549_v7 = vpop.permute.xlu0 %2548  ;;  %v2553_v56 = vpop.permute.xlu1 %2552 }
 0x35c   : > { %v2577_v48 = vmul.f32 %v2549_v7, %v4896_v49  ;;  %v2578_v59 = vmul.f32 %v2549_v7, %v4893_v14  ;;  %v2579_v50 = vmul.f32 %v2549_v7, %v4769_v34  ;;  %v2580_v27 = vmul.f32 %v2553_v56, %v4910_v5 }
 0x35d   : > { %v2623_v62 = vsel %vm2202_vm3, %v2620_v52, %v2622_v31  ;;  %v2621_v20 = vsel %vm2202_vm3, %v2619_v44, %v2620_v52  ;;  %v2581_v24 = vmul.f32 %v2553_v56, %v4907_v63  ;;  %v2582_v41 = vmul.f32 %v2553_v56, %v4779_v60 }
 0x35e   : > { %2661 = vrot.lane.b32.xlu1 %v2623_v62, %s3943_s12  ;;  %2659 = vrot.lane.b32.xlu0 %v2621_v20, %s3943_s12  ;;  %v2629_v17 = vrot.slane %v2577_v48, 1  ;;  %v2630_v19 = vrot.slane %v2578_v59, 1  ;;  %v2632_v23 = vrot.slane %v2579_v50, 1  ;;  %v2628_v7 = vsel %vm2202_vm3, %v2625_v35, %v2627_v0 }
 0x35f   : > { %v2557_v42 = vpop.permute.xlu0 %2556  ;;  %v2626_v31 = vsel %vm2202_vm3, %v2624_v1, %v2625_v35  ;;  %v2634_v62 = vrot.slane %v2580_v27, 1  ;;  %v2635_v20 = vrot.slane %v2581_v24, 1  ;;  %v2637_v44 = vrot.slane %v2582_v41, 1  ;;  %v2561_v51 = vpop.permute.xlu1 %2560 }
 0x360   : > { %v2583_v52 = vmul.f32 %v2557_v42, %v4925_v29  ;;  %v2584_v56 = vmul.f32 %v2557_v42, %v4922_v54  ;;  %v2585_v59 = vmul.f32 %v2557_v42, %v4789_v37  ;;  %v2633_v48 = vsel %vm2202_vm3, %v2630_v19, %v2632_v23 }
 0x361   : > { %v2631_v0 = vsel %vm2202_vm3, %v2629_v17, %v2630_v19  ;;  %v2586_v1 = vmul.f32 %v2561_v51, %v4940_v47  ;;  %v2587_v35 = vmul.f32 %v2561_v51, %v4937_v10  ;;  %v2588_v50 = vmul.f32 %v2561_v51, %v4799_v25 }
 0x362   : > { %2665 = vrot.lane.b32.xlu1 %v2628_v7, %s3943_s12  ;;  %2663 = vrot.lane.b32.xlu0 %v2626_v31, %s3943_s12  ;;  %v2639_v27 = vrot.slane %v2583_v52, 1  ;;  %v2640_v24 = vrot.slane %v2584_v56, 1  ;;  %v2642_v41 = vrot.slane %v2585_v59, 1  ;;  %v2638_v42 = vsel %vm2202_vm3, %v2635_v20, %v2637_v44 }
 0x363   : > { %v2565_v7 = vpop.permute.xlu0 %2564  ;;  %v2636_v23 = vsel %vm2202_vm3, %v2634_v62, %v2635_v20  ;;  %v2644_v17 = vrot.slane %v2586_v1, 1  ;;  %v2645_v19 = vrot.slane %v2587_v35, 1  ;;  %v2647_v31 = vrot.slane %v2588_v50, 1 }
 0x364   : > { %v2590_v51 = vmul.f32 %v2565_v7, %v4950_v28  ;;  %v2591_v52 = vmul.f32 %v2565_v7, %v4809_v33  ;;  %v2643_v56 = vsel %vm2202_vm3, %v2640_v24, %v2642_v41  ;;  %v2641_v44 = vsel %vm2202_vm3, %v2639_v27, %v2640_v24 }
 0x366   : > { %2669 = vrot.lane.b32.xlu1 %v2633_v48, %s3943_s12  ;;  %2667 = vrot.lane.b32.xlu0 %v2631_v0, %s3943_s12  ;;  %v2589_v48 = vmul.f32 %v2565_v7, %v4953_v26  ;;  %v2569_v0 = vpop.permute.xlu1 %2568  ;;  %v2650_v35 = vrot.slane %v2590_v51, 1  ;;  %v2652_v50 = vrot.slane %v2591_v52, 1  ;;  %v2646_v7 = vsel %vm2202_vm3, %v2644_v17, %v2645_v19  ;;  %v3721_v17 = vld [vmem:[%s6056_s3 + $0x31] ss:$0 sm:$0xff]  ;;  %v3728_v51 = vld [vmem:[%s6056_s3 + $0x38] ss:$0 sm:$0xff] }
 0x367   : > { %v2592_v62 = vmul.f32 %v2569_v0, %v4965_v38  ;;  %v2593_v20 = vmul.f32 %v2569_v0, %v4962_v4  ;;  %v2594_v59 = vmul.f32 %v2569_v0, %v4821_v32  ;;  %v3729_v0 = vld [vmem:[%s6056_s3 + $0x39] ss:$0 sm:$0xff]  ;;  %v3731_v52 = vld [vmem:[%s6056_s3 + $0x3b] ss:$0 sm:$0xff] }
 0x368   : > { %v2649_v1 = vrot.slane %v2589_v48, 1 }
 0x369   : > { %v2654_v27 = vrot.slane %v2592_v62, 1  ;;  %v2655_v24 = vrot.slane %v2593_v20, 1  ;;  %v2657_v41 = vrot.slane %v2594_v59, 1  ;;  %v3733_v62 = vld [vmem:[%s6056_s3 + $0x3d] ss:$0 sm:$0xff] }
 0x36a   : > { %2673 = vrot.lane.b32.xlu1 %v2638_v42, %s3943_s12  ;;  %2671 = vrot.lane.b32.xlu0 %v2636_v23, %s3943_s12  ;;  %v2648_v42 = vsel %vm2202_vm3, %v2645_v19, %v2647_v31  ;;  %v2653_v23 = vsel %vm2202_vm3, %v2650_v35, %v2652_v50  ;;  %v3720_v19 = vld [vmem:[%s6056_s3 + $0x30] ss:$0 sm:$0xff]  ;;  %v3732_v20 = vld [vmem:[%s6056_s3 + $0x3c] ss:$0 sm:$0xff] }
 0x36b   : > { %v2658_v48 = vsel %vm2202_vm3, %v2655_v24, %v2657_v41  ;;  %v2656_v31 = vsel %vm2202_vm3, %v2654_v27, %v2655_v24  ;;  %v3735_v59 = vld [vmem:[%s6056_s3 + $0x3f] ss:$0 sm:$0xff]  ;;  %v3736_v50 = vld [vmem:[%s6056_s3 + $0x40] ss:$0 sm:$0xff]  ;;  %v3741_v27 = vld [vmem:[%s6056_s3 + $0x45] ss:$0 sm:$0xff] }
 0x36c   : > { %v3740_v24 = vld [vmem:[%s6056_s3 + $0x44] ss:$0 sm:$0xff]  ;;  %v3743_v41 = vld [vmem:[%s6056_s3 + $0x47] ss:$0 sm:$0xff] }
 0x36e   : > { %2677 = vrot.lane.b32.xlu1 %v2643_v56, %s3943_s12  ;;  %2675 = vrot.lane.b32.xlu0 %v2641_v44, %s3943_s12  ;;  %v2651_v56 = vsel %vm2202_vm3, %v2649_v1, %v2650_v35  ;;  %v3730_v44 = vld [vmem:[%s6056_s3 + $0x3a] ss:$0 sm:$0xff]  ;;  %v3734_v1 = vld [vmem:[%s6056_s3 + $0x3e] ss:$0 sm:$0xff] }
 0x36f   : > { %v3737_v35 = vld [vmem:[%s6056_s3 + $0x41] ss:$0 sm:$0xff] }
 0x372   : > { %2681 = vrot.lane.b32.xlu1 %v2648_v42, %s3943_s12  ;;  %2679 = vrot.lane.b32.xlu0 %v2646_v7, %s3943_s12  ;;  %v3739_v42 = vld [vmem:[%s6056_s3 + $0x43] ss:$0 sm:$0xff]  ;;  %v3738_v7 = vld [vmem:[%s6056_s3 + $0x42] ss:$0 sm:$0xff] }
 0x376   : > { %2685 = vrot.lane.b32.xlu1 %v2653_v23, %s3943_s12  ;;  %2683 = vrot.lane.b32.xlu0 %v2651_v56, %s3943_s12  ;;  %v3742_v23 = vld [vmem:[%s6056_s3 + $0x46] ss:$0 sm:$0xff]  ;;  %v3723_v56 = vld [vmem:[%s6056_s3 + $0x33] ss:$0 sm:$0xff] }
 0x37a   : > { %2689 = vrot.lane.b32.xlu1 %v2658_v48, %s3943_s12  ;;  %2687 = vrot.lane.b32.xlu0 %v2656_v31, %s3943_s12  ;;  %v3722_v48 = vld [vmem:[%s6056_s3 + $0x32] ss:$0 sm:$0xff]  ;;  %v3725_v31 = vld [vmem:[%s6056_s3 + $0x35] ss:$0 sm:$0xff] }
 0x37e   : > { %2768 = vperm.xlu1 %3813, %v3721_v17   ;;  %2764 = vperm.xlu0 %3812, %v3720_v19   ;;  %v3724_v17 = vld [vmem:[%s6056_s3 + $0x34] ss:$0 sm:$0xff]  ;;  %v3727_v19 = vld [vmem:[%s6056_s3 + $0x37] ss:$0 sm:$0xff] }
 0x382   : > { %2961 = vperm.xlu1 %3813, %v3729_v0   ;;  %2957 = vperm.xlu0 %3812, %v3728_v51   ;;  %v3726_v0 = vld [vmem:[%s6056_s3 + $0x36] ss:$0 sm:$0xff]  ;;  %v1716_v51 = vmul.f32 %v4841_v57, %v4882_v12 }
 0x386   : > { %2969 = vperm.xlu1 %3813, %v3731_v52   ;;  %2965 = vperm.xlu0 %3812, %v3730_v44   ;;  %v1717_v52 = vmul.f32 %v4841_v57, %v4879_v45  ;;  %v1715_v44 = vmul.f32 %v4843_v58, %v4865_v22  ;;  %v1719_v57 = vmul.f32 %v4847_v36, %v4893_v14 }
 0x38a   : > { %2977 = vperm.xlu1 %3813, %v3733_v62   ;;  %2973 = vperm.xlu0 %3812, %v3732_v20   ;;  %v1714_v62 = vmul.f32 %v4843_v58, %v4868_v61  ;;  %v1720_v20 = vmul.f32 %v4845_v43, %v4910_v5  ;;  %v1725_v58 = vmul.f32 %v4850_v30, %v4937_v10 }
 0x38e   : > { %2985 = vperm.xlu1 %3813, %v3735_v59   ;;  %2981 = vperm.xlu0 %3812, %v3734_v1   ;;  %v1721_v59 = vmul.f32 %v4845_v43, %v4907_v63  ;;  %v1733_v1 = vadd.f32 %v1717_v52, %v4825_v39  ;;  %v1723_v43 = vmul.f32 %v4852_v46, %v4922_v54 }
 0x392   : > { %3185 = vperm.xlu1 %3813, %v3737_v35   ;;  %3181 = vperm.xlu0 %3812, %v3736_v50   ;;  %v1732_v35 = vadd.f32 %v1716_v51, %v4825_v39  ;;  %v1718_v50 = vmul.f32 %v4847_v36, %v4896_v49  ;;  %v1729_v39 = vmul.f32 %v4856_v16, %v4962_v4 }
 0x393   : > { %v1727_v36 = vmul.f32 %v4858_v40, %v4950_v28 }
 0x394   : > { %v5424_v51 = vadd.f32 %v1729_v39, %v4837_v3 }
 0x396   : > { %3193 = vperm.xlu1 %3813, %v3739_v42   ;;  %3189 = vperm.xlu0 %3812, %v3738_v7   ;;  %v1724_v42 = vmul.f32 %v4850_v30, %v4940_v47  ;;  %v1722_v7 = vmul.f32 %v4852_v46, %v4925_v29  ;;  %v1736_v30 = vadd.f32 %v1720_v20, %v4829_v8 }
 0x397   : > { %v2154_v46 = vmul.f32 %v5117_v13, %v4868_v61 }
 0x39a   : > { %3201 = vperm.xlu1 %3813, %v3741_v27   ;;  %3197 = vperm.xlu0 %3812, %v3740_v24   ;;  %v1731_v27 = vadd.f32 %v1715_v44, %v4827_v2  ;;  %v1730_v24 = vadd.f32 %v1714_v62, %v4827_v2  ;;  %v1734_v2 = vadd.f32 %v1718_v50, %v4831_v55  ;;  %v2203_v44 = vrot.slane %v2154_v46, 1 }
 0x39c   : > { %v1899_v20 = vadd.f32 %v5051_v11, %v1731_v27  ;;  %v6166_v11 = vld [vmem:[#allocation43_spill] sm:$0xff] }
 0x39d   : > { %v2160_v27 = vmul.f32 %v6166_v11, %v4896_v49 }
 0x39e   : > { %3209 = vperm.xlu1 %3813, %v3743_v41   ;;  %3205 = vperm.xlu0 %3812, %v3742_v23   ;;  %v1737_v41 = vadd.f32 %v1721_v59, %v4829_v8  ;;  %v1726_v23 = vmul.f32 %v4858_v40, %v4953_v26  ;;  %v1740_v8 = vadd.f32 %v1724_v42, %v4833_v53  ;;  %v6159_v59 = vld [vmem:[#allocation11_spill] sm:$0xff] }
 0x39f   : > { %v5419_v40 = vmul.f32 %v4856_v16, %v4965_v38  ;;  %v2159_v16 = vmul.f32 %v5115_v21, %v4759_v18  ;;  %v1898_v50 = vadd.f32 %v6159_v59, %v1730_v24 }
 0x3a0   : > { %v5436_v52 = vadd.f32 %v1726_v23, %v4839_v9 }
 0x3a2   : > { %2776 = vperm.xlu1 %3813, %v3723_v56   ;;  %2772 = vperm.xlu0 %3812, %v3722_v48   ;;  %v2155_v56 = vmul.f32 %v5117_v13, %v4865_v22  ;;  %v2156_v48 = vmul.f32 %v5117_v13, %v4749_v15  ;;  %v5427_v13 = vadd.f32 %v1727_v36, %v4839_v9  ;;  %v6163_v36 = vld [vmem:[#allocation15_spill] sm:$0xff]  ;;  %v6165_v9 = vld [vmem:[#allocation17_spill] sm:$0xff] }
 0x3a3   : > { %v1904_v23 = vadd.f32 %v6165_v9, %v1736_v30  ;;  %v6168_v30 = vld [vmem:[#allocation19_spill] sm:$0xff] }
 0x3a4   : > { %v2206_v62 = vrot.slane %v2156_v48, 1  ;;  %v2211_v48 = vrot.slane %v2159_v16, 1  ;;  %v6170_v16 = vld [vmem:[#allocation27_spill] sm:$0xff] }
 0x3a5   : > { %v2066_v59 = vadd.f32 %v6170_v16, %v1898_v50  ;;  %v6175_v16 = vld [vmem:[#allocation29_spill] sm:$0xff] }
 0x3a6   : > { %2784 = vperm.xlu1 %3813, %v3725_v31   ;;  %2780 = vperm.xlu0 %3812, %v3724_v17   ;;  %v1735_v31 = vadd.f32 %v1719_v57, %v4831_v55  ;;  %v1741_v17 = vadd.f32 %v1725_v58, %v4833_v53  ;;  %v2157_v55 = vmul.f32 %v5115_v21, %v4882_v12  ;;  %v6160_v57 = vld [vmem:[#allocation12_spill] sm:$0xff]  ;;  %v6161_v58 = vld [vmem:[#allocation13_spill] sm:$0xff] }
 0x3a7   : > { %v2158_v53 = vmul.f32 %v5115_v21, %v4879_v45  ;;  %v1901_v42 = vadd.f32 %v6160_v57, %v1733_v1  ;;  %v1902_v45 = vadd.f32 %v6163_v36, %v1734_v2  ;;  %v6164_v12 = vld [vmem:[#allocation16_spill] sm:$0xff]  ;;  %v2161_v1 = vmul.f32 %v6166_v11, %v4893_v14 }
 0x3a8   : > { %v5445_v21 = vadd.f32 %v6164_v12, %v1737_v41  ;;  %v2208_v46 = vrot.slane %v2157_v55, 1  ;;  %v6167_v12 = vld [vmem:[#allocation18_spill] sm:$0xff]  ;;  %v6171_v57 = vld [vmem:[#allocation20_spill] sm:$0xff] }
 0x3a9   : > { %v6169_v55 = vld [vmem:[#allocation26_spill] sm:$0xff] }
 0x3aa   : > { %2792 = vperm.xlu1 %3813, %v3727_v19   ;;  %2788 = vperm.xlu0 %3812, %v3726_v0   ;;  %v1739_v19 = vadd.f32 %v1723_v43, %v4835_v6  ;;  %v1738_v0 = vadd.f32 %v1722_v7, %v4835_v6  ;;  %v2204_v6 = vrot.slane %v2155_v56, 1  ;;  %v1900_v7 = vadd.f32 %v6161_v58, %v1732_v35  ;;  %v6162_v43 = vld [vmem:[#allocation14_spill] sm:$0xff] }
 0x3ab   : > { %v1903_v39 = vadd.f32 %v6162_v43, %v1735_v31  ;;  %v2209_v56 = vrot.slane %v2158_v53, 1  ;;  %v2162_v35 = vmul.f32 %v6166_v11, %v4769_v34  ;;  %v2067_v53 = vadd.f32 %v6169_v55, %v1899_v20  ;;  %v6172_v43 = vld [vmem:[#allocation42_spill] sm:$0xff]  ;;  %v6177_v34 = vld [vmem:[#allocation49_spill] sm:$0xff] }
 0x3ac   : > { %v2207_v24 = vsel %vm2202_vm3, %v2204_v6, %v2206_v62  ;;  %v2205_v31 = vsel %vm2202_vm3, %v2203_v44, %v2204_v6  ;;  %v5457_v41 = vadd.f32 %v6167_v12, %v1739_v19  ;;  %v5460_v2 = vadd.f32 %v6168_v30, %v1738_v0  ;;  %v6173_v44 = vld [vmem:[#allocation21_spill] sm:$0xff]  ;;  %v6174_v30 = vld [vmem:[#allocation28_spill] sm:$0xff] }
 0x3ad   : > { %v5465_v58 = vadd.f32 %v6171_v57, %v1741_v17  ;;  %v2163_v36 = vmul.f32 %v6172_v43, %v4910_v5  ;;  %v2164_v62 = vmul.f32 %v6172_v43, %v4907_v63  ;;  %v2165_v19 = vmul.f32 %v6172_v43, %v4779_v60  ;;  %v6176_v5 = vld [vmem:[#allocation48_spill] sm:$0xff] }
 0x3ae   : > { %v5474_v6 = vadd.f32 %v6173_v44, %v1740_v8  ;;  %v2213_v0 = vrot.slane %v2160_v27, 1  ;;  %v2260_v9 = vadd.f32 %v2207_v24, %v2067_v53  ;;  %v2259_v20 = vadd.f32 %v2205_v31, %v2066_v59  ;;  %v6178_v27 = vld [vmem:[#allocation45_spill] sm:$0xff] }
 0x3af   : > { %v2214_v11 = vrot.slane %v2161_v1, 1  ;;  %v2216_v50 = vrot.slane %v2162_v35, 1  ;;  %v2212_v17 = vsel %vm2202_vm3, %v2209_v56, %v2211_v48  ;;  %v2210_v12 = vsel %vm2202_vm3, %v2208_v46, %v2209_v56  ;;  %v6179_v56 = vld [vmem:[#allocation30_spill] sm:$0xff] }
 0x3b0   : > { %v2069_v55 = vadd.f32 %v6174_v30, %v1901_v42  ;;  %v2068_v57 = vadd.f32 %v6175_v16, %v1900_v7  ;;  %v2484_v63 = vadd.f32 %v6176_v5, %v2260_v9  ;;  %v2483_v43 = vadd.f32 %v6177_v34, %v2259_v20 }
 0x3b1   : > { %v2218_v60 = vrot.slane %v2163_v36, 1  ;;  %v2219_v8 = vrot.slane %v2164_v62, 1  ;;  %v2221_v44 = vrot.slane %v2165_v19, 1  ;;  %v2166_v24 = vmul.f32 %v6178_v27, %v4925_v29  ;;  %v6180_v36 = vld [vmem:[#allocation31_spill] sm:$0xff]  ;;  %v6181_v19 = vld [vmem:[#allocation50_spill] sm:$0xff] }
 0x3b2   : > { %v2262_v31 = vadd.f32 %v2212_v17, %v2069_v55  ;;  %v2261_v48 = vadd.f32 %v2210_v12, %v2068_v57  ;;  %v2167_v42 = vmul.f32 %v6178_v27, %v4922_v54  ;;  %v2168_v34 = vmul.f32 %v6178_v27, %v4789_v37  ;;  %v6183_v17 = vld [vmem:[#allocation44_spill] sm:$0xff] }
 0x3b3   : > { %v2217_v5 = vsel %vm2202_vm3, %v2214_v11, %v2216_v50  ;;  %v2215_v7 = vsel %vm2202_vm3, %v2213_v0, %v2214_v11  ;;  %v2071_v59 = vadd.f32 %v6179_v56, %v1903_v39  ;;  %v2070_v62 = vadd.f32 %v6180_v36, %v1902_v45  ;;  %v6185_v56 = vld [vmem:[#allocation33_spill] sm:$0xff] }
 0x3b4   : > { %v2486_v9 = vadd.f32 %v6181_v19, %v2262_v31  ;;  %v2169_v12 = vmul.f32 %v6183_v17, %v4940_v47  ;;  %v2170_v30 = vmul.f32 %v6183_v17, %v4937_v10  ;;  %v2171_v55 = vmul.f32 %v6183_v17, %v4799_v25  ;;  %v6184_v31 = vld [vmem:[#allocation32_spill] sm:$0xff] }
 0x3b5   : > { %v2223_v50 = vrot.slane %v2166_v24, 1  ;;  %v2264_v11 = vadd.f32 %v2217_v5, %v2071_v59  ;;  %v2263_v39 = vadd.f32 %v2215_v7, %v2070_v62  ;;  %v2226_v27 = vrot.slane %v2168_v34, 1  ;;  %v6186_v24 = vld [vmem:[#allocation52_spill] sm:$0xff] }
 0x3b6   : > { %v2072_v36 = vadd.f32 %v6185_v56, %v1904_v23  ;;  %v2228_v7 = vrot.slane %v2169_v12, 1  ;;  %v2229_v59 = vrot.slane %v2170_v30, 1  ;;  %v2231_v62 = vrot.slane %v2171_v55, 1  ;;  %v6189_v55 = vld [vmem:[#allocation34_spill] sm:$0xff] }
 0x3b7   : > { %v2488_v19 = vadd.f32 %v6186_v24, %v2264_v11 }
 0x3d0   : > { %v2662_v1 = vpop.permute.xlu1 %2661  ;;  %v2660_v35 = vpop.permute.xlu0 %2659 }
 0x3d1   : > { %v5484_v53 = vadd.f32 %v2662_v1, %v2484_v63  ;;  %v5486_v46 = vadd.f32 %v2660_v35, %v2483_v43  ;;  %v6182_v63 = vld [vmem:[#allocation51_spill] sm:$0xff]  ;;  %v2224_v43 = vrot.slane %v2167_v42, 1  ;;  %v2222_v1 = vsel %vm2202_vm3, %v2219_v8, %v2221_v44 }
 0x3d2   : > { %v2485_v20 = vadd.f32 %v6182_v63, %v2261_v48  ;;  %v2220_v35 = vsel %vm2202_vm3, %v2218_v60, %v2219_v8  ;;  %v2073_v48 = vadd.f32 %v6184_v31, %v5445_v21  ;;  %v6187_v63 = vld [vmem:[#allocation53_spill] sm:$0xff] }
 0x3d3   : > { %v2487_v5 = vadd.f32 %v6187_v63, %v2263_v39  ;;  %v2265_v17 = vadd.f32 %v2220_v35, %v2072_v36  ;;  %v2227_v12 = vsel %vm2202_vm3, %v2224_v43, %v2226_v27  ;;  %v2225_v30 = vsel %vm2202_vm3, %v2223_v50, %v2224_v43  ;;  %v6191_v39 = vld [vmem:[#allocation54_spill] sm:$0xff]  ;;  %v6192_v35 = vld [vmem:[#allocation55_spill] sm:$0xff] }
 0x3d4   : > { %v2666_v16 = vpop.permute.xlu1 %2665  ;;  %v2664_v0 = vpop.permute.xlu0 %2663  ;;  %v2266_v44 = vadd.f32 %v2222_v1, %v2073_v48  ;;  %v6193_v48 = vld [vmem:[#allocation46_spill] sm:$0xff] }
 0x3d5   : > { %v5504_v57 = vadd.f32 %v2666_v16, %v2486_v9  ;;  %v5506_v45 = vadd.f32 %v2664_v0, %v2485_v20  ;;  %v6188_v9 = vld [vmem:[#allocation47_spill] sm:$0xff]  ;;  %v2075_v16 = vadd.f32 %v6189_v55, %v5457_v41  ;;  %v2489_v31 = vadd.f32 %v6192_v35, %v2265_v17  ;;  %v6195_v55 = vld [vmem:[#allocation37_spill] sm:$0xff] }
 0x3d6   : > { %v2172_v42 = vmul.f32 %v6188_v9, %v4953_v26  ;;  %v2173_v21 = vmul.f32 %v6188_v9, %v4950_v28  ;;  %v2174_v23 = vmul.f32 %v6188_v9, %v4809_v33  ;;  %v6190_v0 = vld [vmem:[#allocation35_spill] sm:$0xff]  ;;  %v2490_v1 = vadd.f32 %v6191_v39, %v2266_v44  ;;  %v6194_v44 = vld [vmem:[#allocation36_spill] sm:$0xff] }
 0x3d7   : > { %v2074_v11 = vadd.f32 %v6190_v0, %v5460_v2  ;;  %v2175_v56 = vmul.f32 %v6193_v48, %v4965_v38  ;;  %v2176_v36 = vmul.f32 %v6193_v48, %v4962_v4  ;;  %v2177_v27 = vmul.f32 %v6193_v48, %v4821_v32  ;;  %v6196_v0 = vld [vmem:[#allocation56_spill] sm:$0xff] }
 0x3d8   : > { %v2670_v34 = vpop.permute.xlu1 %2669  ;;  %v2668_v20 = vpop.permute.xlu0 %2667  ;;  %v2233_v50 = vrot.slane %v2172_v42, 1  ;;  %v2268_v41 = vadd.f32 %v2227_v12, %v2075_v16  ;;  %v2236_v9 = vrot.slane %v2174_v23, 1  ;;  %v2077_v17 = vadd.f32 %v6194_v44, %v5465_v58  ;;  %v6197_v12 = vld [vmem:[#allocation57_spill] sm:$0xff]  ;;  %v6198_v16 = vld [vmem:[#allocation22_spill] sm:$0xff] }
 0x3d9   : > { %v5517_v60 = vadd.f32 %v2670_v34, %v2488_v19  ;;  %v5519_v8 = vadd.f32 %v2668_v20, %v2487_v5  ;;  %v2267_v19 = vadd.f32 %v2225_v30, %v2074_v11  ;;  %v2234_v5 = vrot.slane %v2173_v21, 1  ;;  %v6199_v21 = vld [vmem:[#allocation23_spill] sm:$0xff] }
 0x3da   : > { %v2232_v34 = vsel %vm2202_vm3, %v2229_v59, %v2231_v62  ;;  %v2230_v20 = vsel %vm2202_vm3, %v2228_v7, %v2229_v59  ;;  %v2076_v42 = vadd.f32 %v6195_v55, %v5474_v6  ;;  %v2492_v39 = vadd.f32 %v6196_v0, %v2268_v41  ;;  %v6200_v41 = vld [vmem:[#allocation38_spill] sm:$0xff] }
 0x3db   : > { %v2491_v30 = vadd.f32 %v6197_v12, %v2267_v19  ;;  %v1911_v11 = vadd.f32 %v6198_v16, %v5427_v13  ;;  %v1910_v23 = vadd.f32 %v6199_v21, %v5436_v52  ;;  %v1744_v62 = vadd.f32 %v5419_v40, %v4837_v3  ;;  %v6201_v19 = vld [vmem:[#allocation39_spill] sm:$0xff]  ;;  %v6202_v3 = vld [vmem:[#allocation58_spill] sm:$0xff] }
 0x3dc   : > { %v2674_v43 = vpop.permute.xlu1 %2673  ;;  %v2672_v24 = vpop.permute.xlu0 %2671  ;;  %v2238_v7 = vrot.slane %v2175_v56, 1  ;;  %v2270_v58 = vadd.f32 %v2232_v34, %v2077_v17  ;;  %v2269_v35 = vadd.f32 %v2230_v20, %v2076_v42  ;;  %v2239_v48 = vrot.slane %v2176_v36, 1  ;;  %v6203_v56 = vld [vmem:[#allocation59_spill] sm:$0xff]  ;;  %v6204_v34 = vld [vmem:[#allocation24_spill] sm:$0xff]  ;;  %v6205_v17 = vld [vmem:[#allocation25_spill] sm:$0xff] }
 0x3dd   : > { %v5539_v63 = vadd.f32 %v2674_v43, %v2490_v1  ;;  %v5541_v2 = vadd.f32 %v2672_v24, %v2489_v31  ;;  %v2241_v43 = vrot.slane %v2177_v27, 1  ;;  %v2237_v24 = vsel %vm2202_vm3, %v2234_v5, %v2236_v9 }
 0x3de   : > { %v2235_v13 = vsel %vm2202_vm3, %v2233_v50, %v2234_v5  ;;  %v2079_v52 = vadd.f32 %v6200_v41, %v1911_v11  ;;  %v2078_v44 = vadd.f32 %v6201_v19, %v1910_v23  ;;  %v2494_v40 = vadd.f32 %v6202_v3, %v2270_v58  ;;  %v6208_v11 = vld [vmem:[#allocation41_spill] sm:$0xff]  ;;  %v6209_v23 = vld [vmem:[#allocation60_spill] sm:$0xff]  ;;  %v6214_v19 = vld [vmem:[#allocation63_spill] sm:$0xff] }
 0x3df   : > { %v2493_v55 = vadd.f32 %v6203_v56, %v2269_v35  ;;  %v1913_v20 = vadd.f32 %v6204_v34, %v5424_v51  ;;  %v1912_v42 = vadd.f32 %v6205_v17, %v1744_v62  ;;  %v2242_v5 = vsel %vm2202_vm3, %v2239_v48, %v2241_v43 }
 0x3e0   : > { %v2678_v59 = vpop.permute.xlu1 %2677  ;;  %v2676_v1 = vpop.permute.xlu0 %2675  ;;  %v2272_v27 = vadd.f32 %v2237_v24, %v2079_v52  ;;  %v2240_v12 = vsel %vm2202_vm3, %v2238_v7, %v2239_v48  ;;  %v6213_v52 = vld [vmem:[#allocation62_spill] sm:$0xff] }
 0x3e1   : > { %v5557_v31 = vadd.f32 %v2678_v59, %v2492_v39  ;;  %v5559_v6 = vadd.f32 %v2676_v1, %v2491_v30  ;;  %v2271_v39 = vadd.f32 %v2235_v13, %v2078_v44  ;;  %v6207_v30 = vld [vmem:[#allocation40_spill] sm:$0xff]  ;;  %v2080_v21 = vadd.f32 %v6208_v11, %v1912_v42  ;;  %v6210_v59 = vld [vmem:[#allocation61_spill] sm:$0xff] }
 0x3e2   : > { %v2081_v16 = vadd.f32 %v6207_v30, %v1913_v20  ;;  %v2496_v51 = vadd.f32 %v6209_v23, %v2272_v27  ;;  %v6218_v30 = vld [vmem:[#allocation7_spill] sm:$0xff] }
 0x3e3   : > { %v2495_v62 = vadd.f32 %v6210_v59, %v2271_v39  ;;  %v2273_v24 = vadd.f32 %v2240_v12, %v2080_v21 }
 0x3e4   : > { %v2682_v0 = vpop.permute.xlu1 %2681  ;;  %v2680_v36 = vpop.permute.xlu0 %2679  ;;  %v2274_v35 = vadd.f32 %v2242_v5, %v2081_v16  ;;  %v6217_v5 = vld [vmem:[#allocation8_spill] sm:$0xff] }
 0x3e5   : > { %v5570_v9 = vadd.f32 %v2682_v0, %v2494_v40  ;;  %v5572_v50 = vadd.f32 %v2680_v36, %v2493_v55  ;;  %v2497_v7 = vadd.f32 %v6214_v19, %v2273_v24 }
 0x3e6   : > { %v2498_v43 = vadd.f32 %v6213_v52, %v2274_v35 }
 0x3e7   : > { %6206 = vst [vmem:[#allocation11_spill] sm:$0xff] %v5572_v50 }
 0x3e8   : > { %v2686_v1 = vpop.permute.xlu1 %2685  ;;  %v2684_v58 = vpop.permute.xlu0 %2683 }
 0x3e9   : > { %v5580_v13 = vadd.f32 %v2686_v1, %v2496_v51  ;;  %v5582_v41 = vadd.f32 %v2684_v58, %v2495_v62 }
 0x3eb   : > { %6211 = vst [vmem:[#allocation12_spill] sm:$0xff] %v5580_v13  ;;  %6212 = vst [vmem:[#allocation13_spill] sm:$0xff] %v5582_v41 }
 0x3ec   : > { %v2690_v48 = vpop.permute.xlu1 %2689  ;;  %v2688_v44 = vpop.permute.xlu0 %2687 }
 0x3ed   : > { %v5586_v3 = vadd.f32 %v2690_v48, %v2498_v43  ;;  %v5588_v40 = vadd.f32 %v2688_v44, %v2497_v7 }
 0x3ef   : > { %6215 = vst [vmem:[#allocation14_spill] sm:$0xff] %v5586_v3  ;;  %6216 = vst [vmem:[#allocation15_spill] sm:$0xff] %v5588_v40 }
 0x3f9   : > { %v5590_v56 = vpop.permute.xlu1 %2768  ;;  %v2765_v55 = vpop.permute.xlu0 %2764 }
 0x3fa   : > { %v2795_v34 = vmul.f32 %v2765_v55, %v4868_v61  ;;  %v2796_v20 = vmul.f32 %v2765_v55, %v4865_v22  ;;  %v2797_v17 = vmul.f32 %v2765_v55, %v4749_v15 }
 0x3fc   : > { %v2844_v42 = vrot.slane %v2795_v34, 2  ;;  %v2845_v0 = vrot.slane %v2796_v20, 2  ;;  %v2847_v36 = vrot.slane %v2797_v17, 2  ;;  %v6221_v20 = vld [vmem:[#allocation5_spill] sm:$0xff] }
 0x3fd   : > { %v2962_v27 = vpop.permute.xlu1 %2961  ;;  %v2958_v39 = vpop.permute.xlu0 %2957 }
 0x3fe   : > { %v2991_v12 = vmul.f32 %v2962_v27, %v6217_v5  ;;  %v2992_v16 = vmul.f32 %v2962_v27, %v6218_v30  ;;  %v2993_v11 = vmul.f32 %v2962_v27, %v4759_v18  ;;  %v2988_v21 = vmul.f32 %v2958_v39, %v4868_v61 }
 0x3ff   : > { %v2989_v23 = vmul.f32 %v2958_v39, %v4865_v22  ;;  %v2990_v51 = vmul.f32 %v2958_v39, %v4749_v15  ;;  %v2848_v59 = vsel %vm2843_vm4, %v2845_v0, %v2847_v36  ;;  %v2846_v62 = vsel %vm2843_vm4, %v2844_v42, %v2845_v0  ;;  %v6223_v39 = vld [vmem:[#allocation10_spill] sm:$0xff] }
 0x400   : > { %v3036_v1 = vrot.slane %v2988_v21, 2  ;;  %v5604_v43 = vadd.f32 %v2848_v59, %v5484_v53  ;;  %v5607_v19 = vadd.f32 %v2846_v62, %v5486_v46  ;;  %v3041_v7 = vrot.slane %v2991_v12, 2  ;;  %v6222_v53 = vld [vmem:[#allocation9_spill] sm:$0xff] }
 0x401   : > { %v3037_v58 = vrot.slane %v2989_v23, 2  ;;  %v3039_v35 = vrot.slane %v2990_v51, 2  ;;  %v2970_v24 = vpop.permute.xlu1 %2969  ;;  %v2966_v52 = vpop.permute.xlu0 %2965  ;;  %v3042_v48 = vrot.slane %v2992_v16, 2  ;;  %v3044_v44 = vrot.slane %v2993_v11, 2  ;;  %v6224_v16 = vld [vmem:[#allocation6_spill] sm:$0xff] }
 0x402   : > { %6219 = vst [vmem:[#allocation16_spill] sm:$0xff] %v5604_v43  ;;  %6220 = vst [vmem:[#allocation17_spill] sm:$0xff] %v5607_v19  ;;  %v2994_v55 = vmul.f32 %v2966_v52, %v4896_v49  ;;  %v2995_v34 = vmul.f32 %v2966_v52, %v4893_v14  ;;  %v2996_v17 = vmul.f32 %v2966_v52, %v6221_v20 }
 0x403   : > { %v3040_v42 = vsel %vm2843_vm4, %v3037_v58, %v3039_v35  ;;  %v3038_v0 = vsel %vm2843_vm4, %v3036_v1, %v3037_v58  ;;  %v2998_v46 = vmul.f32 %v2970_v24, %v6222_v53  ;;  %v2997_v12 = vmul.f32 %v2970_v24, %v6223_v39 }
 0x404   : > { %3078 = vrot.lane.b32.xlu1 %v3040_v42, %s3942_s11  ;;  %3076 = vrot.lane.b32.xlu0 %v3038_v0, %s3942_s11  ;;  %v2999_v11 = vmul.f32 %v2970_v24, %v6224_v16  ;;  %v3046_v21 = vrot.slane %v2994_v55, 2  ;;  %v3047_v23 = vrot.slane %v2995_v34, 2  ;;  %v3049_v51 = vrot.slane %v2996_v17, 2 }
 0x405   : > { %v2978_v36 = vpop.permute.xlu1 %2977  ;;  %v2974_v27 = vpop.permute.xlu0 %2973  ;;  %v3045_v59 = vsel %vm2843_vm4, %v3042_v48, %v3044_v44  ;;  %v3043_v62 = vsel %vm2843_vm4, %v3041_v7, %v3042_v48  ;;  %v3052_v1 = vrot.slane %v2998_v46, 2  ;;  %v3051_v55 = vrot.slane %v2997_v12, 2 }
 0x406   : > { %v3054_v52 = vrot.slane %v2999_v11, 2  ;;  %v3000_v42 = vmul.f32 %v2974_v27, %v4925_v29  ;;  %v3001_v0 = vmul.f32 %v2974_v27, %v4922_v54  ;;  %v3002_v24 = vmul.f32 %v2974_v27, %v4789_v37 }
 0x407   : > { %v3050_v34 = vsel %vm2843_vm4, %v3047_v23, %v3049_v51  ;;  %v3048_v44 = vsel %vm2843_vm4, %v3046_v21, %v3047_v23  ;;  %v5630_v7 = vmul.f32 %v5590_v56, %v6217_v5  ;;  %v5634_v48 = vmul.f32 %v5590_v56, %v6218_v30 }
 0x408   : > { %3082 = vrot.lane.b32.xlu1 %v3045_v59, %s3942_s11  ;;  %3080 = vrot.lane.b32.xlu0 %v3043_v62, %s3942_s11  ;;  %v3003_v17 = vmul.f32 %v2978_v36, %v4940_v47  ;;  %v5641_v46 = vmul.f32 %v5590_v56, %v4759_v18  ;;  %v3004_v27 = vmul.f32 %v2978_v36, %v4937_v10  ;;  %v3056_v23 = vrot.slane %v3000_v42, 2 }
 0x409   : > { %v2986_v58 = vpop.permute.xlu1 %2985  ;;  %v2982_v35 = vpop.permute.xlu0 %2981  ;;  %v3005_v12 = vmul.f32 %v2978_v36, %v4799_v25  ;;  %v3057_v51 = vrot.slane %v3001_v0, 2  ;;  %v3059_v59 = vrot.slane %v3002_v24, 2  ;;  %v3055_v62 = vsel %vm2843_vm4, %v3052_v1, %v3054_v52 }
 0x40a   : > { %v3009_v19 = vmul.f32 %v2986_v58, %v4965_v38  ;;  %v3053_v56 = vsel %vm2843_vm4, %v3051_v55, %v3052_v1  ;;  %v3061_v36 = vrot.slane %v3003_v17, 2  ;;  %v3006_v3 = vmul.f32 %v2982_v35, %v4953_v26 }
 0x40b   : > { %v3062_v52 = vrot.slane %v3004_v27, 2  ;;  %v3064_v42 = vrot.slane %v3005_v12, 2  ;;  %v3007_v0 = vmul.f32 %v2982_v35, %v4950_v28  ;;  %v3008_v24 = vmul.f32 %v2982_v35, %v4809_v33 }
 0x40c   : > { %3086 = vrot.lane.b32.xlu1 %v3050_v34, %s3942_s11  ;;  %3084 = vrot.lane.b32.xlu0 %v3048_v44, %s3942_s11  ;;  %v3010_v34 = vmul.f32 %v2986_v58, %v4962_v4  ;;  %v3011_v44 = vmul.f32 %v2986_v58, %v4821_v32  ;;  %v3060_v43 = vsel %vm2843_vm4, %v3057_v51, %v3059_v59  ;;  %v3071_v40 = vrot.slane %v3009_v19, 2 }
 0x40d   : > { %v3186_v11 = vpop.permute.xlu1 %3185  ;;  %v3182_v21 = vpop.permute.xlu0 %3181  ;;  %v3058_v27 = vsel %vm2843_vm4, %v3056_v23, %v3057_v51  ;;  %v3066_v12 = vrot.slane %v3006_v3, 2  ;;  %v3065_v19 = vsel %vm2843_vm4, %v3062_v52, %v3064_v42  ;;  %v3063_v59 = vsel %vm2843_vm4, %v3061_v36, %v3062_v52 }
 0x40e   : > { %v3212_v1 = vmul.f32 %v3182_v21, %v4868_v61  ;;  %v3213_v55 = vmul.f32 %v3182_v21, %v4865_v22  ;;  %v3214_v17 = vmul.f32 %v3182_v21, %v4749_v15  ;;  %v3074_v13 = vrot.slane %v3011_v44, 2 }
 0x40f   : > { %v3216_v35 = vmul.f32 %v3186_v11, %v6218_v30  ;;  %v3217_v50 = vmul.f32 %v3186_v11, %v4759_v18  ;;  %v3067_v22 = vrot.slane %v3007_v0, 2  ;;  %v3069_v15 = vrot.slane %v3008_v24, 2 }
 0x410   : > { %3090 = vrot.lane.b32.xlu1 %v3055_v62, %s3942_s11  ;;  %3088 = vrot.lane.b32.xlu0 %v3053_v56, %s3942_s11  ;;  %v3072_v62 = vrot.slane %v3010_v34, 2  ;;  %v3215_v56 = vmul.f32 %v3186_v11, %v6217_v5  ;;  %v3260_v23 = vrot.slane %v3212_v1, 2  ;;  %v3261_v3 = vrot.slane %v3213_v55, 2 }
 0x411   : > { %v3194_v58 = vpop.permute.xlu1 %3193  ;;  %v3190_v41 = vpop.permute.xlu0 %3189  ;;  %v3263_v51 = vrot.slane %v3214_v17, 2  ;;  %v3266_v44 = vrot.slane %v3216_v35, 2  ;;  %v3268_v42 = vrot.slane %v3217_v50, 2  ;;  %v2852_v52 = vrot.slane %v5641_v46, 2 }
 0x412   : > { %v5670_v5 = vmul.f32 %v3194_v58, %v6223_v39  ;;  %v5673_v18 = vmul.f32 %v3194_v58, %v6222_v53  ;;  %v5676_v30 = vmul.f32 %v3194_v58, %v6224_v16  ;;  %v3220_v11 = vmul.f32 %v3190_v41, %v6221_v20 }
 0x413   : > { %v3265_v34 = vrot.slane %v3215_v56, 2  ;;  %v3218_v36 = vmul.f32 %v3190_v41, %v4896_v49  ;;  %v3070_v58 = vsel %vm2843_vm4, %v3067_v22, %v3069_v15  ;;  %v3068_v1 = vsel %vm2843_vm4, %v3066_v12, %v3067_v22 }
 0x414   : > { %3094 = vrot.lane.b32.xlu1 %v3060_v43, %s3942_s11  ;;  %3092 = vrot.lane.b32.xlu0 %v3058_v27, %s3942_s11  ;;  %v3219_v43 = vmul.f32 %v3190_v41, %v4893_v14  ;;  %v3075_v55 = vsel %vm2843_vm4, %v3072_v62, %v3074_v13  ;;  %v3073_v41 = vsel %vm2843_vm4, %v3071_v40, %v3072_v62  ;;  %v3278_v56 = vrot.slane %v5676_v30, 2 }
 0x415   : > { %v3202_v61 = vpop.permute.xlu1 %3201  ;;  %v3198_v21 = vpop.permute.xlu0 %3197  ;;  %v3264_v17 = vsel %vm2843_vm4, %v3261_v3, %v3263_v51  ;;  %v3262_v27 = vsel %vm2843_vm4, %v3260_v23, %v3261_v3  ;;  %v3269_v13 = vsel %vm2843_vm4, %v3266_v44, %v3268_v42  ;;  %v3267_v40 = vsel %vm2843_vm4, %v3265_v34, %v3266_v44 }
 0x416   : > { %v3271_v35 = vrot.slane %v3219_v43, 2  ;;  %v5698_v15 = vmul.f32 %v3198_v21, %v4925_v29  ;;  %v5705_v62 = vmul.f32 %v3202_v61, %v4940_v47  ;;  %v5708_v12 = vmul.f32 %v3202_v61, %v4937_v10 }
 0x417   : > { %v5711_v22 = vmul.f32 %v3202_v61, %v4799_v25  ;;  %v5714_v23 = vmul.f32 %v3198_v21, %v4922_v54  ;;  %v5721_v42 = vmul.f32 %v3198_v21, %v4789_v37 }
 0x418   : > { %3098 = vrot.lane.b32.xlu1 %v3065_v19, %s3942_s11  ;;  %3096 = vrot.lane.b32.xlu0 %v3063_v59, %s3942_s11  ;;  %v3273_v19 = vrot.slane %v3220_v11, 2  ;;  %v3270_v59 = vrot.slane %v3218_v36, 2  ;;  %v3285_v30 = vrot.slane %v5705_v62, 2 }
 0x419   : > { %v5684_v0 = vpop.permute.xlu1 %3209  ;;  %v5686_v24 = vpop.permute.xlu0 %3205 }
 0x41a   : > { %v3233_v62 = vmul.f32 %v5684_v0, %v4965_v38 }
 0x41c   : > { %3102 = vrot.lane.b32.xlu1 %v3070_v58, %s3942_s11  ;;  %3100 = vrot.lane.b32.xlu0 %v3068_v1, %s3942_s11  ;;  %v3274_v58 = vsel %vm2843_vm4, %v3271_v35, %v3273_v19  ;;  %v3280_v1 = vrot.slane %v5698_v15, 2 }
 0x41d   : > { %v2777_v3 = vpop.permute.xlu1 %2776  ;;  %v2773_v51 = vpop.permute.xlu0 %2772 }
 0x41e   : > { %v2804_v43 = vmul.f32 %v2777_v3, %v6223_v39  ;;  %v2805_v11 = vmul.f32 %v2777_v3, %v6222_v53  ;;  %v2806_v34 = vmul.f32 %v2777_v3, %v6224_v16  ;;  %v2801_v44 = vmul.f32 %v2773_v51, %v4896_v49 }
 0x41f   : > { %v2802_v36 = vmul.f32 %v2773_v51, %v4893_v14  ;;  %v2803_v61 = vmul.f32 %v2773_v51, %v6221_v20  ;;  %v3272_v53 = vsel %vm2843_vm4, %v3270_v59, %v3271_v35  ;;  %v6225_v35 = vrot.slane %v5634_v48, 2 }
 0x420   : > { %v2859_v50 = vrot.slane %v2804_v43, 2  ;;  %v2860_v46 = vrot.slane %v2805_v11, 2  ;;  %3106 = vrot.lane.b32.xlu1 %v3075_v55, %s3942_s11  ;;  %3104 = vrot.lane.b32.xlu0 %v3073_v41, %s3942_s11  ;;  %v2862_v49 = vrot.slane %v2806_v34, 2  ;;  %v2854_v39 = vrot.slane %v2801_v44, 2  ;;  %s215_s11 = sand.u32 1, %s3930_s19  }
 0x421   : > { %v2855_v16 = vrot.slane %v2802_v36, 2  ;;  %v2857_v21 = vrot.slane %v2803_v61, 2  ;;  %v2785_v3 = vpop.permute.xlu1 %2784  ;;  %v2781_v14 = vpop.permute.xlu0 %2780  ;;  %v2853_v59 = vsel %vm2843_vm4, %v6225_v35, %v2852_v52  ;;  %v6226_v11 = vmov %v6225_v35  ;;  %s6013_s22 = scalar_lea.sflag [#allocation3], %s215_s11 }
 0x422   : > { %v2810_v20 = vmul.f32 %v2785_v3, %v4940_v47  ;;  %v2811_v19 = vmul.f32 %v2785_v3, %v4937_v10  ;;  %v2812_v51 = vmul.f32 %v2785_v3, %v4799_v25  ;;  %v2807_v43 = vmul.f32 %v2781_v14, %v4925_v29 }
 0x423   : > { %v2808_v55 = vmul.f32 %v2781_v14, %v4922_v54  ;;  %v2809_v41 = vmul.f32 %v2781_v14, %v4789_v37  ;;  %v6227_v34 = vrot.slane %v5630_v7, 2  ;;  %v5747_v52 = vadd.f32 %v2853_v59, %v5504_v57 }
 0x424   : > { %v2869_v44 = vrot.slane %v2810_v20, 2  ;;  %v2870_v10 = vrot.slane %v2811_v19, 2  ;;  %v2872_v36 = vrot.slane %v2812_v51, 2  ;;  %v2864_v25 = vrot.slane %v2807_v43, 2  ;;  %3302 = vrot.lane.b32.xlu1 %v3264_v17, %s3943_s12  ;;  %3300 = vrot.lane.b32.xlu0 %v3262_v27, %s3943_s12 }
 0x425   : > { %v2851_v47 = vsel %vm2843_vm4, %v6227_v34, %v6226_v11  ;;  %v2865_v54 = vrot.slane %v2808_v55, 2  ;;  %v2867_v37 = vrot.slane %v2809_v41, 2  ;;  %v2793_v29 = vpop.permute.xlu1 %2792  ;;  %v2789_v61 = vpop.permute.xlu0 %2788  ;;  %v2858_v19 = vsel %vm2843_vm4, %v2855_v16, %v2857_v21 }
 0x426   : > { %v5750_v48 = vadd.f32 %v2851_v47, %v5506_v45  ;;  %v2816_v7 = vmul.f32 %v2793_v29, %v4965_v38  ;;  %v2817_v3 = vmul.f32 %v2793_v29, %v4962_v4  ;;  %v2818_v14 = vmul.f32 %v2793_v29, %v4821_v32 }
 0x427   : > { %v2813_v17 = vmul.f32 %v2789_v61, %v4953_v26  ;;  %v2814_v27 = vmul.f32 %v2789_v61, %v4950_v28  ;;  %v2815_v20 = vmul.f32 %v2789_v61, %v4809_v33  ;;  %v2856_v57 = vsel %vm2843_vm4, %v2854_v39, %v2855_v16 }
 0x428   : > { %v2879_v51 = vrot.slane %v2816_v7, 2  ;;  %v2880_v43 = vrot.slane %v2817_v3, 2  ;;  %v2882_v45 = vrot.slane %v2818_v14, 2  ;;  %3306 = vrot.lane.b32.xlu1 %v3269_v13, %s3943_s12  ;;  %3304 = vrot.lane.b32.xlu0 %v3267_v40, %s3943_s12  ;;  %v5763_v59 = vadd.f32 %v2858_v19, %v5517_v60  ;;  %v6235_v3 = vld [vmem:[#allocation15_spill] sm:$0xff] }
 0x429   : > { %v2874_v55 = vrot.slane %v2813_v17, 2  ;;  %v2875_v41 = vrot.slane %v2814_v27, 2  ;;  %v2877_v35 = vrot.slane %v2815_v20, 2  ;;  %v5766_v11 = vadd.f32 %v2856_v57, %v5519_v8 }
 0x42a   : > { %v2863_v21 = vsel %vm2843_vm4, %v2860_v46, %v2862_v49  ;;  %v2861_v39 = vsel %vm2843_vm4, %v2859_v50, %v2860_v46  ;;  %v2868_v16 = vsel %vm2843_vm4, %v2865_v54, %v2867_v37  ;;  %v2866_v34 = vsel %vm2843_vm4, %v2864_v25, %v2865_v54 }
 0x42b   : > { %v5773_v13 = vadd.f32 %v2863_v21, %v5539_v63  ;;  %v5776_v40 = vadd.f32 %v2861_v39, %v5541_v2  ;;  %v5779_v60 = vadd.f32 %v2868_v16, %v5557_v31  ;;  %v5782_v8 = vadd.f32 %v2866_v34, %v5559_v6  ;;  %v6228_v31 = vld [vmem:[#allocation11_spill] sm:$0xff]  ;;  %v6229_v6 = vld [vmem:[#allocation12_spill] sm:$0xff] }
 0x42c   : > { %v3281_v49 = vrot.slane %v5714_v23, 2  ;;  %3310 = vrot.lane.b32.xlu1 %v3274_v58, %s3943_s12  ;;  %3308 = vrot.lane.b32.xlu0 %v3272_v53, %s3943_s12  ;;  %v2873_v50 = vsel %vm2843_vm4, %v2870_v10, %v2872_v36  ;;  %v2871_v63 = vsel %vm2843_vm4, %v2869_v44, %v2870_v10  ;;  %v2878_v46 = vsel %vm2843_vm4, %v2875_v41, %v2877_v35  ;;  %v6230_v53 = vld [vmem:[#allocation13_spill] sm:$0xff] }
 0x42d   : > { %v5791_v2 = vadd.f32 %v2873_v50, %v5570_v9  ;;  %v5794_v47 = vadd.f32 %v2871_v63, %v6228_v31  ;;  %v5797_v25 = vadd.f32 %v2878_v46, %v6229_v6  ;;  %v2876_v23 = vsel %vm2843_vm4, %v2874_v55, %v2875_v41 }
 0x42e   : > { %v3283_v58 = vrot.slane %v5721_v42, 2  ;;  %v5802_v54 = vadd.f32 %v2876_v23, %v6230_v53  ;;  %v2883_v44 = vsel %vm2843_vm4, %v2880_v43, %v2882_v45  ;;  %v2881_v10 = vsel %vm2843_vm4, %v2879_v51, %v2880_v43  ;;  %v6234_v42 = vld [vmem:[#allocation14_spill] sm:$0xff] }
 0x42f   : > { %v6231_v9 = vrot.slane %v5673_v18, 2  ;;  %v6233_v29 = vrot.slane %v5670_v5, 2  ;;  %v5817_v7 = vadd.f32 %v2883_v44, %v6234_v42  ;;  %v5820_v14 = vadd.f32 %v2881_v10, %v6235_v3  ;;  %v6237_v44 = vld [vmem:[#allocation17_spill] sm:$0xff] }
 0x430   : > { %v3288_v18 = vrot.slane %v5711_v22, 2  ;;  %v3230_v5 = vmul.f32 %v5686_v24, %v4953_v26  ;;  %v3231_v17 = vmul.f32 %v5686_v24, %v4950_v28  ;;  %v3232_v27 = vmul.f32 %v5686_v24, %v4809_v33 }
 0x431   : > { %v3279_v36 = vsel %vm2843_vm4, %v6231_v9, %v3278_v56  ;;  %v6232_v37 = vmov %v6231_v9  ;;  %v3286_v56 = vrot.slane %v5708_v12, 2  ;;  %v3284_v20 = vsel %vm2843_vm4, %v3281_v49, %v3283_v58  ;;  %v6236_v58 = vld [vmem:[#allocation16_spill] sm:$0xff] }
 0x432   : > { %v3277_v61 = vsel %vm2843_vm4, %v6233_v29, %v6232_v37  ;;  %3314 = vrot.lane.b32.xlu1 %v3279_v36, %s3943_s12  ;;  %v3282_v19 = vsel %vm2843_vm4, %v3280_v1, %v3281_v49  ;;  %v3234_v26 = vmul.f32 %v5684_v0, %v4962_v4  ;;  %v3235_v28 = vmul.f32 %v5684_v0, %v4821_v32 }
 0x433   : > { %3312 = vrot.lane.b32.xlu0 %v3277_v61, %s3943_s12  ;;  %v3290_v33 = vrot.slane %v3230_v5, 2  ;;  %v3291_v24 = vrot.slane %v3231_v17, 2  ;;  %v3293_v12 = vrot.slane %v3232_v27, 2  ;;  %v3289_v15 = vsel %vm2843_vm4, %v3286_v56, %v3288_v18 }
 0x434   : > { %v3287_v22 = vsel %vm2843_vm4, %v3285_v30, %v3286_v56  ;;  %v3295_v1 = vrot.slane %v3233_v62, 2  ;;  %v3296_v57 = vrot.slane %v3234_v26, 2  ;;  %v3298_v38 = vrot.slane %v3235_v28, 2 }
 0x435   : > { %v3294_v51 = vsel %vm2843_vm4, %v3291_v24, %v3293_v12  ;;  %v3292_v4 = vsel %vm2843_vm4, %v3290_v33, %v3291_v24 }
 0x436   : > { %3318 = vrot.lane.b32.xlu1 %v3284_v20, %s3943_s12  ;;  %v3299_v32 = vsel %vm2843_vm4, %v3296_v57, %v3298_v38  ;;  %v3297_v0 = vsel %vm2843_vm4, %v3295_v1, %v3296_v57 }
 0x437   : > { %3316 = vrot.lane.b32.xlu0 %v3282_v19, %s3943_s12 }
 0x43a   : > { %3322 = vrot.lane.b32.xlu1 %v3289_v15, %s3943_s12 }
 0x43b   : > { %3320 = vrot.lane.b32.xlu0 %v3287_v22, %s3943_s12 }
 0x43e   : > { %3326 = vrot.lane.b32.xlu1 %v3294_v51, %s3943_s12 }
 0x43f   : > { %3324 = vrot.lane.b32.xlu0 %v3292_v4, %s3943_s12 }
 0x442   : > { %3330 = vrot.lane.b32.xlu1 %v3299_v32, %s3943_s12 }
 0x443   : > { %3328 = vrot.lane.b32.xlu0 %v3297_v0, %s3943_s12  ;;  %s3573_s12 = sshll.u32 %s215_s11, 7 }
 0x444   : > { %s5929_s9 = scalar_lea.vmem [#allocation2], %s3573_s12 }
 0x445   : > { %s3507_s13 = sshll.u32 %s5929_s9, 4  ;;  %s6002_s13 = int_to_ptr.vmem [resolvable:$true] %s3507_s13 }
 0x446   : > { %s3878_s17 = scalar_lea.vmem %s6002_s13, 2048  ;;  %p3885_p0 = scmp.lt.s32.totalorder %s6002_s13, %s3883_s25 }
 0x447   : > { %p3879_p11 = scmp.ne.s32.totalorder %s6002_s13, %s3878_s17  ;;  %p3886_p1 = scmp.lt.s32.totalorder %s3884_s26, %s3878_s17 }
 0x449   : > { %p3880_p12 = pnand %p3879_p11, %p4015_p5  ;;  %p3887_p2 = por %p3886_p1, %p3885_p0 }
 0x44b   : > { %p3881_p13 = pneg %p3880_p12 }
 0x44d   : > { %p3888_p3 = pnand %p3887_p2, %p3881_p13 }
 0x476   : > { %v3079_v43 = vpop.permute.xlu1 %3078  ;;  %v3077_v45 = vpop.permute.xlu0 %3076 }
 0x477   : > { %v3125_v53 = vadd.f32 %v3079_v43, %v6236_v58  ;;  %v3124_v10 = vadd.f32 %v3077_v45, %v6237_v44 }
 0x47a   : > { %v3083_v55 = vpop.permute.xlu1 %3082  ;;  %v3081_v41 = vpop.permute.xlu0 %3080 }
 0x47b   : > { %v3127_v61 = vadd.f32 %v3083_v55, %v5747_v52  ;;  %v3126_v42 = vadd.f32 %v3081_v41, %v5750_v48 }
 0x47e   : > { %v3087_v35 = vpop.permute.xlu1 %3086  ;;  %v3085_v21 = vpop.permute.xlu0 %3084 }
 0x47f   : > { %v3129_v19 = vadd.f32 %v3087_v35, %v5763_v59  ;;  %v3128_v62 = vadd.f32 %v3085_v21, %v5766_v11 }
 0x482   : > { %v3091_v39 = vpop.permute.xlu1 %3090  ;;  %v3089_v16 = vpop.permute.xlu0 %3088 }
 0x483   : > { %v3131_v22 = vadd.f32 %v3091_v39, %v5773_v13  ;;  %v3130_v59 = vadd.f32 %v3089_v16, %v5776_v40 }
 0x486   : > { %v3095_v34 = vpop.permute.xlu1 %3094  ;;  %v3093_v49 = vpop.permute.xlu0 %3092 }
 0x487   : > { %v3133_v43 = vadd.f32 %v3095_v34, %v5779_v60  ;;  %v3132_v13 = vadd.f32 %v3093_v49, %v5782_v8 }
 0x48a   : > { %v3099_v50 = vpop.permute.xlu1 %3098  ;;  %v3097_v63 = vpop.permute.xlu0 %3096 }
 0x48b   : > { %v3135_v60 = vadd.f32 %v3099_v50, %v5791_v2  ;;  %v3134_v8 = vadd.f32 %v3097_v63, %v5794_v47 }
 0x48e   : > { %v5857_v46 = vpop.permute.xlu1 %3102  ;;  %v5859_v31 = vpop.permute.xlu0 %3100 }
 0x48f   : > { %v3137_v58 = vadd.f32 %v5857_v46, %v5797_v25 }
 0x492   : > { %v5861_v6 = vpop.permute.xlu1 %3106  ;;  %v5863_v23 = vpop.permute.xlu0 %3104 }
 0x493   : > { %v3139_v25 = vadd.f32 %v5861_v6, %v5817_v7 }
 0x496   : > { %v3303_v9 = vpop.permute.xlu1 %3302  ;;  %v3301_v36 = vpop.permute.xlu0 %3300 }
 0x497   : > { %v5867_v37 = vadd.f32 %v3303_v9, %v3125_v53  ;;  %v5869_v29 = vadd.f32 %v3301_v36, %v3124_v10  ;;  %v3136_v53 = vadd.f32 %v5859_v31, %v5802_v54  ;;  %v3138_v54 = vadd.f32 %v5863_v23, %v5820_v14 }
 0x499   : > { %v3381_v3 = vmin.f32 %v5867_v37, 0.0  ;;  %v3380_v30 = vmin.f32 %v5869_v29, 0.0  ;;  %vm3365_vm6 = vcmp.gt.f32.partialorder %v5867_v37, 0.0  ;;  %vm3364_vm7 = vcmp.gt.f32.partialorder %v5869_v29, 0.0 }
 0x49a   : > { %v3307_v56 = vpop.permute.xlu1 %3306  ;;  %v3305_v18 = vpop.permute.xlu0 %3304 }
 0x49b   : > { %v3398_v5 = vmul.f32 1.442695, %v3381_v3  ;;  %v3396_v17 = vmul.f32 1.442695, %v3380_v30  ;;  %v5875_v27 = vadd.f32 %v3307_v56, %v3127_v61  ;;  %v5877_v20 = vadd.f32 %v3305_v18, %v3126_v42 }
 0x49d   : > { %3846 = vpow2.f32 %v3398_v5  ;;  %v3383_v52 = vmin.f32 %v5875_v27, 0.0  ;;  %v3382_v48 = vmin.f32 %v5877_v20, 0.0  ;;  %vm3367_vm8 = vcmp.gt.f32.partialorder %v5875_v27, 0.0 }
 0x49e   : > { %3848 = vpow2.f32 %v3396_v17  ;;  %v3311_v26 = vpop.permute.xlu1 %3310  ;;  %v3309_v28 = vpop.permute.xlu0 %3308  ;;  %vm3366_vm9 = vcmp.gt.f32.partialorder %v5877_v20, 0.0 }
 0x49f   : > { %v3402_v33 = vmul.f32 1.442695, %v3383_v52  ;;  %v5883_v24 = vadd.f32 %v3311_v26, %v3129_v19  ;;  %v5885_v12 = vadd.f32 %v3309_v28, %v3128_v62  ;;  %v3400_v15 = vmul.f32 1.442695, %v3382_v48 }
 0x4a1   : > { %3850 = vpow2.f32 %v3402_v33  ;;  %v3385_v11 = vmin.f32 %v5883_v24, 0.0  ;;  %v3384_v1 = vmin.f32 %v5885_v12, 0.0  ;;  %vm3369_vm10 = vcmp.gt.f32.partialorder %v5883_v24, 0.0 }
 0x4a2   : > { %3852 = vpow2.f32 %v3400_v15  ;;  %vm3368_vm11 = vcmp.gt.f32.partialorder %v5885_v12, 0.0 }
 0x4a3   : > { %v3406_v51 = vmul.f32 1.442695, %v3385_v11  ;;  %v3404_v0 = vmul.f32 1.442695, %v3384_v1 }
 0x4a4   : > { %v3315_v57 = vpop.permute.xlu1 %3314 }
 0x4a5   : > { %v3313_v38 = vpop.permute.xlu0 %3312  ;;  %v5891_v4 = vadd.f32 %v3315_v57, %v3131_v22  ;;  %3854 = vpow2.f32 %v3406_v51 }
 0x4a6   : > { %v5893_v32 = vadd.f32 %v3313_v38, %v3130_v59  ;;  %3856 = vpow2.f32 %v3404_v0 }
 0x4a7   : > { %v3387_v40 = vmin.f32 %v5891_v4, 0.0  ;;  %vm3371_vm12 = vcmp.gt.f32.partialorder %v5891_v4, 0.0 }
 0x4a8   : > { %v3386_v45 = vmin.f32 %v5893_v32, 0.0  ;;  %v3319_v55 = vpop.permute.xlu1 %3318  ;;  %vm3370_vm13 = vcmp.gt.f32.partialorder %v5893_v32, 0.0 }
 0x4a9   : > { %v3317_v41 = vpop.permute.xlu0 %3316  ;;  %v3410_v35 = vmul.f32 1.442695, %v3387_v40  ;;  %v5900_v21 = vadd.f32 %v3319_v55, %v3133_v43 }
 0x4aa   : > { %v5902_v39 = vadd.f32 %v3317_v41, %v3132_v13  ;;  %v3408_v16 = vmul.f32 1.442695, %v3386_v45  ;;  %v3847_v49 = vpop.eup %3846 }
 0x4ab   : > { %3858 = vpow2.f32 %v3410_v35  ;;  %v3389_v34 = vmin.f32 %v5900_v21, 0.0  ;;  %v3849_v2 = vpop.eup %3848  ;;  %v3745_v50 = vadd.f32 -1.0, %v3847_v49  ;;  %vm3373_vm14 = vcmp.gt.f32.partialorder %v5900_v21, 0.0 }
 0x4ac   : > { %3860 = vpow2.f32 %v3408_v16  ;;  %v3388_v44 = vmin.f32 %v5902_v39, 0.0  ;;  %v3323_v10 = vpop.permute.xlu1 %3322  ;;  %v3744_v46 = vadd.f32 -1.0, %v3849_v2  ;;  %vm3372_vm15 = vcmp.gt.f32.partialorder %v5902_v39, 0.0 }
 0x4ad   : > { %v3321_v9 = vpop.permute.xlu0 %3320  ;;  %v3414_v47 = vmul.f32 1.442695, %v3389_v34  ;;  %v5914_v63 = vadd.f32 %v3323_v10, %v3135_v60  ;;  %v3445_v61 = vmul.f32 0.1, %v3745_v50 }
 0x4ae   : > { %v5916_v36 = vadd.f32 %v3321_v9, %v3134_v8  ;;  %v3412_v31 = vmul.f32 1.442695, %v3388_v44  ;;  %v3851_v3 = vpop.eup %3850  ;;  %v3444_v30 = vmul.f32 0.1, %v3744_v46 }
 0x4af   : > { %3862 = vpow2.f32 %v3414_v47  ;;  %v3391_v42 = vmin.f32 %v5914_v63, 0.0  ;;  %v3853_v6 = vpop.eup %3852  ;;  %v3461_v14 = vsel %vm3365_vm6, %v5867_v37, %v3445_v61  ;;  %v3747_v23 = vadd.f32 -1.0, %v3851_v3 }
 0x4b0   : > { %3864 = vpow2.f32 %v3412_v31  ;;  %v3390_v56 = vmin.f32 %v5916_v36, 0.0  ;;  %v3327_v18 = vpop.permute.xlu1 %3326  ;;  %3478 = vst.msk [vmem:[%s5929_s9 + $0x8] sm:$0xff] %vm3476_vm5, %v3461_v14  ;;  %v3460_v19 = vsel %vm3364_vm7, %v5869_v29, %v3444_v30  ;;  %v3746_v62 = vadd.f32 -1.0, %v3853_v6 }
 0x4b1   : > { %v3325_v7 = vpop.permute.xlu0 %3324  ;;  %v3418_v5 = vmul.f32 1.442695, %v3391_v42  ;;  %v5927_v17 = vadd.f32 %v3327_v18, %v3137_v58  ;;  %3477 = vst.msk [vmem:[%s5929_s9] sm:$0xff] %vm3476_vm5, %v3460_v19  ;;  %v3447_v37 = vmul.f32 0.1, %v3747_v23  ;;  %vm3375_vm0 = vcmp.gt.f32.partialorder %v5914_v63, 0.0 }
 0x4b2   : > { %v3416_v52 = vmul.f32 1.442695, %v3390_v56  ;;  %v5934_v48 = vadd.f32 %v3325_v7, %v3136_v53  ;;  %v3855_v28 = vpop.eup %3854  ;;  %v3446_v33 = vmul.f32 0.1, %v3746_v62  ;;  %vm3374_vm1 = vcmp.gt.f32.partialorder %v5916_v36, 0.0 }
 0x4b3   : > { %3866 = vpow2.f32 %v3418_v5  ;;  %v3393_v26 = vmin.f32 %v5927_v17, 0.0  ;;  %v3857_v59 = vpop.eup %3856  ;;  %v3463_v11 = vsel %vm3367_vm8, %v5875_v27, %v3447_v37  ;;  %v3749_v1 = vadd.f32 -1.0, %v3855_v28 }
 0x4b4   : > { %3868 = vpow2.f32 %v3416_v52  ;;  %v3392_v29 = vmin.f32 %v5934_v48, 0.0  ;;  %v3331_v15 = vpop.permute.xlu1 %3330  ;;  %3480 = vst.msk [vmem:[%s5929_s9 + $0x18] sm:$0xff] %vm3476_vm5, %v3463_v11  ;;  %v3462_v51 = vsel %vm3366_vm9, %v5877_v20, %v3446_v33  ;;  %v3748_v0 = vadd.f32 -1.0, %v3857_v59 }
 0x4b5   : > { %v3329_v22 = vpop.permute.xlu0 %3328  ;;  %v3422_v57 = vmul.f32 1.442695, %v3393_v26  ;;  %v5943_v38 = vadd.f32 %v3331_v15, %v3139_v25  ;;  %3479 = vst.msk [vmem:[%s5929_s9 + $0x10] sm:$0xff] %vm3476_vm5, %v3462_v51  ;;  %v3449_v40 = vmul.f32 0.1, %v3749_v1  ;;  %vm3377_vm2 = vcmp.gt.f32.partialorder %v5927_v17, 0.0 }
 0x4b6   : > { %v3420_v43 = vmul.f32 1.442695, %v3392_v29  ;;  %v5948_v13 = vadd.f32 %v3329_v22, %v3138_v54  ;;  %v3448_v55 = vmul.f32 0.1, %v3748_v0  ;;  %vm3376_vm3 = vcmp.gt.f32.partialorder %v5934_v48, 0.0 }
 0x4b7   : > { %3870 = vpow2.f32 %v3422_v57  ;;  %v3395_v27 = vmin.f32 %v5943_v38, 0.0  ;;  %v3465_v35 = vsel %vm3369_vm10, %v5883_v24, %v3449_v40  ;;  %vm3379_vm4 = vcmp.gt.f32.partialorder %v5943_v38, 0.0 }
 0x4b8   : > { %v3859_v45 = vpop.eup %3858  ;;  %3872 = vpow2.f32 %v3420_v43  ;;  %v3394_v41 = vmin.f32 %v5948_v13, 0.0  ;;  %3482 = vst.msk [vmem:[%s5929_s9 + $0x28] sm:$0xff] %vm3476_vm5, %v3465_v35  ;;  %v3464_v8 = vsel %vm3368_vm11, %v5885_v12, %v3448_v55  ;;  %vm3378_vm6 = vcmp.gt.f32.partialorder %v5948_v13, 0.0 }
 0x4b9   : > { %v3861_v20 = vpop.eup %3860  ;;  %v3751_v16 = vadd.f32 -1.0, %v3859_v45  ;;  %v3426_v60 = vmul.f32 1.442695, %v3395_v27  ;;  %3481 = vst.msk [vmem:[%s5929_s9 + $0x20] sm:$0xff] %vm3476_vm5, %v3464_v8 }
 0x4ba   : > { %v3750_v34 = vadd.f32 -1.0, %v3861_v20  ;;  %v3424_v49 = vmul.f32 1.442695, %v3394_v41 }
 0x4bb   : > { %v3451_v58 = vmul.f32 0.1, %v3751_v16  ;;  %3874 = vpow2.f32 %v3426_v60 }
 0x4bc   : > { %v3863_v53 = vpop.eup %3862  ;;  %v3450_v24 = vmul.f32 0.1, %v3750_v34  ;;  %3876 = vpow2.f32 %v3424_v49 }
 0x4bd   : > { %v3865_v44 = vpop.eup %3864  ;;  %v3467_v10 = vsel %vm3371_vm12, %v5891_v4, %v3451_v58  ;;  %v3753_v9 = vadd.f32 -1.0, %v3863_v53 }
 0x4be   : > { %3484 = vst.msk [vmem:[%s5929_s9 + $0x38] sm:$0xff] %vm3476_vm5, %v3467_v10  ;;  %v3466_v12 = vsel %vm3370_vm13, %v5893_v32, %v3450_v24  ;;  %v3752_v2 = vadd.f32 -1.0, %v3865_v44 }
 0x4bf   : > { %3483 = vst.msk [vmem:[%s5929_s9 + $0x30] sm:$0xff] %vm3476_vm5, %v3466_v12  ;;  %v3453_v50 = vmul.f32 0.1, %v3753_v9 }
 0x4c0   : > { %v3867_v47 = vpop.eup %3866  ;;  %v3452_v25 = vmul.f32 0.1, %v3752_v2 }
 0x4c1   : > { %v3869_v54 = vpop.eup %3868  ;;  %v3469_v4 = vsel %vm3373_vm14, %v5900_v21, %v3453_v50  ;;  %v3755_v46 = vadd.f32 -1.0, %v3867_v47 }
 0x4c2   : > { %3486 = vst.msk [vmem:[%s5929_s9 + $0x48] sm:$0xff] %vm3476_vm5, %v3469_v4  ;;  %v3468_v32 = vsel %vm3372_vm15, %v5902_v39, %v3452_v25  ;;  %v3754_v31 = vadd.f32 -1.0, %v3869_v54 }
 0x4c3   : > { %3485 = vst.msk [vmem:[%s5929_s9 + $0x40] sm:$0xff] %vm3476_vm5, %v3468_v32  ;;  %v3455_v61 = vmul.f32 0.1, %v3755_v46 }
 0x4c4   : > { %v3871_v42 = vpop.eup %3870  ;;  %v3454_v3 = vmul.f32 0.1, %v3754_v31 }
 0x4c5   : > { %v3873_v30 = vpop.eup %3872  ;;  %v3471_v21 = vsel %vm3375_vm0, %v5914_v63, %v3455_v61  ;;  %v3757_v56 = vadd.f32 -1.0, %v3871_v42 }
 0x4c6   : > { %3488 = vst.msk [vmem:[%s5929_s9 + $0x58] sm:$0xff] %vm3476_vm5, %v3471_v21  ;;  %v3470_v39 = vsel %vm3374_vm1, %v5916_v36, %v3454_v3  ;;  %v3756_v18 = vadd.f32 -1.0, %v3873_v30 }
 0x4c7   : > { %3487 = vst.msk [vmem:[%s5929_s9 + $0x50] sm:$0xff] %vm3476_vm5, %v3470_v39  ;;  %v3457_v7 = vmul.f32 0.1, %v3757_v56 }
 0x4c8   : > { %v3875_v6 = vpop.eup %3874  ;;  %v3456_v14 = vmul.f32 0.1, %v3756_v18 }
 0x4c9   : > { %v3877_v23 = vpop.eup %3876  ;;  %v3473_v63 = vsel %vm3377_vm2, %v5927_v17, %v3457_v7  ;;  %v3759_v5 = vadd.f32 -1.0, %v3875_v6 }
 0x4ca   : > { %3490 = vst.msk [vmem:[%s5929_s9 + $0x68] sm:$0xff] %vm3476_vm5, %v3473_v63  ;;  %v3472_v36 = vsel %vm3376_vm3, %v5934_v48, %v3456_v14  ;;  %v3758_v19 = vadd.f32 -1.0, %v3877_v23 }
 0x4cb   : > { %3489 = vst.msk [vmem:[%s5929_s9 + $0x60] sm:$0xff] %vm3476_vm5, %v3472_v36  ;;  %v3459_v62 = vmul.f32 0.1, %v3759_v5 }
 0x4cc   : > { %v3458_v17 = vmul.f32 0.1, %v3758_v19 }
 0x4cd   : > { %v3475_v52 = vsel %vm3379_vm4, %v5943_v38, %v3459_v62 }
 0x4ce   : > { %3492 = vst.msk [vmem:[%s5929_s9 + $0x78] sm:$0xff] %vm3476_vm5, %v3475_v52  ;;  %v3474_v48 = vsel %vm3378_vm6, %v5948_v13, %v3458_v17 }
 0x4cf   : > { %3491 = vst.msk [vmem:[%s5929_s9 + $0x70] sm:$0xff] %vm3476_vm5, %v3474_v48 }
 0x4d0   : > { %3891 = shalt.err (!%p3888_p3)
}
 0x4d1   : > { %s3892_s30 = scalar_lea.hbm %s6000_s16, 2048  ;;  %s3896_s8 = scalar_lea.hbm %s6058_s5, 4096 }
 0x4d2   : > { %p3893_p4 = scmp.ne.s32.totalorder %s6000_s16, %s3892_s30  ;;  %p3897_p9 = scmp.lt.s32.totalorder %s6000_s16, %s6058_s5 }
 0x4d3   : > { %p3898_p10 = scmp.lt.s32.totalorder %s3896_s8, %s3892_s30 }
 0x4d4   : > { %p3894_p7 = pnand %p3893_p4, %p4015_p5 }
 0x4d5   : > { %p3899_p11 = por %p3898_p10, %p3897_p9 }
 0x4d6   : > { %p3895_p8 = pneg %p3894_p7 }
 0x4d8   : > { %p3900_p12 = pnand %p3899_p11, %p3895_p8 }
 0x4da   : > { %3903 = shalt.err (!%p3900_p12)
}
 0x4db   : > { %s3945_s9 = smov 128   ;;  %s3946_s10 = smov 8  }
 0x4dc   : > { %3767 = dma.vmem_to_hbm [thread:$0]  (%p4015_p5), %s6002_s13, 2048, %s6000_s16, %s6013_s22, %s3945_s9, %s3945_s9, %s3946_s10  }
 0x4dd PF: > { %p3773_p13 = scmp.ge.s32.totalorder %s3938_s21, 2  ;;  %s3522_s14 = sand.u32 1, %s3926_s18  }
 0x4de   : > { %s3523_s15 = scalar_lea.sflag [#allocation3], %s3522_s14 }
 0x4df   : > { %p3770_p0 = pnand %p3773_p13, %p4019_p6 }
 0x4e1   : > { %p3771_p1 = pneg %p3770_p0 }
 0x4e3   : > { %3921 = dma.done.wait (%p3771_p1), %s3523_s15, 2048  }
 0x4e4   : > { %3923 = vsyncadd (%p3771_p1), %s3523_s15, 4294965248  ;;  %p15_p2 = scmp.ge.s32.totalorder %s4002_s24, 4   ;;  %s6238_s18 = smov %s3930_s19 }
 0x4e5   : > { %s6239_s19 = smov %s3934_s20  ;;  %s6240_s20 = smov %s4013_s27 }
 0x4e6   : > { %s6241_s21 = smov %s4002_s24  ;;  %17 = sbr.rel (!%p15_p2) target bundleno = 3 (0x3), region = 75 }
 0x4eb   :  { %3528 = vsyncpa [#allocation3], 1 }
 0x4ec   :  { %3530 = vsyncpa [#allocation3 + $0x1], 1 }

// kernel: inconv_forward.2
= control target key start
LH: loop header
LB: loop body
LE: loop exit
PB: predicated region body
PF: predicated region fallthrough
CT: control target
= control target key end

     0   :  { %s3688_s21 = smov 0   ;;  %s5568_s0 = inlined_call_operand.vmem [shape: f32[2,4,16,16], index: 0, kind: input, shape index: {}]   ;;  %s5569_s1 = inlined_call_operand.vmem [shape: f32[4,8,1,1], index: 1, kind: input, shape index: {}]   ;;  %s5570_s2 = inlined_call_operand.vmem [shape: f32[8,1,1], index: 2, kind: input, shape index: {}]   ;;  %s5571_s3 = inlined_call_operand.vmem [shape: f32[9,8,1,1], index: 3, kind: input, shape index: {}]   ;;  %s5572_s4 = inlined_call_operand.vmem [shape: f32[8,1,1], index: 4, kind: input, shape index: {}]   ;;  %s5573_s5 = inlined_call_operand.vmem [shape: f32[2,8,16,16], index: 5, kind: output, shape index: {0}]   ;;  %s5574_s6 = inlined_call_operand.vmem [shape: f32[8,1,2], index: 6, kind: output, shape index: {1}]  }
   0x1 LB: > { %s3694_s22 = sadd.s32 4294967295, %s3646_s21   ;;  %p3399_p0 = scmp.ge.s32.totalorder %s3646_s21, 1  ;;  %s3646_s21 = sphi %s3688_s21, %s17_s21  }
   0x2   : > { %p210_p1 = scmp.lt.s32.totalorder %s3646_s21, 3 }
   0x4   : > { %p211_p2 = pnand %p3399_p0, %p210_p1 }
   0x6   : > { %214 = sbr.rel (%p211_p2) target bundleno = 1175 (0x497), region = 40 }
   0xb   : > { %v3406_v0 = vld [vmem:[%s5570_s2 + $0x2] ss:$0 sm:$0xff]  ;;  %v3404_v1 = vld [vmem:[%s5570_s2] ss:$0 sm:$0xff]  ;;  %v3648_v2 = vmov 0   ;;  %p240_p3 = scmp.lt.s32.totalorder %s3694_s22, 1 }
   0xc   : > { %3575 = vset.pattern.permute.xlu1 %v3648_v2  ;;  %3574 = vset.pattern.permute.xlu0 %v3648_v2  ;;  %v3407_v3 = vld [vmem:[%s5570_s2 + $0x3] ss:$0 sm:$0xff]  ;;  %v3405_v4 = vld [vmem:[%s5570_s2 + $0x1] ss:$0 sm:$0xff]  ;;  %v3409_v5 = vld [vmem:[%s5570_s2 + $0x5] ss:$0 sm:$0xff] }
   0xd   : > { %347 = vperm.xlu1 %3575, %v3406_v0   ;;  %339 = vperm.xlu0 %3574, %v3404_v1   ;;  %v3408_v6 = vld [vmem:[%s5570_s2 + $0x4] ss:$0 sm:$0xff]  ;;  %v3411_v7 = vld [vmem:[%s5570_s2 + $0x7] ss:$0 sm:$0xff]  ;;  %v3410_v8 = vld [vmem:[%s5570_s2 + $0x6] ss:$0 sm:$0xff] }
   0xe   : > { %v3413_v9 = vld [vmem:[%s5569_s1 + $0x1] ss:$0 sm:$0xff]  ;;  %v3412_v10 = vld [vmem:[%s5569_s1] ss:$0 sm:$0xff]  ;;  %v3415_v11 = vld [vmem:[%s5569_s1 + $0x3] ss:$0 sm:$0xff] }
   0xf   : > { %v3414_v12 = vld [vmem:[%s5569_s1 + $0x2] ss:$0 sm:$0xff]  ;;  %v3417_v13 = vld [vmem:[%s5569_s1 + $0x5] ss:$0 sm:$0xff]  ;;  %v3416_v14 = vld [vmem:[%s5569_s1 + $0x4] ss:$0 sm:$0xff] }
  0x10   : > { %v3419_v15 = vld [vmem:[%s5569_s1 + $0x7] ss:$0 sm:$0xff]  ;;  %v3418_v16 = vld [vmem:[%s5569_s1 + $0x6] ss:$0 sm:$0xff]  ;;  %v3421_v17 = vld [vmem:[%s5569_s1 + $0x9] ss:$0 sm:$0xff] }
  0x11   : > { %351 = vperm.xlu1 %3575, %v3407_v3   ;;  %343 = vperm.xlu0 %3574, %v3405_v4   ;;  %v3420_v18 = vld [vmem:[%s5569_s1 + $0x8] ss:$0 sm:$0xff]  ;;  %v3423_v19 = vld [vmem:[%s5569_s1 + $0xb] ss:$0 sm:$0xff]  ;;  %v3422_v20 = vld [vmem:[%s5569_s1 + $0xa] ss:$0 sm:$0xff] }
  0x12   : > { %v3425_v21 = vld [vmem:[%s5569_s1 + $0xd] ss:$0 sm:$0xff]  ;;  %v3424_v22 = vld [vmem:[%s5569_s1 + $0xc] ss:$0 sm:$0xff]  ;;  %v3427_v23 = vld [vmem:[%s5569_s1 + $0xf] ss:$0 sm:$0xff] }
  0x13   : > { %v3426_v24 = vld [vmem:[%s5569_s1 + $0xe] ss:$0 sm:$0xff]  ;;  %v3429_v25 = vld [vmem:[%s5569_s1 + $0x11] ss:$0 sm:$0xff]  ;;  %v3428_v26 = vld [vmem:[%s5569_s1 + $0x10] ss:$0 sm:$0xff] }
  0x14   : > { %v3431_v27 = vld [vmem:[%s5569_s1 + $0x13] ss:$0 sm:$0xff]  ;;  %v3430_v28 = vld [vmem:[%s5569_s1 + $0x12] ss:$0 sm:$0xff]  ;;  %v3433_v29 = vld [vmem:[%s5569_s1 + $0x15] ss:$0 sm:$0xff] }
  0x15   : > { %359 = vperm.xlu1 %3575, %v3409_v5   ;;  %355 = vperm.xlu0 %3574, %v3408_v6   ;;  %v3432_v30 = vld [vmem:[%s5569_s1 + $0x14] ss:$0 sm:$0xff]  ;;  %v3435_v31 = vld [vmem:[%s5569_s1 + $0x17] ss:$0 sm:$0xff]  ;;  %v3434_v32 = vld [vmem:[%s5569_s1 + $0x16] ss:$0 sm:$0xff] }
  0x16   : > { %v3437_v33 = vld [vmem:[%s5569_s1 + $0x19] ss:$0 sm:$0xff]  ;;  %v3436_v34 = vld [vmem:[%s5569_s1 + $0x18] ss:$0 sm:$0xff]  ;;  %v3439_v35 = vld [vmem:[%s5569_s1 + $0x1b] ss:$0 sm:$0xff] }
  0x17   : > { %v3438_v36 = vld [vmem:[%s5569_s1 + $0x1a] ss:$0 sm:$0xff]  ;;  %v3441_v37 = vld [vmem:[%s5569_s1 + $0x1d] ss:$0 sm:$0xff]  ;;  %v3440_v38 = vld [vmem:[%s5569_s1 + $0x1c] ss:$0 sm:$0xff] }
  0x18   : > { %v3443_v39 = vld [vmem:[%s5569_s1 + $0x1f] ss:$0 sm:$0xff]  ;;  %v3442_v40 = vld [vmem:[%s5569_s1 + $0x1e] ss:$0 sm:$0xff]  ;;  %v3461_v41 = vld [vmem:[%s5572_s4 + $0x1] ss:$0 sm:$0xff] }
  0x19   : > { %367 = vperm.xlu1 %3575, %v3411_v7   ;;  %363 = vperm.xlu0 %3574, %v3410_v8   ;;  %v3460_v42 = vld [vmem:[%s5572_s4] ss:$0 sm:$0xff]  ;;  %v3463_v43 = vld [vmem:[%s5572_s4 + $0x3] ss:$0 sm:$0xff]  ;;  %v3462_v44 = vld [vmem:[%s5572_s4 + $0x2] ss:$0 sm:$0xff] }
  0x1a   : > { %v3465_v45 = vld [vmem:[%s5572_s4 + $0x5] ss:$0 sm:$0xff]  ;;  %v3464_v46 = vld [vmem:[%s5572_s4 + $0x4] ss:$0 sm:$0xff]  ;;  %v3467_v47 = vld [vmem:[%s5572_s4 + $0x7] ss:$0 sm:$0xff] }
  0x1b   : > { %v3466_v48 = vld [vmem:[%s5572_s4 + $0x6] ss:$0 sm:$0xff]  ;;  %v3469_v49 = vld [vmem:[%s5571_s3 + $0x1] ss:$0 sm:$0xff]  ;;  %v3468_v50 = vld [vmem:[%s5571_s3] ss:$0 sm:$0xff] }
  0x1c   : > { %v3471_v51 = vld [vmem:[%s5571_s3 + $0x3] ss:$0 sm:$0xff]  ;;  %v3470_v52 = vld [vmem:[%s5571_s3 + $0x2] ss:$0 sm:$0xff]  ;;  %v3473_v53 = vld [vmem:[%s5571_s3 + $0x5] ss:$0 sm:$0xff] }
  0x1d   : > { %415 = vperm.xlu1 %3575, %v3413_v9   ;;  %411 = vperm.xlu0 %3574, %v3412_v10   ;;  %v3472_v54 = vld [vmem:[%s5571_s3 + $0x4] ss:$0 sm:$0xff]  ;;  %v3475_v55 = vld [vmem:[%s5571_s3 + $0x7] ss:$0 sm:$0xff]  ;;  %v3474_v56 = vld [vmem:[%s5571_s3 + $0x6] ss:$0 sm:$0xff] }
  0x1e   : > { %v3477_v57 = vld [vmem:[%s5571_s3 + $0x9] ss:$0 sm:$0xff]  ;;  %v3476_v58 = vld [vmem:[%s5571_s3 + $0x8] ss:$0 sm:$0xff]  ;;  %v3479_v59 = vld [vmem:[%s5571_s3 + $0xb] ss:$0 sm:$0xff] }
  0x1f   : > { %v3478_v60 = vld [vmem:[%s5571_s3 + $0xa] ss:$0 sm:$0xff]  ;;  %v3481_v61 = vld [vmem:[%s5571_s3 + $0xd] ss:$0 sm:$0xff]  ;;  %v3480_v62 = vld [vmem:[%s5571_s3 + $0xc] ss:$0 sm:$0xff] }
  0x20   : > { %v3483_v63 = vld [vmem:[%s5571_s3 + $0xf] ss:$0 sm:$0xff]  ;;  %v3482_v0 = vld [vmem:[%s5571_s3 + $0xe] ss:$0 sm:$0xff]  ;;  %s3896_s17 = scalar_select %p240_p3, %s3694_s22, 1 }
  0x21   : > { %423 = vperm.xlu1 %3575, %v3415_v11   ;;  %419 = vperm.xlu0 %3574, %v3414_v12   ;;  %s3649_s24 = smov 1   ;;  %s3650_s7 = smov 127  }
  0x22   : > { %s3559_s18 = sshll.u32 %s3896_s17, 6  ;;  %s3651_s8 = smov 126  }
  0x23   : > { %s3904_s23 = scalar_lea.vmem %s5568_s0, %s3559_s18  ;;  %p3556_p4 = scmp.ne.s32.totalorder %s3694_s22, 0 }
  0x25   : > { %431 = vperm.xlu1 %3575, %v3417_v13   ;;  %427 = vperm.xlu0 %3574, %v3416_v14  }
  0x29   : > { %439 = vperm.xlu1 %3575, %v3419_v15   ;;  %435 = vperm.xlu0 %3574, %v3418_v16  }
  0x2d   : > { %519 = vperm.xlu1 %3575, %v3421_v17   ;;  %515 = vperm.xlu0 %3574, %v3420_v18  }
  0x31   : > { %527 = vperm.xlu1 %3575, %v3423_v19   ;;  %523 = vperm.xlu0 %3574, %v3422_v20  }
  0x35   : > { %535 = vperm.xlu1 %3575, %v3425_v21   ;;  %531 = vperm.xlu0 %3574, %v3424_v22  }
  0x39   : > { %543 = vperm.xlu1 %3575, %v3427_v23   ;;  %539 = vperm.xlu0 %3574, %v3426_v24  }
  0x3d   : > { %623 = vperm.xlu1 %3575, %v3429_v25   ;;  %619 = vperm.xlu0 %3574, %v3428_v26   ;;  %v250_v25 = vld [vmem:[%s3904_s23] sm:$0xff]  ;;  %v251_v26 = vld [vmem:[%s3904_s23 + $0x8] sm:$0xff] }
  0x41   : > { %631 = vperm.xlu1 %3575, %v3431_v27   ;;  %627 = vperm.xlu0 %3574, %v3430_v28  }
  0x45   : > { %639 = vperm.xlu1 %3575, %v3433_v29   ;;  %635 = vperm.xlu0 %3574, %v3432_v30  }
  0x49   : > { %647 = vperm.xlu1 %3575, %v3435_v31   ;;  %643 = vperm.xlu0 %3574, %v3434_v32  }
  0x4d   : > { %727 = vperm.xlu1 %3575, %v3437_v33   ;;  %723 = vperm.xlu0 %3574, %v3436_v34  }
  0x51   : > { %735 = vperm.xlu1 %3575, %v3439_v35   ;;  %731 = vperm.xlu0 %3574, %v3438_v36  }
  0x55   : > { %743 = vperm.xlu1 %3575, %v3441_v37   ;;  %739 = vperm.xlu0 %3574, %v3440_v38  }
  0x59   : > { %751 = vperm.xlu1 %3575, %v3443_v39   ;;  %747 = vperm.xlu0 %3574, %v3442_v40  }
  0x5d   : > { %1186 = vperm.xlu1 %3575, %v3461_v41   ;;  %1182 = vperm.xlu0 %3574, %v3460_v42  }
  0x61   : > { %1194 = vperm.xlu1 %3575, %v3463_v43   ;;  %1190 = vperm.xlu0 %3574, %v3462_v44  }
  0x65   : > { %1202 = vperm.xlu1 %3575, %v3465_v45   ;;  %1198 = vperm.xlu0 %3574, %v3464_v46  }
  0x69   : > { %1210 = vperm.xlu1 %3575, %v3467_v47   ;;  %1206 = vperm.xlu0 %3574, %v3466_v48  }
  0x6d   : > { %1258 = vperm.xlu1 %3575, %v3469_v49   ;;  %1254 = vperm.xlu0 %3574, %v3468_v50   ;;  %v252_v50 = vld [vmem:[%s3904_s23 + $0x10] sm:$0xff] }
  0x71   : > { %1266 = vperm.xlu1 %3575, %v3471_v51   ;;  %1262 = vperm.xlu0 %3574, %v3470_v52   ;;  %v253_v51 = vld [vmem:[%s3904_s23 + $0x18] sm:$0xff] }
  0x75   : > { %1274 = vperm.xlu1 %3575, %v3473_v53   ;;  %1270 = vperm.xlu0 %3574, %v3472_v54  }
  0x79   : > { %1282 = vperm.xlu1 %3575, %v3475_v55   ;;  %1278 = vperm.xlu0 %3574, %v3474_v56  }
  0x7d   : > { %1362 = vperm.xlu1 %3575, %v3477_v57   ;;  %1358 = vperm.xlu0 %3574, %v3476_v58  }
  0x81   : > { %1370 = vperm.xlu1 %3575, %v3479_v59   ;;  %1366 = vperm.xlu0 %3574, %v3478_v60  }
  0x85   : > { %1378 = vperm.xlu1 %3575, %v3481_v61   ;;  %1374 = vperm.xlu0 %3574, %v3480_v62  }
  0x88   : > { %v348_v1 = vpop.permute.xlu1 %347  ;;  %v340_v2 = vpop.permute.xlu0 %339 }
  0x89   : > { %1386 = vperm.xlu1 %3575, %v3483_v63   ;;  %1382 = vperm.xlu0 %3574, %v3482_v0  }
  0x8c   : > { %v352_v3 = vpop.permute.xlu1 %351  ;;  %v344_v4 = vpop.permute.xlu0 %343 }
  0x90   : > { %v360_v5 = vpop.permute.xlu1 %359  ;;  %v356_v6 = vpop.permute.xlu0 %355 }
  0x94   : > { %v3890_v7 = vpop.permute.xlu1 %367  ;;  %v3892_v8 = vpop.permute.xlu0 %363 }
  0x98   : > { %v416_v9 = vpop.permute.xlu1 %415  ;;  %v412_v10 = vpop.permute.xlu0 %411 }
  0x99   : > { %v444_v27 = vmul.f32 %v416_v9, %v250_v25  ;;  %v445_v28 = vmul.f32 %v416_v9, %v251_v26  ;;  %v442_v31 = vmul.f32 %v412_v10, %v250_v25  ;;  %v443_v32 = vmul.f32 %v412_v10, %v251_v26  ;;  %v3928_v10 = vld [vmem:[%s3904_s23 + $0x20] sm:$0xff] }
  0x9b   : > { %v460_v40 = vadd.f32 %v444_v27, %v344_v4  ;;  %v461_v41 = vadd.f32 %v445_v28, %v344_v4  ;;  %v458_v46 = vadd.f32 %v442_v31, %v340_v2  ;;  %v459_v47 = vadd.f32 %v443_v32, %v340_v2 }
  0x9c   : > { %v424_v11 = vpop.permute.xlu1 %423  ;;  %v420_v12 = vpop.permute.xlu0 %419 }
  0x9d   : > { %v448_v33 = vmul.f32 %v424_v11, %v250_v25  ;;  %v449_v34 = vmul.f32 %v424_v11, %v251_v26  ;;  %v446_v35 = vmul.f32 %v420_v12, %v250_v25  ;;  %v447_v36 = vmul.f32 %v420_v12, %v251_v26 }
  0x9f   : > { %v464_v48 = vadd.f32 %v448_v33, %v352_v3  ;;  %v465_v49 = vadd.f32 %v449_v34, %v352_v3  ;;  %v462_v52 = vadd.f32 %v446_v35, %v348_v1  ;;  %v463_v53 = vadd.f32 %v447_v36, %v348_v1  ;;  %v3949_v35 = vld [vmem:[%s3904_s23 + $0x30] sm:$0xff]  ;;  %v3952_v36 = vld [vmem:[%s3904_s23 + $0x38] sm:$0xff] }
  0xa0   : > { %v432_v13 = vpop.permute.xlu1 %431  ;;  %v428_v14 = vpop.permute.xlu0 %427 }
  0xa1   : > { %v452_v37 = vmul.f32 %v432_v13, %v250_v25  ;;  %v453_v38 = vmul.f32 %v432_v13, %v251_v26  ;;  %v450_v39 = vmul.f32 %v428_v14, %v250_v25  ;;  %v451_v42 = vmul.f32 %v428_v14, %v251_v26 }
  0xa3   : > { %v468_v54 = vadd.f32 %v452_v37, %v360_v5  ;;  %v469_v56 = vadd.f32 %v453_v38, %v360_v5  ;;  %v466_v57 = vadd.f32 %v450_v39, %v356_v6  ;;  %v467_v60 = vadd.f32 %v451_v42, %v356_v6  ;;  %v3931_v5 = vld [vmem:[%s3904_s23 + $0x28] sm:$0xff] }
  0xa4   : > { %v440_v15 = vpop.permute.xlu1 %439  ;;  %v436_v16 = vpop.permute.xlu0 %435 }
  0xa5   : > { %v456_v43 = vmul.f32 %v440_v15, %v250_v25  ;;  %v457_v55 = vmul.f32 %v440_v15, %v251_v26  ;;  %v454_v58 = vmul.f32 %v436_v16, %v250_v25  ;;  %v455_v59 = vmul.f32 %v436_v16, %v251_v26 }
  0xa7   : > { %v3921_v61 = vadd.f32 %v456_v43, %v3890_v7  ;;  %v473_v11 = vadd.f32 %v457_v55, %v3890_v7  ;;  %v470_v14 = vadd.f32 %v454_v58, %v3892_v8  ;;  %v3936_v15 = vadd.f32 %v455_v59, %v3892_v8 }
  0xa8   : > { %v520_v17 = vpop.permute.xlu1 %519  ;;  %v516_v18 = vpop.permute.xlu0 %515 }
  0xa9   : > { %v548_v62 = vmul.f32 %v520_v17, %v252_v50  ;;  %v549_v63 = vmul.f32 %v520_v17, %v253_v51  ;;  %v546_v3 = vmul.f32 %v516_v18, %v252_v50  ;;  %v547_v1 = vmul.f32 %v516_v18, %v253_v51 }
  0xab   : > { %v564_v18 = vadd.f32 %v548_v62, %v460_v40  ;;  %v562_v27 = vadd.f32 %v546_v3, %v458_v46  ;;  %v563_v28 = vadd.f32 %v547_v1, %v459_v47 }
  0xac   : > { %v528_v19 = vpop.permute.xlu1 %527  ;;  %v524_v20 = vpop.permute.xlu0 %523 }
  0xad   : > { %v552_v4 = vmul.f32 %v528_v19, %v252_v50  ;;  %v553_v9 = vmul.f32 %v528_v19, %v253_v51  ;;  %v550_v6 = vmul.f32 %v524_v20, %v252_v50  ;;  %v551_v12 = vmul.f32 %v524_v20, %v253_v51 }
  0xae   : > { %v565_v19 = vadd.f32 %v549_v63, %v461_v41 }
  0xaf   : > { %v568_v31 = vadd.f32 %v552_v4, %v464_v48  ;;  %v569_v8 = vadd.f32 %v553_v9, %v465_v49  ;;  %v566_v32 = vadd.f32 %v550_v6, %v462_v52 }
  0xb0   : > { %v536_v21 = vpop.permute.xlu1 %535  ;;  %v3899_v22 = vpop.permute.xlu0 %531 }
  0xb1   : > { %v556_v13 = vmul.f32 %v536_v21, %v252_v50  ;;  %v557_v16 = vmul.f32 %v536_v21, %v253_v51  ;;  %v554_v17 = vmul.f32 %v3899_v22, %v252_v50  ;;  %v567_v21 = vadd.f32 %v551_v12, %v463_v53 }
  0xb2   : > { %v555_v34 = vmul.f32 %v3899_v22, %v253_v51 }
  0xb3   : > { %v3945_v33 = vadd.f32 %v556_v13, %v468_v54  ;;  %v3954_v37 = vadd.f32 %v557_v16, %v469_v56 }
  0xb4   : > { %v3906_v23 = vpop.permute.xlu1 %543  ;;  %v3908_v24 = vpop.permute.xlu0 %539  ;;  %v571_v53 = vadd.f32 %v555_v34, %v467_v60 }
  0xb5   : > { %v561_v38 = vmul.f32 %v3906_v23, %v253_v51  ;;  %v558_v40 = vmul.f32 %v3908_v24, %v252_v50  ;;  %v3968_v54 = vmul.f32 %v3906_v23, %v252_v50  ;;  %v559_v55 = vmul.f32 %v3908_v24, %v253_v51 }
  0xb7   : > { %v3978_v62 = vadd.f32 %v561_v38, %v473_v11  ;;  %v3980_v63 = vadd.f32 %v558_v40, %v470_v14 }
  0xb8   : > { %v3912_v29 = vpop.permute.xlu1 %623  ;;  %v620_v30 = vpop.permute.xlu0 %619 }
  0xb9   : > { %v650_v25 = vmul.f32 %v620_v30, %v3928_v10  ;;  %v651_v26 = vmul.f32 %v620_v30, %v3931_v5  ;;  %v570_v30 = vadd.f32 %v554_v17, %v466_v57  ;;  %v653_v39 = vmul.f32 %v3912_v29, %v3931_v5 }
  0xba   : > { %v652_v41 = vmul.f32 %v3912_v29, %v3928_v10 }
  0xbb   : > { %v666_v42 = vadd.f32 %v650_v25, %v562_v27  ;;  %v667_v43 = vadd.f32 %v651_v26, %v563_v28  ;;  %v669_v56 = vadd.f32 %v653_v39, %v565_v19 }
  0xbc   : > { %v3914_v44 = vpop.permute.xlu1 %631  ;;  %v3916_v45 = vpop.permute.xlu0 %627  ;;  %v668_v60 = vadd.f32 %v652_v41, %v564_v18 }
  0xbd   : > { %v654_v47 = vmul.f32 %v3916_v45, %v3928_v10  ;;  %v655_v29 = vmul.f32 %v3916_v45, %v3931_v5  ;;  %v656_v23 = vmul.f32 %v3914_v44, %v3928_v10  ;;  %v657_v45 = vmul.f32 %v3914_v44, %v3931_v5 }
  0xbf   : > { %v670_v51 = vadd.f32 %v654_v47, %v566_v32  ;;  %v671_v4 = vadd.f32 %v655_v29, %v567_v21  ;;  %v672_v16 = vadd.f32 %v656_v23, %v568_v31  ;;  %v673_v26 = vadd.f32 %v657_v45, %v569_v8 }
  0xc0   : > { %v3923_v0 = vpop.permute.xlu1 %639  ;;  %v3925_v2 = vpop.permute.xlu0 %635 }
  0xc1   : > { %v659_v9 = vmul.f32 %v3925_v2, %v3931_v5  ;;  %v658_v17 = vmul.f32 %v3925_v2, %v3928_v10  ;;  %v660_v34 = vmul.f32 %v3923_v0, %v3928_v10  ;;  %v661_v31 = vmul.f32 %v3923_v0, %v3931_v5 }
  0xc3   : > { %v675_v38 = vadd.f32 %v659_v9, %v571_v53 }
  0xc4   : > { %v3941_v7 = vpop.permute.xlu1 %647  ;;  %v3943_v20 = vpop.permute.xlu0 %643 }
  0xc8   : > { %v728_v22 = vpop.permute.xlu1 %727  ;;  %v724_v46 = vpop.permute.xlu0 %723 }
  0xc9   : > { %v757_v48 = vmul.f32 %v728_v22, %v3952_v36  ;;  %v754_v49 = vmul.f32 %v724_v46, %v3949_v35  ;;  %v755_v52 = vmul.f32 %v724_v46, %v3952_v36  ;;  %v756_v57 = vmul.f32 %v728_v22, %v3949_v35 }
  0xca   : > { %v575_v46 = vadd.f32 %v559_v55, %v3936_v15  ;;  %v676_v55 = vadd.f32 %v660_v34, %v3945_v33 }
  0xcb   : > { %v3974_v58 = vadd.f32 %v754_v49, %v666_v42  ;;  %v3976_v59 = vadd.f32 %v755_v52, %v667_v43  ;;  %v3986_v3 = vadd.f32 %v757_v48, %v669_v56  ;;  %v3993_v12 = vadd.f32 %v756_v57, %v668_v60 }
  0xcc   : > { %v736_v50 = vpop.permute.xlu1 %735  ;;  %v732_v24 = vpop.permute.xlu0 %731  ;;  %v674_v42 = vadd.f32 %v658_v17, %v570_v30  ;;  %v677_v49 = vadd.f32 %v661_v31, %v3954_v37  ;;  %v663_v52 = vmul.f32 %v3943_v20, %v3931_v5  ;;  %v662_v60 = vmul.f32 %v3943_v20, %v3928_v10 }
  0xcd   : > { %v803_v1 = vmin.f32 %v3976_v59, 0.0  ;;  %v758_v11 = vmul.f32 %v732_v24, %v3949_v35  ;;  %v759_v6 = vmul.f32 %v732_v24, %v3952_v36  ;;  %v802_v13 = vmin.f32 %v3974_v58, 0.0 }
  0xce   : > { %v760_v14 = vmul.f32 %v736_v50, %v3949_v35  ;;  %v761_v44 = vmul.f32 %v736_v50, %v3952_v36  ;;  %v805_v27 = vmin.f32 %v3986_v3, 0.0  ;;  %v804_v39 = vmin.f32 %v3993_v12, 0.0 }
  0xcf   : > { %v4000_v18 = vadd.f32 %v759_v6, %v671_v4  ;;  %v820_v25 = vmul.f32 1.442695, %v803_v1  ;;  %v4003_v28 = vadd.f32 %v758_v11, %v670_v51  ;;  %v818_v41 = vmul.f32 1.442695, %v802_v13 }
  0xd0   : > { %v740_v19 = vpop.permute.xlu0 %739  ;;  %v744_v32 = vpop.permute.xlu1 %743  ;;  %v4012_v40 = vadd.f32 %v760_v14, %v672_v16  ;;  %v4014_v8 = vadd.f32 %v761_v44, %v673_v26  ;;  %v824_v48 = vmul.f32 1.442695, %v805_v27  ;;  %v822_v15 = vmul.f32 1.442695, %v804_v39 }
  0xd1   : > { %v763_v21 = vmul.f32 %v740_v19, %v3952_v36  ;;  %v762_v2 = vmul.f32 %v740_v19, %v3949_v35  ;;  %v807_v43 = vmin.f32 %v4000_v18, 0.0  ;;  %v765_v22 = vmul.f32 %v744_v32, %v3952_v36 }
  0xd2   : > { %3576 = vpow2.f32 %v820_v25  ;;  %v806_v0 = vmin.f32 %v4003_v28, 0.0  ;;  %v764_v53 = vmul.f32 %v744_v32, %v3949_v35  ;;  %v808_v56 = vmin.f32 %v4012_v40, 0.0 }
  0xd3   : > { %v4020_v47 = vadd.f32 %v763_v21, %v675_v38  ;;  %v4026_v30 = vadd.f32 %v762_v2, %v674_v42  ;;  %v809_v57 = vmin.f32 %v4014_v8, 0.0  ;;  %3578 = vpow2.f32 %v818_v41 }
  0xd4   : > { %v748_v29 = vpop.permute.xlu0 %747  ;;  %v4033_v37 = vadd.f32 %v765_v22, %v677_v49  ;;  %v828_v23 = vmul.f32 1.442695, %v807_v43  ;;  %3580 = vpow2.f32 %v824_v48  ;;  %v826_v45 = vmul.f32 1.442695, %v806_v0  ;;  %v752_v9 = vpop.permute.xlu1 %751 }
  0xd5   : > { %v811_v50 = vmin.f32 %v4020_v47, 0.0  ;;  %v767_v24 = vmul.f32 %v748_v29, %v3952_v36  ;;  %v665_v51 = vmul.f32 %v3941_v7, %v3931_v5  ;;  %v679_v1 = vadd.f32 %v663_v52, %v575_v46 }
  0xd6   : > { %v4039_v4 = vadd.f32 %v764_v53, %v676_v55  ;;  %v810_v33 = vmin.f32 %v4026_v30, 0.0  ;;  %v766_v20 = vmul.f32 %v748_v29, %v3949_v35  ;;  %3582 = vpow2.f32 %v822_v15 }
  0xd7   : > { %v832_v11 = vmul.f32 1.442695, %v809_v57  ;;  %v830_v6 = vmul.f32 1.442695, %v808_v56  ;;  %v664_v13 = vmul.f32 %v3941_v7, %v3928_v10  ;;  %v678_v14 = vadd.f32 %v662_v60, %v3980_v63 }
  0xd8   : > { %v813_v44 = vmin.f32 %v4033_v37, 0.0  ;;  %3584 = vpow2.f32 %v828_v23  ;;  %v769_v5 = vmul.f32 %v752_v9, %v3952_v36  ;;  %v4048_v16 = vadd.f32 %v767_v24, %v679_v1 }
  0xd9   : > { %3586 = vpow2.f32 %v826_v45  ;;  %v836_v17 = vmul.f32 1.442695, %v811_v50  ;;  %v576_v19 = vadd.f32 %v3968_v54, %v3921_v61  ;;  %v681_v25 = vadd.f32 %v665_v51, %v3978_v62 }
  0xda   : > { %v768_v26 = vmul.f32 %v752_v9, %v3949_v35  ;;  %3588 = vpow2.f32 %v832_v11  ;;  %v812_v10 = vmin.f32 %v4039_v4, 0.0  ;;  %v4055_v7 = vadd.f32 %v766_v20, %v678_v14 }
  0xdb   : > { %3590 = vpow2.f32 %v830_v6  ;;  %v834_v63 = vmul.f32 1.442695, %v810_v33  ;;  %v680_v27 = vadd.f32 %v664_v13, %v576_v19  ;;  %v4057_v32 = vadd.f32 %v769_v5, %v681_v25 }
  0xdc   : > { %v815_v21 = vmin.f32 %v4048_v16, 0.0  ;;  %3592 = vpow2.f32 %v836_v17  ;;  %v840_v34 = vmul.f32 1.442695, %v813_v44  ;;  %v814_v35 = vmin.f32 %v4055_v7, 0.0 }
  0xdd   : > { %v4060_v61 = vadd.f32 %v768_v26, %v680_v27  ;;  %vm787_vm0 = vcmp.gt.f32.partialorder %v3976_v59, 0.0  ;;  %3594 = vpow2.f32 %v834_v63  ;;  %v838_v62 = vmul.f32 1.442695, %v812_v10  ;;  %v3485_v10 = vld [vmem:[%s5571_s3 + $0x11] ss:$0 sm:$0xff] }
  0xde   : > { %v817_v2 = vmin.f32 %v4057_v32, 0.0  ;;  %3596 = vpow2.f32 %v840_v34  ;;  %v844_v41 = vmul.f32 1.442695, %v815_v21  ;;  %vm786_vm1 = vcmp.gt.f32.partialorder %v3974_v58, 0.0  ;;  %v3487_v63 = vld [vmem:[%s5571_s3 + $0x13] ss:$0 sm:$0xff]  ;;  %v4134_v34 = vpop.permute.xlu1 %1186 }
  0xdf   : > { %v3577_v36 = vpop.eup %3576  ;;  %v816_v43 = vmin.f32 %v4060_v61, 0.0  ;;  %3598 = vpow2.f32 %v838_v62  ;;  %v842_v0 = vmul.f32 1.442695, %v814_v35  ;;  %vm789_vm2 = vcmp.gt.f32.partialorder %v3986_v3, 0.0  ;;  %v3486_v27 = vld [vmem:[%s5571_s3 + $0x12] ss:$0 sm:$0xff]  ;;  %v4142_v35 = vpop.permute.xlu0 %1182 }
  0xe0   : > { %v3445_v54 = vadd.f32 -1.0, %v3577_v36  ;;  %v3579_v31 = vpop.eup %3578  ;;  %3600 = vpow2.f32 %v844_v41  ;;  %v848_v53 = vmul.f32 1.442695, %v817_v2  ;;  %vm788_vm3 = vcmp.gt.f32.partialorder %v3993_v12, 0.0  ;;  %v3489_v36 = vld [vmem:[%s5571_s3 + $0x15] ss:$0 sm:$0xff] }
  0xe1   : > { %v3444_v39 = vadd.f32 -1.0, %v3579_v31  ;;  %v3581_v42 = vpop.eup %3580  ;;  %3602 = vpow2.f32 %v842_v0  ;;  %v846_v55 = vmul.f32 1.442695, %v816_v43  ;;  %vm791_vm4 = vcmp.gt.f32.partialorder %v4000_v18, 0.0  ;;  %v3491_v21 = vld [vmem:[%s5571_s3 + $0x17] ss:$0 sm:$0xff] }
  0xe2   : > { %v867_v38 = vsel %vm787_vm0, %v3976_v59, %v3445_v54  ;;  %v3447_v46 = vadd.f32 -1.0, %v3581_v42  ;;  %3604 = vpow2.f32 %v848_v53  ;;  %vm790_vm5 = vcmp.gt.f32.partialorder %v4003_v28, 0.0  ;;  %v3493_v54 = vld [vmem:[%s5571_s3 + $0x19] ss:$0 sm:$0xff]  ;;  %v3492_v62 = vld [vmem:[%s5571_s3 + $0x18] ss:$0 sm:$0xff]  ;;  %v4147_v31 = vpop.permute.xlu1 %1194 }
  0xe3   : > { %900 = vrot.lane.b32.xlu1 %v867_v38, %s3649_s24  ;;  %v866_v22 = vsel %vm786_vm1, %v3974_v58, %v3444_v39  ;;  %v3583_v48 = vpop.eup %3582  ;;  %3606 = vpow2.f32 %v846_v55  ;;  %vm793_vm6 = vcmp.gt.f32.partialorder %v4014_v8, 0.0  ;;  %vm792_vm7 = vcmp.gt.f32.partialorder %v4012_v40, 0.0  ;;  %v3495_v38 = vld [vmem:[%s5571_s3 + $0x1b] ss:$0 sm:$0xff]  ;;  %v3494_v2 = vld [vmem:[%s5571_s3 + $0x1a] ss:$0 sm:$0xff]  ;;  %v4155_v39 = vpop.permute.xlu0 %1190 }
  0xe4   : > { %898 = vrot.lane.b32.xlu0 %v866_v22, %s3649_s24  ;;  %v869_v49 = vsel %vm789_vm2, %v3986_v3, %v3447_v46  ;;  %v3446_v52 = vadd.f32 -1.0, %v3583_v48  ;;  %vm795_vm8 = vcmp.gt.f32.partialorder %v4020_v47, 0.0  ;;  %vm794_vm9 = vcmp.gt.f32.partialorder %v4026_v30, 0.0  ;;  %v3497_v41 = vld [vmem:[%s5571_s3 + $0x1d] ss:$0 sm:$0xff] }
  0xe5   : > { %v3585_v59 = vpop.eup %3584  ;;  %vm797_vm10 = vcmp.gt.f32.partialorder %v4033_v37, 0.0  ;;  %vm796_vm11 = vcmp.gt.f32.partialorder %v4039_v4, 0.0  ;;  %vm799_vm12 = vcmp.gt.f32.partialorder %v4048_v16, 0.0  ;;  %vm798_vm13 = vcmp.gt.f32.partialorder %v4055_v7, 0.0  ;;  %v3496_v43 = vld [vmem:[%s5571_s3 + $0x1c] ss:$0 sm:$0xff] }
  0xe6   : > { %v3587_v29 = vpop.eup %3586  ;;  %v3449_v58 = vadd.f32 -1.0, %v3585_v59  ;;  %v868_v57 = vsel %vm788_vm3, %v3993_v12, %v3446_v52  ;;  %vm801_vm14 = vcmp.gt.f32.partialorder %v4057_v32, 0.0  ;;  %vm800_vm15 = vcmp.gt.f32.partialorder %v4060_v61, 0.0  ;;  %v4160_v42 = vpop.permute.xlu1 %1202  ;;  %v3499_v22 = vld [vmem:[%s5571_s3 + $0x1f] ss:$0 sm:$0xff] }
  0xe7   : > { %904 = vrot.lane.b32.xlu1 %v869_v49, %s3649_s24  ;;  %v3589_v56 = vpop.eup %3588  ;;  %v3448_v15 = vadd.f32 -1.0, %v3587_v29  ;;  %v4168_v46 = vpop.permute.xlu0 %1198  ;;  %v3498_v0 = vld [vmem:[%s5571_s3 + $0x1e] ss:$0 sm:$0xff]  ;;  %v3501_v59 = vld [vmem:[%s5571_s3 + $0x21] ss:$0 sm:$0xff]  ;;  %vm946_vm0 = vcmask 7168  }
  0xe8   : > { %v3591_v60 = vpop.eup %3590  ;;  %902 = vrot.lane.b32.xlu0 %v868_v57, %s3649_s24  ;;  %v871_v3 = vsel %vm791_vm4, %v4000_v18, %v3449_v58  ;;  %v3451_v23 = vadd.f32 -1.0, %v3589_v56  ;;  %v3500_v49 = vld [vmem:[%s5571_s3 + $0x20] ss:$0 sm:$0xff]  ;;  %v3503_v53 = vld [vmem:[%s5571_s3 + $0x23] ss:$0 sm:$0xff]  ;;  %vm963_vm1 = vcmask 138240  }
  0xe9   : > { %v3593_v50 = vpop.eup %3592  ;;  %v870_v24 = vsel %vm790_vm5, %v4003_v28, %v3448_v15  ;;  %v3450_v12 = vadd.f32 -1.0, %v3591_v60  ;;  %v3502_v58 = vld [vmem:[%s5571_s3 + $0x22] ss:$0 sm:$0xff]  ;;  %v3505_v56 = vld [vmem:[%s5571_s3 + $0x25] ss:$0 sm:$0xff]  ;;  %vm996_vm2 = vcmask 1040384  }
  0xea   : > { %v3595_v45 = vpop.eup %3594  ;;  %v873_v51 = vsel %vm793_vm6, %v4014_v8, %v3451_v23  ;;  %v3453_v1 = vadd.f32 -1.0, %v3593_v50  ;;  %v4173_v48 = vpop.permute.xlu1 %1210  ;;  %v3504_v15 = vld [vmem:[%s5571_s3 + $0x24] ss:$0 sm:$0xff]  ;;  %v3507_v60 = vld [vmem:[%s5571_s3 + $0x27] ss:$0 sm:$0xff]  ;;  %vm1773_vm3 = vcmask 1046528  }
  0xeb   : > { %908 = vrot.lane.b32.xlu1 %v871_v3, %s3649_s24  ;;  %v3597_v18 = vpop.eup %3596  ;;  %v872_v33 = vsel %vm792_vm7, %v4012_v40, %v3450_v12  ;;  %v3452_v9 = vadd.f32 -1.0, %v3595_v45  ;;  %v4181_v52 = vpop.permute.xlu0 %1206  ;;  %v3506_v3 = vld [vmem:[%s5571_s3 + $0x26] ss:$0 sm:$0xff]  ;;  %vm2414_vm4 = vcmask 1045504   ;;  %vm3047_vm5 = vcmask 130048  }
  0xec   : > { %906 = vrot.lane.b32.xlu0 %v870_v24, %s3649_s24  ;;  %v3599_v20 = vpop.eup %3598  ;;  %v875_v28 = vsel %vm795_vm8, %v4020_v47, %v3453_v1  ;;  %v3455_v11 = vadd.f32 -1.0, %v3597_v18  ;;  %5599 = vst [vmem:[#allocation2_spill] sm:$0xff] %v4181_v52 }
  0xed   : > { %v3601_v6 = vpop.eup %3600  ;;  %v874_v8 = vsel %vm794_vm9, %v4026_v30, %v3452_v9  ;;  %v3454_v13 = vadd.f32 -1.0, %v3599_v20 }
  0xee   : > { %v3603_v14 = vpop.eup %3602  ;;  %v877_v40 = vsel %vm797_vm10, %v4033_v37, %v3455_v11  ;;  %v3457_v44 = vadd.f32 -1.0, %v3601_v6  ;;  %v4186_v29 = vpop.permute.xlu1 %1258 }
  0xef   : > { %912 = vrot.lane.b32.xlu1 %v873_v51, %s3649_s24  ;;  %v3605_v5 = vpop.eup %3604  ;;  %v876_v47 = vsel %vm796_vm11, %v4039_v4, %v3454_v13  ;;  %v3456_v17 = vadd.f32 -1.0, %v3603_v14  ;;  %v4194_v57 = vpop.permute.xlu0 %1254 }
  0xf0   : > { %910 = vrot.lane.b32.xlu0 %v872_v33, %s3649_s24  ;;  %v3607_v19 = vpop.eup %3606  ;;  %v879_v30 = vsel %vm799_vm12, %v4048_v16, %v3457_v44  ;;  %v3459_v25 = vadd.f32 -1.0, %v3605_v5 }
  0xf1   : > { %v878_v37 = vsel %vm798_vm13, %v4055_v7, %v3456_v17  ;;  %v3458_v26 = vadd.f32 -1.0, %v3607_v19  ;;  %v3484_v7 = vld [vmem:[%s5571_s3 + $0x10] ss:$0 sm:$0xff] }
  0xf2   : > { %v881_v4 = vsel %vm801_vm14, %v4057_v32, %v3459_v25  ;;  %v3488_v32 = vld [vmem:[%s5571_s3 + $0x14] ss:$0 sm:$0xff]  ;;  %v4199_v55 = vpop.permute.xlu1 %1266 }
  0xf3   : > { %916 = vrot.lane.b32.xlu1 %v875_v28, %s3649_s24  ;;  %v880_v16 = vsel %vm800_vm15, %v4060_v61, %v3458_v26  ;;  %v3490_v61 = vld [vmem:[%s5571_s3 + $0x16] ss:$0 sm:$0xff]  ;;  %v4207_v23 = vpop.permute.xlu0 %1262 }
  0xf4   : > { %914 = vrot.lane.b32.xlu0 %v874_v8, %s3649_s24 }
  0xf6   : > { %v4209_v50 = vpop.permute.xlu1 %1274 }
  0xf7   : > { %920 = vrot.lane.b32.xlu1 %v877_v40, %s3649_s24  ;;  %v4211_v24 = vpop.permute.xlu0 %1270 }
  0xf8   : > { %918 = vrot.lane.b32.xlu0 %v876_v47, %s3649_s24 }
  0xfa   : > { %v4213_v12 = vpop.permute.xlu1 %1282 }
  0xfb   : > { %924 = vrot.lane.b32.xlu1 %v879_v30, %s3649_s24  ;;  %v4215_v45 = vpop.permute.xlu0 %1278 }
  0xfc   : > { %922 = vrot.lane.b32.xlu0 %v878_v37, %s3649_s24 }
  0xfe   : > { %v1363_v51 = vpop.permute.xlu1 %1362 }
  0xff   : > { %928 = vrot.lane.b32.xlu1 %v881_v4, %s3649_s24  ;;  %v1359_v1 = vpop.permute.xlu0 %1358 }
 0x100   : > { %926 = vrot.lane.b32.xlu0 %v880_v16, %s3649_s24 }
 0x102   : > { %v4217_v18 = vpop.permute.xlu1 %1370 }
 0x103   : > { %1530 = vperm.xlu1 %3575, %v3485_v10   ;;  %v1367_v33 = vpop.permute.xlu0 %1366 }
 0x104   : > { %1526 = vperm.xlu0 %3574, %v3484_v7  }
 0x106   : > { %v4219_v9 = vpop.permute.xlu1 %1378 }
 0x107   : > { %1538 = vperm.xlu1 %3575, %v3487_v63   ;;  %v4221_v20 = vpop.permute.xlu0 %1374 }
 0x108   : > { %1534 = vperm.xlu0 %3574, %v3486_v27  }
 0x10a   : > { %v4223_v28 = vpop.permute.xlu1 %1386 }
 0x10b   : > { %1546 = vperm.xlu1 %3575, %v3489_v36   ;;  %v4225_v11 = vpop.permute.xlu0 %1382 }
 0x10c   : > { %1542 = vperm.xlu0 %3574, %v3488_v32  }
 0x10f   : > { %1554 = vperm.xlu1 %3575, %v3491_v21  }
 0x110   : > { %1550 = vperm.xlu0 %3574, %v3490_v61  }
 0x113   : > { %1698 = vperm.xlu1 %3575, %v3493_v54  }
 0x114   : > { %1694 = vperm.xlu0 %3574, %v3492_v62  }
 0x117   : > { %1706 = vperm.xlu1 %3575, %v3495_v38  }
 0x118   : > { %1702 = vperm.xlu0 %3574, %v3494_v2  }
 0x11b   : > { %1714 = vperm.xlu1 %3575, %v3497_v41  }
 0x11c   : > { %1710 = vperm.xlu0 %3574, %v3496_v43  }
 0x11f   : > { %1722 = vperm.xlu1 %3575, %v3499_v22  }
 0x120   : > { %1718 = vperm.xlu0 %3574, %v3498_v0  }
 0x123   : > { %1891 = vperm.xlu1 %3575, %v3501_v59  }
 0x124   : > { %1887 = vperm.xlu0 %3574, %v3500_v49  }
 0x127   : > { %1899 = vperm.xlu1 %3575, %v3503_v53  }
 0x128   : > { %1895 = vperm.xlu0 %3574, %v3502_v58  }
 0x12b   : > { %1907 = vperm.xlu1 %3575, %v3505_v56  }
 0x12c   : > { %1903 = vperm.xlu0 %3574, %v3504_v15  }
 0x12f   : > { %1915 = vperm.xlu1 %3575, %v3507_v60  }
 0x130   : > { %1911 = vperm.xlu0 %3574, %v3506_v3  }
 0x155   : > { %v901_v6 = vpop.permute.xlu1 %900 }
 0x156   : > { %v948_v8 = vsel %vm946_vm0, 0.0, %v901_v6  ;;  %v899_v40 = vpop.permute.xlu0 %898 }
 0x157   : > { %v965_v13 = vsel %vm963_vm1, %v948_v8, 0.0  ;;  %v947_v44 = vsel %vm946_vm0, 0.0, %v899_v40 }
 0x158   : > { %v998_v14 = vrot.slane %v965_v13, 7  ;;  %v964_v47 = vsel %vm963_vm1, %v947_v44, 0.0 }
 0x159   : > { %v905_v17 = vpop.permute.xlu1 %904  ;;  %v997_v19 = vrot.slane %v964_v47, 7 }
 0x15a   : > { %v4231_v5 = vsel %vm996_vm2, %v998_v14, 0.0  ;;  %v950_v30 = vsel %vm946_vm0, 0.0, %v905_v17  ;;  %v903_v37 = vpop.permute.xlu0 %902 }
 0x15b   : > { %v967_v25 = vsel %vm963_vm1, %v950_v30, 0.0  ;;  %v4237_v26 = vsel %vm996_vm2, %v997_v19, %v998_v14  ;;  %v4240_v4 = vsel %vm996_vm2, 0.0, %v997_v19  ;;  %v949_v10 = vsel %vm946_vm0, 0.0, %v903_v37 }
 0x15c   : > { %v1001_v16 = vrot.slane %v967_v25, 7  ;;  %v966_v7 = vsel %vm963_vm1, %v949_v10, 0.0  ;;  %v1389_v27 = vmul.f32 %v1359_v1, %v4240_v4  ;;  %v1390_v36 = vmul.f32 %v1359_v1, %v4237_v26 }
 0x15d   : > { %v909_v63 = vpop.permute.xlu1 %908  ;;  %v1000_v21 = vrot.slane %v966_v7, 7 }
 0x15e   : > { %v4247_v32 = vsel %vm996_vm2, %v1001_v16, 0.0  ;;  %v952_v61 = vsel %vm946_vm0, 0.0, %v909_v63  ;;  %1421 = vrot.lane.b32.xlu0 %v1389_v27, %s3650_s7  ;;  %1423 = vrot.lane.b32.xlu1 %v1390_v36, %s3650_s7  ;;  %v907_v62 = vpop.permute.xlu0 %906 }
 0x15f   : > { %v969_v54 = vsel %vm963_vm1, %v952_v61, 0.0  ;;  %v4254_v38 = vsel %vm996_vm2, %v1000_v21, %v1001_v16  ;;  %v4257_v2 = vsel %vm996_vm2, 0.0, %v1000_v21  ;;  %v951_v43 = vsel %vm946_vm0, 0.0, %v907_v62 }
 0x160   : > { %v1004_v41 = vrot.slane %v969_v54, 7  ;;  %v968_v22 = vsel %vm963_vm1, %v951_v43, 0.0  ;;  %v1391_v59 = vmul.f32 %v1363_v51, %v4257_v2  ;;  %v1392_v49 = vmul.f32 %v1363_v51, %v4254_v38 }
 0x161   : > { %v913_v0 = vpop.permute.xlu1 %912  ;;  %v1003_v58 = vrot.slane %v968_v22, 7 }
 0x162   : > { %v4264_v53 = vsel %vm996_vm2, %v1004_v41, 0.0  ;;  %v954_v56 = vsel %vm946_vm0, 0.0, %v913_v0  ;;  %1425 = vrot.lane.b32.xlu0 %v1391_v59, %s3650_s7  ;;  %1427 = vrot.lane.b32.xlu1 %v1392_v49, %s3650_s7  ;;  %v911_v60 = vpop.permute.xlu0 %910 }
 0x163   : > { %v971_v15 = vsel %vm963_vm1, %v954_v56, 0.0  ;;  %v4271_v3 = vsel %vm996_vm2, %v1003_v58, %v1004_v41  ;;  %v4274_v1 = vsel %vm996_vm2, 0.0, %v1003_v58  ;;  %v953_v6 = vsel %vm946_vm0, 0.0, %v911_v60 }
 0x164   : > { %v1007_v51 = vrot.slane %v971_v15, 7  ;;  %v970_v8 = vsel %vm963_vm1, %v953_v6, 0.0  ;;  %v1393_v14 = vmul.f32 %v1367_v33, %v4274_v1  ;;  %v1394_v40 = vmul.f32 %v1367_v33, %v4271_v3 }
 0x165   : > { %v917_v13 = vpop.permute.xlu1 %916  ;;  %v1006_v47 = vrot.slane %v970_v8, 7 }
 0x166   : > { %v4281_v44 = vsel %vm996_vm2, %v1007_v51, 0.0  ;;  %v956_v17 = vsel %vm946_vm0, 0.0, %v917_v13  ;;  %1429 = vrot.lane.b32.xlu0 %v1393_v14, %s3650_s7  ;;  %1431 = vrot.lane.b32.xlu1 %v1394_v40, %s3650_s7  ;;  %v915_v30 = vpop.permute.xlu0 %914 }
 0x167   : > { %5600 = vst [vmem:[#allocation3_spill] sm:$0xff] %v4281_v44  ;;  %v973_v19 = vsel %vm963_vm1, %v956_v17, 0.0  ;;  %v4288_v25 = vsel %vm996_vm2, %v1006_v47, %v1007_v51  ;;  %v4291_v37 = vsel %vm996_vm2, 0.0, %v1006_v47  ;;  %v955_v16 = vsel %vm946_vm0, 0.0, %v915_v30 }
 0x168   : > { %5601 = vst [vmem:[#allocation4_spill] sm:$0xff] %v4288_v25  ;;  %5602 = vst [vmem:[#allocation5_spill] sm:$0xff] %v4291_v37  ;;  %v1010_v33 = vrot.slane %v973_v19, 7  ;;  %v972_v10 = vsel %vm963_vm1, %v955_v16, 0.0  ;;  %v1395_v63 = vmul.f32 %v4217_v18, %v4291_v37  ;;  %v1396_v27 = vmul.f32 %v4217_v18, %v4288_v25 }
 0x169   : > { %v921_v7 = vpop.permute.xlu1 %920  ;;  %v1009_v21 = vrot.slane %v972_v10, 7 }
 0x16a   : > { %v4300_v36 = vsel %vm996_vm2, %v1010_v33, 0.0  ;;  %v958_v61 = vsel %vm946_vm0, 0.0, %v921_v7  ;;  %1433 = vrot.lane.b32.xlu0 %v1395_v63, %s3650_s7  ;;  %1435 = vrot.lane.b32.xlu1 %v1396_v27, %s3650_s7  ;;  %v919_v62 = vpop.permute.xlu0 %918 }
 0x16b   : > { %v975_v54 = vsel %vm963_vm1, %v958_v61, 0.0  ;;  %v4307_v41 = vsel %vm996_vm2, %v1009_v21, %v1010_v33  ;;  %v4310_v43 = vsel %vm996_vm2, 0.0, %v1009_v21  ;;  %v957_v22 = vsel %vm946_vm0, 0.0, %v919_v62 }
 0x16c   : > { %v1013_v18 = vrot.slane %v975_v54, 7  ;;  %v974_v0 = vsel %vm963_vm1, %v957_v22, 0.0  ;;  %v1397_v49 = vmul.f32 %v4221_v20, %v4310_v43  ;;  %v1398_v58 = vmul.f32 %v4221_v20, %v4307_v41 }
 0x16d   : > { %v925_v59 = vpop.permute.xlu1 %924  ;;  %v1012_v15 = vrot.slane %v974_v0, 7 }
 0x16e   : > { %v4319_v56 = vsel %vm996_vm2, %v1013_v18, 0.0  ;;  %v960_v60 = vsel %vm946_vm0, 0.0, %v925_v59  ;;  %1437 = vrot.lane.b32.xlu0 %v1397_v49, %s3650_s7  ;;  %1439 = vrot.lane.b32.xlu1 %v1398_v58, %s3650_s7  ;;  %v923_v6 = vpop.permute.xlu0 %922 }
 0x16f   : > { %5603 = vst [vmem:[#allocation6_spill] sm:$0xff] %v4319_v56  ;;  %v977_v51 = vsel %vm963_vm1, %v960_v60, 0.0  ;;  %v4326_v8 = vsel %vm996_vm2, %v1012_v15, %v1013_v18  ;;  %v4329_v13 = vsel %vm996_vm2, 0.0, %v1012_v15  ;;  %v959_v14 = vsel %vm946_vm0, 0.0, %v923_v6 }
 0x170   : > { %5604 = vst [vmem:[#allocation7_spill] sm:$0xff] %v4326_v8  ;;  %5605 = vst [vmem:[#allocation8_spill] sm:$0xff] %v4329_v13  ;;  %v1016_v20 = vrot.slane %v977_v51, 7  ;;  %v976_v40 = vsel %vm963_vm1, %v959_v14, 0.0  ;;  %v1399_v17 = vmul.f32 %v4219_v9, %v4329_v13  ;;  %v1400_v19 = vmul.f32 %v4219_v9, %v4326_v8 }
 0x171   : > { %v929_v47 = vpop.permute.xlu1 %928  ;;  %v1015_v33 = vrot.slane %v976_v40, 7 }
 0x172   : > { %v4338_v30 = vsel %vm996_vm2, %v1016_v20, 0.0  ;;  %v962_v16 = vsel %vm946_vm0, 0.0, %v929_v47  ;;  %1441 = vrot.lane.b32.xlu0 %v1399_v17, %s3650_s7  ;;  %1443 = vrot.lane.b32.xlu1 %v1400_v19, %s3650_s7  ;;  %v927_v7 = vpop.permute.xlu0 %926 }
 0x173   : > { %v979_v10 = vsel %vm963_vm1, %v962_v16, 0.0  ;;  %v4345_v63 = vsel %vm996_vm2, %v1015_v33, %v1016_v20  ;;  %v4348_v27 = vsel %vm996_vm2, 0.0, %v1015_v33  ;;  %v961_v21 = vsel %vm946_vm0, 0.0, %v927_v7 }
 0x174   : > { %v1019_v9 = vrot.slane %v979_v10, 7  ;;  %v978_v61 = vsel %vm963_vm1, %v961_v21, 0.0  ;;  %v1401_v54 = vmul.f32 %v4225_v11, %v4348_v27  ;;  %v1402_v62 = vmul.f32 %v4225_v11, %v4345_v63 }
 0x175   : > { %v1018_v22 = vrot.slane %v978_v61, 7 }
 0x176   : > { %v4357_v18 = vsel %vm996_vm2, %v1019_v9, 0.0  ;;  %1445 = vrot.lane.b32.xlu0 %v1401_v54, %s3650_s7  ;;  %1447 = vrot.lane.b32.xlu1 %v1402_v62, %s3650_s7 }
 0x177   : > { %5606 = vst [vmem:[#allocation9_spill] sm:$0xff] %v4357_v18  ;;  %v4362_v0 = vsel %vm996_vm2, %v1018_v22, %v1019_v9  ;;  %v4365_v59 = vsel %vm996_vm2, 0.0, %v1018_v22 }
 0x178   : > { %5607 = vst [vmem:[#allocation10_spill] sm:$0xff] %v4362_v0  ;;  %5608 = vst [vmem:[#allocation11_spill] sm:$0xff] %v4365_v59  ;;  %v1403_v49 = vmul.f32 %v4223_v28, %v4365_v59  ;;  %v1404_v11 = vmul.f32 %v4223_v28, %v4362_v0 }
 0x17a   : > { %1449 = vrot.lane.b32.xlu0 %v1403_v49, %s3650_s7  ;;  %1451 = vrot.lane.b32.xlu1 %v1404_v11, %s3650_s7 }
 0x17e   : > { %v1531_v58 = vpop.permute.xlu1 %1530 }
 0x17f   : > { %v1527_v15 = vpop.permute.xlu0 %1526  ;;  %v1559_v14 = vmul.f32 %v1531_v58, %v4257_v2  ;;  %v1560_v28 = vmul.f32 %v1531_v58, %v4254_v38 }
 0x180   : > { %v1557_v60 = vmul.f32 %v1527_v15, %v4240_v4  ;;  %v1558_v51 = vmul.f32 %v1527_v15, %v4237_v26 }
 0x182   : > { %v1539_v6 = vpop.permute.xlu1 %1538  ;;  %1591 = vrot.lane.b32.xlu1 %v1558_v51, %s3651_s8  ;;  %1589 = vrot.lane.b32.xlu0 %v1557_v60, %s3651_s8 }
 0x183   : > { %v1535_v20 = vpop.permute.xlu0 %1534  ;;  %v1563_v10 = vmul.f32 %v1539_v6, %v4291_v37  ;;  %v1564_v7 = vmul.f32 %v1539_v6, %v4288_v25 }
 0x184   : > { %v1561_v17 = vmul.f32 %v1535_v20, %v4274_v1  ;;  %v1562_v19 = vmul.f32 %v1535_v20, %v4271_v3 }
 0x186   : > { %v1547_v40 = vpop.permute.xlu1 %1546  ;;  %1595 = vrot.lane.b32.xlu1 %v1560_v28, %s3651_s8  ;;  %1593 = vrot.lane.b32.xlu0 %v1559_v14, %s3651_s8 }
 0x187   : > { %v1543_v47 = vpop.permute.xlu0 %1542  ;;  %v1567_v49 = vmul.f32 %v1547_v40, %v4329_v13  ;;  %v1568_v11 = vmul.f32 %v1547_v40, %v4326_v8 }
 0x188   : > { %v1565_v61 = vmul.f32 %v1543_v47, %v4310_v43  ;;  %v1566_v54 = vmul.f32 %v1543_v47, %v4307_v41 }
 0x18a   : > { %v1555_v33 = vpop.permute.xlu1 %1554  ;;  %1599 = vrot.lane.b32.xlu1 %v1562_v19, %s3651_s8  ;;  %1597 = vrot.lane.b32.xlu0 %v1561_v17, %s3651_s8 }
 0x18b   : > { %v1551_v16 = vpop.permute.xlu0 %1550  ;;  %v1571_v14 = vmul.f32 %v1555_v33, %v4365_v59  ;;  %v1572_v28 = vmul.f32 %v1555_v33, %v4362_v0 }
 0x18c   : > { %v1569_v60 = vmul.f32 %v1551_v16, %v4348_v27  ;;  %v1570_v51 = vmul.f32 %v1551_v16, %v4345_v63 }
 0x18e   : > { %v4387_v9 = vpop.permute.xlu1 %1698  ;;  %1603 = vrot.lane.b32.xlu1 %v1564_v7, %s3651_s8  ;;  %1601 = vrot.lane.b32.xlu0 %v1563_v10, %s3651_s8 }
 0x18f   : > { %v4391_v21 = vpop.permute.xlu0 %1694 }
 0x192   : > { %v4395_v62 = vpop.permute.xlu1 %1706  ;;  %1607 = vrot.lane.b32.xlu1 %v1566_v54, %s3651_s8  ;;  %1605 = vrot.lane.b32.xlu0 %v1565_v61, %s3651_s8 }
 0x193   : > { %5609 = vst [vmem:[#allocation12_spill] sm:$0xff] %v4395_v62  ;;  %v4399_v22 = vpop.permute.xlu0 %1702 }
 0x194   : > { %5610 = vst [vmem:[#allocation13_spill] sm:$0xff] %v4399_v22 }
 0x196   : > { %v4403_v58 = vpop.permute.xlu1 %1714  ;;  %1611 = vrot.lane.b32.xlu1 %v1568_v11, %s3651_s8  ;;  %1609 = vrot.lane.b32.xlu0 %v1567_v49, %s3651_s8 }
 0x197   : > { %5611 = vst [vmem:[#allocation14_spill] sm:$0xff] %v4403_v58  ;;  %v4407_v15 = vpop.permute.xlu0 %1710 }
 0x198   : > { %5612 = vst [vmem:[#allocation15_spill] sm:$0xff] %v4407_v15 }
 0x19a   : > { %v4411_v6 = vpop.permute.xlu1 %1722  ;;  %1615 = vrot.lane.b32.xlu1 %v1570_v51, %s3651_s8  ;;  %1613 = vrot.lane.b32.xlu0 %v1569_v60, %s3651_s8 }
 0x19b   : > { %v4415_v20 = vpop.permute.xlu0 %1718 }
 0x19c   : > { %5613 = vst [vmem:[#allocation16_spill] sm:$0xff] %v4415_v20 }
 0x19e   : > { %v1892_v40 = vpop.permute.xlu1 %1891  ;;  %1619 = vrot.lane.b32.xlu1 %v1572_v28, %s3651_s8  ;;  %1617 = vrot.lane.b32.xlu0 %v1571_v14, %s3651_s8 }
 0x19f   : > { %v1888_v47 = vpop.permute.xlu0 %1887  ;;  %v1921_v17 = vmul.f32 %v1892_v40, %v4257_v2  ;;  %v1922_v19 = vmul.f32 %v1892_v40, %v4254_v38  ;;  %v1923_v16 = vmul.f32 %v1892_v40, %v4247_v32 }
 0x1a0   : > { %v1918_v10 = vmul.f32 %v1888_v47, %v4240_v4  ;;  %v1919_v7 = vmul.f32 %v1888_v47, %v4237_v26  ;;  %v1920_v61 = vmul.f32 %v1888_v47, %v4231_v5 }
 0x1a1   : > { %v1971_v60 = vrot.slane %v1921_v17, 1  ;;  %v1972_v51 = vrot.slane %v1922_v19, 1  ;;  %v1974_v14 = vrot.slane %v1923_v16, 1 }
 0x1a2   : > { %v1966_v54 = vrot.slane %v1918_v10, 1  ;;  %v1967_v33 = vrot.slane %v1919_v7, 1  ;;  %v1969_v49 = vrot.slane %v1920_v61, 1  ;;  %v1900_v20 = vpop.permute.xlu1 %1899 }
 0x1a3   : > { %v1896_v11 = vpop.permute.xlu0 %1895  ;;  %v1927_v47 = vmul.f32 %v1900_v20, %v4291_v37  ;;  %v1928_v17 = vmul.f32 %v1900_v20, %v4288_v25  ;;  %v1929_v19 = vmul.f32 %v1900_v20, %v4281_v44  ;;  %v1975_v16 = vsel %vm1773_vm3, %v1972_v51, %v1974_v14 }
 0x1a4   : > { %v1924_v28 = vmul.f32 %v1896_v11, %v4274_v1  ;;  %v1925_v15 = vmul.f32 %v1896_v11, %v4271_v3  ;;  %v1926_v40 = vmul.f32 %v1896_v11, %v4264_v53  ;;  %v1970_v58 = vsel %vm1773_vm3, %v1967_v33, %v1969_v49 }
 0x1a5   : > { %v1968_v22 = vsel %vm1773_vm3, %v1966_v54, %v1967_v33  ;;  %2008 = vrot.lane.b32.xlu1 %v1970_v58, %s3650_s7  ;;  %v1973_v49 = vsel %vm1773_vm3, %v1971_v60, %v1972_v51  ;;  %v1981_v58 = vrot.slane %v1927_v47, 1  ;;  %v1984_v54 = vrot.slane %v1929_v19, 1 }
 0x1a6   : > { %2006 = vrot.lane.b32.xlu0 %v1968_v22, %s3650_s7  ;;  %v1976_v10 = vrot.slane %v1924_v28, 1  ;;  %v1977_v7 = vrot.slane %v1925_v15, 1  ;;  %v1979_v61 = vrot.slane %v1926_v40, 1  ;;  %v1982_v22 = vrot.slane %v1928_v17, 1  ;;  %v1908_v62 = vpop.permute.xlu1 %1907 }
 0x1a7   : > { %v1904_v11 = vpop.permute.xlu0 %1903  ;;  %v1933_v60 = vmul.f32 %v1908_v62, %v4329_v13  ;;  %v1934_v51 = vmul.f32 %v1908_v62, %v4326_v8  ;;  %v1935_v40 = vmul.f32 %v1908_v62, %v4319_v56 }
 0x1a8   : > { %v1930_v33 = vmul.f32 %v1904_v11, %v4310_v43  ;;  %v1931_v20 = vmul.f32 %v1904_v11, %v4307_v41  ;;  %v1932_v14 = vmul.f32 %v1904_v11, %v4300_v36  ;;  %v1980_v15 = vsel %vm1773_vm3, %v1977_v7, %v1979_v61 }
 0x1a9   : > { %2012 = vrot.lane.b32.xlu1 %v1975_v16, %s3650_s7  ;;  %v1978_v28 = vsel %vm1773_vm3, %v1976_v10, %v1977_v7  ;;  %v1985_v47 = vsel %vm1773_vm3, %v1982_v22, %v1984_v54  ;;  %v1983_v61 = vsel %vm1773_vm3, %v1981_v58, %v1982_v22  ;;  %v1991_v10 = vrot.slane %v1933_v60, 1 }
 0x1aa   : > { %2010 = vrot.lane.b32.xlu0 %v1973_v49, %s3650_s7  ;;  %v1986_v17 = vrot.slane %v1930_v33, 1  ;;  %v1987_v19 = vrot.slane %v1931_v20, 1  ;;  %v1989_v16 = vrot.slane %v1932_v14, 1  ;;  %v1992_v7 = vrot.slane %v1934_v51, 1 }
 0x1ab   : > { %v1912_v11 = vpop.permute.xlu0 %1911  ;;  %v1994_v49 = vrot.slane %v1935_v40, 1 }
 0x1ac   : > { %v1937_v62 = vmul.f32 %v1912_v11, %v4345_v63  ;;  %v1938_v54 = vmul.f32 %v1912_v11, %v4338_v30  ;;  %v1990_v33 = vsel %vm1773_vm3, %v1987_v19, %v1989_v16  ;;  %v1988_v20 = vsel %vm1773_vm3, %v1986_v17, %v1987_v19 }
 0x1ad   : > { %2016 = vrot.lane.b32.xlu1 %v1980_v15, %s3650_s7  ;;  %v1936_v15 = vmul.f32 %v1912_v11, %v4348_v27  ;;  %v1995_v60 = vsel %vm1773_vm3, %v1992_v7, %v1994_v49  ;;  %v1993_v11 = vsel %vm1773_vm3, %v1991_v10, %v1992_v7  ;;  %v3509_v10 = vld [vmem:[%s5571_s3 + $0x29] ss:$0 sm:$0xff]  ;;  %v3508_v7 = vld [vmem:[%s5571_s3 + $0x28] ss:$0 sm:$0xff] }
 0x1ae   : > { %2014 = vrot.lane.b32.xlu0 %v1978_v28, %s3650_s7  ;;  %v1916_v28 = vpop.permute.xlu1 %1915  ;;  %v1997_v40 = vrot.slane %v1937_v62, 1  ;;  %v3510_v62 = vld [vmem:[%s5571_s3 + $0x2a] ss:$0 sm:$0xff] }
 0x1af   : > { %v1939_v58 = vmul.f32 %v1916_v28, %v4365_v59  ;;  %v1940_v22 = vmul.f32 %v1916_v28, %v4362_v0  ;;  %v1941_v14 = vmul.f32 %v1916_v28, %v4357_v18  ;;  %v1996_v51 = vrot.slane %v1936_v15, 1  ;;  %v3511_v28 = vld [vmem:[%s5571_s3 + $0x2b] ss:$0 sm:$0xff] }
 0x1b1   : > { %2020 = vrot.lane.b32.xlu1 %v1985_v47, %s3650_s7  ;;  %v1999_v47 = vrot.slane %v1938_v54, 1  ;;  %v2001_v17 = vrot.slane %v1939_v58, 1  ;;  %v2002_v19 = vrot.slane %v1940_v22, 1  ;;  %v2004_v16 = vrot.slane %v1941_v14, 1  ;;  %v3513_v54 = vld [vmem:[%s5571_s3 + $0x2d] ss:$0 sm:$0xff] }
 0x1b2   : > { %2018 = vrot.lane.b32.xlu0 %v1983_v61, %s3650_s7  ;;  %v3515_v58 = vld [vmem:[%s5571_s3 + $0x2f] ss:$0 sm:$0xff]  ;;  %v3514_v22 = vld [vmem:[%s5571_s3 + $0x2e] ss:$0 sm:$0xff] }
 0x1b3   : > { %v2000_v61 = vsel %vm1773_vm3, %v1997_v40, %v1999_v47  ;;  %v2005_v49 = vsel %vm1773_vm3, %v2002_v19, %v2004_v16  ;;  %v2003_v15 = vsel %vm1773_vm3, %v2001_v17, %v2002_v19 }
 0x1b5   : > { %2024 = vrot.lane.b32.xlu1 %v1990_v33, %s3650_s7  ;;  %v1998_v33 = vsel %vm1773_vm3, %v1996_v51, %v1997_v40 }
 0x1b6   : > { %2022 = vrot.lane.b32.xlu0 %v1988_v20, %s3650_s7  ;;  %v3512_v20 = vld [vmem:[%s5571_s3 + $0x2c] ss:$0 sm:$0xff] }
 0x1b9   : > { %2028 = vrot.lane.b32.xlu1 %v1995_v60, %s3650_s7 }
 0x1ba   : > { %2026 = vrot.lane.b32.xlu0 %v1993_v11, %s3650_s7 }
 0x1bd   : > { %2032 = vrot.lane.b32.xlu1 %v2000_v61, %s3650_s7 }
 0x1be   : > { %2030 = vrot.lane.b32.xlu0 %v1998_v33, %s3650_s7 }
 0x1c1   : > { %2036 = vrot.lane.b32.xlu1 %v2005_v49, %s3650_s7 }
 0x1c2   : > { %2034 = vrot.lane.b32.xlu0 %v2003_v15, %s3650_s7 }
 0x1c5   : > { %2115 = vperm.xlu1 %3575, %v3509_v10  }
 0x1c6   : > { %2111 = vperm.xlu0 %3574, %v3508_v7  }
 0x1c9   : > { %2123 = vperm.xlu1 %3575, %v3511_v28  }
 0x1ca   : > { %2119 = vperm.xlu0 %3574, %v3510_v62  }
 0x1cd   : > { %2131 = vperm.xlu1 %3575, %v3513_v54  }
 0x1ce   : > { %2127 = vperm.xlu0 %3574, %v3512_v20  }
 0x1d0   : > { %v4501_v14 = vpop.permute.xlu1 %1423  ;;  %v4503_v60 = vpop.permute.xlu0 %1421 }
 0x1d1   : > { %5614 = vst [vmem:[#allocation17_spill] sm:$0xff] %v4501_v14  ;;  %5615 = vst [vmem:[#allocation18_spill] sm:$0xff] %v4503_v60  ;;  %2139 = vperm.xlu1 %3575, %v3515_v58  }
 0x1d2   : > { %2135 = vperm.xlu0 %3574, %v3514_v22  }
 0x1d4   : > { %v4505_v51 = vpop.permute.xlu1 %1427  ;;  %v4507_v40 = vpop.permute.xlu0 %1425 }
 0x1d5   : > { %5616 = vst [vmem:[#allocation19_spill] sm:$0xff] %v4505_v51  ;;  %5617 = vst [vmem:[#allocation20_spill] sm:$0xff] %v4507_v40 }
 0x1d8   : > { %v4509_v47 = vpop.permute.xlu1 %1431  ;;  %v4511_v11 = vpop.permute.xlu0 %1429 }
 0x1d9   : > { %5618 = vst [vmem:[#allocation21_spill] sm:$0xff] %v4509_v47  ;;  %5619 = vst [vmem:[#allocation22_spill] sm:$0xff] %v4511_v11 }
 0x1dc   : > { %v4513_v17 = vpop.permute.xlu1 %1435  ;;  %v4515_v19 = vpop.permute.xlu0 %1433 }
 0x1dd   : > { %5620 = vst [vmem:[#allocation23_spill] sm:$0xff] %v4513_v17  ;;  %5621 = vst [vmem:[#allocation24_spill] sm:$0xff] %v4515_v19 }
 0x1e0   : > { %v4517_v16 = vpop.permute.xlu1 %1439  ;;  %v4519_v61 = vpop.permute.xlu0 %1437 }
 0x1e1   : > { %5622 = vst [vmem:[#allocation25_spill] sm:$0xff] %v4517_v16  ;;  %5623 = vst [vmem:[#allocation26_spill] sm:$0xff] %v4519_v61 }
 0x1e4   : > { %v4521_v33 = vpop.permute.xlu1 %1443  ;;  %v4523_v49 = vpop.permute.xlu0 %1441 }
 0x1e5   : > { %5624 = vst [vmem:[#allocation27_spill] sm:$0xff] %v4521_v33  ;;  %5625 = vst [vmem:[#allocation28_spill] sm:$0xff] %v4523_v49 }
 0x1e8   : > { %v4525_v15 = vpop.permute.xlu1 %1447  ;;  %v4527_v10 = vpop.permute.xlu0 %1445 }
 0x1e9   : > { %5626 = vst [vmem:[#allocation29_spill] sm:$0xff] %v4525_v15  ;;  %5627 = vst [vmem:[#allocation30_spill] sm:$0xff] %v4527_v10 }
 0x1ec   : > { %v1452_v7 = vpop.permute.xlu1 %1451  ;;  %v1450_v28 = vpop.permute.xlu0 %1449 }
 0x1f4   : > { %v4529_v62 = vpop.permute.xlu1 %1591  ;;  %v4531_v54 = vpop.permute.xlu0 %1589 }
 0x1f5   : > { %5628 = vst [vmem:[#allocation31_spill] sm:$0xff] %v4529_v62  ;;  %5629 = vst [vmem:[#allocation32_spill] sm:$0xff] %v4531_v54 }
 0x1f8   : > { %v4533_v20 = vpop.permute.xlu1 %1595  ;;  %v4535_v58 = vpop.permute.xlu0 %1593 }
 0x1f9   : > { %5630 = vst [vmem:[#allocation33_spill] sm:$0xff] %v4533_v20  ;;  %5631 = vst [vmem:[#allocation34_spill] sm:$0xff] %v4535_v58 }
 0x1fc   : > { %v4537_v22 = vpop.permute.xlu1 %1599  ;;  %v4539_v61 = vpop.permute.xlu0 %1597 }
 0x1fd   : > { %5632 = vst [vmem:[#allocation35_spill] sm:$0xff] %v4537_v22  ;;  %5633 = vst [vmem:[#allocation36_spill] sm:$0xff] %v4539_v61 }
 0x200   : > { %v4541_v33 = vpop.permute.xlu1 %1603  ;;  %v4543_v49 = vpop.permute.xlu0 %1601 }
 0x201   : > { %5634 = vst [vmem:[#allocation37_spill] sm:$0xff] %v4541_v33  ;;  %5635 = vst [vmem:[#allocation38_spill] sm:$0xff] %v4543_v49 }
 0x204   : > { %v4545_v15 = vpop.permute.xlu1 %1607  ;;  %v4547_v10 = vpop.permute.xlu0 %1605 }
 0x205   : > { %5636 = vst [vmem:[#allocation39_spill] sm:$0xff] %v4545_v15  ;;  %5637 = vst [vmem:[#allocation40_spill] sm:$0xff] %v4547_v10 }
 0x208   : > { %v4549_v16 = vpop.permute.xlu1 %1611  ;;  %v4551_v19 = vpop.permute.xlu0 %1609 }
 0x209   : > { %5638 = vst [vmem:[#allocation41_spill] sm:$0xff] %v4549_v16  ;;  %5639 = vst [vmem:[#allocation42_spill] sm:$0xff] %v4551_v19 }
 0x20c   : > { %v4553_v17 = vpop.permute.xlu1 %1615  ;;  %v4555_v11 = vpop.permute.xlu0 %1613 }
 0x20d   : > { %5640 = vst [vmem:[#allocation43_spill] sm:$0xff] %v4553_v17  ;;  %5641 = vst [vmem:[#allocation44_spill] sm:$0xff] %v4555_v11  ;;  %v1300_v11 = vmul.f32 %v4213_v12, %v4362_v0  ;;  %v1299_v17 = vmul.f32 %v4213_v12, %v4365_v59 }
 0x210   : > { %v1620_v47 = vpop.permute.xlu1 %1619  ;;  %v1618_v22 = vpop.permute.xlu0 %1617 }
 0x217   : > { %v4557_v58 = vpop.permute.xlu1 %2008 }
 0x218   : > { %5642 = vst [vmem:[#allocation45_spill] sm:$0xff] %v4557_v58  ;;  %v4559_v61 = vpop.permute.xlu0 %2006 }
 0x219   : > { %5643 = vst [vmem:[#allocation46_spill] sm:$0xff] %v4559_v61 }
 0x21b   : > { %v4561_v33 = vpop.permute.xlu1 %2012 }
 0x21c   : > { %5644 = vst [vmem:[#allocation47_spill] sm:$0xff] %v4561_v33  ;;  %v4563_v49 = vpop.permute.xlu0 %2010 }
 0x21d   : > { %5645 = vst [vmem:[#allocation48_spill] sm:$0xff] %v4563_v49  ;;  %v1746_v49 = vmul.f32 %v4411_v6, %v4365_v59 }
 0x21f   : > { %v4565_v15 = vpop.permute.xlu1 %2016 }
 0x220   : > { %5646 = vst [vmem:[#allocation49_spill] sm:$0xff] %v4565_v15  ;;  %v4567_v10 = vpop.permute.xlu0 %2014  ;;  %v1315_v15 = vadd.f32 %v1299_v17, %v4173_v48 }
 0x221   : > { %5647 = vst [vmem:[#allocation50_spill] sm:$0xff] %v4567_v10  ;;  %v1747_v10 = vmul.f32 %v4411_v6, %v4362_v0 }
 0x222   : > { %v1483_v20 = vadd.f32 %v1450_v28, %v1315_v15 }
 0x223   : > { %v4569_v16 = vpop.permute.xlu1 %2020  ;;  %v1810_v40 = vrot.slane %v1747_v10, 1 }
 0x224   : > { %5648 = vst [vmem:[#allocation51_spill] sm:$0xff] %v4569_v16  ;;  %v4571_v19 = vpop.permute.xlu0 %2018  ;;  %v1748_v16 = vmul.f32 %v4411_v6, %v4357_v18  ;;  %v1651_v62 = vadd.f32 %v1618_v22, %v1483_v20 }
 0x225   : > { %5649 = vst [vmem:[#allocation52_spill] sm:$0xff] %v4571_v19  ;;  %v1316_v19 = vadd.f32 %v1300_v11, %v4173_v48 }
 0x226   : > { %v1812_v51 = vrot.slane %v1748_v16, 1 }
 0x227   : > { %v4577_v58 = vpop.permute.xlu1 %2024 }
 0x228   : > { %5650 = vst [vmem:[#allocation53_spill] sm:$0xff] %v4577_v58  ;;  %v4579_v61 = vpop.permute.xlu0 %2022  ;;  %v1484_v58 = vadd.f32 %v1452_v7, %v1316_v19  ;;  %v1813_v6 = vsel %vm1773_vm3, %v1810_v40, %v1812_v51 }
 0x229   : > { %5651 = vst [vmem:[#allocation54_spill] sm:$0xff] %v4579_v61  ;;  %v1809_v61 = vrot.slane %v1746_v49, 1 }
 0x22a   : > { %v1652_v54 = vadd.f32 %v1620_v47, %v1484_v58 }
 0x22b   : > { %v4589_v33 = vpop.permute.xlu1 %2028  ;;  %v1811_v11 = vsel %vm1773_vm3, %v1809_v61, %v1810_v40 }
 0x22c   : > { %5652 = vst [vmem:[#allocation55_spill] sm:$0xff] %v4589_v33  ;;  %v4591_v12 = vpop.permute.xlu0 %2026  ;;  %v1845_v48 = vadd.f32 %v1813_v6, %v1652_v54  ;;  %v1844_v17 = vadd.f32 %v1811_v11, %v1651_v62 }
 0x22d   : > { %5653 = vst [vmem:[#allocation56_spill] sm:$0xff] %v4591_v12 }
 0x22f   : > { %v4593_v60 = vpop.permute.xlu1 %2032 }
 0x230   : > { %v4595_v14 = vpop.permute.xlu0 %2030 }
 0x233   : > { %v2037_v33 = vpop.permute.xlu1 %2036 }
 0x234   : > { %v2035_v52 = vpop.permute.xlu0 %2034  ;;  %v4599_v12 = vadd.f32 %v2037_v33, %v1845_v48 }
 0x235   : > { %v4601_v19 = vadd.f32 %v2035_v52, %v1844_v17 }
 0x240   : > { %v2116_v49 = vpop.permute.xlu1 %2115 }
 0x241   : > { %v2112_v16 = vpop.permute.xlu0 %2111  ;;  %v2145_v47 = vmul.f32 %v2116_v49, %v4257_v2  ;;  %v2146_v15 = vmul.f32 %v2116_v49, %v4254_v38  ;;  %v2147_v10 = vmul.f32 %v2116_v49, %v4247_v32 }
 0x242   : > { %v2142_v51 = vmul.f32 %v2112_v16, %v4240_v4  ;;  %v2143_v40 = vmul.f32 %v2112_v16, %v4237_v26  ;;  %v2144_v61 = vmul.f32 %v2112_v16, %v4231_v5 }
 0x243   : > { %v2195_v52 = vrot.slane %v2145_v47, 1  ;;  %v2196_v54 = vrot.slane %v2146_v15, 1  ;;  %v2198_v20 = vrot.slane %v2147_v10, 1 }
 0x244   : > { %v2190_v7 = vrot.slane %v2142_v51, 1  ;;  %v2191_v28 = vrot.slane %v2143_v40, 1  ;;  %v2193_v33 = vrot.slane %v2144_v61, 1  ;;  %v2124_v22 = vpop.permute.xlu1 %2123 }
 0x245   : > { %v2120_v62 = vpop.permute.xlu0 %2119  ;;  %v2151_v49 = vmul.f32 %v2124_v22, %v4291_v37  ;;  %v2152_v16 = vmul.f32 %v2124_v22, %v4288_v25  ;;  %v2153_v47 = vmul.f32 %v2124_v22, %v4281_v44  ;;  %v2199_v61 = vsel %vm1773_vm3, %v2196_v54, %v2198_v20 }
 0x246   : > { %v2148_v58 = vmul.f32 %v2120_v62, %v4274_v1  ;;  %v2149_v6 = vmul.f32 %v2120_v62, %v4271_v3  ;;  %v2150_v11 = vmul.f32 %v2120_v62, %v4264_v53  ;;  %v2194_v48 = vsel %vm1773_vm3, %v2191_v28, %v2193_v33 }
 0x247   : > { %v2192_v17 = vsel %vm1773_vm3, %v2190_v7, %v2191_v28  ;;  %2232 = vrot.lane.b32.xlu1 %v2194_v48, %s3651_s8  ;;  %v2197_v33 = vsel %vm1773_vm3, %v2195_v52, %v2196_v54  ;;  %v2205_v7 = vrot.slane %v2151_v49, 1  ;;  %v2206_v28 = vrot.slane %v2152_v16, 1 }
 0x248   : > { %2230 = vrot.lane.b32.xlu0 %v2192_v17, %s3651_s8  ;;  %v2200_v15 = vrot.slane %v2148_v58, 1  ;;  %v2201_v10 = vrot.slane %v2149_v6, 1  ;;  %v2203_v51 = vrot.slane %v2150_v11, 1  ;;  %v2208_v62 = vrot.slane %v2153_v47, 1  ;;  %v2132_v17 = vpop.permute.xlu1 %2131 }
 0x249   : > { %v2128_v40 = vpop.permute.xlu0 %2127  ;;  %v2157_v52 = vmul.f32 %v2132_v17, %v4329_v13  ;;  %v2158_v54 = vmul.f32 %v2132_v17, %v4326_v8  ;;  %v2159_v11 = vmul.f32 %v2132_v17, %v4319_v56 }
 0x24a   : > { %v2154_v48 = vmul.f32 %v2128_v40, %v4310_v43  ;;  %v2155_v22 = vmul.f32 %v2128_v40, %v4307_v41  ;;  %v2156_v58 = vmul.f32 %v2128_v40, %v4300_v36  ;;  %v2204_v6 = vsel %vm1773_vm3, %v2201_v10, %v2203_v51 }
 0x24b   : > { %2236 = vrot.lane.b32.xlu1 %v2199_v61, %s3651_s8  ;;  %v2202_v20 = vsel %vm1773_vm3, %v2200_v15, %v2201_v10  ;;  %v2209_v40 = vsel %vm1773_vm3, %v2206_v28, %v2208_v62  ;;  %v2207_v51 = vsel %vm1773_vm3, %v2205_v7, %v2206_v28  ;;  %v2215_v15 = vrot.slane %v2157_v52, 1 }
 0x24c   : > { %2234 = vrot.lane.b32.xlu0 %v2197_v33, %s3651_s8  ;;  %v2210_v49 = vrot.slane %v2154_v48, 1  ;;  %v2211_v16 = vrot.slane %v2155_v22, 1  ;;  %v2213_v47 = vrot.slane %v2156_v58, 1  ;;  %v2216_v10 = vrot.slane %v2158_v54, 1 }
 0x24d   : > { %v2136_v61 = vpop.permute.xlu0 %2135  ;;  %v2218_v33 = vrot.slane %v2159_v11, 1 }
 0x24e   : > { %v2161_v17 = vmul.f32 %v2136_v61, %v4345_v63  ;;  %v2162_v48 = vmul.f32 %v2136_v61, %v4338_v30  ;;  %v2214_v22 = vsel %vm1773_vm3, %v2211_v16, %v2213_v47  ;;  %v2212_v62 = vsel %vm1773_vm3, %v2210_v49, %v2211_v16 }
 0x24f   : > { %2240 = vrot.lane.b32.xlu1 %v2204_v6, %s3651_s8  ;;  %v2160_v6 = vmul.f32 %v2136_v61, %v4348_v27  ;;  %v2217_v61 = vsel %vm1773_vm3, %v2215_v15, %v2216_v10  ;;  %v3517_v15 = vld [vmem:[%s5571_s3 + $0x31] ss:$0 sm:$0xff] }
 0x250   : > { %2238 = vrot.lane.b32.xlu0 %v2202_v20, %s3651_s8  ;;  %v2140_v20 = vpop.permute.xlu1 %2139  ;;  %v2221_v54 = vrot.slane %v2161_v17, 1  ;;  %v2223_v11 = vrot.slane %v2162_v48, 1  ;;  %v3524_v17 = vld [vmem:[%s5571_s3 + $0x38] ss:$0 sm:$0xff]  ;;  %v3527_v48 = vld [vmem:[%s5571_s3 + $0x3b] ss:$0 sm:$0xff] }
 0x251   : > { %v2163_v7 = vmul.f32 %v2140_v20, %v4365_v59  ;;  %v2164_v28 = vmul.f32 %v2140_v20, %v4362_v0  ;;  %v2165_v58 = vmul.f32 %v2140_v20, %v4357_v18  ;;  %v2220_v52 = vrot.slane %v2160_v6, 1  ;;  %v3525_v20 = vld [vmem:[%s5571_s3 + $0x39] ss:$0 sm:$0xff] }
 0x253   : > { %2244 = vrot.lane.b32.xlu1 %v2209_v40, %s3651_s8  ;;  %v2219_v40 = vsel %vm1773_vm3, %v2216_v10, %v2218_v33  ;;  %v2225_v49 = vrot.slane %v2163_v7, 1  ;;  %v2226_v16 = vrot.slane %v2164_v28, 1  ;;  %v2228_v47 = vrot.slane %v2165_v58, 1  ;;  %v3516_v10 = vld [vmem:[%s5571_s3 + $0x30] ss:$0 sm:$0xff] }
 0x254   : > { %2242 = vrot.lane.b32.xlu0 %v2207_v51, %s3651_s8  ;;  %v2224_v51 = vsel %vm1773_vm3, %v2221_v54, %v2223_v11  ;;  %v3529_v7 = vld [vmem:[%s5571_s3 + $0x3d] ss:$0 sm:$0xff]  ;;  %v3528_v28 = vld [vmem:[%s5571_s3 + $0x3c] ss:$0 sm:$0xff]  ;;  %v3531_v58 = vld [vmem:[%s5571_s3 + $0x3f] ss:$0 sm:$0xff] }
 0x255   : > { %v2229_v6 = vsel %vm1773_vm3, %v2226_v16, %v2228_v47  ;;  %v2227_v33 = vsel %vm1773_vm3, %v2225_v49, %v2226_v16  ;;  %v3532_v11 = vld [vmem:[%s5571_s3 + $0x40] ss:$0 sm:$0xff]  ;;  %v3537_v49 = vld [vmem:[%s5571_s3 + $0x45] ss:$0 sm:$0xff]  ;;  %v3536_v16 = vld [vmem:[%s5571_s3 + $0x44] ss:$0 sm:$0xff] }
 0x256   : > { %v3539_v47 = vld [vmem:[%s5571_s3 + $0x47] ss:$0 sm:$0xff] }
 0x257   : > { %2248 = vrot.lane.b32.xlu1 %v2214_v22, %s3651_s8  ;;  %v2222_v22 = vsel %vm1773_vm3, %v2220_v52, %v2221_v54  ;;  %v3530_v52 = vld [vmem:[%s5571_s3 + $0x3e] ss:$0 sm:$0xff]  ;;  %v3533_v54 = vld [vmem:[%s5571_s3 + $0x41] ss:$0 sm:$0xff] }
 0x258   : > { %2246 = vrot.lane.b32.xlu0 %v2212_v62, %s3651_s8  ;;  %v3526_v62 = vld [vmem:[%s5571_s3 + $0x3a] ss:$0 sm:$0xff] }
 0x25b   : > { %2252 = vrot.lane.b32.xlu1 %v2219_v40, %s3651_s8  ;;  %v3535_v40 = vld [vmem:[%s5571_s3 + $0x43] ss:$0 sm:$0xff] }
 0x25c   : > { %2250 = vrot.lane.b32.xlu0 %v2217_v61, %s3651_s8  ;;  %v3534_v61 = vld [vmem:[%s5571_s3 + $0x42] ss:$0 sm:$0xff] }
 0x25f   : > { %2256 = vrot.lane.b32.xlu1 %v2224_v51, %s3651_s8  ;;  %v3538_v51 = vld [vmem:[%s5571_s3 + $0x46] ss:$0 sm:$0xff] }
 0x260   : > { %2254 = vrot.lane.b32.xlu0 %v2222_v22, %s3651_s8  ;;  %v3519_v22 = vld [vmem:[%s5571_s3 + $0x33] ss:$0 sm:$0xff] }
 0x263   : > { %2260 = vrot.lane.b32.xlu1 %v2229_v6, %s3651_s8  ;;  %v3518_v6 = vld [vmem:[%s5571_s3 + $0x32] ss:$0 sm:$0xff] }
 0x264   : > { %2258 = vrot.lane.b32.xlu0 %v2227_v33, %s3651_s8  ;;  %v3521_v33 = vld [vmem:[%s5571_s3 + $0x35] ss:$0 sm:$0xff] }
 0x267   : > { %2339 = vperm.xlu1 %3575, %v3517_v15   ;;  %v3520_v15 = vld [vmem:[%s5571_s3 + $0x34] ss:$0 sm:$0xff] }
 0x268   : > { %2335 = vperm.xlu0 %3574, %v3516_v10   ;;  %v3523_v10 = vld [vmem:[%s5571_s3 + $0x37] ss:$0 sm:$0xff] }
 0x26b   : > { %2532 = vperm.xlu1 %3575, %v3525_v20   ;;  %v3522_v20 = vld [vmem:[%s5571_s3 + $0x36] ss:$0 sm:$0xff] }
 0x26c   : > { %2528 = vperm.xlu0 %3574, %v3524_v17   ;;  %v1286_v17 = vmul.f32 %v4194_v57, %v4237_v26 }
 0x26f   : > { %2540 = vperm.xlu1 %3575, %v3527_v48   ;;  %v1285_v48 = vmul.f32 %v4194_v57, %v4240_v4 }
 0x270   : > { %2536 = vperm.xlu0 %3574, %v3526_v62   ;;  %v1288_v62 = vmul.f32 %v4186_v29, %v4254_v38 }
 0x272   : > { %v1304_v57 = vadd.f32 %v1288_v62, %v4134_v34 }
 0x273   : > { %2548 = vperm.xlu1 %3575, %v3529_v7   ;;  %v1287_v7 = vmul.f32 %v4186_v29, %v4257_v2  ;;  %v1291_v29 = vmul.f32 %v4199_v55, %v4291_v37 }
 0x274   : > { %2544 = vperm.xlu0 %3574, %v3528_v28   ;;  %v1290_v28 = vmul.f32 %v4207_v23, %v4271_v3 }
 0x277   : > { %2556 = vperm.xlu1 %3575, %v3531_v58   ;;  %v1289_v58 = vmul.f32 %v4207_v23, %v4274_v1  ;;  %v1293_v23 = vmul.f32 %v4211_v24, %v4310_v43 }
 0x278   : > { %2552 = vperm.xlu0 %3574, %v3530_v52   ;;  %v1292_v52 = vmul.f32 %v4199_v55, %v4288_v25  ;;  %v1298_v55 = vmul.f32 %v4215_v45, %v4345_v63 }
 0x27b   : > { %2756 = vperm.xlu1 %3575, %v3533_v54   ;;  %v1302_v54 = vadd.f32 %v1286_v17, %v4142_v35 }
 0x27c   : > { %2752 = vperm.xlu0 %3574, %v3532_v11   ;;  %v1301_v11 = vadd.f32 %v1285_v48, %v4142_v35  ;;  %v1730_v35 = vmul.f32 %v4387_v9, %v4247_v32 }
 0x27e   : > { %v1782_v48 = vrot.slane %v1730_v35, 1 }
 0x27f   : > { %2764 = vperm.xlu1 %3575, %v3535_v40   ;;  %v1303_v40 = vadd.f32 %v1287_v7, %v4134_v34  ;;  %v1295_v34 = vmul.f32 %v4209_v50, %v4329_v13 }
 0x280   : > { %2760 = vperm.xlu0 %3574, %v3534_v61   ;;  %v1294_v61 = vmul.f32 %v4211_v24, %v4307_v41  ;;  %v1306_v24 = vadd.f32 %v1290_v28, %v4155_v39 }
 0x281   : > { %v4789_v62 = vadd.f32 %v1295_v34, %v4160_v42  ;;  %v5658_v34 = vld [vmem:[#allocation31_spill] sm:$0xff] }
 0x283   : > { %2772 = vperm.xlu1 %3575, %v3537_v49   ;;  %v1296_v49 = vmul.f32 %v4209_v50, %v4326_v8  ;;  %v1727_v50 = vmul.f32 %v4391_v21, %v4231_v5 }
 0x284   : > { %2768 = vperm.xlu0 %3574, %v3536_v16   ;;  %v1729_v16 = vmul.f32 %v4387_v9, %v4254_v38 }
 0x286   : > { %v1780_v17 = vrot.slane %v1729_v16, 1 }
 0x287   : > { %2780 = vperm.xlu1 %3575, %v3539_v47   ;;  %v1728_v47 = vmul.f32 %v4387_v9, %v4257_v2  ;;  %v1307_v9 = vadd.f32 %v1291_v29, %v4147_v31 }
 0x288   : > { %2776 = vperm.xlu0 %3574, %v3538_v51   ;;  %v1305_v51 = vadd.f32 %v1289_v58, %v4155_v39  ;;  %v4783_v39 = vadd.f32 %v1293_v23, %v4168_v46  ;;  %v5656_v58 = vld [vmem:[#allocation17_spill] sm:$0xff] }
 0x28b   : > { %2347 = vperm.xlu1 %3575, %v3519_v22   ;;  %v1308_v22 = vadd.f32 %v1292_v52, %v4147_v31  ;;  %v5655_v31 = vld [vmem:[#allocation12_spill] sm:$0xff]  ;;  %v1470_v52 = vadd.f32 %v5656_v58, %v1302_v54  ;;  %v5660_v54 = vld [vmem:[#allocation13_spill] sm:$0xff] }
 0x28c   : > { %2343 = vperm.xlu0 %3574, %v3518_v6   ;;  %v1725_v6 = vmul.f32 %v4391_v21, %v4240_v4  ;;  %v4796_v28 = vmul.f32 %v5655_v31, %v4291_v37  ;;  %v1736_v35 = vmul.f32 %v5655_v31, %v4281_v44  ;;  %v1731_v58 = vmul.f32 %v5660_v54, %v4274_v1  ;;  %v5665_v44 = vld [vmem:[#allocation14_spill] sm:$0xff] }
 0x28d   : > { %v4826_v37 = vmul.f32 %v5665_v44, %v4329_v13  ;;  %v5671_v13 = vld [vmem:[#allocation36_spill] sm:$0xff] }
 0x28e   : > { %v1784_v59 = vrot.slane %v1731_v58, 1 }
 0x28f   : > { %2355 = vperm.xlu1 %3575, %v3521_v33   ;;  %v1726_v33 = vmul.f32 %v4391_v21, %v4237_v26  ;;  %v5654_v21 = vld [vmem:[#allocation2_spill] sm:$0xff] }
 0x290   : > { %2351 = vperm.xlu0 %3574, %v3520_v15   ;;  %v1297_v15 = vmul.f32 %v4215_v45, %v4348_v27  ;;  %v4792_v7 = vadd.f32 %v1298_v55, %v5654_v21  ;;  %v1779_v45 = vrot.slane %v1728_v47, 1  ;;  %v1638_v55 = vadd.f32 %v5658_v34, %v1470_v52  ;;  %v5659_v47 = vld [vmem:[#allocation32_spill] sm:$0xff] }
 0x291   : > { %v1775_v23 = vrot.slane %v1726_v33, 1  ;;  %v5662_v33 = vld [vmem:[#allocation20_spill] sm:$0xff] }
 0x292   : > { %v4801_v16 = vadd.f32 %v1297_v15, %v5654_v21  ;;  %v1783_v15 = vsel %vm1773_vm3, %v1780_v17, %v1782_v48  ;;  %v1789_v21 = vrot.slane %v4796_v28, 1  ;;  %v1781_v52 = vsel %vm1773_vm3, %v1779_v45, %v1780_v17 }
 0x293   : > { %2363 = vperm.xlu1 %3575, %v3523_v10   ;;  %v4780_v10 = vadd.f32 %v1294_v61, %v4168_v46  ;;  %v5657_v46 = vld [vmem:[#allocation18_spill] sm:$0xff]  ;;  %v1774_v61 = vrot.slane %v1725_v6, 1  ;;  %v1792_v48 = vrot.slane %v1736_v35, 1  ;;  %v4830_v17 = vmul.f32 %v5665_v44, %v4326_v8 }
 0x294   : > { %2359 = vperm.xlu0 %3574, %v3522_v20   ;;  %v4786_v20 = vadd.f32 %v1296_v49, %v4160_v42  ;;  %v1469_v29 = vadd.f32 %v5657_v46, %v1301_v11  ;;  %v1777_v49 = vrot.slane %v1727_v50, 1  ;;  %v1735_v42 = vmul.f32 %v5655_v31, %v4288_v25  ;;  %v5661_v11 = vld [vmem:[#allocation19_spill] sm:$0xff] }
 0x295   : > { %v1472_v6 = vadd.f32 %v5661_v11, %v1304_v57  ;;  %v1471_v50 = vadd.f32 %v5662_v33, %v1303_v40  ;;  %v1732_v46 = vmul.f32 %v5660_v54, %v4271_v3  ;;  %v1733_v31 = vmul.f32 %v5660_v54, %v4264_v53 }
 0x296   : > { %v1637_v18 = vadd.f32 %v5659_v47, %v1469_v29  ;;  %v5663_v29 = vld [vmem:[#allocation33_spill] sm:$0xff]  ;;  %v5664_v47 = vld [vmem:[#allocation34_spill] sm:$0xff]  ;;  %v1778_v57 = vsel %vm1773_vm3, %v1775_v23, %v1777_v49  ;;  %v1776_v40 = vsel %vm1773_vm3, %v1774_v61, %v1775_v23  ;;  %v1790_v11 = vrot.slane %v1735_v42, 1 }
 0x297   : > { %v1640_v34 = vadd.f32 %v5663_v29, %v1472_v6  ;;  %v1639_v0 = vadd.f32 %v5664_v47, %v1471_v50  ;;  %v1831_v33 = vadd.f32 %v1778_v57, %v1638_v55  ;;  %v4834_v45 = vmul.f32 %v5665_v44, %v4319_v56  ;;  %v5666_v49 = vld [vmem:[#allocation21_spill] sm:$0xff]  ;;  %v5667_v61 = vld [vmem:[#allocation22_spill] sm:$0xff] }
 0x298   : > { %v1830_v28 = vadd.f32 %v1776_v40, %v1637_v18  ;;  %v1474_v54 = vadd.f32 %v5666_v49, %v1306_v24  ;;  %v1473_v23 = vadd.f32 %v5667_v61, %v1305_v51  ;;  %v5668_v42 = vld [vmem:[#allocation45_spill] sm:$0xff]  ;;  %v5669_v18 = vld [vmem:[#allocation46_spill] sm:$0xff]  ;;  %v1785_v58 = vrot.slane %v1732_v46, 1  ;;  %v5670_v40 = vld [vmem:[#allocation35_spill] sm:$0xff] }
 0x299   : > { %v2055_v35 = vadd.f32 %v5668_v42, %v1831_v33  ;;  %v1787_v6 = vrot.slane %v1733_v31, 1  ;;  %v1833_v50 = vadd.f32 %v1783_v15, %v1640_v34  ;;  %v1832_v29 = vadd.f32 %v1781_v52, %v1639_v0  ;;  %v5672_v24 = vld [vmem:[#allocation15_spill] sm:$0xff]  ;;  %v5676_v34 = vld [vmem:[#allocation48_spill] sm:$0xff]  ;;  %v5677_v61 = vld [vmem:[#allocation37_spill] sm:$0xff] }
 0x29a   : > { %v2054_v55 = vadd.f32 %v5669_v18, %v1830_v28  ;;  %v1642_v8 = vadd.f32 %v5670_v40, %v1474_v54  ;;  %v1641_v25 = vadd.f32 %v5671_v13, %v1473_v23  ;;  %v1737_v51 = vmul.f32 %v5672_v24, %v4310_v43  ;;  %v5673_v33 = vld [vmem:[#allocation23_spill] sm:$0xff]  ;;  %v5674_v28 = vld [vmem:[#allocation24_spill] sm:$0xff]  ;;  %v5678_v42 = vld [vmem:[#allocation38_spill] sm:$0xff] }
 0x29b   : > { %v1476_v49 = vadd.f32 %v5673_v33, %v1308_v22  ;;  %v1475_v46 = vadd.f32 %v5674_v28, %v1307_v9  ;;  %v1793_v15 = vsel %vm1773_vm3, %v1790_v11, %v1792_v48  ;;  %v1738_v0 = vmul.f32 %v5672_v24, %v4307_v41  ;;  %v5675_v13 = vld [vmem:[#allocation47_spill] sm:$0xff]  ;;  %v5681_v28 = vld [vmem:[#allocation49_spill] sm:$0xff] }
 0x29c   : > { %v1739_v31 = vmul.f32 %v5672_v24, %v4300_v36  ;;  %v2057_v52 = vadd.f32 %v5675_v13, %v1833_v50  ;;  %v2056_v54 = vadd.f32 %v5676_v34, %v1832_v29  ;;  %v1788_v22 = vsel %vm1773_vm3, %v1785_v58, %v1787_v6 }
 0x29d   : > { %v1644_v23 = vadd.f32 %v5677_v61, %v1476_v49  ;;  %v1786_v9 = vsel %vm1773_vm3, %v1784_v59, %v1785_v58  ;;  %v1799_v50 = vrot.slane %v4826_v37, 1  ;;  %v1800_v29 = vrot.slane %v4830_v17, 1  ;;  %v5679_v49 = vld [vmem:[#allocation25_spill] sm:$0xff]  ;;  %v5680_v59 = vld [vmem:[#allocation26_spill] sm:$0xff]  ;;  %v5683_v17 = vld [vmem:[#allocation39_spill] sm:$0xff] }
 0x29e   : > { %v1794_v24 = vrot.slane %v1737_v51, 1  ;;  %v1791_v33 = vsel %vm1773_vm3, %v1789_v21, %v1790_v11  ;;  %v1478_v6 = vadd.f32 %v5679_v49, %v4780_v10  ;;  %v1477_v58 = vadd.f32 %v5680_v59, %v4783_v39 }
 0x29f   : > { %v1795_v13 = vrot.slane %v1738_v0, 1  ;;  %v1837_v34 = vadd.f32 %v1793_v15, %v1644_v23  ;;  %v1802_v39 = vrot.slane %v4834_v45, 1  ;;  %v5686_v0 = vld [vmem:[#allocation27_spill] sm:$0xff]  ;;  %v5687_v15 = vld [vmem:[#allocation28_spill] sm:$0xff]  ;;  %v5690_v45 = vld [vmem:[#allocation41_spill] sm:$0xff] }
 0x2a0   : > { %v1646_v51 = vadd.f32 %v5683_v17, %v1478_v6  ;;  %v1479_v23 = vadd.f32 %v5687_v15, %v4789_v62  ;;  %v5691_v6 = vld [vmem:[#allocation42_spill] sm:$0xff]  ;;  %v5692_v17 = vld [vmem:[#allocation29_spill] sm:$0xff] }
 0x2a2   : > { %v1647_v59 = vadd.f32 %v5691_v6, %v1479_v23 }
 0x2b9   : > { %v2233_v47 = vpop.permute.xlu1 %2232 }
 0x2ba   : > { %v2231_v57 = vpop.permute.xlu0 %2230  ;;  %v4842_v44 = vadd.f32 %v2233_v47, %v2055_v35  ;;  %v1643_v35 = vadd.f32 %v5678_v42, %v1475_v46  ;;  %v1834_v47 = vadd.f32 %v1786_v9, %v1641_v25  ;;  %v5682_v25 = vld [vmem:[#allocation50_spill] sm:$0xff]  ;;  %v5684_v42 = vld [vmem:[#allocation40_spill] sm:$0xff] }
 0x2bb   : > { %v4844_v56 = vadd.f32 %v2231_v57, %v2054_v55  ;;  %v1835_v55 = vadd.f32 %v1788_v22, %v1642_v8  ;;  %v1645_v21 = vadd.f32 %v5684_v42, %v1477_v58  ;;  %v5685_v22 = vld [vmem:[#allocation16_spill] sm:$0xff]  ;;  %v1482_v42 = vadd.f32 %v5692_v17, %v4792_v7 }
 0x2bc   : > { %v2058_v46 = vadd.f32 %v5682_v25, %v1834_v47  ;;  %v1743_v9 = vmul.f32 %v5685_v22, %v4348_v27  ;;  %v5689_v47 = vld [vmem:[#allocation52_spill] sm:$0xff] }
 0x2bd   : > { %v2237_v18 = vpop.permute.xlu1 %2236  ;;  %v2059_v8 = vadd.f32 %v5681_v28, %v1835_v55 }
 0x2be   : > { %v2235_v48 = vpop.permute.xlu0 %2234  ;;  %v4861_v57 = vadd.f32 %v2237_v18, %v2057_v52  ;;  %v1797_v52 = vrot.slane %v1739_v31, 1  ;;  %v1480_v31 = vadd.f32 %v5686_v0, %v4786_v20  ;;  %v1745_v18 = vmul.f32 %v5685_v22, %v4338_v30  ;;  %v5695_v0 = vld [vmem:[#allocation54_spill] sm:$0xff] }
 0x2bf   : > { %v4863_v40 = vadd.f32 %v2235_v48, %v2056_v54  ;;  %v1836_v54 = vadd.f32 %v1791_v33, %v1643_v35  ;;  %v1744_v35 = vmul.f32 %v5685_v22, %v4345_v63  ;;  %v5688_v48 = vld [vmem:[#allocation51_spill] sm:$0xff]  ;;  %v1796_v20 = vsel %vm1773_vm3, %v1794_v24, %v1795_v13  ;;  %v5694_v24 = vld [vmem:[#allocation53_spill] sm:$0xff] }
 0x2c0   : > { %v2061_v55 = vadd.f32 %v5688_v48, %v1837_v34  ;;  %v1648_v49 = vadd.f32 %v5690_v45, %v1480_v31  ;;  %v1798_v58 = vsel %vm1773_vm3, %v1795_v13, %v1797_v52  ;;  %v1838_v25 = vadd.f32 %v1796_v20, %v1645_v21  ;;  %v5693_v52 = vld [vmem:[#allocation30_spill] sm:$0xff]  ;;  %v5699_v45 = vld [vmem:[#allocation56_spill] sm:$0xff] }
 0x2c1   : > { %v2241_v37 = vpop.permute.xlu1 %2240  ;;  %v2060_v33 = vadd.f32 %v5689_v47, %v1836_v54  ;;  %v1803_v34 = vsel %vm1773_vm3, %v1800_v29, %v1802_v39  ;;  %v1801_v54 = vsel %vm1773_vm3, %v1799_v50, %v1800_v29  ;;  %v1481_v22 = vadd.f32 %v5693_v52, %v4801_v16  ;;  %v5697_v47 = vld [vmem:[#allocation44_spill] sm:$0xff] }
 0x2c2   : > { %v2239_v61 = vpop.permute.xlu0 %2238  ;;  %v4876_v11 = vadd.f32 %v2241_v37, %v2059_v8  ;;  %v1839_v8 = vadd.f32 %v1798_v58, %v1646_v51  ;;  %v2062_v51 = vadd.f32 %v5695_v0, %v1838_v25  ;;  %v1805_v21 = vrot.slane %v1744_v35, 1 }
 0x2c3   : > { %v4878_v10 = vadd.f32 %v2239_v61, %v2058_v46  ;;  %v1804_v61 = vrot.slane %v1743_v9, 1  ;;  %v1807_v31 = vrot.slane %v1745_v18, 1  ;;  %v1841_v15 = vadd.f32 %v1803_v34, %v1648_v49 }
 0x2c4   : > { %v2063_v13 = vadd.f32 %v5694_v24, %v1839_v8  ;;  %v1840_v23 = vadd.f32 %v1801_v54, %v1647_v59  ;;  %v1649_v50 = vadd.f32 %v5697_v47, %v1481_v22 }
 0x2c5   : > { %v2245_v28 = vpop.permute.xlu1 %2244  ;;  %v1808_v58 = vsel %vm1773_vm3, %v1805_v21, %v1807_v31  ;;  %v1806_v35 = vsel %vm1773_vm3, %v1804_v61, %v1805_v21 }
 0x2c6   : > { %v2243_v62 = vpop.permute.xlu0 %2242  ;;  %v4897_v46 = vadd.f32 %v2245_v28, %v2061_v55  ;;  %v5696_v55 = vld [vmem:[#allocation43_spill] sm:$0xff]  ;;  %v2064_v6 = vadd.f32 %v5699_v45, %v1840_v23  ;;  %v1842_v20 = vadd.f32 %v1806_v35, %v1649_v50 }
 0x2c7   : > { %v4899_v37 = vadd.f32 %v2243_v62, %v2060_v33  ;;  %v1650_v39 = vadd.f32 %v5696_v55, %v1482_v42  ;;  %v5698_v33 = vld [vmem:[#allocation55_spill] sm:$0xff] }
 0x2c8   : > { %v2065_v16 = vadd.f32 %v5698_v33, %v1841_v15  ;;  %v2066_v25 = vadd.f32 %v4595_v14, %v1842_v20 }
 0x2c9   : > { %v2249_v48 = vpop.permute.xlu1 %2248  ;;  %v1843_v59 = vadd.f32 %v1808_v58, %v1650_v39 }
 0x2ca   : > { %v2247_v9 = vpop.permute.xlu0 %2246  ;;  %v4911_v29 = vadd.f32 %v2249_v48, %v2063_v13 }
 0x2cb   : > { %v4913_v7 = vadd.f32 %v2247_v9, %v2062_v51  ;;  %v2067_v8 = vadd.f32 %v4593_v60, %v1843_v59 }
 0x2cd   : > { %v2253_v18 = vpop.permute.xlu1 %2252 }
 0x2ce   : > { %v2251_v49 = vpop.permute.xlu0 %2250  ;;  %v4919_v28 = vadd.f32 %v2253_v18, %v2065_v16 }
 0x2cf   : > { %v4921_v62 = vadd.f32 %v2251_v49, %v2064_v6 }
 0x2d1   : > { %5700 = vst [vmem:[#allocation2_spill] sm:$0xff] %v4921_v62  ;;  %v2257_v34 = vpop.permute.xlu1 %2256 }
 0x2d2   : > { %v2255_v54 = vpop.permute.xlu0 %2254  ;;  %v4925_v17 = vadd.f32 %v2257_v34, %v2067_v8 }
 0x2d3   : > { %v4927_v42 = vadd.f32 %v2255_v54, %v2066_v25 }
 0x2d4   : > { %5701 = vst [vmem:[#allocation12_spill] sm:$0xff] %v4925_v17 }
 0x2d5   : > { %5702 = vst [vmem:[#allocation17_spill] sm:$0xff] %v4927_v42  ;;  %v2261_v52 = vpop.permute.xlu1 %2260 }
 0x2d6   : > { %v2259_v61 = vpop.permute.xlu0 %2258  ;;  %v4930_v22 = vadd.f32 %v2261_v52, %v4599_v12 }
 0x2d7   : > { %v4933_v24 = vadd.f32 %v2259_v61, %v4601_v19 }
 0x2d8   : > { %5703 = vst [vmem:[#allocation18_spill] sm:$0xff] %v4930_v22 }
 0x2d9   : > { %5704 = vst [vmem:[#allocation31_spill] sm:$0xff] %v4933_v24 }
 0x2e2   : > { %v4935_v13 = vpop.permute.xlu1 %2339 }
 0x2e3   : > { %v2336_v0 = vpop.permute.xlu0 %2335 }
 0x2e4   : > { %v2366_v60 = vmul.f32 %v2336_v0, %v4240_v4  ;;  %v2367_v14 = vmul.f32 %v2336_v0, %v4237_v26  ;;  %v2368_v51 = vmul.f32 %v2336_v0, %v4231_v5 }
 0x2e6   : > { %v2415_v21 = vrot.slane %v2366_v60, 2  ;;  %v2416_v31 = vrot.slane %v2367_v14, 2  ;;  %v2418_v15 = vrot.slane %v2368_v51, 2  ;;  %v2533_v23 = vpop.permute.xlu1 %2532  ;;  %v5708_v14 = vld [vmem:[#allocation5_spill] sm:$0xff] }
 0x2e7   : > { %v2529_v48 = vpop.permute.xlu0 %2528  ;;  %v2562_v12 = vmul.f32 %v2533_v23, %v4257_v2  ;;  %v2563_v19 = vmul.f32 %v2533_v23, %v4254_v38  ;;  %v2564_v9 = vmul.f32 %v2533_v23, %v4247_v32 }
 0x2e8   : > { %v2559_v55 = vmul.f32 %v2529_v48, %v4240_v4  ;;  %v2560_v39 = vmul.f32 %v2529_v48, %v4237_v26  ;;  %v2561_v47 = vmul.f32 %v2529_v48, %v4231_v5  ;;  %v2419_v50 = vsel %vm2414_vm4, %v2416_v31, %v2418_v15 }
 0x2e9   : > { %v2417_v33 = vsel %vm2414_vm4, %v2415_v21, %v2416_v31  ;;  %v4949_v18 = vadd.f32 %v2419_v50, %v4842_v44  ;;  %v2612_v59 = vrot.slane %v2562_v12, 2  ;;  %v2613_v20 = vrot.slane %v2563_v19, 2  ;;  %v5707_v44 = vld [vmem:[#allocation4_spill] sm:$0xff]  ;;  %v5709_v21 = vld [vmem:[#allocation3_spill] sm:$0xff] }
 0x2ea   : > { %v2607_v16 = vrot.slane %v2559_v55, 2  ;;  %v2608_v45 = vrot.slane %v2560_v39, 2  ;;  %v2610_v6 = vrot.slane %v2561_v47, 2  ;;  %v2541_v58 = vpop.permute.xlu1 %2540  ;;  %v4952_v49 = vadd.f32 %v2417_v33, %v4844_v56 }
 0x2eb   : > { %v2537_v35 = vpop.permute.xlu0 %2536  ;;  %5705 = vst [vmem:[#allocation32_spill] sm:$0xff] %v4949_v18  ;;  %v2615_v8 = vrot.slane %v2564_v9, 2  ;;  %v2569_v56 = vmul.f32 %v2541_v58, %v5707_v44  ;;  %v2568_v51 = vmul.f32 %v2541_v58, %v5708_v14  ;;  %v2570_v31 = vmul.f32 %v2541_v58, %v5709_v21 }
 0x2ec   : > { %5706 = vst [vmem:[#allocation13_spill] sm:$0xff] %v4952_v49  ;;  %v2565_v25 = vmul.f32 %v2537_v35, %v4274_v1  ;;  %v2566_v34 = vmul.f32 %v2537_v35, %v4271_v3  ;;  %v2567_v54 = vmul.f32 %v2537_v35, %v4264_v53  ;;  %v2611_v52 = vsel %vm2414_vm4, %v2608_v45, %v2610_v6 }
 0x2ed   : > { %v2609_v61 = vsel %vm2414_vm4, %v2607_v16, %v2608_v45  ;;  %2649 = vrot.lane.b32.xlu1 %v2611_v52, %s3650_s7  ;;  %v2616_v12 = vsel %vm2414_vm4, %v2613_v20, %v2615_v8  ;;  %v2614_v19 = vsel %vm2414_vm4, %v2612_v59, %v2613_v20  ;;  %v2623_v9 = vrot.slane %v2569_v56, 2  ;;  %v5710_v20 = vld [vmem:[#allocation8_spill] sm:$0xff]  ;;  %v5712_v52 = vld [vmem:[#allocation6_spill] sm:$0xff] }
 0x2ee   : > { %2647 = vrot.lane.b32.xlu0 %v2609_v61, %s3650_s7  ;;  %v2549_v0 = vpop.permute.xlu1 %2548  ;;  %v2617_v15 = vrot.slane %v2565_v25, 2  ;;  %v2618_v23 = vrot.slane %v2566_v34, 2  ;;  %v2620_v48 = vrot.slane %v2567_v54, 2  ;;  %v2625_v47 = vrot.slane %v2570_v31, 2  ;;  %v5711_v34 = vld [vmem:[#allocation7_spill] sm:$0xff] }
 0x2ef   : > { %v2545_v60 = vpop.permute.xlu0 %2544  ;;  %v2622_v45 = vrot.slane %v2568_v51, 2  ;;  %v4975_v35 = vmul.f32 %v4935_v13, %v4257_v2  ;;  %v4979_v59 = vmul.f32 %v4935_v13, %v4254_v38  ;;  %v2574_v8 = vmul.f32 %v2549_v0, %v5710_v20 }
 0x2f0   : > { %v2571_v50 = vmul.f32 %v2545_v60, %v4310_v43  ;;  %v2572_v33 = vmul.f32 %v2545_v60, %v4307_v41  ;;  %v2573_v16 = vmul.f32 %v2545_v60, %v4300_v36  ;;  %v2621_v6 = vsel %vm2414_vm4, %v2618_v23, %v2620_v48  ;;  %v5713_v48 = vld [vmem:[#allocation11_spill] sm:$0xff] }
 0x2f1   : > { %2653 = vrot.lane.b32.xlu1 %v2616_v12, %s3650_s7  ;;  %v2619_v58 = vsel %vm2414_vm4, %v2617_v15, %v2618_v23  ;;  %v4986_v25 = vmul.f32 %v4935_v13, %v4247_v32  ;;  %v2575_v54 = vmul.f32 %v2549_v0, %v5711_v34  ;;  %v2576_v61 = vmul.f32 %v2549_v0, %v5712_v52 }
 0x2f2   : > { %2651 = vrot.lane.b32.xlu0 %v2614_v19, %s3650_s7  ;;  %v2557_v55 = vpop.permute.xlu1 %2556  ;;  %v2627_v51 = vrot.slane %v2571_v50, 2  ;;  %v2628_v31 = vrot.slane %v2572_v33, 2  ;;  %v2630_v15 = vrot.slane %v2573_v16, 2  ;;  %v2626_v23 = vsel %vm2414_vm4, %v2623_v9, %v2625_v47  ;;  %v5714_v19 = vld [vmem:[#allocation10_spill] sm:$0xff] }
 0x2f3   : > { %v2553_v39 = vpop.permute.xlu0 %2552  ;;  %v2580_v12 = vmul.f32 %v2557_v55, %v5713_v48  ;;  %v2624_v13 = vsel %vm2414_vm4, %v2622_v45, %v2623_v9  ;;  %v2632_v0 = vrot.slane %v2574_v8, 2  ;;  %v2633_v47 = vrot.slane %v2575_v54, 2 }
 0x2f4   : > { %v2577_v22 = vmul.f32 %v2553_v39, %v4348_v27  ;;  %v2635_v50 = vrot.slane %v2576_v61, 2  ;;  %v2578_v33 = vmul.f32 %v2553_v39, %v4345_v63  ;;  %v2579_v16 = vmul.f32 %v2553_v39, %v4338_v30 }
 0x2f5   : > { %2657 = vrot.lane.b32.xlu1 %v2621_v6, %s3650_s7  ;;  %v2581_v6 = vmul.f32 %v2557_v55, %v5714_v19  ;;  %v2631_v18 = vsel %vm2414_vm4, %v2628_v31, %v2630_v15  ;;  %v2642_v24 = vrot.slane %v2580_v12, 2  ;;  %v2629_v54 = vsel %vm2414_vm4, %v2627_v51, %v2628_v31 }
 0x2f6   : > { %2655 = vrot.lane.b32.xlu0 %v2619_v58, %s3650_s7  ;;  %v2757_v56 = vpop.permute.xlu1 %2756  ;;  %v5715_v58 = vld [vmem:[#allocation9_spill] sm:$0xff]  ;;  %v2637_v61 = vrot.slane %v2577_v22, 2  ;;  %v2636_v15 = vsel %vm2414_vm4, %v2633_v47, %v2635_v50 }
 0x2f7   : > { %v2753_v60 = vpop.permute.xlu0 %2752  ;;  %v2582_v49 = vmul.f32 %v2557_v55, %v5715_v58  ;;  %v2787_v39 = vmul.f32 %v2757_v56, %v4254_v38  ;;  %v2788_v62 = vmul.f32 %v2757_v56, %v4247_v32 }
 0x2f8   : > { %v2783_v9 = vmul.f32 %v2753_v60, %v4240_v4  ;;  %v2784_v45 = vmul.f32 %v2753_v60, %v4237_v26  ;;  %v2785_v8 = vmul.f32 %v2753_v60, %v4231_v5  ;;  %v2638_v26 = vrot.slane %v2578_v33, 2 }
 0x2f9   : > { %2661 = vrot.lane.b32.xlu1 %v2626_v23, %s3650_s7  ;;  %v2643_v23 = vrot.slane %v2581_v6, 2  ;;  %v2645_v17 = vrot.slane %v2582_v49, 2  ;;  %v2640_v5 = vrot.slane %v2579_v16, 2  ;;  %v2634_v49 = vsel %vm2414_vm4, %v2632_v0, %v2633_v47 }
 0x2fa   : > { %2659 = vrot.lane.b32.xlu0 %v2624_v13, %s3650_s7  ;;  %v2765_v55 = vpop.permute.xlu1 %2764  ;;  %v2786_v13 = vmul.f32 %v2757_v56, %v4257_v2  ;;  %v2831_v51 = vrot.slane %v2783_v9, 2  ;;  %v2832_v22 = vrot.slane %v2784_v45, 2  ;;  %v2834_v31 = vrot.slane %v2785_v8, 2 }
 0x2fb   : > { %v2761_v42 = vpop.permute.xlu0 %2760  ;;  %v5015_v2 = vmul.f32 %v2765_v55, %v5708_v14  ;;  %v5018_v32 = vmul.f32 %v2765_v55, %v5707_v44  ;;  %v5021_v38 = vmul.f32 %v2765_v55, %v5709_v21  ;;  %v2837_v6 = vrot.slane %v2787_v39, 2 }
 0x2fc   : > { %v2791_v56 = vmul.f32 %v2761_v42, %v4264_v53  ;;  %v2836_v12 = vrot.slane %v2786_v13, 2  ;;  %v2839_v50 = vrot.slane %v2788_v62, 2  ;;  %v2789_v0 = vmul.f32 %v2761_v42, %v4274_v1 }
 0x2fd   : > { %2665 = vrot.lane.b32.xlu1 %v2631_v18, %s3650_s7  ;;  %v2790_v18 = vmul.f32 %v2761_v42, %v4271_v3  ;;  %v2423_v47 = vrot.slane %v4986_v25, 2  ;;  %v2641_v55 = vsel %vm2414_vm4, %v2638_v26, %v2640_v5  ;;  %v2639_v9 = vsel %vm2414_vm4, %v2637_v61, %v2638_v26 }
 0x2fe   : > { %2663 = vrot.lane.b32.xlu0 %v2629_v54, %s3650_s7  ;;  %v2773_v4 = vpop.permute.xlu1 %2772  ;;  %v2646_v45 = vsel %vm2414_vm4, %v2643_v23, %v2645_v17  ;;  %v2644_v42 = vsel %vm2414_vm4, %v2642_v24, %v2643_v23  ;;  %v2835_v8 = vsel %vm2414_vm4, %v2832_v22, %v2834_v31  ;;  %v2833_v54 = vsel %vm2414_vm4, %v2831_v51, %v2832_v22 }
 0x2ff   : > { %v2769_v60 = vpop.permute.xlu0 %2768  ;;  %v2849_v13 = vrot.slane %v5021_v38, 2  ;;  %v2842_v39 = vrot.slane %v2790_v18, 2  ;;  %v2840_v17 = vsel %vm2414_vm4, %v2837_v6, %v2839_v50  ;;  %v2838_v24 = vsel %vm2414_vm4, %v2836_v12, %v2837_v6 }
 0x300   : > { %v5043_v5 = vmul.f32 %v2769_v60, %v4310_v43  ;;  %v5050_v23 = vmul.f32 %v2773_v4, %v5710_v20  ;;  %v5053_v61 = vmul.f32 %v2773_v4, %v5711_v34  ;;  %v5056_v26 = vmul.f32 %v2773_v4, %v5712_v52 }
 0x301   : > { %2669 = vrot.lane.b32.xlu1 %v2636_v15, %s3650_s7  ;;  %v2844_v15 = vrot.slane %v2791_v56, 2  ;;  %v5059_v51 = vmul.f32 %v2769_v60, %v4307_v41  ;;  %v5066_v50 = vmul.f32 %v2769_v60, %v4300_v36 }
 0x302   : > { %2667 = vrot.lane.b32.xlu0 %v2634_v49, %s3650_s7  ;;  %v5029_v33 = vpop.permute.xlu1 %2780  ;;  %v2841_v49 = vrot.slane %v2789_v0, 2  ;;  %v2856_v38 = vrot.slane %v5050_v23, 2 }
 0x303   : > { %v5031_v16 = vpop.permute.xlu0 %2776  ;;  %v2804_v23 = vmul.f32 %v5029_v33, %v5713_v48 }
 0x305   : > { %2673 = vrot.lane.b32.xlu1 %v2641_v55, %s3650_s7  ;;  %v2845_v55 = vsel %vm2414_vm4, %v2842_v39, %v2844_v15 }
 0x306   : > { %2671 = vrot.lane.b32.xlu0 %v2639_v9, %s3650_s7  ;;  %v2348_v22 = vpop.permute.xlu1 %2347  ;;  %v2851_v9 = vrot.slane %v5043_v5, 2 }
 0x307   : > { %v2344_v31 = vpop.permute.xlu0 %2343  ;;  %v2375_v18 = vmul.f32 %v2348_v22, %v5708_v14  ;;  %v2376_v56 = vmul.f32 %v2348_v22, %v5707_v44  ;;  %v2377_v12 = vmul.f32 %v2348_v22, %v5709_v21  ;;  %v2843_v44 = vsel %vm2414_vm4, %v2841_v49, %v2842_v39 }
 0x308   : > { %v2372_v6 = vmul.f32 %v2344_v31, %v4274_v1  ;;  %v2373_v0 = vmul.f32 %v2344_v31, %v4271_v3  ;;  %v2374_v4 = vmul.f32 %v2344_v31, %v4264_v53  ;;  %v5716_v39 = vrot.slane %v4979_v59, 2 }
 0x309   : > { %v2430_v62 = vrot.slane %v2375_v18, 2  ;;  %v2431_v25 = vrot.slane %v2376_v56, 2  ;;  %2677 = vrot.lane.b32.xlu1 %v2646_v45, %s3650_s7  ;;  %v2433_v1 = vrot.slane %v2377_v12, 2  ;;  %v5718_v12 = vrot.slane %v4975_v35, 2 }
 0x30a   : > { %2675 = vrot.lane.b32.xlu0 %v2644_v42, %s3650_s7  ;;  %v2425_v14 = vrot.slane %v2372_v6, 2  ;;  %v2426_v21 = vrot.slane %v2373_v0, 2  ;;  %v2428_v60 = vrot.slane %v2374_v4, 2  ;;  %v2356_v22 = vpop.permute.xlu1 %2355  ;;  %v2424_v49 = vsel %vm2414_vm4, %v5716_v39, %v2423_v47  ;;  %s3560_s7 = sshll.u32 %s3896_s17, 7 }
 0x30b   : > { %v2352_v3 = vpop.permute.xlu0 %2351  ;;  %v2381_v53 = vmul.f32 %v2356_v22, %v5710_v20  ;;  %v2382_v15 = vmul.f32 %v2356_v22, %v5711_v34  ;;  %v2383_v31 = vmul.f32 %v2356_v22, %v5712_v52  ;;  %v5717_v56 = vmov %v5716_v39  ;;  %s5268_s16 = scalar_lea.vmem %s5573_s5, %s3560_s7 }
 0x30c   : > { %v2378_v18 = vmul.f32 %v2352_v3, %v4310_v43  ;;  %v2379_v45 = vmul.f32 %v2352_v3, %v4307_v41  ;;  %v2380_v42 = vmul.f32 %v2352_v3, %v4300_v36  ;;  %v2422_v20 = vsel %vm2414_vm4, %v5718_v12, %v5717_v56 }
 0x30d   : > { %v2440_v6 = vrot.slane %v2381_v53, 2  ;;  %v2441_v34 = vrot.slane %v2382_v15, 2  ;;  %v2443_v0 = vrot.slane %v2383_v31, 2  ;;  %2873 = vrot.lane.b32.xlu1 %v2835_v8, %s3651_s8  ;;  %v5092_v47 = vadd.f32 %v2424_v49, %v4861_v57 }
 0x30e   : > { %v2435_v52 = vrot.slane %v2378_v18, 2  ;;  %2871 = vrot.lane.b32.xlu0 %v2833_v54, %s3651_s8  ;;  %v2436_v41 = vrot.slane %v2379_v45, 2  ;;  %v2438_v36 = vrot.slane %v2380_v42, 2  ;;  %v2364_v43 = vpop.permute.xlu1 %2363  ;;  %v5095_v59 = vadd.f32 %v2422_v20, %v4863_v40 }
 0x30f   : > { %v2360_v4 = vpop.permute.xlu0 %2359  ;;  %v2387_v35 = vmul.f32 %v2364_v43, %v5713_v48  ;;  %v2388_v22 = vmul.f32 %v2364_v43, %v5714_v19  ;;  %v2389_v3 = vmul.f32 %v2364_v43, %v5715_v58  ;;  %v2429_v15 = vsel %vm2414_vm4, %v2426_v21, %v2428_v60 }
 0x310   : > { %v2384_v8 = vmul.f32 %v2360_v4, %v4348_v27  ;;  %v2385_v54 = vmul.f32 %v2360_v4, %v4345_v63  ;;  %v2386_v53 = vmul.f32 %v2360_v4, %v4338_v30  ;;  %v2427_v57 = vsel %vm2414_vm4, %v2425_v14, %v2426_v21 }
 0x311   : > { %v2450_v31 = vrot.slane %v2387_v35, 2  ;;  %v2451_v18 = vrot.slane %v2388_v22, 2  ;;  %v2453_v40 = vrot.slane %v2389_v3, 2  ;;  %2877 = vrot.lane.b32.xlu1 %v2840_v17, %s3651_s8  ;;  %v5108_v49 = vadd.f32 %v2429_v15, %v4876_v11  ;;  %v5726_v22 = vld [vmem:[#allocation31_spill] sm:$0xff] }
 0x312   : > { %v2445_v45 = vrot.slane %v2384_v8, 2  ;;  %2875 = vrot.lane.b32.xlu0 %v2838_v24, %s3651_s8  ;;  %v2446_v42 = vrot.slane %v2385_v54, 2  ;;  %v2448_v39 = vrot.slane %v2386_v53, 2  ;;  %v5111_v56 = vadd.f32 %v2427_v57, %v4878_v10 }
 0x313   : > { %v2434_v60 = vsel %vm2414_vm4, %v2431_v25, %v2433_v1  ;;  %v2432_v14 = vsel %vm2414_vm4, %v2430_v62, %v2431_v25  ;;  %v2439_v21 = vsel %vm2414_vm4, %v2436_v41, %v2438_v36  ;;  %v2437_v12 = vsel %vm2414_vm4, %v2435_v52, %v2436_v41 }
 0x314   : > { %v5118_v17 = vadd.f32 %v2434_v60, %v4897_v46  ;;  %v5121_v24 = vadd.f32 %v2432_v14, %v4899_v37  ;;  %v5124_v11 = vadd.f32 %v2439_v21, %v4911_v29  ;;  %v5127_v10 = vadd.f32 %v2437_v12, %v4913_v7  ;;  %v5719_v29 = vld [vmem:[#allocation2_spill] sm:$0xff]  ;;  %v5720_v7 = vld [vmem:[#allocation12_spill] sm:$0xff] }
 0x315   : > { %v2852_v1 = vrot.slane %v5059_v51, 2  ;;  %2881 = vrot.lane.b32.xlu1 %v2845_v55, %s3651_s8  ;;  %v2444_v62 = vsel %vm2414_vm4, %v2441_v34, %v2443_v0  ;;  %v2442_v46 = vsel %vm2414_vm4, %v2440_v6, %v2441_v34  ;;  %v2449_v25 = vsel %vm2414_vm4, %v2446_v42, %v2448_v39 }
 0x316   : > { %2879 = vrot.lane.b32.xlu0 %v2843_v44, %s3651_s8  ;;  %v5136_v37 = vadd.f32 %v2444_v62, %v4919_v28  ;;  %v5139_v20 = vadd.f32 %v2442_v46, %v5719_v29  ;;  %v5142_v52 = vadd.f32 %v2449_v25, %v5720_v7  ;;  %v2447_v51 = vsel %vm2414_vm4, %v2445_v45, %v2446_v42  ;;  %v5721_v44 = vld [vmem:[#allocation17_spill] sm:$0xff] }
 0x317   : > { %v2854_v55 = vrot.slane %v5066_v50, 2  ;;  %v5147_v41 = vadd.f32 %v2447_v51, %v5721_v44  ;;  %v2454_v6 = vsel %vm2414_vm4, %v2451_v18, %v2453_v40  ;;  %v2452_v34 = vsel %vm2414_vm4, %v2450_v31, %v2451_v18  ;;  %v5725_v50 = vld [vmem:[#allocation18_spill] sm:$0xff] }
 0x318   : > { %v5722_v28 = vrot.slane %v5018_v32, 2  ;;  %v5724_v43 = vrot.slane %v5015_v2, 2  ;;  %v5162_v35 = vadd.f32 %v2454_v6, %v5725_v50  ;;  %v5165_v3 = vadd.f32 %v2452_v34, %v5726_v22  ;;  %v5728_v6 = vld [vmem:[#allocation13_spill] sm:$0xff] }
 0x319   : > { %v2859_v32 = vrot.slane %v5056_v26, 2  ;;  %v2801_v2 = vmul.f32 %v5031_v16, %v4348_v27  ;;  %v2802_v8 = vmul.f32 %v5031_v16, %v4345_v63  ;;  %v2803_v54 = vmul.f32 %v5031_v16, %v4338_v30 }
 0x31a   : > { %v2850_v0 = vsel %vm2414_vm4, %v5722_v28, %v2849_v13  ;;  %v5723_v36 = vmov %v5722_v28  ;;  %v2857_v13 = vrot.slane %v5053_v61, 2  ;;  %v2855_v53 = vsel %vm2414_vm4, %v2852_v1, %v2854_v55  ;;  %v5727_v55 = vld [vmem:[#allocation32_spill] sm:$0xff] }
 0x31b   : > { %v2848_v4 = vsel %vm2414_vm4, %v5724_v43, %v5723_v36  ;;  %2885 = vrot.lane.b32.xlu1 %v2850_v0, %s3651_s8  ;;  %v2853_v15 = vsel %vm2414_vm4, %v2851_v9, %v2852_v1  ;;  %v2805_v27 = vmul.f32 %v5029_v33, %v5714_v19  ;;  %v2806_v63 = vmul.f32 %v5029_v33, %v5715_v58 }
 0x31c   : > { %2883 = vrot.lane.b32.xlu0 %v2848_v4, %s3651_s8  ;;  %v2861_v30 = vrot.slane %v2801_v2, 2  ;;  %v2862_v16 = vrot.slane %v2802_v8, 2  ;;  %v2864_v61 = vrot.slane %v2803_v54, 2  ;;  %v2860_v5 = vsel %vm2414_vm4, %v2857_v13, %v2859_v32 }
 0x31d   : > { %v2858_v26 = vsel %vm2414_vm4, %v2856_v38, %v2857_v13  ;;  %v2866_v9 = vrot.slane %v2804_v23, 2  ;;  %v2867_v57 = vrot.slane %v2805_v27, 2  ;;  %v2869_v48 = vrot.slane %v2806_v63, 2 }
 0x31e   : > { %v2865_v31 = vsel %vm2414_vm4, %v2862_v16, %v2864_v61  ;;  %v2863_v19 = vsel %vm2414_vm4, %v2861_v30, %v2862_v16 }
 0x31f   : > { %2889 = vrot.lane.b32.xlu1 %v2855_v53, %s3651_s8  ;;  %v2870_v58 = vsel %vm2414_vm4, %v2867_v57, %v2869_v48  ;;  %v2868_v33 = vsel %vm2414_vm4, %v2866_v9, %v2867_v57 }
 0x320   : > { %2887 = vrot.lane.b32.xlu0 %v2853_v15, %s3651_s8 }
 0x323   : > { %2893 = vrot.lane.b32.xlu1 %v2860_v5, %s3651_s8 }
 0x324   : > { %2891 = vrot.lane.b32.xlu0 %v2858_v26, %s3651_s8 }
 0x327   : > { %2897 = vrot.lane.b32.xlu1 %v2865_v31, %s3651_s8 }
 0x328   : > { %2895 = vrot.lane.b32.xlu0 %v2863_v19, %s3651_s8 }
 0x32b   : > { %2901 = vrot.lane.b32.xlu1 %v2870_v58, %s3651_s8 }
 0x32c   : > { %2899 = vrot.lane.b32.xlu0 %v2868_v33, %s3651_s8 }
 0x35f   : > { %v2650_v18 = vpop.permute.xlu1 %2649 }
 0x360   : > { %v2648_v40 = vpop.permute.xlu0 %2647  ;;  %v2696_v44 = vadd.f32 %v2650_v18, %v5727_v55 }
 0x361   : > { %v2695_v34 = vadd.f32 %v2648_v40, %v5728_v6 }
 0x363   : > { %v2654_v45 = vpop.permute.xlu1 %2653 }
 0x364   : > { %v2652_v42 = vpop.permute.xlu0 %2651  ;;  %v2698_v4 = vadd.f32 %v2654_v45, %v5092_v47 }
 0x365   : > { %v2697_v50 = vadd.f32 %v2652_v42, %v5095_v59 }
 0x367   : > { %v2658_v39 = vpop.permute.xlu1 %2657 }
 0x368   : > { %v2656_v60 = vpop.permute.xlu0 %2655  ;;  %v2700_v15 = vadd.f32 %v2658_v39, %v5108_v49 }
 0x369   : > { %v2699_v23 = vadd.f32 %v2656_v60, %v5111_v56 }
 0x36b   : > { %v2662_v14 = vpop.permute.xlu1 %2661 }
 0x36c   : > { %v2660_v21 = vpop.permute.xlu0 %2659  ;;  %v2702_v26 = vadd.f32 %v2662_v14, %v5118_v17 }
 0x36d   : > { %v2701_v49 = vadd.f32 %v2660_v21, %v5121_v24 }
 0x36f   : > { %v2666_v12 = vpop.permute.xlu1 %2665 }
 0x370   : > { %v2664_v1 = vpop.permute.xlu0 %2663  ;;  %v2704_v18 = vadd.f32 %v2666_v12, %v5124_v11 }
 0x371   : > { %v2703_v17 = vadd.f32 %v2664_v1, %v5127_v10 }
 0x373   : > { %v2670_v62 = vpop.permute.xlu1 %2669 }
 0x374   : > { %v2668_v46 = vpop.permute.xlu0 %2667  ;;  %v2706_v11 = vadd.f32 %v2670_v62, %v5136_v37 }
 0x375   : > { %v2705_v10 = vadd.f32 %v2668_v46, %v5139_v20 }
 0x377   : > { %v5202_v25 = vpop.permute.xlu1 %2673 }
 0x378   : > { %v5204_v29 = vpop.permute.xlu0 %2671  ;;  %v2708_v55 = vadd.f32 %v5202_v25, %v5142_v52 }
 0x37b   : > { %v5206_v7 = vpop.permute.xlu1 %2677 }
 0x37c   : > { %v5208_v51 = vpop.permute.xlu0 %2675 }
 0x37d   : > { %v2709_v52 = vadd.f32 %v5208_v51, %v5165_v3 }
 0x37f   : > { %v2874_v28 = vpop.permute.xlu1 %2873 }
 0x380   : > { %v2872_v0 = vpop.permute.xlu0 %2871  ;;  %v5212_v36 = vadd.f32 %v2874_v28, %v2696_v44  ;;  %v2707_v44 = vadd.f32 %v5204_v29, %v5147_v41 }
 0x381   : > { %v5214_v43 = vadd.f32 %v2872_v0, %v2695_v34 }
 0x382   : > { %v2952_v22 = vmin.f32 %v5212_v36, 0.0  ;;  %vm2936_vm6 = vcmp.gt.f32.partialorder %v5212_v36, 0.0 }
 0x383   : > { %v2951_v38 = vmin.f32 %v5214_v43, 0.0  ;;  %v2878_v13 = vpop.permute.xlu1 %2877  ;;  %vm2935_vm7 = vcmp.gt.f32.partialorder %v5214_v43, 0.0 }
 0x384   : > { %v2876_v32 = vpop.permute.xlu0 %2875  ;;  %v2969_v2 = vmul.f32 1.442695, %v2952_v22  ;;  %v5220_v54 = vadd.f32 %v2878_v13, %v2698_v4  ;;  %v2710_v4 = vadd.f32 %v5206_v7, %v5162_v35 }
 0x385   : > { %v2967_v8 = vmul.f32 1.442695, %v2951_v38  ;;  %v5222_v53 = vadd.f32 %v2876_v32, %v2697_v50 }
 0x386   : > { %3608 = vpow2.f32 %v2969_v2  ;;  %v2954_v47 = vmin.f32 %v5220_v54, 0.0  ;;  %vm2938_vm8 = vcmp.gt.f32.partialorder %v5220_v54, 0.0 }
 0x387   : > { %3610 = vpow2.f32 %v2967_v8  ;;  %v2953_v59 = vmin.f32 %v5222_v53, 0.0  ;;  %v2882_v27 = vpop.permute.xlu1 %2881  ;;  %vm2937_vm9 = vcmp.gt.f32.partialorder %v5222_v53, 0.0 }
 0x388   : > { %v2880_v63 = vpop.permute.xlu0 %2879  ;;  %v2973_v30 = vmul.f32 1.442695, %v2954_v47  ;;  %v5228_v16 = vadd.f32 %v2882_v27, %v2700_v15 }
 0x389   : > { %v5230_v61 = vadd.f32 %v2880_v63, %v2699_v23  ;;  %v2971_v5 = vmul.f32 1.442695, %v2953_v59 }
 0x38a   : > { %3612 = vpow2.f32 %v2973_v30  ;;  %v2956_v56 = vmin.f32 %v5228_v16, 0.0  ;;  %vm2940_vm10 = vcmp.gt.f32.partialorder %v5228_v16, 0.0 }
 0x38b   : > { %3614 = vpow2.f32 %v2971_v5  ;;  %v2955_v9 = vmin.f32 %v5230_v61, 0.0  ;;  %vm2939_vm11 = vcmp.gt.f32.partialorder %v5230_v61, 0.0 }
 0x38c   : > { %v2977_v31 = vmul.f32 1.442695, %v2956_v56 }
 0x38d   : > { %v2886_v57 = vpop.permute.xlu1 %2885  ;;  %v2975_v33 = vmul.f32 1.442695, %v2955_v9 }
 0x38e   : > { %v2884_v48 = vpop.permute.xlu0 %2883  ;;  %v5236_v19 = vadd.f32 %v2886_v57, %v2702_v26  ;;  %3616 = vpow2.f32 %v2977_v31 }
 0x38f   : > { %v5238_v58 = vadd.f32 %v2884_v48, %v2701_v49  ;;  %3618 = vpow2.f32 %v2975_v33 }
 0x390   : > { %v2958_v24 = vmin.f32 %v5236_v19, 0.0  ;;  %vm2942_vm12 = vcmp.gt.f32.partialorder %v5236_v19, 0.0 }
 0x391   : > { %v2957_v40 = vmin.f32 %v5238_v58, 0.0  ;;  %v2890_v45 = vpop.permute.xlu1 %2889  ;;  %vm2941_vm13 = vcmp.gt.f32.partialorder %v5238_v58, 0.0 }
 0x392   : > { %v2888_v42 = vpop.permute.xlu0 %2887  ;;  %v2981_v39 = vmul.f32 1.442695, %v2958_v24  ;;  %v5244_v60 = vadd.f32 %v2890_v45, %v2704_v18 }
 0x393   : > { %v5246_v14 = vadd.f32 %v2888_v42, %v2703_v17  ;;  %v2979_v21 = vmul.f32 1.442695, %v2957_v40  ;;  %v3609_v1 = vpop.eup %3608 }
 0x394   : > { %3620 = vpow2.f32 %v2981_v39  ;;  %v2960_v12 = vmin.f32 %v5244_v60, 0.0  ;;  %v3611_v0 = vpop.eup %3610  ;;  %v3541_v37 = vadd.f32 -1.0, %v3609_v1  ;;  %vm2944_vm14 = vcmp.gt.f32.partialorder %v5244_v60, 0.0 }
 0x395   : > { %3622 = vpow2.f32 %v2979_v21  ;;  %v2959_v6 = vmin.f32 %v5246_v14, 0.0  ;;  %v2894_v34 = vpop.permute.xlu1 %2893  ;;  %v3540_v25 = vadd.f32 -1.0, %v3611_v0  ;;  %vm2943_vm15 = vcmp.gt.f32.partialorder %v5246_v14, 0.0 }
 0x396   : > { %v2892_v28 = vpop.permute.xlu0 %2891  ;;  %v2985_v62 = vmul.f32 1.442695, %v2960_v12  ;;  %v5257_v20 = vadd.f32 %v2894_v34, %v2706_v11  ;;  %v3016_v29 = vmul.f32 0.1, %v3541_v37 }
 0x397   : > { %v5259_v46 = vadd.f32 %v2892_v28, %v2705_v10  ;;  %v2983_v41 = vmul.f32 1.442695, %v2959_v6  ;;  %v3613_v22 = vpop.eup %3612  ;;  %v3015_v35 = vmul.f32 0.1, %v3540_v25 }
 0x398   : > { %3624 = vpow2.f32 %v2985_v62  ;;  %v2962_v50 = vmin.f32 %v5257_v20, 0.0  ;;  %v3615_v38 = vpop.eup %3614  ;;  %v5275_v13 = vsel %vm2936_vm6, %v5212_v36, %v3016_v29  ;;  %v3543_v32 = vadd.f32 -1.0, %v3613_v22 }
 0x399   : > { %3626 = vpow2.f32 %v2983_v41  ;;  %v2961_v3 = vmin.f32 %v5259_v46, 0.0  ;;  %v2898_v7 = vpop.permute.xlu1 %2897  ;;  %3049 = vst.msk [vmem:[%s5268_s16 + $0x8] sm:$0xff] %vm3047_vm5, %v5275_v13  ;;  %v5283_v15 = vsel %vm2935_vm7, %v5214_v43, %v3015_v35  ;;  %v3542_v23 = vadd.f32 -1.0, %v3615_v38 }
 0x39a   : > { %v2896_v51 = vpop.permute.xlu0 %2895  ;;  %v2989_v2 = vmul.f32 1.442695, %v2962_v50  ;;  %v5277_v8 = vadd.f32 %v2898_v7, %v2708_v55  ;;  %3048 = vst.msk [vmem:[%s5268_s16] sm:$0xff] %vm3047_vm5, %v5283_v15  ;;  %v3018_v36 = vmul.f32 0.1, %v3543_v32  ;;  %vm2946_vm1 = vcmp.gt.f32.partialorder %v5257_v20, 0.0 }
 0x39b   : > { %v2987_v47 = vmul.f32 1.442695, %v2961_v3  ;;  %v5285_v59 = vadd.f32 %v2896_v51, %v2707_v44  ;;  %v3617_v63 = vpop.eup %3616  ;;  %v3017_v43 = vmul.f32 0.1, %v3542_v23  ;;  %vm2945_vm2 = vcmp.gt.f32.partialorder %v5259_v46, 0.0 }
 0x39c   : > { %3628 = vpow2.f32 %v2989_v2  ;;  %v2964_v27 = vmin.f32 %v5277_v8, 0.0  ;;  %v3619_v49 = vpop.eup %3618  ;;  %v5295_v56 = vsel %vm2938_vm8, %v5220_v54, %v3018_v36  ;;  %v3545_v9 = vadd.f32 -1.0, %v3617_v63 }
 0x39d   : > { %3630 = vpow2.f32 %v2987_v47  ;;  %v2963_v30 = vmin.f32 %v5285_v59, 0.0  ;;  %v2902_v5 = vpop.permute.xlu1 %2901  ;;  %3051 = vst.msk [vmem:[%s5268_s16 + $0x18] sm:$0xff] %vm3047_vm5, %v5295_v56  ;;  %v5303_v31 = vsel %vm2937_vm9, %v5222_v53, %v3017_v43  ;;  %v3544_v33 = vadd.f32 -1.0, %v3619_v49 }
 0x39e   : > { %v2900_v26 = vpop.permute.xlu0 %2899  ;;  %v2993_v57 = vmul.f32 1.442695, %v2964_v27  ;;  %v5297_v48 = vadd.f32 %v2902_v5, %v2710_v4  ;;  %3050 = vst.msk [vmem:[%s5268_s16 + $0x10] sm:$0xff] %vm3047_vm5, %v5303_v31  ;;  %v3020_v54 = vmul.f32 0.1, %v3545_v9  ;;  %vm2948_vm3 = vcmp.gt.f32.partialorder %v5277_v8, 0.0 }
 0x39f   : > { %v2991_v18 = vmul.f32 1.442695, %v2963_v30  ;;  %v5305_v17 = vadd.f32 %v2900_v26, %v2709_v52  ;;  %v3019_v45 = vmul.f32 0.1, %v3544_v33  ;;  %vm2947_vm4 = vcmp.gt.f32.partialorder %v5285_v59, 0.0 }
 0x3a0   : > { %3632 = vpow2.f32 %v2993_v57  ;;  %v2966_v24 = vmin.f32 %v5297_v48, 0.0  ;;  %v5314_v39 = vsel %vm2940_vm10, %v5228_v16, %v3020_v54  ;;  %vm2950_vm6 = vcmp.gt.f32.partialorder %v5297_v48, 0.0 }
 0x3a1   : > { %v3621_v40 = vpop.eup %3620  ;;  %3634 = vpow2.f32 %v2991_v18  ;;  %v2965_v53 = vmin.f32 %v5305_v17, 0.0  ;;  %3053 = vst.msk [vmem:[%s5268_s16 + $0x28] sm:$0xff] %vm3047_vm5, %v5314_v39  ;;  %v5321_v10 = vsel %vm2939_vm11, %v5230_v61, %v3019_v45  ;;  %vm2949_vm7 = vcmp.gt.f32.partialorder %v5305_v17, 0.0 }
 0x3a2   : > { %v3623_v42 = vpop.eup %3622  ;;  %v3547_v21 = vadd.f32 -1.0, %v3621_v40  ;;  %v2997_v11 = vmul.f32 1.442695, %v2966_v24  ;;  %3052 = vst.msk [vmem:[%s5268_s16 + $0x20] sm:$0xff] %vm3047_vm5, %v5321_v10 }
 0x3a3   : > { %v3546_v12 = vadd.f32 -1.0, %v3623_v42  ;;  %v2995_v1 = vmul.f32 1.442695, %v2965_v53 }
 0x3a4   : > { %v3022_v55 = vmul.f32 0.1, %v3547_v21  ;;  %3636 = vpow2.f32 %v2997_v11 }
 0x3a5   : > { %v3625_v16 = vpop.eup %3624  ;;  %v3021_v44 = vmul.f32 0.1, %v3546_v12  ;;  %3638 = vpow2.f32 %v2995_v1 }
 0x3a6   : > { %v3627_v6 = vpop.eup %3626  ;;  %v5328_v34 = vsel %vm2942_vm12, %v5236_v19, %v3022_v55  ;;  %v3549_v61 = vadd.f32 -1.0, %v3625_v16 }
 0x3a7   : > { %3055 = vst.msk [vmem:[%s5268_s16 + $0x38] sm:$0xff] %vm3047_vm5, %v5328_v34  ;;  %v5335_v28 = vsel %vm2941_vm13, %v5238_v58, %v3021_v44  ;;  %v3548_v0 = vadd.f32 -1.0, %v3627_v6 }
 0x3a8   : > { %3054 = vst.msk [vmem:[%s5268_s16 + $0x30] sm:$0xff] %vm3047_vm5, %v5335_v28  ;;  %v3024_v37 = vmul.f32 0.1, %v3549_v61 }
 0x3a9   : > { %v3629_v62 = vpop.eup %3628  ;;  %v3023_v19 = vmul.f32 0.1, %v3548_v0 }
 0x3aa   : > { %v3631_v4 = vpop.eup %3630  ;;  %v5342_v52 = vsel %vm2944_vm14, %v5244_v60, %v3024_v37  ;;  %v3551_v25 = vadd.f32 -1.0, %v3629_v62 }
 0x3ab   : > { %3057 = vst.msk [vmem:[%s5268_s16 + $0x48] sm:$0xff] %vm3047_vm5, %v5342_v52  ;;  %v5349_v58 = vsel %vm2943_vm15, %v5246_v14, %v3023_v19  ;;  %v3550_v41 = vadd.f32 -1.0, %v3631_v4 }
 0x3ac   : > { %3056 = vst.msk [vmem:[%s5268_s16 + $0x40] sm:$0xff] %vm3047_vm5, %v5349_v58  ;;  %v3026_v29 = vmul.f32 0.1, %v3551_v25 }
 0x3ad   : > { %v3633_v50 = vpop.eup %3632  ;;  %v3025_v60 = vmul.f32 0.1, %v3550_v41 }
 0x3ae   : > { %v3635_v22 = vpop.eup %3634  ;;  %v5356_v35 = vsel %vm2946_vm1, %v5257_v20, %v3026_v29  ;;  %v3553_v3 = vadd.f32 -1.0, %v3633_v50 }
 0x3af   : > { %3059 = vst.msk [vmem:[%s5268_s16 + $0x58] sm:$0xff] %vm3047_vm5, %v5356_v35  ;;  %v5363_v14 = vsel %vm2945_vm2, %v5259_v46, %v3025_v60  ;;  %v3552_v7 = vadd.f32 -1.0, %v3635_v22 }
 0x3b0   : > { %3058 = vst.msk [vmem:[%s5268_s16 + $0x50] sm:$0xff] %vm3047_vm5, %v5363_v14  ;;  %v3028_v51 = vmul.f32 0.1, %v3553_v3 }
 0x3b1   : > { %v3637_v38 = vpop.eup %3636  ;;  %v3027_v20 = vmul.f32 0.1, %v3552_v7 }
 0x3b2   : > { %v3639_v32 = vpop.eup %3638  ;;  %v5370_v2 = vsel %vm2948_vm3, %v5277_v8, %v3028_v51  ;;  %v3555_v23 = vadd.f32 -1.0, %v3637_v38 }
 0x3b3   : > { %3061 = vst.msk [vmem:[%s5268_s16 + $0x68] sm:$0xff] %vm3047_vm5, %v5370_v2  ;;  %v5377_v46 = vsel %vm2947_vm4, %v5285_v59, %v3027_v20  ;;  %v3554_v47 = vadd.f32 -1.0, %v3639_v32 }
 0x3b4   : > { %3060 = vst.msk [vmem:[%s5268_s16 + $0x60] sm:$0xff] %vm3047_vm5, %v5377_v46  ;;  %v3030_v36 = vmul.f32 0.1, %v3555_v23  ;;  %3067 = sbr.rel (%p3556_p4) target bundleno = 958 (0x3be), region = 44 }
 0x3b5   : > { %v3029_v27 = vmul.f32 0.1, %v3554_v47 }
 0x3b6   : > { %v5384_v8 = vsel %vm2950_vm6, %v5297_v48, %v3030_v36 }
 0x3b7   : > { %3063 = vst.msk [vmem:[%s5268_s16 + $0x78] sm:$0xff] %vm3047_vm5, %v5384_v8  ;;  %v5391_v63 = vsel %vm2949_vm7, %v5305_v17, %v3029_v27 }
 0x3b8   : > { %3062 = vst.msk [vmem:[%s5268_s16 + $0x70] sm:$0xff] %vm3047_vm5, %v5391_v63 }
 0x3b9   : > { %vm3068_vm8 = vcmask 8192   ;;  %v3652_v59 = vmov 0.0  }
 0x3ba   : > { %3069 = vst.msk [vmem:[%s5574_s6] sm:$0x1] %vm3068_vm8, %v3652_v59  ;;  %3070 = vst.msk [vmem:[%s5574_s6 + $0x1] sm:$0x1] %vm3068_vm8, %v3652_v59 }
 0x3bb   : > { %3071 = vst.msk [vmem:[%s5574_s6 + $0x2] sm:$0x1] %vm3068_vm8, %v3652_v59  ;;  %3072 = vst.msk [vmem:[%s5574_s6 + $0x3] sm:$0x1] %vm3068_vm8, %v3652_v59 }
 0x3bc   : > { %3073 = vst.msk [vmem:[%s5574_s6 + $0x4] sm:$0x1] %vm3068_vm8, %v3652_v59  ;;  %3074 = vst.msk [vmem:[%s5574_s6 + $0x5] sm:$0x1] %vm3068_vm8, %v3652_v59 }
 0x3bd   : > { %3075 = vst.msk [vmem:[%s5574_s6 + $0x6] sm:$0x1] %vm3068_vm8, %v3652_v59  ;;  %3076 = vst.msk [vmem:[%s5574_s6 + $0x7] sm:$0x1] %vm3068_vm8, %v3652_v59 }
 0x3be PF: > { %v3083_v43 = vsel %vm3047_vm5, %v5303_v31, 0.0  ;;  %v3077_v30 = vsel %vm3047_vm5, %v5283_v15, 0.0  ;;  %v3086_v5 = vsel %vm3047_vm5, %v5295_v56, 0.0  ;;  %v3080_v26 = vsel %vm3047_vm5, %v5275_v13, 0.0 }
 0x3bf   : > { %3084 = vadd.xlane.f32.xlu1 %v3083_v43  ;;  %3078 = vadd.xlane.f32.xlu0 %v3077_v30  ;;  %v3092_v49 = vsel %vm3047_vm5, %v5314_v39, 0.0  ;;  %v3089_v9 = vsel %vm3047_vm5, %v5321_v10, 0.0  ;;  %v3098_v57 = vsel %vm3047_vm5, %v5328_v34, 0.0  ;;  %v3095_v48 = vsel %vm3047_vm5, %v5335_v28, 0.0 }
 0x3c0   : > { %v3104_v33 = vsel %vm3047_vm5, %v5342_v52, 0.0  ;;  %v3101_v18 = vsel %vm3047_vm5, %v5349_v58, 0.0  ;;  %v3110_v17 = vsel %vm3047_vm5, %v5356_v35, 0.0  ;;  %v3107_v54 = vsel %vm3047_vm5, %v5363_v14, 0.0 }
 0x3c1   : > { %v3116_v24 = vsel %vm3047_vm5, %v5370_v2, 0.0  ;;  %v3113_v40 = vsel %vm3047_vm5, %v5377_v46, 0.0  ;;  %v3122_v45 = vsel %vm3047_vm5, %v5384_v8, 0.0  ;;  %v3119_v53 = vsel %vm3047_vm5, %v5391_v63, 0.0 }
 0x3c2   : > { %v3182_v42 = vmul.f32 %v5275_v13, %v5275_v13  ;;  %v3181_v21 = vmul.f32 %v5283_v15, %v5283_v15  ;;  %v3184_v1 = vmul.f32 %v5295_v56, %v5295_v56  ;;  %v3183_v55 = vmul.f32 %v5303_v31, %v5303_v31 }
 0x3c3   : > { %3087 = vadd.xlane.f32.xlu1 %v3086_v5  ;;  %3081 = vadd.xlane.f32.xlu0 %v3080_v26  ;;  %v3186_v15 = vmul.f32 %v5314_v39, %v5314_v39  ;;  %v3185_v44 = vmul.f32 %v5321_v10, %v5321_v10  ;;  %v3188_v31 = vmul.f32 %v5328_v34, %v5328_v34 }
 0x3c4   : > { %v3200_v11 = vsel %vm3047_vm5, %v3182_v42, 0.0  ;;  %v3197_v12 = vsel %vm3047_vm5, %v3181_v21, 0.0  ;;  %v3206_v16 = vsel %vm3047_vm5, %v3184_v1, 0.0  ;;  %v3203_v13 = vsel %vm3047_vm5, %v3183_v55, 0.0 }
 0x3c5   : > { %v3212_v6 = vsel %vm3047_vm5, %v3186_v15, 0.0  ;;  %v3209_v56 = vsel %vm3047_vm5, %v3185_v44, 0.0  ;;  %v3187_v61 = vmul.f32 %v5335_v28, %v5335_v28  ;;  %v3218_v0 = vsel %vm3047_vm5, %v3188_v31, 0.0 }
 0x3c6   : > { %v3190_v10 = vmul.f32 %v5342_v52, %v5342_v52  ;;  %v3189_v37 = vmul.f32 %v5349_v58, %v5349_v58  ;;  %v3192_v28 = vmul.f32 %v5356_v35, %v5356_v35  ;;  %v3191_v19 = vmul.f32 %v5363_v14, %v5363_v14 }
 0x3c7   : > { %3093 = vadd.xlane.f32.xlu1 %v3092_v49  ;;  %3090 = vadd.xlane.f32.xlu0 %v3089_v9  ;;  %v3215_v39 = vsel %vm3047_vm5, %v3187_v61, 0.0  ;;  %v3194_v25 = vmul.f32 %v5370_v2, %v5370_v2  ;;  %v3193_v58 = vmul.f32 %v5377_v46, %v5377_v46  ;;  %v3196_v50 = vmul.f32 %v5384_v8, %v5384_v8 }
 0x3c8   : > { %v3224_v62 = vsel %vm3047_vm5, %v3190_v10, 0.0  ;;  %v3221_v34 = vsel %vm3047_vm5, %v3189_v37, 0.0  ;;  %v3230_v4 = vsel %vm3047_vm5, %v3192_v28, 0.0  ;;  %v3227_v52 = vsel %vm3047_vm5, %v3191_v19, 0.0 }
 0x3c9   : > { %v3236_v41 = vsel %vm3047_vm5, %v3194_v25, 0.0  ;;  %v3233_v29 = vsel %vm3047_vm5, %v3193_v58, 0.0  ;;  %v3195_v60 = vmul.f32 %v5391_v63, %v5391_v63  ;;  %v3242_v22 = vsel %vm3047_vm5, %v3196_v50, 0.0 }
 0x3cb   : > { %3099 = vadd.xlane.f32.xlu1 %v3098_v57  ;;  %3096 = vadd.xlane.f32.xlu0 %v3095_v48  ;;  %v3239_v35 = vsel %vm3047_vm5, %v3195_v60, 0.0  ;;  %vm3325_vm5 = vcmask 8192  }
 0x3cf   : > { %3105 = vadd.xlane.f32.xlu1 %v3104_v33  ;;  %3102 = vadd.xlane.f32.xlu0 %v3101_v18 }
 0x3d3   : > { %3111 = vadd.xlane.f32.xlu1 %v3110_v17  ;;  %3108 = vadd.xlane.f32.xlu0 %v3107_v54 }
 0x3d7   : > { %3117 = vadd.xlane.f32.xlu1 %v3116_v24  ;;  %3114 = vadd.xlane.f32.xlu0 %v3113_v40 }
 0x3db   : > { %3123 = vadd.xlane.f32.xlu1 %v3122_v45  ;;  %3120 = vadd.xlane.f32.xlu0 %v3119_v53 }
 0x3df   : > { %3201 = vadd.xlane.f32.xlu1 %v3200_v11  ;;  %3198 = vadd.xlane.f32.xlu0 %v3197_v12 }
 0x3e3   : > { %3207 = vadd.xlane.f32.xlu1 %v3206_v16  ;;  %3204 = vadd.xlane.f32.xlu0 %v3203_v13 }
 0x3e7   : > { %3213 = vadd.xlane.f32.xlu1 %v3212_v6  ;;  %3210 = vadd.xlane.f32.xlu0 %v3209_v56 }
 0x3eb   : > { %3219 = vadd.xlane.f32.xlu1 %v3218_v0  ;;  %3216 = vadd.xlane.f32.xlu0 %v3215_v39 }
 0x3ef   : > { %3225 = vadd.xlane.f32.xlu1 %v3224_v62  ;;  %3222 = vadd.xlane.f32.xlu0 %v3221_v34 }
 0x3f3   : > { %3231 = vadd.xlane.f32.xlu1 %v3230_v4  ;;  %3228 = vadd.xlane.f32.xlu0 %v3227_v52 }
 0x3f7   : > { %3237 = vadd.xlane.f32.xlu1 %v3236_v41  ;;  %3234 = vadd.xlane.f32.xlu0 %v3233_v29 }
 0x3fb   : > { %3243 = vadd.xlane.f32.xlu1 %v3242_v22  ;;  %3240 = vadd.xlane.f32.xlu0 %v3239_v35 }
 0x448   : > { %v3085_v3 = vpop.xlane.xlu1 %3084  ;;  %v3079_v14 = vpop.xlane.xlu0 %3078 }
 0x44c   : > { %v3088_v7 = vpop.xlane.xlu1 %3087  ;;  %v3082_v51 = vpop.xlane.xlu0 %3081 }
 0x44d   : > { %v3125_v47 = vadd.f32 %v3082_v51, %v3079_v14  ;;  %v3132_v8 = vadd.f32 %v3088_v7, %v3085_v3  ;;  %v3301_v3 = vld [vmem:[%s5574_s6] sm:$0x1] }
 0x44f   : > { %v3126_v63 = vrot.slane %v3125_v47, 4  ;;  %v3133_v30 = vrot.slane %v3132_v8, 4 }
 0x450   : > { %v3094_v38 = vpop.xlane.xlu1 %3093  ;;  %v3091_v20 = vpop.xlane.xlu0 %3090 }
 0x451   : > { %v3139_v5 = vadd.f32 %v3094_v38, %v3091_v20  ;;  %v3127_v26 = vadd.f32 %v3126_v63, %v3125_v47  ;;  %v3134_v57 = vadd.f32 %v3133_v30, %v3132_v8 }
 0x453   : > { %v3140_v48 = vrot.slane %v3139_v5, 4  ;;  %v3128_v18 = vrot.slane %v3127_v26, 2  ;;  %v3135_v40 = vrot.slane %v3134_v57, 2 }
 0x454   : > { %v3100_v32 = vpop.xlane.xlu1 %3099  ;;  %v3097_v2 = vpop.xlane.xlu0 %3096 }
 0x455   : > { %v3146_v33 = vadd.f32 %v3100_v32, %v3097_v2  ;;  %v3141_v45 = vadd.f32 %v3140_v48, %v3139_v5  ;;  %v3129_v11 = vadd.f32 %v3128_v18, %v3127_v26  ;;  %v3136_v13 = vadd.f32 %v3135_v40, %v3134_v57  ;;  %v3302_v26 = vld [vmem:[%s5574_s6 + $0x1] sm:$0x1] }
 0x457   : > { %v3147_v53 = vrot.slane %v3146_v33, 4  ;;  %v3142_v15 = vrot.slane %v3141_v45, 2  ;;  %v3130_v61 = vrot.slane %v3129_v11, 1  ;;  %v3137_v28 = vrot.slane %v3136_v13, 1 }
 0x458   : > { %v3106_v23 = vpop.xlane.xlu1 %3105  ;;  %v3103_v46 = vpop.xlane.xlu0 %3102 }
 0x459   : > { %v3153_v42 = vadd.f32 %v3106_v23, %v3103_v46  ;;  %v3148_v44 = vadd.f32 %v3147_v53, %v3146_v33  ;;  %v3143_v19 = vadd.f32 %v3142_v15, %v3141_v45  ;;  %v3131_v29 = vadd.f32 %v3130_v61, %v3129_v11 }
 0x45a   : > { %v3138_v20 = vadd.f32 %v3137_v28, %v3136_v13 }
 0x45b   : > { %v3154_v6 = vrot.slane %v3153_v42, 4  ;;  %v3149_v4 = vrot.slane %v3148_v44, 2  ;;  %v3144_v32 = vrot.slane %v3143_v19, 1 }
 0x45c   : > { %v3112_v36 = vpop.xlane.xlu1 %3111  ;;  %v3109_v27 = vpop.xlane.xlu0 %3108 }
 0x45d   : > { %v3160_v0 = vadd.f32 %v3112_v36, %v3109_v27  ;;  %v3155_v52 = vadd.f32 %v3154_v6, %v3153_v42  ;;  %v3150_v2 = vadd.f32 %v3149_v4, %v3148_v44  ;;  %v3304_v4 = vld [vmem:[%s5574_s6 + $0x3] sm:$0x1] }
 0x45f   : > { %v3161_v50 = vrot.slane %v3160_v0, 4  ;;  %v3156_v23 = vrot.slane %v3155_v52, 2 }
 0x460   : > { %v3118_v59 = vpop.xlane.xlu1 %3117  ;;  %v3115_v43 = vpop.xlane.xlu0 %3114 }
 0x461   : > { %v3167_v60 = vadd.f32 %v3118_v59, %v3115_v43  ;;  %v3162_v8 = vadd.f32 %v3161_v50, %v3160_v0 }
 0x463   : > { %v3168_v63 = vrot.slane %v3167_v60, 4  ;;  %v3163_v53 = vrot.slane %v3162_v8, 2 }
 0x464   : > { %v3124_v49 = vpop.xlane.xlu1 %3123  ;;  %v3121_v9 = vpop.xlane.xlu0 %3120 }
 0x465   : > { %v3174_v59 = vadd.f32 %v3124_v49, %v3121_v9  ;;  %v3169_v42 = vadd.f32 %v3168_v63, %v3167_v60 }
 0x468   : > { %v3202_v17 = vpop.xlane.xlu1 %3201  ;;  %v3199_v54 = vpop.xlane.xlu0 %3198 }
 0x469   : > { %v3245_v24 = vadd.f32 %v3202_v17, %v3199_v54  ;;  %v3145_v17 = vadd.f32 %v3144_v32, %v3143_v19  ;;  %v3151_v54 = vrot.slane %v3150_v2, 1  ;;  %v3305_v32 = vld [vmem:[%s5574_s6 + $0x4] sm:$0x1] }
 0x46b   : > { %v3246_v21 = vrot.slane %v3245_v24, 4  ;;  %v3152_v6 = vadd.f32 %v3151_v54, %v3150_v2 }
 0x46c   : > { %v3208_v12 = vpop.xlane.xlu1 %3207  ;;  %v3205_v1 = vpop.xlane.xlu0 %3204 }
 0x46d   : > { %v3247_v55 = vadd.f32 %v3246_v21, %v3245_v24  ;;  %v3252_v16 = vadd.f32 %v3208_v12, %v3205_v1  ;;  %v3157_v24 = vadd.f32 %v3156_v23, %v3155_v52  ;;  %v3175_v21 = vrot.slane %v3174_v59, 4 }
 0x46f   : > { %v3248_v56 = vrot.slane %v3247_v55, 2  ;;  %v3253_v31 = vrot.slane %v3252_v16, 4 }
 0x470   : > { %v3214_v39 = vpop.xlane.xlu1 %3213  ;;  %v3211_v10 = vpop.xlane.xlu0 %3210 }
 0x471   : > { %v3249_v37 = vadd.f32 %v3248_v56, %v3247_v55  ;;  %v3254_v62 = vadd.f32 %v3253_v31, %v3252_v16  ;;  %v3259_v34 = vadd.f32 %v3214_v39, %v3211_v10  ;;  %v3303_v55 = vld [vmem:[%s5574_s6 + $0x2] sm:$0x1]  ;;  %v3158_v56 = vrot.slane %v3157_v24, 1 }
 0x472   : > { %v3164_v10 = vadd.f32 %v3163_v53, %v3162_v8 }
 0x473   : > { %v3250_v25 = vrot.slane %v3249_v37, 1  ;;  %v3255_v58 = vrot.slane %v3254_v62, 2  ;;  %v3260_v41 = vrot.slane %v3259_v34, 4 }
 0x474   : > { %v3220_v22 = vpop.xlane.xlu1 %3219  ;;  %v3217_v35 = vpop.xlane.xlu0 %3216 }
 0x475   : > { %v3251_v14 = vadd.f32 %v3250_v25, %v3249_v37  ;;  %v3256_v7 = vadd.f32 %v3255_v58, %v3254_v62  ;;  %v3261_v51 = vadd.f32 %v3260_v41, %v3259_v34  ;;  %v3266_v38 = vadd.f32 %v3220_v22, %v3217_v35 }
 0x476   : > { %v3170_v37 = vrot.slane %v3169_v42, 2  ;;  %v3176_v62 = vadd.f32 %v3175_v21, %v3174_v59 }
 0x477   : > { %v3309_v46 = vsel %vm946_vm0, %v3131_v29, %v3251_v14  ;;  %v3257_v47 = vrot.slane %v3256_v7, 1  ;;  %v3262_v36 = vrot.slane %v3261_v51, 2  ;;  %v3267_v27 = vrot.slane %v3266_v38, 4 }
 0x478   : > { %v3317_v43 = vadd.f32 %v3309_v46, %v3301_v3  ;;  %v3226_v30 = vpop.xlane.xlu1 %3225  ;;  %v3223_v5 = vpop.xlane.xlu0 %3222  ;;  %v3159_v29 = vadd.f32 %v3158_v56, %v3157_v24  ;;  %v3165_v3 = vrot.slane %v3164_v10, 1  ;;  %v3171_v14 = vadd.f32 %v3170_v37, %v3169_v42 }
 0x479   : > { %v3258_v57 = vadd.f32 %v3257_v47, %v3256_v7  ;;  %v3263_v48 = vadd.f32 %v3262_v36, %v3261_v51  ;;  %v3268_v33 = vadd.f32 %v3267_v27, %v3266_v38  ;;  %v3273_v18 = vadd.f32 %v3226_v30, %v3223_v5 }
 0x47a   : > { %3326 = vst.msk [vmem:[%s5574_s6] sm:$0x1] %vm3325_vm5, %v3317_v43  ;;  %v3177_v7 = vrot.slane %v3176_v62, 2  ;;  %v3166_v59 = vadd.f32 %v3165_v3, %v3164_v10  ;;  %v3172_v43 = vrot.slane %v3171_v14, 1 }
 0x47b   : > { %v3310_v49 = vsel %vm946_vm0, %v3138_v20, %v3258_v57  ;;  %v3264_v9 = vrot.slane %v3263_v48, 1  ;;  %v3269_v40 = vrot.slane %v3268_v33, 2  ;;  %v3274_v45 = vrot.slane %v3273_v18, 4 }
 0x47c   : > { %v3318_v11 = vadd.f32 %v3310_v49, %v3302_v26  ;;  %v3232_v12 = vpop.xlane.xlu1 %3231  ;;  %v3229_v1 = vpop.xlane.xlu0 %3228  ;;  %v3178_v5 = vadd.f32 %v3177_v7, %v3176_v62  ;;  %v3306_v26 = vld [vmem:[%s5574_s6 + $0x5] sm:$0x1]  ;;  %v3173_v49 = vadd.f32 %v3172_v43, %v3171_v14 }
 0x47d   : > { %v3265_v16 = vadd.f32 %v3264_v9, %v3263_v48  ;;  %v3270_v13 = vadd.f32 %v3269_v40, %v3268_v33  ;;  %v3275_v15 = vadd.f32 %v3274_v45, %v3273_v18  ;;  %v3280_v44 = vadd.f32 %v3232_v12, %v3229_v1  ;;  %v3307_v40 = vld [vmem:[%s5574_s6 + $0x6] sm:$0x1]  ;;  %v3308_v1 = vld [vmem:[%s5574_s6 + $0x7] sm:$0x1] }
 0x47e   : > { %3327 = vst.msk [vmem:[%s5574_s6 + $0x1] sm:$0x1] %vm3325_vm5, %v3318_v11  ;;  %v3179_v9 = vrot.slane %v3178_v5, 1 }
 0x47f   : > { %v3311_v31 = vsel %vm946_vm0, %v3145_v17, %v3265_v16  ;;  %v3271_v61 = vrot.slane %v3270_v13, 1  ;;  %v3276_v0 = vrot.slane %v3275_v15, 2  ;;  %v3281_v39 = vrot.slane %v3280_v44, 4 }
 0x480   : > { %v3319_v34 = vadd.f32 %v3311_v31, %v3303_v55  ;;  %v3238_v28 = vpop.xlane.xlu1 %3237  ;;  %v3235_v19 = vpop.xlane.xlu0 %3234  ;;  %v3180_v12 = vadd.f32 %v3179_v9, %v3178_v5 }
 0x481   : > { %v3272_v52 = vadd.f32 %v3271_v61, %v3270_v13  ;;  %v3277_v25 = vadd.f32 %v3276_v0, %v3275_v15  ;;  %v3282_v58 = vadd.f32 %v3281_v39, %v3280_v44  ;;  %v3287_v41 = vadd.f32 %v3238_v28, %v3235_v19 }
 0x482   : > { %3328 = vst.msk [vmem:[%s5574_s6 + $0x2] sm:$0x1] %vm3325_vm5, %v3319_v34 }
 0x483   : > { %v3312_v50 = vsel %vm946_vm0, %v3152_v6, %v3272_v52  ;;  %v3278_v60 = vrot.slane %v3277_v25, 1  ;;  %v3283_v22 = vrot.slane %v3282_v58, 2  ;;  %v3288_v35 = vrot.slane %v3287_v41, 4 }
 0x484   : > { %v3320_v51 = vadd.f32 %v3312_v50, %v3304_v4  ;;  %v3244_v38 = vpop.xlane.xlu1 %3243  ;;  %v3241_v20 = vpop.xlane.xlu0 %3240 }
 0x485   : > { %v3279_v2 = vadd.f32 %v3278_v60, %v3277_v25  ;;  %v3284_v23 = vadd.f32 %v3283_v22, %v3282_v58  ;;  %v3289_v46 = vadd.f32 %v3288_v35, %v3287_v41  ;;  %v3294_v47 = vadd.f32 %v3244_v38, %v3241_v20 }
 0x486   : > { %3329 = vst.msk [vmem:[%s5574_s6 + $0x3] sm:$0x1] %vm3325_vm5, %v3320_v51 }
 0x487   : > { %v3313_v36 = vsel %vm946_vm0, %v3159_v29, %v3279_v2  ;;  %v3285_v27 = vrot.slane %v3284_v23, 1  ;;  %v3290_v8 = vrot.slane %v3289_v46, 2  ;;  %v3295_v63 = vrot.slane %v3294_v47, 4 }
 0x488   : > { %v3321_v30 = vadd.f32 %v3313_v36, %v3305_v32 }
 0x489   : > { %v3286_v57 = vadd.f32 %v3285_v27, %v3284_v23  ;;  %v3291_v48 = vadd.f32 %v3290_v8, %v3289_v46  ;;  %v3296_v33 = vadd.f32 %v3295_v63, %v3294_v47 }
 0x48a   : > { %3330 = vst.msk [vmem:[%s5574_s6 + $0x4] sm:$0x1] %vm3325_vm5, %v3321_v30 }
 0x48b   : > { %v3314_v18 = vsel %vm946_vm0, %v3166_v59, %v3286_v57  ;;  %v3292_v17 = vrot.slane %v3291_v48, 1  ;;  %v3297_v54 = vrot.slane %v3296_v33, 2 }
 0x48c   : > { %v3322_v24 = vadd.f32 %v3314_v18, %v3306_v26 }
 0x48d   : > { %v3293_v45 = vadd.f32 %v3292_v17, %v3291_v48  ;;  %v3298_v53 = vadd.f32 %v3297_v54, %v3296_v33 }
 0x48e   : > { %3331 = vst.msk [vmem:[%s5574_s6 + $0x5] sm:$0x1] %vm3325_vm5, %v3322_v24 }
 0x48f   : > { %v3315_v42 = vsel %vm946_vm0, %v3173_v49, %v3293_v45  ;;  %v3299_v21 = vrot.slane %v3298_v53, 1 }
 0x490   : > { %v3323_v11 = vadd.f32 %v3315_v42, %v3307_v40 }
 0x491   : > { %v3300_v55 = vadd.f32 %v3299_v21, %v3298_v53 }
 0x492   : > { %3332 = vst.msk [vmem:[%s5574_s6 + $0x6] sm:$0x1] %vm3325_vm5, %v3323_v11 }
 0x493   : > { %v3316_v16 = vsel %vm946_vm0, %v3180_v12, %v3300_v55 }
 0x494   : > { %v3324_v13 = vadd.f32 %v3316_v16, %v3308_v1 }
 0x496   : > { %3333 = vst.msk [vmem:[%s5574_s6 + $0x7] sm:$0x1] %vm3325_vm5, %v3324_v13 }
 0x497 PF: > { %s17_s21 = sadd.s32 1, %s3646_s21  }
 0x498   : > { %p14_p5 = scmp.ge.s32.totalorder %s17_s21, 4  }
 0x49a   :  { %16 = sbr.rel (!%p14_p5) target bundleno = 1 (0x1), region = 82 }

</bundles_post_ra>
